<compile_context>
chip_gen: v7x
topology: tpu7x:2x2x1
jax: 0.10.0
libtpu: 0.0.40
codegen_flags: <defaults>
</compile_context>

<pallas_src>
import functools

import jax
import jax.numpy as jnp
from jax.experimental import pallas as pl
from jax.experimental.pallas import tpu as pltpu


def _basic_block_kernel(x_ref, w1_ref, s1_ref, b1_ref, w2_ref, s2_ref, b2_ref,
                        mask_ref, out_ref, mid_ref, *, H, W, ext):
    """One image per grid step.

    x_ref   : (1, R_ext, Cin)  zero-padded, row-extended, spatially-flattened input
    w1_ref  : (9, Cin, C)      conv1 weights, one (Cin, C) matrix per 3x3 tap
    s1_ref  : (1, C)  b1_ref: (1, C)   folded bn1 scale / shift
    w2_ref  : (9, C, C)        conv2 weights
    s2_ref  : (1, C)  b2_ref: (1, C)   folded bn2 scale / shift
    mask_ref: (R, 1)           1.0 on interior pixels of the padded grid
    out_ref : (1, R, C)        output on the padded grid (interior rows valid)
    mid_ref : (R_ext, C)       VMEM scratch for the extended intermediate
    """
    Hp, Wp = H + 2, W + 2
    R = Hp * Wp
    taps = [(dy, dx) for dy in (-1, 0, 1) for dx in (-1, 0, 1)]

    x_ext = x_ref[0]                                    # (R_ext, Cin)
    mask = mask_ref[...]                                # (R, 1)

    # ---- conv1: 9 shifted row-slices, each a (R, Cin) @ (Cin, C) matmul -----
    acc = None
    for k, (dy, dx) in enumerate(taps):
        off = ext + dy * Wp + dx                        # static python int
        patch = x_ext[off:off + R, :]                   # (R, Cin)
        prod = jnp.dot(patch, w1_ref[k], preferred_element_type=jnp.float32)
        acc = prod if acc is None else acc + prod

    # bn1 (folded) + relu; zero the halo ring so conv2 sees true zero padding.
    y = jnp.maximum(acc * s1_ref[...] + b1_ref[...], 0.0) * mask   # (R, C)

    # Stage the intermediate in the extended scratch layout (zero borders so
    # the shifted tap slices of conv2 read zeros outside the padded grid).
    mid_ref[...] = jnp.zeros_like(mid_ref)
    mid_ref[ext:ext + R, :] = y
    mid = mid_ref[...]

    # ---- conv2 ---------------------------------------------------------------
    acc2 = None
    for k, (dy, dx) in enumerate(taps):
        off = ext + dy * Wp + dx
        patch = mid[off:off + R, :]
        prod = jnp.dot(patch, w2_ref[k], preferred_element_type=jnp.float32)
        acc2 = prod if acc2 is None else acc2 + prod

    y2 = acc2 * s2_ref[...] + b2_ref[...]

    # Residual add (the centre block of x_ext is the zero-padded input itself)
    # and final relu.  Halo rows carry garbage but are never read back.
    residual = x_ext[ext:ext + R, :]
    out_ref[0] = jnp.maximum(y2 + residual, 0.0)


def _fold_bn(gamma, beta, mean, var, eps):
    scale = gamma / jnp.sqrt(var + eps)
    shift = beta - mean * scale
    return scale.reshape(1, -1).astype(jnp.float32), shift.reshape(1, -1).astype(jnp.float32)


@jax.jit
def basic_block(x, w1, g1, be1, rm1, rv1, w2, g2, be2, rm2, rv2):
    """x: (N, C, H, W) NCHW f32.  w*: (C, C, 3, 3) PyTorch conv weights.
    g/be/rm/rv: BatchNorm weight / bias / running_mean / running_var, shape (C,)."""
    eps = 1e-5
    N, Cin, H, W = x.shape
    C = w1.shape[0]
    assert Cin == C, "stride=1 / downsample=None path requires inplanes == planes"

    Hp, Wp = H + 2, W + 2
    R = Hp * Wp
    ext = ((Wp + 1 + 7) // 8) * 8        # row extension so every tap slice is in-bounds
    R_ext = R + 2 * ext

    # NCHW -> NHWC, zero-pad the spatial halo, flatten spatial, extend rows.
    x_nhwc = jnp.transpose(x, (0, 2, 3, 1)).astype(jnp.float32)
    x_pad = jnp.pad(x_nhwc, ((0, 0), (1, 1), (1, 1), (0, 0)))
    x_ext = jnp.pad(x_pad.reshape(N, R, Cin), ((0, 0), (ext, ext), (0, 0)))

    # (Cout, Cin, 3, 3) -> (9, Cin, Cout): one matrix per tap, k = ky*3 + kx.
    w1m = jnp.transpose(w1, (2, 3, 1, 0)).reshape(9, Cin, C).astype(jnp.float32)
    w2m = jnp.transpose(w2, (2, 3, 1, 0)).reshape(9, C, C).astype(jnp.float32)

    s1, b1 = _fold_bn(g1, be1, rm1, rv1, eps)
    s2, b2 = _fold_bn(g2, be2, rm2, rv2, eps)

    # Interior mask on the flattened padded grid.
    hh = jnp.arange(Hp)
    ww = jnp.arange(Wp)
    mask = ((hh >= 1) & (hh <= H))[:, None] & ((ww >= 1) & (ww <= W))[None, :]
    mask = mask.astype(jnp.float32).reshape(R, 1)

    kernel = functools.partial(_basic_block_kernel, H=H, W=W, ext=ext)

    flops = 2 * 2 * 9 * N * R * Cin * C                 # two 3x3 convs
    bytes_accessed = 4 * (N * R_ext * Cin + N * R * C + 18 * Cin * C + 4 * C + R)

    out_pad = pl.pallas_call(
        kernel,
        out_shape=jax.ShapeDtypeStruct((N, R, C), jnp.float32),
        grid_spec=pltpu.PrefetchScalarGridSpec(
            num_scalar_prefetch=0,
            grid=(N,),
            in_specs=[
                pl.BlockSpec((1, R_ext, Cin), lambda n: (n, 0, 0)),
                pl.BlockSpec((9, Cin, C), lambda n: (0, 0, 0)),
                pl.BlockSpec((1, C), lambda n: (0, 0)),
                pl.BlockSpec((1, C), lambda n: (0, 0)),
                pl.BlockSpec((9, C, C), lambda n: (0, 0, 0)),
                pl.BlockSpec((1, C), lambda n: (0, 0)),
                pl.BlockSpec((1, C), lambda n: (0, 0)),
                pl.BlockSpec((R, 1), lambda n: (0, 0)),
            ],
            out_specs=pl.BlockSpec((1, R, C), lambda n: (n, 0, 0)),
            scratch_shapes=[pltpu.VMEM((R_ext, C), jnp.float32)],
        ),
        compiler_params=pltpu.CompilerParams(
            dimension_semantics=("parallel",)),
        cost_estimate=pl.CostEstimate(
            flops=flops, transcendentals=0, bytes_accessed=bytes_accessed),
    )(x_ext, w1m, s1, b1, w2m, s2, b2, mask)

    # Extract the interior (valid) pixels and go back to NCHW.
    out = out_pad.reshape(N, Hp, Wp, C)[:, 1:H + 1, 1:W + 1, :]
    return jnp.transpose(out, (0, 3, 1, 2))


def basic_block_ref(x, w1, g1, be1, rm1, rv1, w2, g2, be2, rm2, rv2, eps=1e-5):
    """Pure-JAX reference of the PyTorch BasicBlock forward (eval-mode BN)."""
    def conv(z, w):
        return jax.lax.conv_general_dilated(
            z, w, window_strides=(1, 1), padding=((1, 1), (1, 1)),
            dimension_numbers=("NCHW", "OIHW", "NCHW"),
            precision=jax.lax.Precision.HIGHEST)

    def bn(z, g, b, m, v):
        s = g / jnp.sqrt(v + eps)
        return z * s[None, :, None, None] + (b - m * s)[None, :, None, None]

    out = jax.nn.relu(bn(conv(x, w1), g1, be1, rm1, rv1))
    out = bn(conv(out, w2), g2, be2, rm2, rv2)
    return jax.nn.relu(out + x)


if __name__ == "__main__":
    key = jax.random.PRNGKey(0)
    ks = jax.random.split(key, 11)
    N, C, H, W = 2, 4, 16, 16

    x = jax.random.normal(ks[0], (N, C, H, W), jnp.float32)
    w1 = 0.2 * jax.random.normal(ks[1], (C, C, 3, 3), jnp.float32)
    w2 = 0.2 * jax.random.normal(ks[2], (C, C, 3, 3), jnp.float32)
    g1 = 1.0 + 0.1 * jax.random.normal(ks[3], (C,), jnp.float32)
    be1 = 0.1 * jax.random.normal(ks[4], (C,), jnp.float32)
    rm1 = 0.1 * jax.random.normal(ks[5], (C,), jnp.float32)
    rv1 = 0.5 + jax.random.uniform(ks[6], (C,), jnp.float32)
    g2 = 1.0 + 0.1 * jax.random.normal(ks[7], (C,), jnp.float32)
    be2 = 0.1 * jax.random.normal(ks[8], (C,), jnp.float32)
    rm2 = 0.1 * jax.random.normal(ks[9], (C,), jnp.float32)
    rv2 = 0.5 + jax.random.uniform(ks[10], (C,), jnp.float32)

    out = jax.block_until_ready(
        basic_block(x, w1, g1, be1, rm1, rv1, w2, g2, be2, rm2, rv2))

    ref = basic_block_ref(x, w1, g1, be1, rm1, rv1, w2, g2, be2, rm2, rv2)
    assert out.shape == (N, C, H, W), out.shape
    max_err = float(jnp.max(jnp.abs(out - ref)))
    assert jnp.allclose(out, ref, rtol=2e-3, atol=2e-3), max_err

    print("KERNEL_OK")
</pallas_src>

<mosaic_0001>
module attributes {stable_mosaic.version = 11 : i64} {
  func.func @_basic_block_kernel(%arg0: i32, %arg1: memref<1x372x4xf32, #tpu.memory_space<vmem>>, %arg2: memref<9x4x4xf32, #tpu.memory_space<vmem>>, %arg3: memref<1x4xf32, #tpu.memory_space<vmem>>, %arg4: memref<1x4xf32, #tpu.memory_space<vmem>>, %arg5: memref<9x4x4xf32, #tpu.memory_space<vmem>>, %arg6: memref<1x4xf32, #tpu.memory_space<vmem>>, %arg7: memref<1x4xf32, #tpu.memory_space<vmem>>, %arg8: memref<324x1xf32, #tpu.memory_space<vmem>>, %arg9: memref<1x324x4xf32, #tpu.memory_space<vmem>>, %arg10: memref<372x4xf32, #tpu.memory_space<vmem>>) attributes {dimension_semantics = [#tpu.dimension_semantics<parallel>], iteration_bounds = array<i64: 2>, scalar_prefetch = 0 : i64, scratch_operands = 1 : i64, tpu.core_type = #tpu.core_type<tc>, window_params = [{transform_indices = @transform_0, window_bounds = array<i64: 1, 372, 4>}, {pipeline_mode = #tpu.pipeline_mode<synchronous>, transform_indices = @transform_1, window_bounds = array<i64: 9, 4, 4>}, {pipeline_mode = #tpu.pipeline_mode<synchronous>, transform_indices = @transform_2, window_bounds = array<i64: 1, 4>}, {pipeline_mode = #tpu.pipeline_mode<synchronous>, transform_indices = @transform_3, window_bounds = array<i64: 1, 4>}, {pipeline_mode = #tpu.pipeline_mode<synchronous>, transform_indices = @transform_4, window_bounds = array<i64: 9, 4, 4>}, {pipeline_mode = #tpu.pipeline_mode<synchronous>, transform_indices = @transform_5, window_bounds = array<i64: 1, 4>}, {pipeline_mode = #tpu.pipeline_mode<synchronous>, transform_indices = @transform_6, window_bounds = array<i64: 1, 4>}, {pipeline_mode = #tpu.pipeline_mode<synchronous>, transform_indices = @transform_7, window_bounds = array<i64: 324, 1>}, {transform_indices = @transform_8, window_bounds = array<i64: 1, 324, 4>}]} {
    %c0 = arith.constant 0 : index
    %c0_0 = arith.constant 0 : index
    %c0_1 = arith.constant 0 : index
    %0 = vector.load %arg1[%c0, %c0_0, %c0_1] : memref<1x372x4xf32, #tpu.memory_space<vmem>>, vector<1x372x4xf32>
    %1 = vector.shape_cast %0 : vector<1x372x4xf32> to vector<372x4xf32>
    %c0_2 = arith.constant 0 : index
    %c0_3 = arith.constant 0 : index
    %2 = vector.load %arg8[%c0_2, %c0_3] : memref<324x1xf32, #tpu.memory_space<vmem>>, vector<324x1xf32>
    %3 = vector.extract_strided_slice %1 {offsets = [5, 0], sizes = [324, 4], strides = [1, 1]} : vector<372x4xf32> to vector<324x4xf32>
    %c0_4 = arith.constant 0 : index
    %c0_5 = arith.constant 0 : index
    %c0_6 = arith.constant 0 : index
    %4 = vector.load %arg2[%c0_4, %c0_5, %c0_6] : memref<9x4x4xf32, #tpu.memory_space<vmem>>, vector<1x4x4xf32>
    %5 = vector.shape_cast %4 : vector<1x4x4xf32> to vector<4x4xf32>
    %cst = arith.constant dense<0.000000e+00> : vector<324x4xf32>
    %6 = tpu.matmul %3, %5, %cst {dimension_numbers = #tpu.dot_dimension_numbers<[1], [0], [0], [1], [0, 0, 1, 1], [], []>} : vector<324x4xf32>, vector<4x4xf32>, vector<324x4xf32> -> vector<324x4xf32>
    %7 = vector.extract_strided_slice %1 {offsets = [6, 0], sizes = [324, 4], strides = [1, 1]} : vector<372x4xf32> to vector<324x4xf32>
    %c1 = arith.constant 1 : index
    %c0_7 = arith.constant 0 : index
    %c0_8 = arith.constant 0 : index
    %8 = vector.load %arg2[%c1, %c0_7, %c0_8] : memref<9x4x4xf32, #tpu.memory_space<vmem>>, vector<1x4x4xf32>
    %9 = vector.shape_cast %8 : vector<1x4x4xf32> to vector<4x4xf32>
    %cst_9 = arith.constant dense<0.000000e+00> : vector<324x4xf32>
    %10 = tpu.matmul %7, %9, %cst_9 {dimension_numbers = #tpu.dot_dimension_numbers<[1], [0], [0], [1], [0, 0, 1, 1], [], []>} : vector<324x4xf32>, vector<4x4xf32>, vector<324x4xf32> -> vector<324x4xf32>
    %11 = arith.addf %6, %10 : vector<324x4xf32>
    %12 = vector.extract_strided_slice %1 {offsets = [7, 0], sizes = [324, 4], strides = [1, 1]} : vector<372x4xf32> to vector<324x4xf32>
    %c2 = arith.constant 2 : index
    %c0_10 = arith.constant 0 : index
    %c0_11 = arith.constant 0 : index
    %13 = vector.load %arg2[%c2, %c0_10, %c0_11] : memref<9x4x4xf32, #tpu.memory_space<vmem>>, vector<1x4x4xf32>
    %14 = vector.shape_cast %13 : vector<1x4x4xf32> to vector<4x4xf32>
    %cst_12 = arith.constant dense<0.000000e+00> : vector<324x4xf32>
    %15 = tpu.matmul %12, %14, %cst_12 {dimension_numbers = #tpu.dot_dimension_numbers<[1], [0], [0], [1], [0, 0, 1, 1], [], []>} : vector<324x4xf32>, vector<4x4xf32>, vector<324x4xf32> -> vector<324x4xf32>
    %16 = arith.addf %11, %15 : vector<324x4xf32>
    %17 = vector.extract_strided_slice %1 {offsets = [23, 0], sizes = [324, 4], strides = [1, 1]} : vector<372x4xf32> to vector<324x4xf32>
    %c3 = arith.constant 3 : index
    %c0_13 = arith.constant 0 : index
    %c0_14 = arith.constant 0 : index
    %18 = vector.load %arg2[%c3, %c0_13, %c0_14] : memref<9x4x4xf32, #tpu.memory_space<vmem>>, vector<1x4x4xf32>
    %19 = vector.shape_cast %18 : vector<1x4x4xf32> to vector<4x4xf32>
    %cst_15 = arith.constant dense<0.000000e+00> : vector<324x4xf32>
    %20 = tpu.matmul %17, %19, %cst_15 {dimension_numbers = #tpu.dot_dimension_numbers<[1], [0], [0], [1], [0, 0, 1, 1], [], []>} : vector<324x4xf32>, vector<4x4xf32>, vector<324x4xf32> -> vector<324x4xf32>
    %21 = arith.addf %16, %20 : vector<324x4xf32>
    %22 = vector.extract_strided_slice %1 {offsets = [24, 0], sizes = [324, 4], strides = [1, 1]} : vector<372x4xf32> to vector<324x4xf32>
    %c4 = arith.constant 4 : index
    %c0_16 = arith.constant 0 : index
    %c0_17 = arith.constant 0 : index
    %23 = vector.load %arg2[%c4, %c0_16, %c0_17] : memref<9x4x4xf32, #tpu.memory_space<vmem>>, vector<1x4x4xf32>
    %24 = vector.shape_cast %23 : vector<1x4x4xf32> to vector<4x4xf32>
    %cst_18 = arith.constant dense<0.000000e+00> : vector<324x4xf32>
    %25 = tpu.matmul %22, %24, %cst_18 {dimension_numbers = #tpu.dot_dimension_numbers<[1], [0], [0], [1], [0, 0, 1, 1], [], []>} : vector<324x4xf32>, vector<4x4xf32>, vector<324x4xf32> -> vector<324x4xf32>
    %26 = arith.addf %21, %25 : vector<324x4xf32>
    %27 = vector.extract_strided_slice %1 {offsets = [25, 0], sizes = [324, 4], strides = [1, 1]} : vector<372x4xf32> to vector<324x4xf32>
    %c5 = arith.constant 5 : index
    %c0_19 = arith.constant 0 : index
    %c0_20 = arith.constant 0 : index
    %28 = vector.load %arg2[%c5, %c0_19, %c0_20] : memref<9x4x4xf32, #tpu.memory_space<vmem>>, vector<1x4x4xf32>
    %29 = vector.shape_cast %28 : vector<1x4x4xf32> to vector<4x4xf32>
    %cst_21 = arith.constant dense<0.000000e+00> : vector<324x4xf32>
    %30 = tpu.matmul %27, %29, %cst_21 {dimension_numbers = #tpu.dot_dimension_numbers<[1], [0], [0], [1], [0, 0, 1, 1], [], []>} : vector<324x4xf32>, vector<4x4xf32>, vector<324x4xf32> -> vector<324x4xf32>
    %31 = arith.addf %26, %30 : vector<324x4xf32>
    %32 = vector.extract_strided_slice %1 {offsets = [41, 0], sizes = [324, 4], strides = [1, 1]} : vector<372x4xf32> to vector<324x4xf32>
    %c6 = arith.constant 6 : index
    %c0_22 = arith.constant 0 : index
    %c0_23 = arith.constant 0 : index
    %33 = vector.load %arg2[%c6, %c0_22, %c0_23] : memref<9x4x4xf32, #tpu.memory_space<vmem>>, vector<1x4x4xf32>
    %34 = vector.shape_cast %33 : vector<1x4x4xf32> to vector<4x4xf32>
    %cst_24 = arith.constant dense<0.000000e+00> : vector<324x4xf32>
    %35 = tpu.matmul %32, %34, %cst_24 {dimension_numbers = #tpu.dot_dimension_numbers<[1], [0], [0], [1], [0, 0, 1, 1], [], []>} : vector<324x4xf32>, vector<4x4xf32>, vector<324x4xf32> -> vector<324x4xf32>
    %36 = arith.addf %31, %35 : vector<324x4xf32>
    %37 = vector.extract_strided_slice %1 {offsets = [42, 0], sizes = [324, 4], strides = [1, 1]} : vector<372x4xf32> to vector<324x4xf32>
    %c7 = arith.constant 7 : index
    %c0_25 = arith.constant 0 : index
    %c0_26 = arith.constant 0 : index
    %38 = vector.load %arg2[%c7, %c0_25, %c0_26] : memref<9x4x4xf32, #tpu.memory_space<vmem>>, vector<1x4x4xf32>
    %39 = vector.shape_cast %38 : vector<1x4x4xf32> to vector<4x4xf32>
    %cst_27 = arith.constant dense<0.000000e+00> : vector<324x4xf32>
    %40 = tpu.matmul %37, %39, %cst_27 {dimension_numbers = #tpu.dot_dimension_numbers<[1], [0], [0], [1], [0, 0, 1, 1], [], []>} : vector<324x4xf32>, vector<4x4xf32>, vector<324x4xf32> -> vector<324x4xf32>
    %41 = arith.addf %36, %40 : vector<324x4xf32>
    %42 = vector.extract_strided_slice %1 {offsets = [43, 0], sizes = [324, 4], strides = [1, 1]} : vector<372x4xf32> to vector<324x4xf32>
    %c8 = arith.constant 8 : index
    %c0_28 = arith.constant 0 : index
    %c0_29 = arith.constant 0 : index
    %43 = vector.load %arg2[%c8, %c0_28, %c0_29] : memref<9x4x4xf32, #tpu.memory_space<vmem>>, vector<1x4x4xf32>
    %44 = vector.shape_cast %43 : vector<1x4x4xf32> to vector<4x4xf32>
    %cst_30 = arith.constant dense<0.000000e+00> : vector<324x4xf32>
    %45 = tpu.matmul %42, %44, %cst_30 {dimension_numbers = #tpu.dot_dimension_numbers<[1], [0], [0], [1], [0, 0, 1, 1], [], []>} : vector<324x4xf32>, vector<4x4xf32>, vector<324x4xf32> -> vector<324x4xf32>
    %46 = arith.addf %41, %45 : vector<324x4xf32>
    %c0_31 = arith.constant 0 : index
    %c0_32 = arith.constant 0 : index
    %47 = vector.load %arg3[%c0_31, %c0_32] : memref<1x4xf32, #tpu.memory_space<vmem>>, vector<1x4xf32>
    %48 = vector.broadcast %47 : vector<1x4xf32> to vector<324x4xf32>
    %49 = arith.mulf %46, %48 : vector<324x4xf32>
    %c0_33 = arith.constant 0 : index
    %c0_34 = arith.constant 0 : index
    %50 = vector.load %arg4[%c0_33, %c0_34] : memref<1x4xf32, #tpu.memory_space<vmem>>, vector<1x4xf32>
    %51 = vector.broadcast %50 : vector<1x4xf32> to vector<324x4xf32>
    %52 = arith.addf %49, %51 : vector<324x4xf32>
    %cst_35 = arith.constant 0.000000e+00 : f32
    %53 = vector.broadcast %cst_35 : f32 to vector<324x4xf32>
    %54 = arith.maximumf %52, %53 : vector<324x4xf32>
    %55 = vector.broadcast %2 : vector<324x1xf32> to vector<324x4xf32>
    %56 = arith.mulf %54, %55 : vector<324x4xf32>
    %cst_36 = arith.constant 0.000000e+00 : f32
    %57 = vector.broadcast %cst_36 : f32 to vector<372x4xf32>
    %c0_37 = arith.constant 0 : index
    %c0_38 = arith.constant 0 : index
    %58 = vector.load %arg10[%c0_37, %c0_38] : memref<372x4xf32, #tpu.memory_space<vmem>>, vector<372x4xf32>
    tpu.vector_store %arg10[%c0_37, %c0_38], %57 {strides = array<i32>} : memref<372x4xf32, #tpu.memory_space<vmem>>, vector<372x4xf32>,
    %c24 = arith.constant 24 : index
    %c0_39 = arith.constant 0 : index
    %59 = vector.load %arg10[%c24, %c0_39] : memref<372x4xf32, #tpu.memory_space<vmem>>, vector<324x4xf32>
    tpu.vector_store %arg10[%c24, %c0_39], %56 {strides = array<i32>} : memref<372x4xf32, #tpu.memory_space<vmem>>, vector<324x4xf32>,
    %c0_40 = arith.constant 0 : index
    %c0_41 = arith.constant 0 : index
    %60 = vector.load %arg10[%c0_40, %c0_41] : memref<372x4xf32, #tpu.memory_space<vmem>>, vector<372x4xf32>
    %61 = vector.extract_strided_slice %60 {offsets = [5, 0], sizes = [324, 4], strides = [1, 1]} : vector<372x4xf32> to vector<324x4xf32>
    %c0_42 = arith.constant 0 : index
    %c0_43 = arith.constant 0 : index
    %c0_44 = arith.constant 0 : index
    %62 = vector.load %arg5[%c0_42, %c0_43, %c0_44] : memref<9x4x4xf32, #tpu.memory_space<vmem>>, vector<1x4x4xf32>
    %63 = vector.shape_cast %62 : vector<1x4x4xf32> to vector<4x4xf32>
    %cst_45 = arith.constant dense<0.000000e+00> : vector<324x4xf32>
    %64 = tpu.matmul %61, %63, %cst_45 {dimension_numbers = #tpu.dot_dimension_numbers<[1], [0], [0], [1], [0, 0, 1, 1], [], []>} : vector<324x4xf32>, vector<4x4xf32>, vector<324x4xf32> -> vector<324x4xf32>
    %65 = vector.extract_strided_slice %60 {offsets = [6, 0], sizes = [324, 4], strides = [1, 1]} : vector<372x4xf32> to vector<324x4xf32>
    %c1_46 = arith.constant 1 : index
    %c0_47 = arith.constant 0 : index
    %c0_48 = arith.constant 0 : index
    %66 = vector.load %arg5[%c1_46, %c0_47, %c0_48] : memref<9x4x4xf32, #tpu.memory_space<vmem>>, vector<1x4x4xf32>
    %67 = vector.shape_cast %66 : vector<1x4x4xf32> to vector<4x4xf32>
    %cst_49 = arith.constant dense<0.000000e+00> : vector<324x4xf32>
    %68 = tpu.matmul %65, %67, %cst_49 {dimension_numbers = #tpu.dot_dimension_numbers<[1], [0], [0], [1], [0, 0, 1, 1], [], []>} : vector<324x4xf32>, vector<4x4xf32>, vector<324x4xf32> -> vector<324x4xf32>
    %69 = arith.addf %64, %68 : vector<324x4xf32>
    %70 = vector.extract_strided_slice %60 {offsets = [7, 0], sizes = [324, 4], strides = [1, 1]} : vector<372x4xf32> to vector<324x4xf32>
    %c2_50 = arith.constant 2 : index
    %c0_51 = arith.constant 0 : index
    %c0_52 = arith.constant 0 : index
    %71 = vector.load %arg5[%c2_50, %c0_51, %c0_52] : memref<9x4x4xf32, #tpu.memory_space<vmem>>, vector<1x4x4xf32>
    %72 = vector.shape_cast %71 : vector<1x4x4xf32> to vector<4x4xf32>
    %cst_53 = arith.constant dense<0.000000e+00> : vector<324x4xf32>
    %73 = tpu.matmul %70, %72, %cst_53 {dimension_numbers = #tpu.dot_dimension_numbers<[1], [0], [0], [1], [0, 0, 1, 1], [], []>} : vector<324x4xf32>, vector<4x4xf32>, vector<324x4xf32> -> vector<324x4xf32>
    %74 = arith.addf %69, %73 : vector<324x4xf32>
    %75 = vector.extract_strided_slice %60 {offsets = [23, 0], sizes = [324, 4], strides = [1, 1]} : vector<372x4xf32> to vector<324x4xf32>
    %c3_54 = arith.constant 3 : index
    %c0_55 = arith.constant 0 : index
    %c0_56 = arith.constant 0 : index
    %76 = vector.load %arg5[%c3_54, %c0_55, %c0_56] : memref<9x4x4xf32, #tpu.memory_space<vmem>>, vector<1x4x4xf32>
    %77 = vector.shape_cast %76 : vector<1x4x4xf32> to vector<4x4xf32>
    %cst_57 = arith.constant dense<0.000000e+00> : vector<324x4xf32>
    %78 = tpu.matmul %75, %77, %cst_57 {dimension_numbers = #tpu.dot_dimension_numbers<[1], [0], [0], [1], [0, 0, 1, 1], [], []>} : vector<324x4xf32>, vector<4x4xf32>, vector<324x4xf32> -> vector<324x4xf32>
    %79 = arith.addf %74, %78 : vector<324x4xf32>
    %80 = vector.extract_strided_slice %60 {offsets = [24, 0], sizes = [324, 4], strides = [1, 1]} : vector<372x4xf32> to vector<324x4xf32>
    %c4_58 = arith.constant 4 : index
    %c0_59 = arith.constant 0 : index
    %c0_60 = arith.constant 0 : index
    %81 = vector.load %arg5[%c4_58, %c0_59, %c0_60] : memref<9x4x4xf32, #tpu.memory_space<vmem>>, vector<1x4x4xf32>
    %82 = vector.shape_cast %81 : vector<1x4x4xf32> to vector<4x4xf32>
    %cst_61 = arith.constant dense<0.000000e+00> : vector<324x4xf32>
    %83 = tpu.matmul %80, %82, %cst_61 {dimension_numbers = #tpu.dot_dimension_numbers<[1], [0], [0], [1], [0, 0, 1, 1], [], []>} : vector<324x4xf32>, vector<4x4xf32>, vector<324x4xf32> -> vector<324x4xf32>
    %84 = arith.addf %79, %83 : vector<324x4xf32>
    %85 = vector.extract_strided_slice %60 {offsets = [25, 0], sizes = [324, 4], strides = [1, 1]} : vector<372x4xf32> to vector<324x4xf32>
    %c5_62 = arith.constant 5 : index
    %c0_63 = arith.constant 0 : index
    %c0_64 = arith.constant 0 : index
    %86 = vector.load %arg5[%c5_62, %c0_63, %c0_64] : memref<9x4x4xf32, #tpu.memory_space<vmem>>, vector<1x4x4xf32>
    %87 = vector.shape_cast %86 : vector<1x4x4xf32> to vector<4x4xf32>
    %cst_65 = arith.constant dense<0.000000e+00> : vector<324x4xf32>
    %88 = tpu.matmul %85, %87, %cst_65 {dimension_numbers = #tpu.dot_dimension_numbers<[1], [0], [0], [1], [0, 0, 1, 1], [], []>} : vector<324x4xf32>, vector<4x4xf32>, vector<324x4xf32> -> vector<324x4xf32>
    %89 = arith.addf %84, %88 : vector<324x4xf32>
    %90 = vector.extract_strided_slice %60 {offsets = [41, 0], sizes = [324, 4], strides = [1, 1]} : vector<372x4xf32> to vector<324x4xf32>
    %c6_66 = arith.constant 6 : index
    %c0_67 = arith.constant 0 : index
    %c0_68 = arith.constant 0 : index
    %91 = vector.load %arg5[%c6_66, %c0_67, %c0_68] : memref<9x4x4xf32, #tpu.memory_space<vmem>>, vector<1x4x4xf32>
    %92 = vector.shape_cast %91 : vector<1x4x4xf32> to vector<4x4xf32>
    %cst_69 = arith.constant dense<0.000000e+00> : vector<324x4xf32>
    %93 = tpu.matmul %90, %92, %cst_69 {dimension_numbers = #tpu.dot_dimension_numbers<[1], [0], [0], [1], [0, 0, 1, 1], [], []>} : vector<324x4xf32>, vector<4x4xf32>, vector<324x4xf32> -> vector<324x4xf32>
    %94 = arith.addf %89, %93 : vector<324x4xf32>
    %95 = vector.extract_strided_slice %60 {offsets = [42, 0], sizes = [324, 4], strides = [1, 1]} : vector<372x4xf32> to vector<324x4xf32>
    %c7_70 = arith.constant 7 : index
    %c0_71 = arith.constant 0 : index
    %c0_72 = arith.constant 0 : index
    %96 = vector.load %arg5[%c7_70, %c0_71, %c0_72] : memref<9x4x4xf32, #tpu.memory_space<vmem>>, vector<1x4x4xf32>
    %97 = vector.shape_cast %96 : vector<1x4x4xf32> to vector<4x4xf32>
    %cst_73 = arith.constant dense<0.000000e+00> : vector<324x4xf32>
    %98 = tpu.matmul %95, %97, %cst_73 {dimension_numbers = #tpu.dot_dimension_numbers<[1], [0], [0], [1], [0, 0, 1, 1], [], []>} : vector<324x4xf32>, vector<4x4xf32>, vector<324x4xf32> -> vector<324x4xf32>
    %99 = arith.addf %94, %98 : vector<324x4xf32>
    %100 = vector.extract_strided_slice %60 {offsets = [43, 0], sizes = [324, 4], strides = [1, 1]} : vector<372x4xf32> to vector<324x4xf32>
    %c8_74 = arith.constant 8 : index
    %c0_75 = arith.constant 0 : index
    %c0_76 = arith.constant 0 : index
    %101 = vector.load %arg5[%c8_74, %c0_75, %c0_76] : memref<9x4x4xf32, #tpu.memory_space<vmem>>, vector<1x4x4xf32>
    %102 = vector.shape_cast %101 : vector<1x4x4xf32> to vector<4x4xf32>
    %cst_77 = arith.constant dense<0.000000e+00> : vector<324x4xf32>
    %103 = tpu.matmul %100, %102, %cst_77 {dimension_numbers = #tpu.dot_dimension_numbers<[1], [0], [0], [1], [0, 0, 1, 1], [], []>} : vector<324x4xf32>, vector<4x4xf32>, vector<324x4xf32> -> vector<324x4xf32>
    %104 = arith.addf %99, %103 : vector<324x4xf32>
    %c0_78 = arith.constant 0 : index
    %c0_79 = arith.constant 0 : index
    %105 = vector.load %arg6[%c0_78, %c0_79] : memref<1x4xf32, #tpu.memory_space<vmem>>, vector<1x4xf32>
    %106 = vector.broadcast %105 : vector<1x4xf32> to vector<324x4xf32>
    %107 = arith.mulf %104, %106 : vector<324x4xf32>
    %c0_80 = arith.constant 0 : index
    %c0_81 = arith.constant 0 : index
    %108 = vector.load %arg7[%c0_80, %c0_81] : memref<1x4xf32, #tpu.memory_space<vmem>>, vector<1x4xf32>
    %109 = vector.broadcast %108 : vector<1x4xf32> to vector<324x4xf32>
    %110 = arith.addf %107, %109 : vector<324x4xf32>
    %111 = vector.extract_strided_slice %1 {offsets = [24, 0], sizes = [324, 4], strides = [1, 1]} : vector<372x4xf32> to vector<324x4xf32>
    %112 = arith.addf %110, %111 : vector<324x4xf32>
    %cst_82 = arith.constant 0.000000e+00 : f32
    %113 = vector.broadcast %cst_82 : f32 to vector<324x4xf32>
    %114 = arith.maximumf %112, %113 : vector<324x4xf32>
    %c0_83 = arith.constant 0 : index
    %c0_84 = arith.constant 0 : index
    %c0_85 = arith.constant 0 : index
    %115 = vector.load %arg9[%c0_83, %c0_84, %c0_85] : memref<1x324x4xf32, #tpu.memory_space<vmem>>, vector<1x324x4xf32>
    %116 = vector.shape_cast %115 : vector<1x324x4xf32> to vector<324x4xf32>
    %117 = vector.shape_cast %114 : vector<324x4xf32> to vector<1x324x4xf32>
    tpu.vector_store %arg9[%c0_83, %c0_84, %c0_85], %117 {strides = array<i32>} : memref<1x324x4xf32, #tpu.memory_space<vmem>>, vector<1x324x4xf32>,
    return
  }
  func.func @transform_0(%arg0: i32) -> (i32, i32, i32) {
    %c0_i32 = arith.constant 0 : i32
    %c0_i32_0 = arith.constant 0 : i32
    %c0_i32_1 = arith.constant 0 : i32
    return %arg0, %c0_i32, %c0_i32_0 : i32, i32, i32
  }
  func.func @transform_1(%arg0: i32) -> (i32, i32, i32) {
    %c0_i32 = arith.constant 0 : i32
    %c0_i32_0 = arith.constant 0 : i32
    %c0_i32_1 = arith.constant 0 : i32
    %c0_i32_2 = arith.constant 0 : i32
    return %c0_i32, %c0_i32_0, %c0_i32_1 : i32, i32, i32
  }
  func.func @transform_2(%arg0: i32) -> (i32, i32) {
    %c0_i32 = arith.constant 0 : i32
    %c0_i32_0 = arith.constant 0 : i32
    %c0_i32_1 = arith.constant 0 : i32
    return %c0_i32, %c0_i32_0 : i32, i32
  }
  func.func @transform_3(%arg0: i32) -> (i32, i32) {
    %c0_i32 = arith.constant 0 : i32
    %c0_i32_0 = arith.constant 0 : i32
    %c0_i32_1 = arith.constant 0 : i32
    return %c0_i32, %c0_i32_0 : i32, i32
  }
  func.func @transform_4(%arg0: i32) -> (i32, i32, i32) {
    %c0_i32 = arith.constant 0 : i32
    %c0_i32_0 = arith.constant 0 : i32
    %c0_i32_1 = arith.constant 0 : i32
    %c0_i32_2 = arith.constant 0 : i32
    return %c0_i32, %c0_i32_0, %c0_i32_1 : i32, i32, i32
  }
  func.func @transform_5(%arg0: i32) -> (i32, i32) {
    %c0_i32 = arith.constant 0 : i32
    %c0_i32_0 = arith.constant 0 : i32
    %c0_i32_1 = arith.constant 0 : i32
    return %c0_i32, %c0_i32_0 : i32, i32
  }
  func.func @transform_6(%arg0: i32) -> (i32, i32) {
    %c0_i32 = arith.constant 0 : i32
    %c0_i32_0 = arith.constant 0 : i32
    %c0_i32_1 = arith.constant 0 : i32
    return %c0_i32, %c0_i32_0 : i32, i32
  }
  func.func @transform_7(%arg0: i32) -> (i32, i32) {
    %c0_i32 = arith.constant 0 : i32
    %c0_i32_0 = arith.constant 0 : i32
    %c0_i32_1 = arith.constant 0 : i32
    return %c0_i32, %c0_i32_0 : i32, i32
  }
  func.func @transform_8(%arg0: i32) -> (i32, i32, i32) {
    %c0_i32 = arith.constant 0 : i32
    %c0_i32_0 = arith.constant 0 : i32
    %c0_i32_1 = arith.constant 0 : i32
    return %arg0, %c0_i32, %c0_i32_0 : i32, i32, i32
  }
}

</mosaic_0001>

<bundles_post_ra>
// kernel: basic_block.1
= control target key start
LH: loop header
LB: loop body
LE: loop exit
PB: predicated region body
PF: predicated region fallthrough
CT: control target
= control target key end

     0   :  { %s14348_s27 = smov 0   ;;  %s19435_s0 = inlined_call_operand.vmem [shape: f32[2,372,4], index: 0, kind: input, shape index: {}]   ;;  %s19436_s1 = inlined_call_operand.vmem [shape: f32[9,4,4], index: 1, kind: input, shape index: {}]   ;;  %s19437_s2 = inlined_call_operand.vmem [shape: f32[1,4], index: 2, kind: input, shape index: {}]   ;;  %s19438_s3 = inlined_call_operand.vmem [shape: f32[1,4], index: 3, kind: input, shape index: {}]   ;;  %s19439_s4 = inlined_call_operand.vmem [shape: f32[9,4,4], index: 4, kind: input, shape index: {}]   ;;  %s19440_s5 = inlined_call_operand.vmem [shape: f32[1,4], index: 5, kind: input, shape index: {}]   ;;  %s19441_s6 = inlined_call_operand.vmem [shape: f32[1,4], index: 6, kind: input, shape index: {}]   ;;  %s19442_s7 = inlined_call_operand.vmem [shape: f32[324,1], index: 7, kind: input, shape index: {}]   ;;  %s19443_s8 = inlined_call_operand.vmem [shape: f32[2,324,4], index: 8, kind: output, shape index: {}]  }
   0x1 LB: > { %s8975_s28 = sadd.s32 4294967295, %s14298_s27   ;;  %p8979_p0 = scmp.ge.s32.totalorder %s14298_s27, 1  ;;  %s14298_s27 = sphi %s14348_s27, %s18_s27  }
   0x2   : > { %p262_p1 = scmp.lt.s32.totalorder %s14298_s27, 3 }
   0x4   : > { %p263_p2 = pnand %p8979_p0, %p262_p1 }
   0x6   : > { %266 = sbr.rel (%p263_p2) target bundleno = 3251 (0xcb3), region = 52 }
   0xd   : > { %v8982_v0 = vld [vmem:[%s19436_s1 + $0x4] sm:$0xf]  ;;  %vm605_vm0 = vcmask 1043456   ;;  %p296_p3 = scmp.lt.s32.totalorder %s8975_s28, 1  ;;  %v14300_v1 = vmov 0.0   ;;  %vm14301_vm1 = vmmov 0  }
   0xe   : > { %10516 = vmatprep.subr.mxu0 %v14300_v1  ;;  %10518 = vmatprep.mubr.msk.f32.mxu0 %vm14301_vm1, %v14300_v1  ;;  %vm522_vm2 = vcmask 31744   ;;  %vm438_vm3 = vcmask 1041408   ;;  %v393_v7 = vld [vmem:[%s19436_s1] sm:$0xf]  ;;  %vm879_vm4 = vcmask 1042432   ;;  %vm1320_vm5 = vcmask 1040384  }
   0xf   : > { %10517 = vmatpush3.msk.msra.mxu0 %vm605_vm0, %v8982_v0  ;;  %s19500_s28 = smov (!%p296_p3, %s8975_s28), 1  ;;  %4675 = vst.msk [vmem:[#allocation2] sm:$0xff] %vm522_vm2, %v14300_v1  ;;  %4676 = vst.msk [vmem:[#allocation2 + $0x8] sm:$0xff] %vm522_vm2, %v14300_v1  ;;  %11641 = vmatprep.subr.mxu1 %v14300_v1  ;;  %vm2526_vm6 = vcmask 1046528   ;;  %vm3334_vm7 = vcmask 1045504   ;;  %vm3814_vm8 = vcmask 1044480  }
  0x10   : > { %4677 = vst.msk [vmem:[#allocation2 + $0x10] sm:$0xff] %vm522_vm2, %v14300_v1  ;;  %4678 = vst.msk [vmem:[#allocation2 + $0x18] sm:$0xff] %vm522_vm2, %v14300_v1  ;;  %10641 = vmatprep.subr.mxu0 %v14300_v1  ;;  %11643 = vmatprep.mubr.msk.f32.mxu1 %vm14301_vm1, %v14300_v1  ;;  %s14078_s9 = smul.u32 376, %s19500_s28  ;;  %vm4721_vm9 = vcmask 27648  }
  0x11   : > { %4679 = vst.msk [vmem:[#allocation2 + $0x20] sm:$0xff] %vm522_vm2, %v14300_v1  ;;  %4680 = vst.msk [vmem:[#allocation2 + $0x28] sm:$0xff] %vm522_vm2, %v14300_v1  ;;  %s14079_s23 = smul.u32 328, %s19500_s28 }
  0x12   : > { %4681 = vst.msk [vmem:[#allocation2 + $0x30] sm:$0xff] %vm522_vm2, %v14300_v1  ;;  %4682 = vst.msk [vmem:[#allocation2 + $0x38] sm:$0xff] %vm522_vm2, %v14300_v1  ;;  %s14465_s12 = scalar_lea.vmem %s19435_s0, %s14078_s9 }
  0x13   : > { %4683 = vst.msk [vmem:[#allocation2 + $0x40] sm:$0xff] %vm522_vm2, %v14300_v1  ;;  %4684 = vst.msk [vmem:[#allocation2 + $0x48] sm:$0xff] %vm522_vm2, %v14300_v1  ;;  %v14468_v2 = vld [vmem:[%s14465_s12] sm:$0xff]  ;;  %v14471_v3 = vld [vmem:[%s14465_s12 + $0x8] sm:$0xff]  ;;  %s19229_s26 = scalar_lea.vmem %s19443_s8, %s14079_s23 }
  0x14   : > { %4685 = vst.msk [vmem:[#allocation2 + $0x50] sm:$0xff] %vm522_vm2, %v14300_v1  ;;  %4686 = vst.msk [vmem:[#allocation2 + $0x58] sm:$0xff] %vm522_vm2, %v14300_v1  ;;  %v14474_v4 = vld [vmem:[%s14465_s12 + $0x10] sm:$0xff]  ;;  %v439_v5 = vrot.slane %v14468_v2, 6  ;;  %v440_v6 = vrot.slane %v14471_v3, 6  ;;  %v14483_v9 = vld [vmem:[%s14465_s12 + $0x18] sm:$0xff] }
  0x15   : > { %4687 = vst.msk [vmem:[#allocation2 + $0x60] sm:$0xff] %vm522_vm2, %v14300_v1  ;;  %4688 = vst.msk [vmem:[#allocation2 + $0x68] sm:$0xff] %vm522_vm2, %v14300_v1  ;;  %v442_v8 = vrot.slane %v14474_v4, 6  ;;  %v444_v12 = vrot.slane %v14483_v9, 6  ;;  %v14493_v13 = vld [vmem:[%s14465_s12 + $0x20] sm:$0xff]  ;;  %v14502_v16 = vld [vmem:[%s14465_s12 + $0x28] sm:$0xff] }
  0x16   : > { %4689 = vst.msk [vmem:[#allocation2 + $0x70] sm:$0xff] %vm522_vm2, %v14300_v1  ;;  %4690 = vst.msk [vmem:[#allocation2 + $0x78] sm:$0xff] %vm522_vm2, %v14300_v1  ;;  %v441_v10 = vsel %vm438_vm3, %v439_v5, %v440_v6  ;;  %v446_v15 = vrot.slane %v14493_v13, 6  ;;  %v448_v18 = vrot.slane %v14502_v16, 6  ;;  %v14510_v19 = vld [vmem:[%s14465_s12 + $0x30] sm:$0xff]  ;;  %v14518_v22 = vld [vmem:[%s14465_s12 + $0x38] sm:$0xff] }
  0x17   : > { %4691 = vst.msk [vmem:[#allocation2 + $0x80] sm:$0xff] %vm522_vm2, %v14300_v1  ;;  %4692 = vst.msk [vmem:[#allocation2 + $0x88] sm:$0xff] %vm522_vm2, %v14300_v1  ;;  %10519 = vmatmul.mubr.msk.f32.vlgmr.msra.gmra.mrb[0].mxu0 %vm522_vm2, %v441_v10  ;;  %v443_v11 = vsel %vm438_vm3, %v440_v6, %v442_v8  ;;  %v445_v14 = vsel %vm438_vm3, %v442_v8, %v444_v12  ;;  %v450_v21 = vrot.slane %v14510_v19, 6  ;;  %v452_v24 = vrot.slane %v14518_v22, 6  ;;  %v14526_v25 = vld [vmem:[%s14465_s12 + $0x40] sm:$0xff]  ;;  %v14534_v28 = vld [vmem:[%s14465_s12 + $0x48] sm:$0xff] }
  0x18   : > { %4693 = vst.msk [vmem:[#allocation2 + $0x90] sm:$0xff] %vm522_vm2, %v14300_v1  ;;  %4694 = vst.msk [vmem:[#allocation2 + $0x98] sm:$0xff] %vm522_vm2, %v14300_v1  ;;  %10642 = vmatpush3.msk.msra.mxu0 %vm605_vm0, %v393_v7  ;;  %10521 = vmatprep.mubr.msk.f32.mxu0 %vm14301_vm1, %v14300_v1  ;;  %v447_v17 = vsel %vm438_vm3, %v444_v12, %v446_v15  ;;  %v449_v20 = vsel %vm438_vm3, %v446_v15, %v448_v18  ;;  %v454_v27 = vrot.slane %v14526_v25, 6  ;;  %v14542_v31 = vld [vmem:[%s14465_s12 + $0x50] sm:$0xff]  ;;  %v14552_v36 = vld [vmem:[%s14465_s12 + $0x58] sm:$0xff] }
  0x19   : > { %4695 = vst.msk [vmem:[#allocation2 + $0xa0] sm:$0xff] %vm522_vm2, %v14300_v1  ;;  %4696 = vst.msk [vmem:[#allocation2 + $0xa8] sm:$0xff] %vm522_vm2, %v14300_v1  ;;  %10766 = vmatprep.subr.mxu0 %v14300_v1  ;;  %v451_v23 = vsel %vm438_vm3, %v448_v18, %v450_v21  ;;  %v453_v26 = vsel %vm438_vm3, %v450_v21, %v452_v24  ;;  %v456_v30 = vrot.slane %v14534_v28, 6  ;;  %v458_v33 = vrot.slane %v14542_v31, 6  ;;  %v14560_v39 = vld [vmem:[%s14465_s12 + $0x60] sm:$0xff]  ;;  %v14573_v43 = vld [vmem:[%s14465_s12 + $0x68] sm:$0xff] }
  0x1a   : > { %4697 = vst.msk [vmem:[#allocation2 + $0xb0] sm:$0xff] %vm522_vm2, %v14300_v1  ;;  %4698 = vst.msk [vmem:[#allocation2 + $0xb8] sm:$0xff] %vm522_vm2, %v14300_v1  ;;  %v455_v29 = vsel %vm438_vm3, %v452_v24, %v454_v27  ;;  %v880_v34 = vrot.slane %v14468_v2, 5  ;;  %v881_v35 = vrot.slane %v14471_v3, 5  ;;  %v460_v38 = vrot.slane %v14552_v36, 6  ;;  %v14581_v46 = vld [vmem:[%s14465_s12 + $0x70] sm:$0xff] }
  0x1b   : > { %4699 = vst.msk [vmem:[#allocation2 + $0xc0] sm:$0xff] %vm522_vm2, %v14300_v1  ;;  %4700 = vst.msk [vmem:[#allocation2 + $0xc8] sm:$0xff] %vm522_vm2, %v14300_v1  ;;  %10522 = vmatmul.mubr.msk.f32.gmra.mrb[2].mxu0 %vm522_vm2, %v443_v11  ;;  %v457_v32 = vsel %vm438_vm3, %v454_v27, %v456_v30  ;;  %v459_v37 = vsel %vm438_vm3, %v456_v30, %v458_v33  ;;  %v462_v42 = vrot.slane %v14560_v39, 6  ;;  %v464_v45 = vrot.slane %v14573_v43, 6  ;;  %v14589_v49 = vld [vmem:[%s14465_s12 + $0x78] sm:$0xff]  ;;  %v14597_v52 = vld [vmem:[%s14465_s12 + $0x80] sm:$0xff] }
  0x1c   : > { %4701 = vst.msk [vmem:[#allocation2 + $0xd0] sm:$0xff] %vm522_vm2, %v14300_v1  ;;  %4702 = vst.msk [vmem:[#allocation2 + $0xd8] sm:$0xff] %vm522_vm2, %v14300_v1  ;;  %10524 = vmatprep.mubr.msk.f32.mxu0 %vm14301_vm1, %v14300_v1  ;;  %v14565_v40 = vsel %vm879_vm4, %v880_v34, %v881_v35  ;;  %v461_v41 = vsel %vm438_vm3, %v458_v33, %v460_v38  ;;  %v466_v48 = vrot.slane %v14581_v46, 6  ;;  %v468_v51 = vrot.slane %v14589_v49, 6  ;;  %v14605_v55 = vld [vmem:[%s14465_s12 + $0x88] sm:$0xff]  ;;  %v14613_v58 = vld [vmem:[%s14465_s12 + $0x90] sm:$0xff] }
  0x1d   : > { %4703 = vst.msk [vmem:[#allocation2 + $0xe0] sm:$0xff] %vm522_vm2, %v14300_v1  ;;  %4704 = vst.msk [vmem:[#allocation2 + $0xe8] sm:$0xff] %vm522_vm2, %v14300_v1  ;;  %v463_v44 = vsel %vm438_vm3, %v460_v38, %v462_v42  ;;  %v465_v47 = vsel %vm438_vm3, %v462_v42, %v464_v45  ;;  %v470_v54 = vrot.slane %v14597_v52, 6  ;;  %v472_v57 = vrot.slane %v14605_v55, 6  ;;  %v14621_v61 = vld [vmem:[%s14465_s12 + $0x98] sm:$0xff]  ;;  %v14629_v0 = vld [vmem:[%s14465_s12 + $0xa0] sm:$0xff] }
  0x1e   : > { %4705 = vst.msk [vmem:[#allocation2 + $0xf0] sm:$0xff] %vm522_vm2, %v14300_v1  ;;  %4706 = vst.msk [vmem:[#allocation2 + $0xf8] sm:$0xff] %vm522_vm2, %v14300_v1  ;;  %v467_v50 = vsel %vm438_vm3, %v464_v45, %v466_v48  ;;  %v469_v53 = vsel %vm438_vm3, %v466_v48, %v468_v51  ;;  %v474_v60 = vrot.slane %v14613_v58, 6  ;;  %v476_v63 = vrot.slane %v14621_v61, 6  ;;  %v14637_v7 = vld [vmem:[%s14465_s12 + $0xa8] sm:$0xff]  ;;  %v14645_v11 = vld [vmem:[%s14465_s12 + $0xb0] sm:$0xff] }
  0x1f   : > { %4707 = vst.msk [vmem:[#allocation2 + $0x100] sm:$0xff] %vm522_vm2, %v14300_v1  ;;  %4708 = vst.msk [vmem:[#allocation2 + $0x108] sm:$0xff] %vm522_vm2, %v14300_v1  ;;  %10525 = vmatmul.mubr.msk.f32.gmra.mrb[4].mxu0 %vm522_vm2, %v445_v14  ;;  %v471_v56 = vsel %vm438_vm3, %v468_v51, %v470_v54  ;;  %v473_v59 = vsel %vm438_vm3, %v470_v54, %v472_v57  ;;  %v478_v6 = vrot.slane %v14629_v0, 6  ;;  %v480_v10 = vrot.slane %v14637_v7, 6  ;;  %v14653_v15 = vld [vmem:[%s14465_s12 + $0xb8] sm:$0xff]  ;;  %v14669_v24 = vld [vmem:[%s14465_s12 + $0xc8] sm:$0xff] }
  0x20   : > { %4709 = vst.msk [vmem:[#allocation2 + $0x110] sm:$0xff] %vm522_vm2, %v14300_v1  ;;  %4710 = vst.msk [vmem:[#allocation2 + $0x118] sm:$0xff] %vm522_vm2, %v14300_v1  ;;  %10527 = vmatprep.mubr.msk.f32.mxu0 %vm14301_vm1, %v14300_v1  ;;  %v475_v62 = vsel %vm438_vm3, %v472_v57, %v474_v60  ;;  %v477_v5 = vsel %vm438_vm3, %v474_v60, %v476_v63  ;;  %v482_v14 = vrot.slane %v14645_v11, 6  ;;  %v484_v18 = vrot.slane %v14653_v15, 6  ;;  %v14685_v33 = vld [vmem:[%s14465_s12 + $0xd8] sm:$0xff]  ;;  %v14693_v38 = vld [vmem:[%s14465_s12 + $0xe0] sm:$0xff] }
  0x21   : > { %4711 = vst.msk [vmem:[#allocation2 + $0x120] sm:$0xff] %vm522_vm2, %v14300_v1  ;;  %4712 = vst.msk [vmem:[#allocation2 + $0x128] sm:$0xff] %vm522_vm2, %v14300_v1  ;;  %v479_v8 = vsel %vm438_vm3, %v476_v63, %v478_v6  ;;  %v481_v12 = vsel %vm438_vm3, %v478_v6, %v480_v10  ;;  %v488_v27 = vrot.slane %v14669_v24, 6  ;;  %v494_v42 = vrot.slane %v14693_v38, 6  ;;  %v14709_v48 = vld [vmem:[%s14465_s12 + $0xf0] sm:$0xff]  ;;  %v14725_v57 = vld [vmem:[%s14465_s12 + $0x100] sm:$0xff] }
  0x22   : > { %4713 = vst.msk [vmem:[#allocation2 + $0x130] sm:$0xff] %vm522_vm2, %v14300_v1  ;;  %4714 = vst.msk [vmem:[#allocation2 + $0x138] sm:$0xff] %vm522_vm2, %v14300_v1  ;;  %v485_v21 = vsel %vm438_vm3, %v482_v14, %v484_v18  ;;  %v498_v51 = vrot.slane %v14709_v48, 6  ;;  %v502_v60 = vrot.slane %v14725_v57, 6  ;;  %v14741_v6 = vld [vmem:[%s14465_s12 + $0x110] sm:$0xff] }
  0x23   : > { %4715 = vst.msk [vmem:[#allocation2 + $0x140] sm:$0xff] %vm522_vm2, %v14300_v1  ;;  %4716 = vst.msk [vmem:[#allocation2 + $0x148] sm:$0xff] %vm522_vm2, %v14300_v1  ;;  %10528 = vmatmul.mubr.msk.f32.gmra.mrb[6].mxu0 %vm522_vm2, %v447_v17  ;;  %v483_v17 = vsel %vm438_vm3, %v480_v10, %v482_v14  ;;  %v506_v10 = vrot.slane %v14741_v6, 6 }
  0x24   : > { %4717 = vst.msk [vmem:[#allocation2 + $0x150] sm:$0xff] %vm522_vm2, %v14300_v1  ;;  %4718 = vst.msk [vmem:[#allocation2 + $0x158] sm:$0xff] %vm522_vm2, %v14300_v1  ;;  %10530 = vmatprep.mubr.msk.f32.mxu0 %vm14301_vm1, %v14300_v1 }
  0x25   : > { %4719 = vst.msk [vmem:[#allocation2 + $0x160] sm:$0xff] %vm522_vm2, %v14300_v1  ;;  %4720 = vst.msk [vmem:[#allocation2 + $0x168] sm:$0xff] %vm522_vm2, %v14300_v1 }
  0x27   : > { %10531 = vmatmul.mubr.msk.f32.gmra.mrb[8].mxu0 %vm522_vm2, %v449_v20  ;;  %v14661_v20 = vld [vmem:[%s14465_s12 + $0xc0] sm:$0xff] }
  0x28   : > { %10533 = vmatprep.mubr.msk.f32.mxu0 %vm14301_vm1, %v14300_v1 }
  0x2b   : > { %10534 = vmatmul.mubr.msk.f32.gmra.mrb[10].mxu0 %vm522_vm2, %v451_v23  ;;  %v486_v23 = vrot.slane %v14661_v20, 6 }
  0x2c   : > { %10536 = vmatprep.mubr.msk.f32.mxu0 %vm14301_vm1, %v14300_v1 }
  0x2d   : > { %v489_v30 = vsel %vm438_vm3, %v486_v23, %v488_v27 }
  0x2f   : > { %10537 = vmatmul.mubr.msk.f32.gmra.mrb[12].mxu0 %vm522_vm2, %v453_v26  ;;  %v487_v26 = vsel %vm438_vm3, %v484_v18, %v486_v23  ;;  %v14757_v18 = vld [vmem:[%s14465_s12 + $0x120] sm:$0xff] }
  0x30   : > { %10539 = vmatprep.mubr.msk.f32.mxu0 %vm14301_vm1, %v14300_v1  ;;  %v510_v23 = vrot.slane %v14757_v18, 6 }
  0x33   : > { %10540 = vmatmul.mubr.msk.f32.gmra.mrb[14].mxu0 %vm522_vm2, %v455_v29  ;;  %v14677_v29 = vld [vmem:[%s14465_s12 + $0xd0] sm:$0xff] }
  0x34   : > { %10542 = vmatprep.mubr.msk.f32.mxu0 %vm14301_vm1, %v14300_v1 }
  0x37   : > { %10543 = vmatmul.mubr.msk.f32.gmra.mrb[16].mxu0 %vm522_vm2, %v457_v32  ;;  %v490_v32 = vrot.slane %v14677_v29, 6 }
  0x38   : > { %10545 = vmatprep.mubr.msk.f32.mxu0 %vm14301_vm1, %v14300_v1 }
  0x39   : > { %v491_v34 = vsel %vm438_vm3, %v488_v27, %v490_v32 }
  0x3b   : > { %10546 = vmatmul.mubr.msk.f32.gmra.mrb[18].mxu0 %vm522_vm2, %v459_v37  ;;  %v492_v37 = vrot.slane %v14685_v33, 6 }
  0x3c   : > { %10548 = vmatprep.mubr.msk.f32.mxu0 %vm14301_vm1, %v14300_v1 }
  0x3d   : > { %v495_v45 = vsel %vm438_vm3, %v492_v37, %v494_v42 }
  0x3f   : > { %10549 = vmatmul.mubr.msk.f32.gmra.mrb[20].mxu0 %vm522_vm2, %v461_v41  ;;  %v493_v41 = vsel %vm438_vm3, %v490_v32, %v492_v37  ;;  %v14773_v32 = vld [vmem:[%s14465_s12 + $0x130] sm:$0xff] }
  0x40   : > { %10551 = vmatprep.mubr.msk.f32.mxu0 %vm14301_vm1, %v14300_v1  ;;  %v514_v37 = vrot.slane %v14773_v32, 6 }
  0x43   : > { %10552 = vmatmul.mubr.msk.f32.gmra.mrb[22].mxu0 %vm522_vm2, %v463_v44  ;;  %v14701_v44 = vld [vmem:[%s14465_s12 + $0xe8] sm:$0xff] }
  0x44   : > { %10554 = vmatprep.mubr.msk.f32.mxu0 %vm14301_vm1, %v14300_v1 }
  0x47   : > { %10555 = vmatmul.mubr.msk.f32.gmra.mrb[24].mxu0 %vm522_vm2, %v465_v47  ;;  %v496_v47 = vrot.slane %v14701_v44, 6 }
  0x48   : > { %10557 = vmatprep.mubr.msk.f32.mxu0 %vm14301_vm1, %v14300_v1 }
  0x49   : > { %v499_v54 = vsel %vm438_vm3, %v496_v47, %v498_v51 }
  0x4b   : > { %10558 = vmatmul.mubr.msk.f32.gmra.mrb[26].mxu0 %vm522_vm2, %v467_v50  ;;  %v497_v50 = vsel %vm438_vm3, %v494_v42, %v496_v47  ;;  %v14789_v47 = vld [vmem:[%s14465_s12 + $0x140] sm:$0xff] }
  0x4c   : > { %10560 = vmatprep.mubr.msk.f32.mxu0 %vm14301_vm1, %v14300_v1 }
  0x4f   : > { %10561 = vmatmul.mubr.msk.f32.gmra.mrb[28].mxu0 %vm522_vm2, %v469_v53  ;;  %v14717_v53 = vld [vmem:[%s14465_s12 + $0xf8] sm:$0xff] }
  0x50   : > { %10563 = vmatprep.mubr.msk.f32.mxu0 %vm14301_vm1, %v14300_v1 }
  0x53   : > { %10564 = vmatmul.mubr.msk.f32.gmra.mrb[30].mxu0 %vm522_vm2, %v471_v56  ;;  %v500_v56 = vrot.slane %v14717_v53, 6 }
  0x54   : > { %10566 = vmatprep.mubr.msk.f32.mxu0 %vm14301_vm1, %v14300_v1 }
  0x55   : > { %v503_v63 = vsel %vm438_vm3, %v500_v56, %v502_v60 }
  0x57   : > { %10567 = vmatmul.mubr.msk.f32.gmra.mrb[32].mxu0 %vm522_vm2, %v473_v59  ;;  %v501_v59 = vsel %vm438_vm3, %v498_v51, %v500_v56  ;;  %v518_v51 = vrot.slane %v14789_v47, 6 }
  0x58   : > { %10569 = vmatprep.mubr.msk.f32.mxu0 %vm14301_vm1, %v14300_v1 }
  0x5b   : > { %10570 = vmatmul.mubr.msk.f32.gmra.mrb[34].mxu0 %vm522_vm2, %v475_v62  ;;  %v14733_v62 = vld [vmem:[%s14465_s12 + $0x108] sm:$0xff] }
  0x5c   : > { %10572 = vmatprep.mubr.msk.f32.mxu0 %vm14301_vm1, %v14300_v1 }
  0x5f   : > { %10573 = vmatmul.mubr.msk.f32.gmra.mrb[36].mxu0 %vm522_vm2, %v477_v5  ;;  %v504_v5 = vrot.slane %v14733_v62, 6 }
  0x60   : > { %10575 = vmatprep.mubr.msk.f32.mxu0 %vm14301_vm1, %v14300_v1 }
  0x61   : > { %v507_v14 = vsel %vm438_vm3, %v504_v5, %v506_v10 }
  0x63   : > { %10576 = vmatmul.mubr.msk.f32.gmra.mrb[38].mxu0 %vm522_vm2, %v479_v8  ;;  %v505_v8 = vsel %vm438_vm3, %v502_v60, %v504_v5  ;;  %v9067_v5 = vld [vmem:[%s19436_s1 + $0x8] sm:$0xf] }
  0x64   : > { %10578 = vmatprep.mubr.msk.f32.mxu0 %vm14301_vm1, %v14300_v1 }
  0x67   : > { %10579 = vmatmul.mubr.msk.f32.gmra.mrb[40].mxu0 %vm522_vm2, %v481_v12  ;;  %v14749_v12 = vld [vmem:[%s14465_s12 + $0x118] sm:$0xff] }
  0x68   : > { %10581 = vmatprep.mubr.msk.f32.mxu0 %vm14301_vm1, %v14300_v1 }
  0x6b   : > { %10582 = vmatmul.mubr.msk.f32.gmra.mrb[42].mxu0 %vm522_vm2, %v483_v17  ;;  %v508_v17 = vrot.slane %v14749_v12, 6 }
  0x6c   : > { %10584 = vmatprep.mubr.msk.f32.mxu0 %vm14301_vm1, %v14300_v1 }
  0x6d   : > { %v511_v27 = vsel %vm438_vm3, %v508_v17, %v510_v23 }
  0x6f   : > { %10585 = vmatmul.mubr.msk.f32.gmra.mrb[44].mxu0 %vm522_vm2, %v485_v21  ;;  %v509_v21 = vsel %vm438_vm3, %v506_v10, %v508_v17  ;;  %v885_v10 = vrot.slane %v14483_v9, 5  ;;  %v889_v17 = vrot.slane %v14502_v16, 5 }
  0x70   : > { %10587 = vmatprep.mubr.msk.f32.mxu0 %vm14301_vm1, %v14300_v1 }
  0x73   : > { %10588 = vmatmul.mubr.msk.f32.gmra.mrb[46].mxu0 %vm522_vm2, %v487_v26  ;;  %v14765_v26 = vld [vmem:[%s14465_s12 + $0x128] sm:$0xff] }
  0x74   : > { %10590 = vmatprep.mubr.msk.f32.mxu0 %vm14301_vm1, %v14300_v1 }
  0x77   : > { %10591 = vmatmul.mubr.msk.f32.gmra.mrb[48].mxu0 %vm522_vm2, %v489_v30  ;;  %v512_v30 = vrot.slane %v14765_v26, 6 }
  0x78   : > { %10593 = vmatprep.mubr.msk.f32.mxu0 %vm14301_vm1, %v14300_v1 }
  0x79   : > { %v515_v42 = vsel %vm438_vm3, %v512_v30, %v514_v37 }
  0x7b   : > { %10594 = vmatmul.mubr.msk.f32.gmra.mrb[50].mxu0 %vm522_vm2, %v491_v34  ;;  %v513_v34 = vsel %vm438_vm3, %v510_v23, %v512_v30  ;;  %v891_v23 = vrot.slane %v14510_v19, 5  ;;  %v893_v30 = vrot.slane %v14518_v22, 5 }
  0x7c   : > { %10596 = vmatprep.mubr.msk.f32.mxu0 %vm14301_vm1, %v14300_v1 }
  0x7f   : > { %10597 = vmatmul.mubr.msk.f32.gmra.mrb[52].mxu0 %vm522_vm2, %v493_v41  ;;  %v14781_v41 = vld [vmem:[%s14465_s12 + $0x138] sm:$0xff] }
  0x80   : > { %10599 = vmatprep.mubr.msk.f32.mxu0 %vm14301_vm1, %v14300_v1 }
  0x83   : > { %10600 = vmatmul.mubr.msk.f32.gmra.mrb[54].mxu0 %vm522_vm2, %v495_v45  ;;  %v516_v45 = vrot.slane %v14781_v41, 6 }
  0x84   : > { %10602 = vmatprep.mubr.msk.f32.mxu0 %vm14301_vm1, %v14300_v1 }
  0x85   : > { %v519_v56 = vsel %vm438_vm3, %v516_v45, %v518_v51 }
  0x87   : > { %10603 = vmatmul.mubr.msk.f32.gmra.mrb[56].mxu0 %vm522_vm2, %v497_v50  ;;  %v517_v50 = vsel %vm438_vm3, %v514_v37, %v516_v45  ;;  %v895_v37 = vrot.slane %v14526_v25, 5  ;;  %v897_v45 = vrot.slane %v14534_v28, 5 }
  0x88   : > { %10605 = vmatprep.mubr.msk.f32.mxu0 %vm14301_vm1, %v14300_v1 }
  0x8b   : > { %10606 = vmatmul.mubr.msk.f32.gmra.mrb[58].mxu0 %vm522_vm2, %v499_v54  ;;  %v14797_v54 = vld [vmem:[%s14465_s12 + $0x148] sm:$0xff] }
  0x8c   : > { %10608 = vmatprep.mubr.msk.f32.mxu0 %vm14301_vm1, %v14300_v1 }
  0x8f   : > { %10609 = vmatmul.mubr.msk.f32.gmra.mrb[60].mxu0 %vm522_vm2, %v501_v59  ;;  %v520_v59 = vrot.slane %v14797_v54, 6 }
  0x90   : > { %10611 = vmatprep.mubr.msk.f32.mxu0 %vm14301_vm1, %v14300_v1 }
  0x91   : > { %v521_v60 = vsel %vm438_vm3, %v518_v51, %v520_v59  ;;  %v899_v51 = vrot.slane %v14542_v31, 5  ;;  %v1322_v59 = vrot.slane %v14471_v3, 7 }
  0x93   : > { %10612 = vmatmul.mubr.msk.f32.gmra.mrb[62].mxu0 %vm522_vm2, %v503_v63  ;;  %v883_v63 = vrot.slane %v14474_v4, 5 }
  0x94   : > { %10614 = vmatprep.mubr.msk.f32.mxu0 %vm14301_vm1, %v14300_v1 }
  0x97   : > { %10615 = vmatmul.mubr.msk.f32.gmra.mrb[64].mxu0 %vm522_vm2, %v505_v8  ;;  %v884_v8 = vsel %vm879_vm4, %v881_v35, %v883_v63 }
  0x98   : > { %10617 = vmatprep.mubr.msk.f32.mxu0 %vm14301_vm1, %v14300_v1 }
  0x9b   : > { %10618 = vmatmul.mubr.msk.f32.gmra.mrb[66].mxu0 %vm522_vm2, %v507_v14  ;;  %v887_v14 = vrot.slane %v14493_v13, 5 }
  0x9c   : > { %10620 = vmatprep.mubr.msk.f32.mxu0 %vm14301_vm1, %v14300_v1 }
  0x9d   : > { %v888_v35 = vsel %vm879_vm4, %v885_v10, %v887_v14 }
  0x9f   : > { %10621 = vmatmul.mubr.msk.f32.gmra.mrb[68].mxu0 %vm522_vm2, %v509_v21  ;;  %v890_v21 = vsel %vm879_vm4, %v887_v14, %v889_v17 }
  0xa0   : > { %10623 = vmatprep.mubr.msk.f32.mxu0 %vm14301_vm1, %v14300_v1 }
  0xa3   : > { %10624 = vmatmul.mubr.msk.f32.gmra.mrb[70].mxu0 %vm522_vm2, %v511_v27  ;;  %v892_v27 = vsel %vm879_vm4, %v889_v17, %v891_v23 }
  0xa4   : > { %10626 = vmatprep.mubr.msk.f32.mxu0 %vm14301_vm1, %v14300_v1 }
  0xa7   : > { %10627 = vmatmul.mubr.msk.f32.gmra.mrb[72].mxu0 %vm522_vm2, %v513_v34  ;;  %v894_v34 = vsel %vm879_vm4, %v891_v23, %v893_v30 }
  0xa8   : > { %10629 = vmatprep.mubr.msk.f32.mxu0 %vm14301_vm1, %v14300_v1 }
  0xab   : > { %10630 = vmatmul.mubr.msk.f32.gmra.mrb[74].mxu0 %vm522_vm2, %v515_v42  ;;  %v896_v42 = vsel %vm879_vm4, %v893_v30, %v895_v37 }
  0xac   : > { %10632 = vmatprep.mubr.msk.f32.mxu0 %vm14301_vm1, %v14300_v1 }
  0xaf   : > { %10633 = vmatmul.mubr.msk.f32.gmra.mrb[76].mxu0 %vm522_vm2, %v517_v50  ;;  %v898_v50 = vsel %vm879_vm4, %v895_v37, %v897_v45 }
  0xb0   : > { %10635 = vmatprep.mubr.msk.f32.mxu0 %vm14301_vm1, %v14300_v1 }
  0xb3   : > { %10636 = vmatmul.mubr.msk.f32.gmra.mrb[78].mxu0 %vm522_vm2, %v519_v56  ;;  %v1321_v56 = vrot.slane %v14468_v2, 7 }
  0xb4   : > { %10638 = vmatprep.mubr.msk.f32.mxu0 %vm14301_vm1, %v14300_v1 }
  0xb7   : > { %10639 = vmatmul.mubr.msk.f32.gmra.mrb[80].mxu0 %vm522_vm2, %v521_v60  ;;  %v900_v60 = vsel %vm879_vm4, %v897_v45, %v899_v51 }
  0xb8   : > { %10643 = vmatprep.mubr.msk.f32.mxu0 %vm14301_vm1, %v14300_v1 }
  0xbb   : > { %10644 = vmatmul.mubr.msk.f32.vlgmr.msra.gmra.mrb[0].mxu0 %vm522_vm2, %v14565_v40  ;;  %v886_v40 = vsel %vm879_vm4, %v883_v63, %v885_v10  ;;  %v901_v63 = vrot.slane %v14552_v36, 5 }
  0xbc   : > { %10767 = vmatpush3.msk.msra.mxu0 %vm605_vm0, %v9067_v5  ;;  %10646 = vmatprep.mubr.msk.f32.mxu0 %vm14301_vm1, %v14300_v1  ;;  %v14870_v5 = vsel %vm1320_vm5, %v1321_v56, %v1322_v59  ;;  %v919_v56 = vrot.slane %v14629_v0, 5 }
  0xbd   : > { %10891 = vmatprep.subr.mxu0 %v14300_v1  ;;  %v902_v2 = vsel %vm879_vm4, %v899_v51, %v901_v63 }
  0xbf   : > { %10647 = vmatmul.mubr.msk.f32.gmra.mrb[2].mxu0 %vm522_vm2, %v884_v8  ;;  %v903_v8 = vrot.slane %v14560_v39, 5 }
  0xc0   : > { %10649 = vmatprep.mubr.msk.f32.mxu0 %vm14301_vm1, %v14300_v1 }
  0xc1   : > { %v904_v10 = vsel %vm879_vm4, %v901_v63, %v903_v8  ;;  %v921_v63 = vrot.slane %v14637_v7, 5 }
  0xc3   : > { %10650 = vmatmul.mubr.msk.f32.gmra.mrb[4].mxu0 %vm522_vm2, %v886_v40  ;;  %v905_v40 = vrot.slane %v14573_v43, 5 }
  0xc4   : > { %10652 = vmatprep.mubr.msk.f32.mxu0 %vm14301_vm1, %v14300_v1 }
  0xc5   : > { %v906_v14 = vsel %vm879_vm4, %v903_v8, %v905_v40  ;;  %v923_v8 = vrot.slane %v14645_v11, 5 }
  0xc7   : > { %10653 = vmatmul.mubr.msk.f32.gmra.mrb[6].mxu0 %vm522_vm2, %v888_v35  ;;  %v907_v35 = vrot.slane %v14581_v46, 5 }
  0xc8   : > { %10655 = vmatprep.mubr.msk.f32.mxu0 %vm14301_vm1, %v14300_v1 }
  0xc9   : > { %v908_v17 = vsel %vm879_vm4, %v905_v40, %v907_v35  ;;  %v925_v40 = vrot.slane %v14653_v15, 5 }
  0xcb   : > { %10656 = vmatmul.mubr.msk.f32.gmra.mrb[8].mxu0 %vm522_vm2, %v890_v21  ;;  %v909_v21 = vrot.slane %v14589_v49, 5 }
  0xcc   : > { %10658 = vmatprep.mubr.msk.f32.mxu0 %vm14301_vm1, %v14300_v1 }
  0xcd   : > { %v910_v23 = vsel %vm879_vm4, %v907_v35, %v909_v21  ;;  %v927_v35 = vrot.slane %v14661_v20, 5 }
  0xcf   : > { %10659 = vmatmul.mubr.msk.f32.gmra.mrb[10].mxu0 %vm522_vm2, %v892_v27  ;;  %v911_v27 = vrot.slane %v14597_v52, 5 }
  0xd0   : > { %10661 = vmatprep.mubr.msk.f32.mxu0 %vm14301_vm1, %v14300_v1 }
  0xd1   : > { %v912_v30 = vsel %vm879_vm4, %v909_v21, %v911_v27  ;;  %v929_v21 = vrot.slane %v14669_v24, 5 }
  0xd3   : > { %10662 = vmatmul.mubr.msk.f32.gmra.mrb[12].mxu0 %vm522_vm2, %v894_v34  ;;  %v913_v34 = vrot.slane %v14605_v55, 5 }
  0xd4   : > { %10664 = vmatprep.mubr.msk.f32.mxu0 %vm14301_vm1, %v14300_v1 }
  0xd5   : > { %v914_v37 = vsel %vm879_vm4, %v911_v27, %v913_v34  ;;  %v931_v27 = vrot.slane %v14677_v29, 5 }
  0xd7   : > { %10665 = vmatmul.mubr.msk.f32.gmra.mrb[14].mxu0 %vm522_vm2, %v896_v42  ;;  %v915_v42 = vrot.slane %v14613_v58, 5 }
  0xd8   : > { %10667 = vmatprep.mubr.msk.f32.mxu0 %vm14301_vm1, %v14300_v1 }
  0xd9   : > { %v916_v45 = vsel %vm879_vm4, %v913_v34, %v915_v42  ;;  %v933_v34 = vrot.slane %v14685_v33, 5 }
  0xdb   : > { %10668 = vmatmul.mubr.msk.f32.gmra.mrb[16].mxu0 %vm522_vm2, %v898_v50  ;;  %v917_v50 = vrot.slane %v14621_v61, 5 }
  0xdc   : > { %10670 = vmatprep.mubr.msk.f32.mxu0 %vm14301_vm1, %v14300_v1 }
  0xdd   : > { %v918_v51 = vsel %vm879_vm4, %v915_v42, %v917_v50  ;;  %v935_v42 = vrot.slane %v14693_v38, 5 }
  0xdf   : > { %10671 = vmatmul.mubr.msk.f32.gmra.mrb[18].mxu0 %vm522_vm2, %v900_v60  ;;  %v920_v60 = vsel %vm879_vm4, %v917_v50, %v919_v56  ;;  %v937_v50 = vrot.slane %v14701_v44, 5 }
  0xe0   : > { %10673 = vmatprep.mubr.msk.f32.mxu0 %vm14301_vm1, %v14300_v1 }
  0xe3   : > { %10674 = vmatmul.mubr.msk.f32.gmra.mrb[20].mxu0 %vm522_vm2, %v902_v2  ;;  %v922_v2 = vsel %vm879_vm4, %v919_v56, %v921_v63  ;;  %v939_v56 = vrot.slane %v14709_v48, 5 }
  0xe4   : > { %10676 = vmatprep.mubr.msk.f32.mxu0 %vm14301_vm1, %v14300_v1 }
  0xe7   : > { %10677 = vmatmul.mubr.msk.f32.gmra.mrb[22].mxu0 %vm522_vm2, %v904_v10  ;;  %v924_v10 = vsel %vm879_vm4, %v921_v63, %v923_v8  ;;  %v941_v63 = vrot.slane %v14717_v53, 5 }
  0xe8   : > { %10679 = vmatprep.mubr.msk.f32.mxu0 %vm14301_vm1, %v14300_v1 }
  0xeb   : > { %10680 = vmatmul.mubr.msk.f32.gmra.mrb[24].mxu0 %vm522_vm2, %v906_v14  ;;  %v926_v14 = vsel %vm879_vm4, %v923_v8, %v925_v40  ;;  %v943_v8 = vrot.slane %v14725_v57, 5 }
  0xec   : > { %10682 = vmatprep.mubr.msk.f32.mxu0 %vm14301_vm1, %v14300_v1 }
  0xef   : > { %10683 = vmatmul.mubr.msk.f32.gmra.mrb[26].mxu0 %vm522_vm2, %v908_v17  ;;  %v928_v17 = vsel %vm879_vm4, %v925_v40, %v927_v35  ;;  %v945_v40 = vrot.slane %v14733_v62, 5 }
  0xf0   : > { %10685 = vmatprep.mubr.msk.f32.mxu0 %vm14301_vm1, %v14300_v1 }
  0xf3   : > { %10686 = vmatmul.mubr.msk.f32.gmra.mrb[28].mxu0 %vm522_vm2, %v910_v23  ;;  %v930_v23 = vsel %vm879_vm4, %v927_v35, %v929_v21  ;;  %v947_v35 = vrot.slane %v14741_v6, 5 }
  0xf4   : > { %10688 = vmatprep.mubr.msk.f32.mxu0 %vm14301_vm1, %v14300_v1 }
  0xf7   : > { %10689 = vmatmul.mubr.msk.f32.gmra.mrb[30].mxu0 %vm522_vm2, %v912_v30  ;;  %v932_v30 = vsel %vm879_vm4, %v929_v21, %v931_v27  ;;  %v949_v21 = vrot.slane %v14749_v12, 5 }
  0xf8   : > { %10691 = vmatprep.mubr.msk.f32.mxu0 %vm14301_vm1, %v14300_v1 }
  0xfb   : > { %10692 = vmatmul.mubr.msk.f32.gmra.mrb[32].mxu0 %vm522_vm2, %v914_v37  ;;  %v934_v37 = vsel %vm879_vm4, %v931_v27, %v933_v34  ;;  %v951_v27 = vrot.slane %v14757_v18, 5 }
  0xfc   : > { %10694 = vmatprep.mubr.msk.f32.mxu0 %vm14301_vm1, %v14300_v1 }
  0xff   : > { %10695 = vmatmul.mubr.msk.f32.gmra.mrb[34].mxu0 %vm522_vm2, %v916_v45  ;;  %v936_v45 = vsel %vm879_vm4, %v933_v34, %v935_v42  ;;  %v953_v34 = vrot.slane %v14765_v26, 5 }
 0x100   : > { %10697 = vmatprep.mubr.msk.f32.mxu0 %vm14301_vm1, %v14300_v1 }
 0x103   : > { %10698 = vmatmul.mubr.msk.f32.gmra.mrb[36].mxu0 %vm522_vm2, %v918_v51  ;;  %v938_v51 = vsel %vm879_vm4, %v935_v42, %v937_v50  ;;  %v955_v42 = vrot.slane %v14773_v32, 5 }
 0x104   : > { %10700 = vmatprep.mubr.msk.f32.mxu0 %vm14301_vm1, %v14300_v1 }
 0x107   : > { %10701 = vmatmul.mubr.msk.f32.gmra.mrb[38].mxu0 %vm522_vm2, %v920_v60  ;;  %v940_v60 = vsel %vm879_vm4, %v937_v50, %v939_v56  ;;  %v957_v50 = vrot.slane %v14781_v41, 5 }
 0x108   : > { %10703 = vmatprep.mubr.msk.f32.mxu0 %vm14301_vm1, %v14300_v1 }
 0x10b   : > { %10704 = vmatmul.mubr.msk.f32.gmra.mrb[40].mxu0 %vm522_vm2, %v922_v2  ;;  %v942_v2 = vsel %vm879_vm4, %v939_v56, %v941_v63  ;;  %v959_v56 = vrot.slane %v14789_v47, 5 }
 0x10c   : > { %10706 = vmatprep.mubr.msk.f32.mxu0 %vm14301_vm1, %v14300_v1 }
 0x10f   : > { %10707 = vmatmul.mubr.msk.f32.gmra.mrb[42].mxu0 %vm522_vm2, %v924_v10  ;;  %v944_v10 = vsel %vm879_vm4, %v941_v63, %v943_v8  ;;  %v961_v63 = vrot.slane %v14797_v54, 5 }
 0x110   : > { %10709 = vmatprep.mubr.msk.f32.mxu0 %vm14301_vm1, %v14300_v1 }
 0x113   : > { %10710 = vmatmul.mubr.msk.f32.gmra.mrb[44].mxu0 %vm522_vm2, %v926_v14  ;;  %v946_v14 = vsel %vm879_vm4, %v943_v8, %v945_v40  ;;  %v1324_v8 = vrot.slane %v14474_v4, 7 }
 0x114   : > { %10712 = vmatprep.mubr.msk.f32.mxu0 %vm14301_vm1, %v14300_v1 }
 0x117   : > { %10713 = vmatmul.mubr.msk.f32.gmra.mrb[46].mxu0 %vm522_vm2, %v928_v17  ;;  %v948_v17 = vsel %vm879_vm4, %v945_v40, %v947_v35  ;;  %v1325_v40 = vsel %vm1320_vm5, %v1322_v59, %v1324_v8 }
 0x118   : > { %10715 = vmatprep.mubr.msk.f32.mxu0 %vm14301_vm1, %v14300_v1 }
 0x11b   : > { %10716 = vmatmul.mubr.msk.f32.gmra.mrb[48].mxu0 %vm522_vm2, %v930_v23  ;;  %v950_v23 = vsel %vm879_vm4, %v947_v35, %v949_v21 }
 0x11c   : > { %10718 = vmatprep.mubr.msk.f32.mxu0 %vm14301_vm1, %v14300_v1 }
 0x11f   : > { %10719 = vmatmul.mubr.msk.f32.gmra.mrb[50].mxu0 %vm522_vm2, %v932_v30  ;;  %v952_v30 = vsel %vm879_vm4, %v949_v21, %v951_v27 }
 0x120   : > { %10721 = vmatprep.mubr.msk.f32.mxu0 %vm14301_vm1, %v14300_v1 }
 0x123   : > { %10722 = vmatmul.mubr.msk.f32.gmra.mrb[52].mxu0 %vm522_vm2, %v934_v37  ;;  %v954_v37 = vsel %vm879_vm4, %v951_v27, %v953_v34 }
 0x124   : > { %10724 = vmatprep.mubr.msk.f32.mxu0 %vm14301_vm1, %v14300_v1 }
 0x127   : > { %10725 = vmatmul.mubr.msk.f32.gmra.mrb[54].mxu0 %vm522_vm2, %v936_v45  ;;  %v956_v45 = vsel %vm879_vm4, %v953_v34, %v955_v42 }
 0x128   : > { %10727 = vmatprep.mubr.msk.f32.mxu0 %vm14301_vm1, %v14300_v1 }
 0x12b   : > { %10728 = vmatmul.mubr.msk.f32.gmra.mrb[56].mxu0 %vm522_vm2, %v938_v51  ;;  %v958_v51 = vsel %vm879_vm4, %v955_v42, %v957_v50 }
 0x12c   : > { %10730 = vmatprep.mubr.msk.f32.mxu0 %vm14301_vm1, %v14300_v1 }
 0x12f   : > { %10731 = vmatmul.mubr.msk.f32.gmra.mrb[58].mxu0 %vm522_vm2, %v940_v60  ;;  %v960_v60 = vsel %vm879_vm4, %v957_v50, %v959_v56 }
 0x130   : > { %10733 = vmatprep.mubr.msk.f32.mxu0 %vm14301_vm1, %v14300_v1 }
 0x133   : > { %10734 = vmatmul.mubr.msk.f32.gmra.mrb[60].mxu0 %vm522_vm2, %v942_v2  ;;  %v962_v2 = vsel %vm879_vm4, %v959_v56, %v961_v63 }
 0x134   : > { %10736 = vmatprep.mubr.msk.f32.mxu0 %vm14301_vm1, %v14300_v1 }
 0x137   : > { %10737 = vmatmul.mubr.msk.f32.gmra.mrb[62].mxu0 %vm522_vm2, %v944_v10  ;;  %v9110_v10 = vld [vmem:[%s19436_s1 + $0xc] sm:$0xf] }
 0x138   : > { %10739 = vmatprep.mubr.msk.f32.mxu0 %vm14301_vm1, %v14300_v1 }
 0x13b   : > { %10740 = vmatmul.mubr.msk.f32.gmra.mrb[64].mxu0 %vm522_vm2, %v946_v14  ;;  %v1326_v14 = vrot.slane %v14483_v9, 7  ;;  %v1330_v9 = vrot.slane %v14502_v16, 7  ;;  %v1334_v16 = vrot.slane %v14518_v22, 7  ;;  %v1338_v22 = vrot.slane %v14534_v28, 7 }
 0x13c   : > { %10742 = vmatprep.mubr.msk.f32.mxu0 %vm14301_vm1, %v14300_v1  ;;  %v1342_v28 = vrot.slane %v14552_v36, 7  ;;  %v1346_v36 = vrot.slane %v14573_v43, 7  ;;  %v1350_v43 = vrot.slane %v14589_v49, 7  ;;  %v1354_v49 = vrot.slane %v14605_v55, 7 }
 0x13d   : > { %v15047_v4 = vsel %vm1320_vm5, %v1324_v8, %v1326_v14  ;;  %v1358_v55 = vrot.slane %v14621_v61, 7  ;;  %v1362_v61 = vrot.slane %v14637_v7, 7  ;;  %v1366_v7 = vrot.slane %v14653_v15, 7 }
 0x13e   : > { %v1370_v15 = vrot.slane %v14669_v24, 7  ;;  %v1374_v24 = vrot.slane %v14685_v33, 7  ;;  %v1378_v33 = vrot.slane %v14701_v44, 7  ;;  %v1382_v44 = vrot.slane %v14717_v53, 7 }
 0x13f   : > { %10743 = vmatmul.mubr.msk.f32.gmra.mrb[66].mxu0 %vm522_vm2, %v948_v17  ;;  %v1386_v53 = vrot.slane %v14733_v62, 7  ;;  %v1390_v62 = vrot.slane %v14749_v12, 7  ;;  %v1394_v12 = vrot.slane %v14765_v26, 7  ;;  %v1398_v26 = vrot.slane %v14781_v41, 7 }
 0x140   : > { %10745 = vmatprep.mubr.msk.f32.mxu0 %vm14301_vm1, %v14300_v1  ;;  %v1402_v41 = vrot.slane %v14797_v54, 7  ;;  %v9196_v54 = vld [vmem:[%s19436_s1 + $0x14] sm:$0xf] }
 0x143   : > { %10746 = vmatmul.mubr.msk.f32.gmra.mrb[68].mxu0 %vm522_vm2, %v950_v23 }
 0x144   : > { %10748 = vmatprep.mubr.msk.f32.mxu0 %vm14301_vm1, %v14300_v1 }
 0x147   : > { %10749 = vmatmul.mubr.msk.f32.gmra.mrb[70].mxu0 %vm522_vm2, %v952_v30 }
 0x148   : > { %10751 = vmatprep.mubr.msk.f32.mxu0 %vm14301_vm1, %v14300_v1 }
 0x14b   : > { %10752 = vmatmul.mubr.msk.f32.gmra.mrb[72].mxu0 %vm522_vm2, %v954_v37 }
 0x14c   : > { %10754 = vmatprep.mubr.msk.f32.mxu0 %vm14301_vm1, %v14300_v1 }
 0x14f   : > { %10755 = vmatmul.mubr.msk.f32.gmra.mrb[74].mxu0 %vm522_vm2, %v956_v45 }
 0x150   : > { %10757 = vmatprep.mubr.msk.f32.mxu0 %vm14301_vm1, %v14300_v1 }
 0x153   : > { %10758 = vmatmul.mubr.msk.f32.gmra.mrb[76].mxu0 %vm522_vm2, %v958_v51 }
 0x154   : > { %10760 = vmatprep.mubr.msk.f32.mxu0 %vm14301_vm1, %v14300_v1 }
 0x157   : > { %10761 = vmatmul.mubr.msk.f32.gmra.mrb[78].mxu0 %vm522_vm2, %v960_v60 }
 0x158   : > { %10763 = vmatprep.mubr.msk.f32.mxu0 %vm14301_vm1, %v14300_v1 }
 0x15b   : > { %10764 = vmatmul.mubr.msk.f32.gmra.mrb[80].mxu0 %vm522_vm2, %v962_v2 }
 0x15c   : > { %10768 = vmatprep.mubr.msk.f32.mxu0 %vm14301_vm1, %v14300_v1 }
 0x15f   : > { %10769 = vmatmul.mubr.msk.f32.vlgmr.msra.gmra.mrb[0].mxu0 %vm522_vm2, %v14870_v5  ;;  %v1328_v5 = vrot.slane %v14493_v13, 7  ;;  %v1332_v13 = vrot.slane %v14510_v19, 7  ;;  %v1336_v19 = vrot.slane %v14526_v25, 7  ;;  %v1340_v25 = vrot.slane %v14542_v31, 7 }
 0x160   : > { %10892 = vmatpush3.msk.msra.mxu0 %vm605_vm0, %v9110_v10  ;;  %10771 = vmatprep.mubr.msk.f32.mxu0 %vm14301_vm1, %v14300_v1  ;;  %v1344_v31 = vrot.slane %v14560_v39, 7  ;;  %v1348_v39 = vrot.slane %v14581_v46, 7  ;;  %v1352_v46 = vrot.slane %v14597_v52, 7  ;;  %v1356_v52 = vrot.slane %v14613_v58, 7 }
 0x161   : > { %11016 = vmatprep.subr.mxu0 %v14300_v1  ;;  %v15055_v3 = vsel %vm1320_vm5, %v1326_v14, %v1328_v5  ;;  %v15063_v59 = vsel %vm1320_vm5, %v1328_v5, %v1330_v9  ;;  %v15071_v35 = vsel %vm1320_vm5, %v1330_v9, %v1332_v13  ;;  %v15079_v17 = vsel %vm1320_vm5, %v1332_v13, %v1334_v16 }
 0x162   : > { %v15087_v21 = vsel %vm1320_vm5, %v1334_v16, %v1336_v19  ;;  %v15095_v23 = vsel %vm1320_vm5, %v1336_v19, %v1338_v22  ;;  %v15103_v27 = vsel %vm1320_vm5, %v1338_v22, %v1340_v25  ;;  %v15111_v30 = vsel %vm1320_vm5, %v1340_v25, %v1342_v28 }
 0x163   : > { %10772 = vmatmul.mubr.msk.f32.gmra.mrb[2].mxu0 %vm522_vm2, %v1325_v40  ;;  %v15119_v34 = vsel %vm1320_vm5, %v1342_v28, %v1344_v31  ;;  %v15127_v37 = vsel %vm1320_vm5, %v1344_v31, %v1346_v36  ;;  %v15135_v42 = vsel %vm1320_vm5, %v1346_v36, %v1348_v39  ;;  %v15143_v45 = vsel %vm1320_vm5, %v1348_v39, %v1350_v43 }
 0x164   : > { %10774 = vmatprep.mubr.msk.f32.mxu0 %vm14301_vm1, %v14300_v1  ;;  %v15151_v50 = vsel %vm1320_vm5, %v1350_v43, %v1352_v46  ;;  %v15159_v51 = vsel %vm1320_vm5, %v1352_v46, %v1354_v49  ;;  %v15167_v56 = vsel %vm1320_vm5, %v1354_v49, %v1356_v52  ;;  %v15175_v60 = vsel %vm1320_vm5, %v1356_v52, %v1358_v55 }
 0x165   : > { %v1360_v58 = vrot.slane %v14629_v0, 7  ;;  %v1364_v0 = vrot.slane %v14645_v11, 7  ;;  %v1368_v11 = vrot.slane %v14661_v20, 7  ;;  %v1372_v20 = vrot.slane %v14677_v29, 7 }
 0x166   : > { %v1376_v29 = vrot.slane %v14693_v38, 7  ;;  %v1380_v38 = vrot.slane %v14709_v48, 7  ;;  %v1384_v48 = vrot.slane %v14725_v57, 7  ;;  %v1388_v57 = vrot.slane %v14741_v6, 7 }
 0x167   : > { %10775 = vmatmul.mubr.msk.f32.gmra.mrb[4].mxu0 %vm522_vm2, %v15047_v4  ;;  %v15183_v63 = vsel %vm1320_vm5, %v1358_v55, %v1360_v58  ;;  %v15191_v2 = vsel %vm1320_vm5, %v1360_v58, %v1362_v61  ;;  %v15199_v8 = vsel %vm1320_vm5, %v1362_v61, %v1364_v0  ;;  %v15207_v10 = vsel %vm1320_vm5, %v1364_v0, %v1366_v7  ;;  %v9153_v55 = vld [vmem:[%s19436_s1 + $0x10] sm:$0xf]  ;;  %v15635_v61 = vld [vmem:[%s14465_s12 + $0x80] sm:$0xff] }
 0x168   : > { %10777 = vmatprep.mubr.msk.f32.mxu0 %vm14301_vm1, %v14300_v1  ;;  %v15215_v40 = vsel %vm1320_vm5, %v1366_v7, %v1368_v11  ;;  %v15223_v14 = vsel %vm1320_vm5, %v1368_v11, %v1370_v15  ;;  %v15231_v5 = vsel %vm1320_vm5, %v1370_v15, %v1372_v20  ;;  %v15239_v9 = vsel %vm1320_vm5, %v1372_v20, %v1374_v24  ;;  %v15621_v58 = vld [vmem:[%s14465_s12 + $0x70] sm:$0xff]  ;;  %v15663_v7 = vld [vmem:[%s14465_s12 + $0xa0] sm:$0xff] }
 0x169   : > { %v15247_v13 = vsel %vm1320_vm5, %v1374_v24, %v1376_v29  ;;  %v15255_v16 = vsel %vm1320_vm5, %v1376_v29, %v1378_v33  ;;  %v15263_v19 = vsel %vm1320_vm5, %v1378_v33, %v1380_v38  ;;  %v15271_v22 = vsel %vm1320_vm5, %v1380_v38, %v1382_v44  ;;  %v15649_v0 = vld [vmem:[%s14465_s12 + $0x90] sm:$0xff]  ;;  %v15691_v15 = vld [vmem:[%s14465_s12 + $0xc0] sm:$0xff] }
 0x16a   : > { %v15279_v25 = vsel %vm1320_vm5, %v1382_v44, %v1384_v48  ;;  %v15287_v28 = vsel %vm1320_vm5, %v1384_v48, %v1386_v53  ;;  %v15295_v31 = vsel %vm1320_vm5, %v1386_v53, %v1388_v57  ;;  %v15303_v36 = vsel %vm1320_vm5, %v1388_v57, %v1390_v62  ;;  %v15677_v11 = vld [vmem:[%s14465_s12 + $0xb0] sm:$0xff]  ;;  %v15719_v24 = vld [vmem:[%s14465_s12 + $0xe0] sm:$0xff] }
 0x16b   : > { %10778 = vmatmul.mubr.msk.f32.gmra.mrb[6].mxu0 %vm522_vm2, %v15055_v3  ;;  %v1392_v6 = vrot.slane %v14757_v18, 7  ;;  %v1396_v18 = vrot.slane %v14773_v32, 7  ;;  %v1400_v32 = vrot.slane %v14789_v47, 7  ;;  %v15705_v20 = vld [vmem:[%s14465_s12 + $0xd0] sm:$0xff]  ;;  %19466 = vst [vmem:[#allocation6_spill] sm:$0xff] %v15719_v24  ;;  %v15747_v33 = vld [vmem:[%s14465_s12 + $0x100] sm:$0xff] }
 0x16c   : > { %10780 = vmatprep.mubr.msk.f32.mxu0 %vm14301_vm1, %v14300_v1  ;;  %19464 = vst [vmem:[#allocation4_spill] sm:$0xff] %v15705_v20  ;;  %v15733_v29 = vld [vmem:[%s14465_s12 + $0xf0] sm:$0xff]  ;;  %19470 = vst [vmem:[#allocation10_spill] sm:$0xff] %v15747_v33  ;;  %v15775_v44 = vld [vmem:[%s14465_s12 + $0x120] sm:$0xff] }
 0x16d   : > { %v15311_v39 = vsel %vm1320_vm5, %v1390_v62, %v1392_v6  ;;  %v15319_v43 = vsel %vm1320_vm5, %v1392_v6, %v1394_v12  ;;  %v15327_v46 = vsel %vm1320_vm5, %v1394_v12, %v1396_v18  ;;  %v15335_v49 = vsel %vm1320_vm5, %v1396_v18, %v1398_v26  ;;  %19468 = vst [vmem:[#allocation8_spill] sm:$0xff] %v15733_v29  ;;  %v15761_v38 = vld [vmem:[%s14465_s12 + $0x110] sm:$0xff]  ;;  %v15803_v53 = vld [vmem:[%s14465_s12 + $0x140] sm:$0xff]  ;;  %v9239_v6 = vld [vmem:[%s19436_s1 + $0x18] sm:$0xf] }
 0x16e   : > { %v15343_v52 = vsel %vm1320_vm5, %v1398_v26, %v1400_v32  ;;  %v15353_v47 = vsel %vm1320_vm5, %v1400_v32, %v1402_v41  ;;  %19472 = vst [vmem:[#allocation12_spill] sm:$0xff] %v15761_v38  ;;  %19474 = vst [vmem:[#allocation14_spill] sm:$0xff] %v15775_v44  ;;  %v15789_v48 = vld [vmem:[%s14465_s12 + $0x130] sm:$0xff] }
 0x16f   : > { %10781 = vmatmul.mubr.msk.f32.gmra.mrb[8].mxu0 %vm522_vm2, %v15063_v59  ;;  %19476 = vst [vmem:[#allocation16_spill] sm:$0xff] %v15789_v48  ;;  %19478 = vst [vmem:[#allocation18_spill] sm:$0xff] %v15803_v53 }
 0x170   : > { %10783 = vmatprep.mubr.msk.f32.mxu0 %vm14301_vm1, %v14300_v1 }
 0x173   : > { %10784 = vmatmul.mubr.msk.f32.gmra.mrb[10].mxu0 %vm522_vm2, %v15071_v35 }
 0x174   : > { %10786 = vmatprep.mubr.msk.f32.mxu0 %vm14301_vm1, %v14300_v1 }
 0x177   : > { %10787 = vmatmul.mubr.msk.f32.gmra.mrb[12].mxu0 %vm522_vm2, %v15079_v17 }
 0x178   : > { %10789 = vmatprep.mubr.msk.f32.mxu0 %vm14301_vm1, %v14300_v1 }
 0x17b   : > { %10790 = vmatmul.mubr.msk.f32.gmra.mrb[14].mxu0 %vm522_vm2, %v15087_v21 }
 0x17c   : > { %10792 = vmatprep.mubr.msk.f32.mxu0 %vm14301_vm1, %v14300_v1 }
 0x17f   : > { %10793 = vmatmul.mubr.msk.f32.gmra.mrb[16].mxu0 %vm522_vm2, %v15095_v23 }
 0x180   : > { %10795 = vmatprep.mubr.msk.f32.mxu0 %vm14301_vm1, %v14300_v1 }
 0x183   : > { %10796 = vmatmul.mubr.msk.f32.gmra.mrb[18].mxu0 %vm522_vm2, %v15103_v27 }
 0x184   : > { %10798 = vmatprep.mubr.msk.f32.mxu0 %vm14301_vm1, %v14300_v1 }
 0x187   : > { %10799 = vmatmul.mubr.msk.f32.gmra.mrb[20].mxu0 %vm522_vm2, %v15111_v30 }
 0x188   : > { %10801 = vmatprep.mubr.msk.f32.mxu0 %vm14301_vm1, %v14300_v1 }
 0x18b   : > { %10802 = vmatmul.mubr.msk.f32.gmra.mrb[22].mxu0 %vm522_vm2, %v15119_v34 }
 0x18c   : > { %10804 = vmatprep.mubr.msk.f32.mxu0 %vm14301_vm1, %v14300_v1 }
 0x18f   : > { %10805 = vmatmul.mubr.msk.f32.gmra.mrb[24].mxu0 %vm522_vm2, %v15127_v37 }
 0x190   : > { %10807 = vmatprep.mubr.msk.f32.mxu0 %vm14301_vm1, %v14300_v1 }
 0x193   : > { %10808 = vmatmul.mubr.msk.f32.gmra.mrb[26].mxu0 %vm522_vm2, %v15135_v42 }
 0x194   : > { %10810 = vmatprep.mubr.msk.f32.mxu0 %vm14301_vm1, %v14300_v1 }
 0x197   : > { %10811 = vmatmul.mubr.msk.f32.gmra.mrb[28].mxu0 %vm522_vm2, %v15143_v45 }
 0x198   : > { %10813 = vmatprep.mubr.msk.f32.mxu0 %vm14301_vm1, %v14300_v1 }
 0x19b   : > { %10814 = vmatmul.mubr.msk.f32.gmra.mrb[30].mxu0 %vm522_vm2, %v15151_v50 }
 0x19c   : > { %10816 = vmatprep.mubr.msk.f32.mxu0 %vm14301_vm1, %v14300_v1 }
 0x19f   : > { %10817 = vmatmul.mubr.msk.f32.gmra.mrb[32].mxu0 %vm522_vm2, %v15159_v51 }
 0x1a0   : > { %10819 = vmatprep.mubr.msk.f32.mxu0 %vm14301_vm1, %v14300_v1 }
 0x1a3   : > { %10820 = vmatmul.mubr.msk.f32.gmra.mrb[34].mxu0 %vm522_vm2, %v15167_v56 }
 0x1a4   : > { %10822 = vmatprep.mubr.msk.f32.mxu0 %vm14301_vm1, %v14300_v1 }
 0x1a7   : > { %10823 = vmatmul.mubr.msk.f32.gmra.mrb[36].mxu0 %vm522_vm2, %v15175_v60 }
 0x1a8   : > { %10825 = vmatprep.mubr.msk.f32.mxu0 %vm14301_vm1, %v14300_v1 }
 0x1ab   : > { %10826 = vmatmul.mubr.msk.f32.gmra.mrb[38].mxu0 %vm522_vm2, %v15183_v63 }
 0x1ac   : > { %10828 = vmatprep.mubr.msk.f32.mxu0 %vm14301_vm1, %v14300_v1 }
 0x1af   : > { %10829 = vmatmul.mubr.msk.f32.gmra.mrb[40].mxu0 %vm522_vm2, %v15191_v2 }
 0x1b0   : > { %10831 = vmatprep.mubr.msk.f32.mxu0 %vm14301_vm1, %v14300_v1 }
 0x1b3   : > { %10832 = vmatmul.mubr.msk.f32.gmra.mrb[42].mxu0 %vm522_vm2, %v15199_v8 }
 0x1b4   : > { %10834 = vmatprep.mubr.msk.f32.mxu0 %vm14301_vm1, %v14300_v1 }
 0x1b7   : > { %10835 = vmatmul.mubr.msk.f32.gmra.mrb[44].mxu0 %vm522_vm2, %v15207_v10 }
 0x1b8   : > { %10837 = vmatprep.mubr.msk.f32.mxu0 %vm14301_vm1, %v14300_v1 }
 0x1bb   : > { %10838 = vmatmul.mubr.msk.f32.gmra.mrb[46].mxu0 %vm522_vm2, %v15215_v40 }
 0x1bc   : > { %10840 = vmatprep.mubr.msk.f32.mxu0 %vm14301_vm1, %v14300_v1 }
 0x1bf   : > { %10841 = vmatmul.mubr.msk.f32.gmra.mrb[48].mxu0 %vm522_vm2, %v15223_v14 }
 0x1c0   : > { %10843 = vmatprep.mubr.msk.f32.mxu0 %vm14301_vm1, %v14300_v1 }
 0x1c3   : > { %10844 = vmatmul.mubr.msk.f32.gmra.mrb[50].mxu0 %vm522_vm2, %v15231_v5 }
 0x1c4   : > { %10846 = vmatprep.mubr.msk.f32.mxu0 %vm14301_vm1, %v14300_v1 }
 0x1c7   : > { %10847 = vmatmul.mubr.msk.f32.gmra.mrb[52].mxu0 %vm522_vm2, %v15239_v9 }
 0x1c8   : > { %10849 = vmatprep.mubr.msk.f32.mxu0 %vm14301_vm1, %v14300_v1 }
 0x1cb   : > { %10850 = vmatmul.mubr.msk.f32.gmra.mrb[54].mxu0 %vm522_vm2, %v15247_v13 }
 0x1cc   : > { %10852 = vmatprep.mubr.msk.f32.mxu0 %vm14301_vm1, %v14300_v1 }
 0x1cf   : > { %10853 = vmatmul.mubr.msk.f32.gmra.mrb[56].mxu0 %vm522_vm2, %v15255_v16 }
 0x1d0   : > { %10855 = vmatprep.mubr.msk.f32.mxu0 %vm14301_vm1, %v14300_v1 }
 0x1d3   : > { %10856 = vmatmul.mubr.msk.f32.gmra.mrb[58].mxu0 %vm522_vm2, %v15263_v19 }
 0x1d4   : > { %10858 = vmatprep.mubr.msk.f32.mxu0 %vm14301_vm1, %v14300_v1 }
 0x1d7   : > { %10859 = vmatmul.mubr.msk.f32.gmra.mrb[60].mxu0 %vm522_vm2, %v15271_v22 }
 0x1d8   : > { %10861 = vmatprep.mubr.msk.f32.mxu0 %vm14301_vm1, %v14300_v1 }
 0x1db   : > { %10862 = vmatmul.mubr.msk.f32.gmra.mrb[62].mxu0 %vm522_vm2, %v15279_v25 }
 0x1dc   : > { %10864 = vmatprep.mubr.msk.f32.mxu0 %vm14301_vm1, %v14300_v1 }
 0x1df   : > { %10865 = vmatmul.mubr.msk.f32.gmra.mrb[64].mxu0 %vm522_vm2, %v15287_v28 }
 0x1e0   : > { %10867 = vmatprep.mubr.msk.f32.mxu0 %vm14301_vm1, %v14300_v1 }
 0x1e3   : > { %10868 = vmatmul.mubr.msk.f32.gmra.mrb[66].mxu0 %vm522_vm2, %v15295_v31 }
 0x1e4   : > { %10870 = vmatprep.mubr.msk.f32.mxu0 %vm14301_vm1, %v14300_v1 }
 0x1e7   : > { %10871 = vmatmul.mubr.msk.f32.gmra.mrb[68].mxu0 %vm522_vm2, %v15303_v36 }
 0x1e8   : > { %10873 = vmatprep.mubr.msk.f32.mxu0 %vm14301_vm1, %v14300_v1 }
 0x1eb   : > { %10874 = vmatmul.mubr.msk.f32.gmra.mrb[70].mxu0 %vm522_vm2, %v15311_v39 }
 0x1ec   : > { %10876 = vmatprep.mubr.msk.f32.mxu0 %vm14301_vm1, %v14300_v1 }
 0x1ef   : > { %10877 = vmatmul.mubr.msk.f32.gmra.mrb[72].mxu0 %vm522_vm2, %v15319_v43 }
 0x1f0   : > { %10879 = vmatprep.mubr.msk.f32.mxu0 %vm14301_vm1, %v14300_v1 }
 0x1f3   : > { %10880 = vmatmul.mubr.msk.f32.gmra.mrb[74].mxu0 %vm522_vm2, %v15327_v46 }
 0x1f4   : > { %10882 = vmatprep.mubr.msk.f32.mxu0 %vm14301_vm1, %v14300_v1 }
 0x1f7   : > { %10883 = vmatmul.mubr.msk.f32.gmra.mrb[76].mxu0 %vm522_vm2, %v15335_v49 }
 0x1f8   : > { %10885 = vmatprep.mubr.msk.f32.mxu0 %vm14301_vm1, %v14300_v1 }
 0x1fb   : > { %10886 = vmatmul.mubr.msk.f32.gmra.mrb[78].mxu0 %vm522_vm2, %v15343_v52 }
 0x1fc   : > { %10888 = vmatprep.mubr.msk.f32.mxu0 %vm14301_vm1, %v14300_v1 }
 0x1ff   : > { %10889 = vmatmul.mubr.msk.f32.gmra.mrb[80].mxu0 %vm522_vm2, %v15353_v47 }
 0x200   : > { %10893 = vmatprep.mubr.msk.f32.mxu0 %vm14301_vm1, %v14300_v1 }
 0x203   : > { %10894 = vmatmul.mubr.msk.f32.vlgmr.msra.gmra.mrb[0].mxu0 %vm522_vm2, %v15047_v4  ;;  %v15513_v4 = vld [vmem:[%s14465_s12 + $0x150] sm:$0xff] }
 0x204   : > { %11017 = vmatpush3.msk.msra.mxu0 %vm605_vm0, %v9153_v55  ;;  %10896 = vmatprep.mubr.msk.f32.mxu0 %vm14301_vm1, %v14300_v1 }
 0x205   : > { %11141 = vmatprep.subr.mxu0 %v14300_v1 }
 0x207   : > { %10897 = vmatmul.mubr.msk.f32.gmra.mrb[2].mxu0 %vm522_vm2, %v15055_v3  ;;  %v1804_v3 = vrot.slane %v15513_v4, 7 }
 0x208   : > { %10899 = vmatprep.mubr.msk.f32.mxu0 %vm14301_vm1, %v14300_v1 }
 0x20b   : > { %10900 = vmatmul.mubr.msk.f32.gmra.mrb[4].mxu0 %vm522_vm2, %v15063_v59  ;;  %v15521_v59 = vld [vmem:[%s14465_s12 + $0x158] sm:$0xff] }
 0x20c   : > { %10902 = vmatprep.mubr.msk.f32.mxu0 %vm14301_vm1, %v14300_v1 }
 0x20f   : > { %10903 = vmatmul.mubr.msk.f32.gmra.mrb[6].mxu0 %vm522_vm2, %v15071_v35  ;;  %v1805_v35 = vsel %vm1320_vm5, %v1402_v41, %v1804_v3 }
 0x210   : > { %10905 = vmatprep.mubr.msk.f32.mxu0 %vm14301_vm1, %v14300_v1 }
 0x213   : > { %10906 = vmatmul.mubr.msk.f32.gmra.mrb[8].mxu0 %vm522_vm2, %v15079_v17  ;;  %v1806_v17 = vrot.slane %v15521_v59, 7 }
 0x214   : > { %10908 = vmatprep.mubr.msk.f32.mxu0 %vm14301_vm1, %v14300_v1 }
 0x217   : > { %10909 = vmatmul.mubr.msk.f32.gmra.mrb[10].mxu0 %vm522_vm2, %v15087_v21  ;;  %v1807_v21 = vsel %vm1320_vm5, %v1804_v3, %v1806_v17 }
 0x218   : > { %10911 = vmatprep.mubr.msk.f32.mxu0 %vm14301_vm1, %v14300_v1 }
 0x21b   : > { %10912 = vmatmul.mubr.msk.f32.gmra.mrb[12].mxu0 %vm522_vm2, %v15095_v23  ;;  %v15542_v23 = vld [vmem:[%s14465_s12 + $0x18] sm:$0xff] }
 0x21c   : > { %10914 = vmatprep.mubr.msk.f32.mxu0 %vm14301_vm1, %v14300_v1  ;;  %v2527_v57 = vrot.slane %v15542_v23, 1 }
 0x21f   : > { %10915 = vmatmul.mubr.msk.f32.gmra.mrb[14].mxu0 %vm522_vm2, %v15103_v27  ;;  %v15551_v27 = vld [vmem:[%s14465_s12 + $0x20] sm:$0xff] }
 0x220   : > { %10917 = vmatprep.mubr.msk.f32.mxu0 %vm14301_vm1, %v14300_v1 }
 0x223   : > { %10918 = vmatmul.mubr.msk.f32.gmra.mrb[16].mxu0 %vm522_vm2, %v15111_v30  ;;  %v15558_v30 = vld [vmem:[%s14465_s12 + $0x28] sm:$0xff] }
 0x224   : > { %10920 = vmatprep.mubr.msk.f32.mxu0 %vm14301_vm1, %v14300_v1 }
 0x227   : > { %10921 = vmatmul.mubr.msk.f32.gmra.mrb[18].mxu0 %vm522_vm2, %v15119_v34  ;;  %v15565_v34 = vld [vmem:[%s14465_s12 + $0x30] sm:$0xff] }
 0x228   : > { %10923 = vmatprep.mubr.msk.f32.mxu0 %vm14301_vm1, %v14300_v1  ;;  %v2532_v12 = vrot.slane %v15565_v34, 1 }
 0x22b   : > { %10924 = vmatmul.mubr.msk.f32.gmra.mrb[20].mxu0 %vm522_vm2, %v15127_v37  ;;  %v15572_v37 = vld [vmem:[%s14465_s12 + $0x38] sm:$0xff] }
 0x22c   : > { %10926 = vmatprep.mubr.msk.f32.mxu0 %vm14301_vm1, %v14300_v1  ;;  %v2534_v18 = vrot.slane %v15572_v37, 1 }
 0x22f   : > { %10927 = vmatmul.mubr.msk.f32.gmra.mrb[22].mxu0 %vm522_vm2, %v15135_v42  ;;  %v15579_v42 = vld [vmem:[%s14465_s12 + $0x40] sm:$0xff] }
 0x230   : > { %10929 = vmatprep.mubr.msk.f32.mxu0 %vm14301_vm1, %v14300_v1  ;;  %v2536_v26 = vrot.slane %v15579_v42, 1 }
 0x233   : > { %10930 = vmatmul.mubr.msk.f32.gmra.mrb[24].mxu0 %vm522_vm2, %v15143_v45  ;;  %v15586_v45 = vld [vmem:[%s14465_s12 + $0x48] sm:$0xff] }
 0x234   : > { %10932 = vmatprep.mubr.msk.f32.mxu0 %vm14301_vm1, %v14300_v1  ;;  %v2538_v32 = vrot.slane %v15586_v45, 1 }
 0x237   : > { %10933 = vmatmul.mubr.msk.f32.gmra.mrb[26].mxu0 %vm522_vm2, %v15151_v50  ;;  %v15593_v50 = vld [vmem:[%s14465_s12 + $0x50] sm:$0xff] }
 0x238   : > { %10935 = vmatprep.mubr.msk.f32.mxu0 %vm14301_vm1, %v14300_v1  ;;  %v2540_v41 = vrot.slane %v15593_v50, 1 }
 0x23b   : > { %10936 = vmatmul.mubr.msk.f32.gmra.mrb[28].mxu0 %vm522_vm2, %v15159_v51  ;;  %v15600_v51 = vld [vmem:[%s14465_s12 + $0x58] sm:$0xff] }
 0x23c   : > { %10938 = vmatprep.mubr.msk.f32.mxu0 %vm14301_vm1, %v14300_v1  ;;  %v2542_v55 = vrot.slane %v15600_v51, 1 }
 0x23e   : > { %v15882_v3 = vsel %vm2526_vm6, %v2540_v41, %v2542_v55 }
 0x23f   : > { %10939 = vmatmul.mubr.msk.f32.gmra.mrb[30].mxu0 %vm522_vm2, %v15167_v56  ;;  %v15607_v56 = vld [vmem:[%s14465_s12 + $0x60] sm:$0xff] }
 0x240   : > { %10941 = vmatprep.mubr.msk.f32.mxu0 %vm14301_vm1, %v14300_v1 }
 0x243   : > { %10942 = vmatmul.mubr.msk.f32.gmra.mrb[32].mxu0 %vm522_vm2, %v15175_v60  ;;  %v15614_v60 = vld [vmem:[%s14465_s12 + $0x68] sm:$0xff] }
 0x244   : > { %10944 = vmatprep.mubr.msk.f32.mxu0 %vm14301_vm1, %v14300_v1 }
 0x247   : > { %10945 = vmatmul.mubr.msk.f32.gmra.mrb[34].mxu0 %vm522_vm2, %v15183_v63  ;;  %v15628_v63 = vld [vmem:[%s14465_s12 + $0x78] sm:$0xff] }
 0x248   : > { %10947 = vmatprep.mubr.msk.f32.mxu0 %vm14301_vm1, %v14300_v1 }
 0x24b   : > { %10948 = vmatmul.mubr.msk.f32.gmra.mrb[36].mxu0 %vm522_vm2, %v15191_v2  ;;  %v15642_v2 = vld [vmem:[%s14465_s12 + $0x88] sm:$0xff] }
 0x24c   : > { %10950 = vmatprep.mubr.msk.f32.mxu0 %vm14301_vm1, %v14300_v1 }
 0x24f   : > { %10951 = vmatmul.mubr.msk.f32.gmra.mrb[38].mxu0 %vm522_vm2, %v15199_v8  ;;  %v15656_v8 = vld [vmem:[%s14465_s12 + $0x98] sm:$0xff] }
 0x250   : > { %10953 = vmatprep.mubr.msk.f32.mxu0 %vm14301_vm1, %v14300_v1 }
 0x253   : > { %10954 = vmatmul.mubr.msk.f32.gmra.mrb[40].mxu0 %vm522_vm2, %v15207_v10  ;;  %v15670_v10 = vld [vmem:[%s14465_s12 + $0xa8] sm:$0xff] }
 0x254   : > { %10956 = vmatprep.mubr.msk.f32.mxu0 %vm14301_vm1, %v14300_v1 }
 0x257   : > { %10957 = vmatmul.mubr.msk.f32.gmra.mrb[42].mxu0 %vm522_vm2, %v15215_v40  ;;  %v15684_v40 = vld [vmem:[%s14465_s12 + $0xb8] sm:$0xff] }
 0x258   : > { %10959 = vmatprep.mubr.msk.f32.mxu0 %vm14301_vm1, %v14300_v1 }
 0x25b   : > { %10960 = vmatmul.mubr.msk.f32.gmra.mrb[44].mxu0 %vm522_vm2, %v15223_v14  ;;  %v15698_v14 = vld [vmem:[%s14465_s12 + $0xc8] sm:$0xff] }
 0x25c   : > { %10962 = vmatprep.mubr.msk.f32.mxu0 %vm14301_vm1, %v14300_v1  ;;  %19463 = vst [vmem:[#allocation3_spill] sm:$0xff] %v15698_v14 }
 0x25f   : > { %10963 = vmatmul.mubr.msk.f32.gmra.mrb[46].mxu0 %vm522_vm2, %v15231_v5  ;;  %v15712_v5 = vld [vmem:[%s14465_s12 + $0xd8] sm:$0xff] }
 0x260   : > { %10965 = vmatprep.mubr.msk.f32.mxu0 %vm14301_vm1, %v14300_v1  ;;  %19465 = vst [vmem:[#allocation5_spill] sm:$0xff] %v15712_v5 }
 0x263   : > { %10966 = vmatmul.mubr.msk.f32.gmra.mrb[48].mxu0 %vm522_vm2, %v15239_v9  ;;  %v15726_v9 = vld [vmem:[%s14465_s12 + $0xe8] sm:$0xff] }
 0x264   : > { %10968 = vmatprep.mubr.msk.f32.mxu0 %vm14301_vm1, %v14300_v1  ;;  %19467 = vst [vmem:[#allocation7_spill] sm:$0xff] %v15726_v9 }
 0x267   : > { %10969 = vmatmul.mubr.msk.f32.gmra.mrb[50].mxu0 %vm522_vm2, %v15247_v13  ;;  %v15740_v13 = vld [vmem:[%s14465_s12 + $0xf8] sm:$0xff] }
 0x268   : > { %10971 = vmatprep.mubr.msk.f32.mxu0 %vm14301_vm1, %v14300_v1  ;;  %19469 = vst [vmem:[#allocation9_spill] sm:$0xff] %v15740_v13 }
 0x26b   : > { %10972 = vmatmul.mubr.msk.f32.gmra.mrb[52].mxu0 %vm522_vm2, %v15255_v16  ;;  %v15754_v16 = vld [vmem:[%s14465_s12 + $0x108] sm:$0xff] }
 0x26c   : > { %10974 = vmatprep.mubr.msk.f32.mxu0 %vm14301_vm1, %v14300_v1  ;;  %19471 = vst [vmem:[#allocation11_spill] sm:$0xff] %v15754_v16 }
 0x26f   : > { %10975 = vmatmul.mubr.msk.f32.gmra.mrb[54].mxu0 %vm522_vm2, %v15263_v19  ;;  %v15768_v19 = vld [vmem:[%s14465_s12 + $0x118] sm:$0xff] }
 0x270   : > { %10977 = vmatprep.mubr.msk.f32.mxu0 %vm14301_vm1, %v14300_v1  ;;  %19473 = vst [vmem:[#allocation13_spill] sm:$0xff] %v15768_v19 }
 0x273   : > { %10978 = vmatmul.mubr.msk.f32.gmra.mrb[56].mxu0 %vm522_vm2, %v15271_v22  ;;  %v15782_v22 = vld [vmem:[%s14465_s12 + $0x128] sm:$0xff] }
 0x274   : > { %10980 = vmatprep.mubr.msk.f32.mxu0 %vm14301_vm1, %v14300_v1  ;;  %19475 = vst [vmem:[#allocation15_spill] sm:$0xff] %v15782_v22 }
 0x277   : > { %10981 = vmatmul.mubr.msk.f32.gmra.mrb[58].mxu0 %vm522_vm2, %v15279_v25  ;;  %v15796_v25 = vld [vmem:[%s14465_s12 + $0x138] sm:$0xff] }
 0x278   : > { %10983 = vmatprep.mubr.msk.f32.mxu0 %vm14301_vm1, %v14300_v1  ;;  %19477 = vst [vmem:[#allocation17_spill] sm:$0xff] %v15796_v25 }
 0x27b   : > { %10984 = vmatmul.mubr.msk.f32.gmra.mrb[60].mxu0 %vm522_vm2, %v15287_v28  ;;  %v15810_v28 = vld [vmem:[%s14465_s12 + $0x148] sm:$0xff] }
 0x27c   : > { %10986 = vmatprep.mubr.msk.f32.mxu0 %vm14301_vm1, %v14300_v1  ;;  %19479 = vst [vmem:[#allocation19_spill] sm:$0xff] %v15810_v28 }
 0x27f   : > { %10987 = vmatmul.mubr.msk.f32.gmra.mrb[62].mxu0 %vm522_vm2, %v15295_v31  ;;  %v2528_v31 = vrot.slane %v15551_v27, 1 }
 0x280   : > { %10989 = vmatprep.mubr.msk.f32.mxu0 %vm14301_vm1, %v14300_v1 }
 0x281   : > { %v2529_v62 = vsel %vm2526_vm6, %v2527_v57, %v2528_v31  ;;  %v2550_v57 = vrot.slane %v15628_v63, 1 }
 0x283   : > { %10990 = vmatmul.mubr.msk.f32.gmra.mrb[64].mxu0 %vm522_vm2, %v15303_v36  ;;  %v2530_v36 = vrot.slane %v15558_v30, 1 }
 0x284   : > { %10992 = vmatprep.mubr.msk.f32.mxu0 %vm14301_vm1, %v14300_v1 }
 0x287   : > { %10993 = vmatmul.mubr.msk.f32.gmra.mrb[66].mxu0 %vm522_vm2, %v15311_v39  ;;  %v2531_v39 = vsel %vm2526_vm6, %v2528_v31, %v2530_v36 }
 0x288   : > { %10995 = vmatprep.mubr.msk.f32.mxu0 %vm14301_vm1, %v14300_v1 }
 0x28b   : > { %10996 = vmatmul.mubr.msk.f32.gmra.mrb[68].mxu0 %vm522_vm2, %v15319_v43  ;;  %v15842_v43 = vsel %vm2526_vm6, %v2530_v36, %v2532_v12 }
 0x28c   : > { %10998 = vmatprep.mubr.msk.f32.mxu0 %vm14301_vm1, %v14300_v1 }
 0x28f   : > { %10999 = vmatmul.mubr.msk.f32.gmra.mrb[70].mxu0 %vm522_vm2, %v15327_v46  ;;  %v15850_v46 = vsel %vm2526_vm6, %v2532_v12, %v2534_v18  ;;  %v2556_v12 = vrot.slane %v15649_v0, 1 }
 0x290   : > { %11001 = vmatprep.mubr.msk.f32.mxu0 %vm14301_vm1, %v14300_v1 }
 0x293   : > { %11002 = vmatmul.mubr.msk.f32.gmra.mrb[72].mxu0 %vm522_vm2, %v15335_v49  ;;  %v15858_v49 = vsel %vm2526_vm6, %v2534_v18, %v2536_v26 }
 0x294   : > { %11004 = vmatprep.mubr.msk.f32.mxu0 %vm14301_vm1, %v14300_v1 }
 0x297   : > { %11005 = vmatmul.mubr.msk.f32.gmra.mrb[74].mxu0 %vm522_vm2, %v15343_v52  ;;  %v15866_v52 = vsel %vm2526_vm6, %v2536_v26, %v2538_v32  ;;  %v2558_v26 = vrot.slane %v15656_v8, 1 }
 0x298   : > { %11007 = vmatprep.mubr.msk.f32.mxu0 %vm14301_vm1, %v14300_v1 }
 0x29b   : > { %11008 = vmatmul.mubr.msk.f32.gmra.mrb[76].mxu0 %vm522_vm2, %v15353_v47  ;;  %v15874_v47 = vsel %vm2526_vm6, %v2538_v32, %v2540_v41  ;;  %v15946_v32 = vsel %vm2526_vm6, %v2556_v12, %v2558_v26  ;;  %v2560_v41 = vrot.slane %v15663_v7, 1 }
 0x29c   : > { %11010 = vmatprep.mubr.msk.f32.mxu0 %vm14301_vm1, %v14300_v1 }
 0x29f   : > { %11011 = vmatmul.mubr.msk.f32.gmra.mrb[78].mxu0 %vm522_vm2, %v1805_v35  ;;  %v2544_v35 = vrot.slane %v15607_v56, 1 }
 0x2a0   : > { %11013 = vmatprep.mubr.msk.f32.mxu0 %vm14301_vm1, %v14300_v1 }
 0x2a1   : > { %v15890_v17 = vsel %vm2526_vm6, %v2542_v55, %v2544_v35  ;;  %v15954_v55 = vsel %vm2526_vm6, %v2558_v26, %v2560_v41 }
 0x2a3   : > { %11014 = vmatmul.mubr.msk.f32.gmra.mrb[80].mxu0 %vm522_vm2, %v1807_v21  ;;  %v2546_v21 = vrot.slane %v15614_v60, 1 }
 0x2a4   : > { %11018 = vmatprep.mubr.msk.f32.mxu0 %vm14301_vm1, %v14300_v1 }
 0x2a7   : > { %11019 = vmatmul.mubr.msk.f32.vlgmr.msra.gmra.mrb[0].mxu0 %vm522_vm2, %v15542_v23  ;;  %v2548_v23 = vrot.slane %v15621_v58, 1 }
 0x2a8   : > { %11142 = vmatpush3.msk.msra.mxu0 %vm605_vm0, %v9196_v54  ;;  %11021 = vmatprep.mubr.msk.f32.mxu0 %vm14301_vm1, %v14300_v1  ;;  %v15898_v54 = vsel %vm2526_vm6, %v2544_v35, %v2546_v21  ;;  %v2562_v35 = vrot.slane %v15670_v10, 1 }
 0x2a9   : > { %11266 = vmatprep.subr.mxu0 %v14300_v1  ;;  %v15914_v31 = vsel %vm2526_vm6, %v2548_v23, %v2550_v57 }
 0x2ab   : > { %11022 = vmatmul.mubr.msk.f32.gmra.mrb[2].mxu0 %vm522_vm2, %v15551_v27  ;;  %v15906_v27 = vsel %vm2526_vm6, %v2546_v21, %v2548_v23  ;;  %v15962_v21 = vsel %vm2526_vm6, %v2560_v41, %v2562_v35  ;;  %v2564_v23 = vrot.slane %v15677_v11, 1  ;;  %v2570_v41 = vrot.slane %v15698_v14, 1 }
 0x2ac   : > { %11024 = vmatprep.mubr.msk.f32.mxu0 %vm14301_vm1, %v14300_v1 }
 0x2af   : > { %11025 = vmatmul.mubr.msk.f32.gmra.mrb[4].mxu0 %vm522_vm2, %v15558_v30 }
 0x2b0   : > { %11027 = vmatprep.mubr.msk.f32.mxu0 %vm14301_vm1, %v14300_v1 }
 0x2b3   : > { %11028 = vmatmul.mubr.msk.f32.gmra.mrb[6].mxu0 %vm522_vm2, %v15565_v34 }
 0x2b4   : > { %11030 = vmatprep.mubr.msk.f32.mxu0 %vm14301_vm1, %v14300_v1 }
 0x2b7   : > { %11031 = vmatmul.mubr.msk.f32.gmra.mrb[8].mxu0 %vm522_vm2, %v15572_v37 }
 0x2b8   : > { %11033 = vmatprep.mubr.msk.f32.mxu0 %vm14301_vm1, %v14300_v1 }
 0x2bb   : > { %11034 = vmatmul.mubr.msk.f32.gmra.mrb[10].mxu0 %vm522_vm2, %v15579_v42 }
 0x2bc   : > { %11036 = vmatprep.mubr.msk.f32.mxu0 %vm14301_vm1, %v14300_v1 }
 0x2bf   : > { %11037 = vmatmul.mubr.msk.f32.gmra.mrb[12].mxu0 %vm522_vm2, %v15586_v45 }
 0x2c0   : > { %11039 = vmatprep.mubr.msk.f32.mxu0 %vm14301_vm1, %v14300_v1 }
 0x2c3   : > { %11040 = vmatmul.mubr.msk.f32.gmra.mrb[14].mxu0 %vm522_vm2, %v15593_v50 }
 0x2c4   : > { %11042 = vmatprep.mubr.msk.f32.mxu0 %vm14301_vm1, %v14300_v1 }
 0x2c7   : > { %11043 = vmatmul.mubr.msk.f32.gmra.mrb[16].mxu0 %vm522_vm2, %v15600_v51 }
 0x2c8   : > { %11045 = vmatprep.mubr.msk.f32.mxu0 %vm14301_vm1, %v14300_v1 }
 0x2cb   : > { %11046 = vmatmul.mubr.msk.f32.gmra.mrb[18].mxu0 %vm522_vm2, %v15607_v56 }
 0x2cc   : > { %11048 = vmatprep.mubr.msk.f32.mxu0 %vm14301_vm1, %v14300_v1 }
 0x2cf   : > { %11049 = vmatmul.mubr.msk.f32.gmra.mrb[20].mxu0 %vm522_vm2, %v15614_v60 }
 0x2d0   : > { %11051 = vmatprep.mubr.msk.f32.mxu0 %vm14301_vm1, %v14300_v1 }
 0x2d3   : > { %11052 = vmatmul.mubr.msk.f32.gmra.mrb[22].mxu0 %vm522_vm2, %v15621_v58 }
 0x2d4   : > { %11054 = vmatprep.mubr.msk.f32.mxu0 %vm14301_vm1, %v14300_v1 }
 0x2d7   : > { %11055 = vmatmul.mubr.msk.f32.gmra.mrb[24].mxu0 %vm522_vm2, %v15628_v63 }
 0x2d8   : > { %11057 = vmatprep.mubr.msk.f32.mxu0 %vm14301_vm1, %v14300_v1 }
 0x2db   : > { %11058 = vmatmul.mubr.msk.f32.gmra.mrb[26].mxu0 %vm522_vm2, %v15635_v61 }
 0x2dc   : > { %11060 = vmatprep.mubr.msk.f32.mxu0 %vm14301_vm1, %v14300_v1 }
 0x2df   : > { %11061 = vmatmul.mubr.msk.f32.gmra.mrb[28].mxu0 %vm522_vm2, %v15642_v2 }
 0x2e0   : > { %11063 = vmatprep.mubr.msk.f32.mxu0 %vm14301_vm1, %v14300_v1 }
 0x2e3   : > { %11064 = vmatmul.mubr.msk.f32.gmra.mrb[30].mxu0 %vm522_vm2, %v15649_v0 }
 0x2e4   : > { %11066 = vmatprep.mubr.msk.f32.mxu0 %vm14301_vm1, %v14300_v1 }
 0x2e7   : > { %11067 = vmatmul.mubr.msk.f32.gmra.mrb[32].mxu0 %vm522_vm2, %v15656_v8 }
 0x2e8   : > { %11069 = vmatprep.mubr.msk.f32.mxu0 %vm14301_vm1, %v14300_v1 }
 0x2eb   : > { %11070 = vmatmul.mubr.msk.f32.gmra.mrb[34].mxu0 %vm522_vm2, %v15663_v7 }
 0x2ec   : > { %11072 = vmatprep.mubr.msk.f32.mxu0 %vm14301_vm1, %v14300_v1 }
 0x2ef   : > { %11073 = vmatmul.mubr.msk.f32.gmra.mrb[36].mxu0 %vm522_vm2, %v15670_v10 }
 0x2f0   : > { %11075 = vmatprep.mubr.msk.f32.mxu0 %vm14301_vm1, %v14300_v1 }
 0x2f3   : > { %11076 = vmatmul.mubr.msk.f32.gmra.mrb[38].mxu0 %vm522_vm2, %v15677_v11 }
 0x2f4   : > { %11078 = vmatprep.mubr.msk.f32.mxu0 %vm14301_vm1, %v14300_v1 }
 0x2f7   : > { %11079 = vmatmul.mubr.msk.f32.gmra.mrb[40].mxu0 %vm522_vm2, %v15684_v40 }
 0x2f8   : > { %11081 = vmatprep.mubr.msk.f32.mxu0 %vm14301_vm1, %v14300_v1 }
 0x2fb   : > { %11082 = vmatmul.mubr.msk.f32.gmra.mrb[42].mxu0 %vm522_vm2, %v15691_v15 }
 0x2fc   : > { %11084 = vmatprep.mubr.msk.f32.mxu0 %vm14301_vm1, %v14300_v1 }
 0x2ff   : > { %11085 = vmatmul.mubr.msk.f32.gmra.mrb[44].mxu0 %vm522_vm2, %v15698_v14  ;;  %v2574_v14 = vrot.slane %v15712_v5, 1 }
 0x300   : > { %11087 = vmatprep.mubr.msk.f32.mxu0 %vm14301_vm1, %v14300_v1 }
 0x303   : > { %11088 = vmatmul.mubr.msk.f32.gmra.mrb[46].mxu0 %vm522_vm2, %v15705_v20 }
 0x304   : > { %11090 = vmatprep.mubr.msk.f32.mxu0 %vm14301_vm1, %v14300_v1 }
 0x307   : > { %11091 = vmatmul.mubr.msk.f32.gmra.mrb[48].mxu0 %vm522_vm2, %v15712_v5  ;;  %v2578_v5 = vrot.slane %v15726_v9, 1 }
 0x308   : > { %11093 = vmatprep.mubr.msk.f32.mxu0 %vm14301_vm1, %v14300_v1 }
 0x30b   : > { %11094 = vmatmul.mubr.msk.f32.gmra.mrb[50].mxu0 %vm522_vm2, %v15719_v24 }
 0x30c   : > { %11096 = vmatprep.mubr.msk.f32.mxu0 %vm14301_vm1, %v14300_v1 }
 0x30f   : > { %11097 = vmatmul.mubr.msk.f32.gmra.mrb[52].mxu0 %vm522_vm2, %v15726_v9  ;;  %v2582_v9 = vrot.slane %v15740_v13, 1 }
 0x310   : > { %11099 = vmatprep.mubr.msk.f32.mxu0 %vm14301_vm1, %v14300_v1 }
 0x313   : > { %11100 = vmatmul.mubr.msk.f32.gmra.mrb[54].mxu0 %vm522_vm2, %v15733_v29 }
 0x314   : > { %11102 = vmatprep.mubr.msk.f32.mxu0 %vm14301_vm1, %v14300_v1 }
 0x317   : > { %11103 = vmatmul.mubr.msk.f32.gmra.mrb[56].mxu0 %vm522_vm2, %v15740_v13  ;;  %v2586_v13 = vrot.slane %v15754_v16, 1 }
 0x318   : > { %11105 = vmatprep.mubr.msk.f32.mxu0 %vm14301_vm1, %v14300_v1 }
 0x31b   : > { %11106 = vmatmul.mubr.msk.f32.gmra.mrb[58].mxu0 %vm522_vm2, %v15747_v33 }
 0x31c   : > { %11108 = vmatprep.mubr.msk.f32.mxu0 %vm14301_vm1, %v14300_v1 }
 0x31f   : > { %11109 = vmatmul.mubr.msk.f32.gmra.mrb[60].mxu0 %vm522_vm2, %v15754_v16  ;;  %v2590_v16 = vrot.slane %v15768_v19, 1 }
 0x320   : > { %11111 = vmatprep.mubr.msk.f32.mxu0 %vm14301_vm1, %v14300_v1 }
 0x323   : > { %11112 = vmatmul.mubr.msk.f32.gmra.mrb[62].mxu0 %vm522_vm2, %v15761_v38 }
 0x324   : > { %11114 = vmatprep.mubr.msk.f32.mxu0 %vm14301_vm1, %v14300_v1 }
 0x327   : > { %11115 = vmatmul.mubr.msk.f32.gmra.mrb[64].mxu0 %vm522_vm2, %v15768_v19  ;;  %v2594_v19 = vrot.slane %v15782_v22, 1 }
 0x328   : > { %11117 = vmatprep.mubr.msk.f32.mxu0 %vm14301_vm1, %v14300_v1 }
 0x32b   : > { %11118 = vmatmul.mubr.msk.f32.gmra.mrb[66].mxu0 %vm522_vm2, %v15775_v44 }
 0x32c   : > { %11120 = vmatprep.mubr.msk.f32.mxu0 %vm14301_vm1, %v14300_v1 }
 0x32f   : > { %11121 = vmatmul.mubr.msk.f32.gmra.mrb[68].mxu0 %vm522_vm2, %v15782_v22  ;;  %v2598_v22 = vrot.slane %v15796_v25, 1 }
 0x330   : > { %11123 = vmatprep.mubr.msk.f32.mxu0 %vm14301_vm1, %v14300_v1 }
 0x333   : > { %11124 = vmatmul.mubr.msk.f32.gmra.mrb[70].mxu0 %vm522_vm2, %v15789_v48 }
 0x334   : > { %11126 = vmatprep.mubr.msk.f32.mxu0 %vm14301_vm1, %v14300_v1 }
 0x337   : > { %11127 = vmatmul.mubr.msk.f32.gmra.mrb[72].mxu0 %vm522_vm2, %v15796_v25  ;;  %v2602_v25 = vrot.slane %v15810_v28, 1 }
 0x338   : > { %11129 = vmatprep.mubr.msk.f32.mxu0 %vm14301_vm1, %v14300_v1 }
 0x33b   : > { %11130 = vmatmul.mubr.msk.f32.gmra.mrb[74].mxu0 %vm522_vm2, %v15803_v53 }
 0x33c   : > { %11132 = vmatprep.mubr.msk.f32.mxu0 %vm14301_vm1, %v14300_v1 }
 0x33f   : > { %11133 = vmatmul.mubr.msk.f32.gmra.mrb[76].mxu0 %vm522_vm2, %v15810_v28  ;;  %v16133_v28 = vrot.slane %v15521_v59, 1 }
 0x340   : > { %11135 = vmatprep.mubr.msk.f32.mxu0 %vm14301_vm1, %v14300_v1 }
 0x343   : > { %11136 = vmatmul.mubr.msk.f32.gmra.mrb[78].mxu0 %vm522_vm2, %v15513_v4 }
 0x344   : > { %11138 = vmatprep.mubr.msk.f32.mxu0 %vm14301_vm1, %v14300_v1 }
 0x347   : > { %11139 = vmatmul.mubr.msk.f32.gmra.mrb[80].mxu0 %vm522_vm2, %v15521_v59  ;;  %v9282_v59 = vld [vmem:[%s19436_s1 + $0x1c] sm:$0xf] }
 0x348   : > { %11143 = vmatprep.mubr.msk.f32.mxu0 %vm14301_vm1, %v14300_v1 }
 0x34b   : > { %11144 = vmatmul.mubr.msk.f32.vlgmr.msra.gmra.mrb[0].mxu0 %vm522_vm2, %v2529_v62  ;;  %v2552_v62 = vrot.slane %v15635_v61, 1 }
 0x34c   : > { %11267 = vmatpush3.msk.msra.mxu0 %vm605_vm0, %v9239_v6  ;;  %11146 = vmatprep.mubr.msk.f32.mxu0 %vm14301_vm1, %v14300_v1  ;;  %v2554_v6 = vrot.slane %v15642_v2, 1 }
 0x34d   : > { %11391 = vmatprep.subr.mxu0 %v14300_v1  ;;  %v15922_v36 = vsel %vm2526_vm6, %v2550_v57, %v2552_v62  ;;  %v15970_v57 = vsel %vm2526_vm6, %v2562_v35, %v2564_v23 }
 0x34e   : > { %v15938_v18 = vsel %vm2526_vm6, %v2554_v6, %v2556_v12  ;;  %v2568_v12 = vrot.slane %v15691_v15, 1 }
 0x34f   : > { %11147 = vmatmul.mubr.msk.f32.gmra.mrb[2].mxu0 %vm522_vm2, %v2531_v39  ;;  %v15930_v39 = vsel %vm2526_vm6, %v2552_v62, %v2554_v6  ;;  %v2566_v62 = vrot.slane %v15684_v40, 1 }
 0x350   : > { %11149 = vmatprep.mubr.msk.f32.mxu0 %vm14301_vm1, %v14300_v1  ;;  %v15994_v35 = vsel %vm2526_vm6, %v2568_v12, %v2570_v41 }
 0x351   : > { %v15978_v6 = vsel %vm2526_vm6, %v2564_v23, %v2566_v62  ;;  %v15986_v26 = vsel %vm2526_vm6, %v2566_v62, %v2568_v12  ;;  %v2572_v23 = vrot.slane %v15705_v20, 1  ;;  %v2576_v20 = vrot.slane %v15719_v24, 1 }
 0x352   : > { %v2580_v24 = vrot.slane %v15733_v29, 1  ;;  %v2584_v29 = vrot.slane %v15747_v33, 1  ;;  %v2588_v33 = vrot.slane %v15761_v38, 1  ;;  %v2592_v38 = vrot.slane %v15775_v44, 1 }
 0x353   : > { %11150 = vmatmul.mubr.msk.f32.gmra.mrb[4].mxu0 %vm522_vm2, %v15842_v43  ;;  %v16002_v62 = vsel %vm2526_vm6, %v2570_v41, %v2572_v23  ;;  %v16010_v12 = vsel %vm2526_vm6, %v2572_v23, %v2574_v14  ;;  %v16018_v41 = vsel %vm2526_vm6, %v2574_v14, %v2576_v20  ;;  %v16026_v23 = vsel %vm2526_vm6, %v2576_v20, %v2578_v5 }
 0x354   : > { %11152 = vmatprep.mubr.msk.f32.mxu0 %vm14301_vm1, %v14300_v1  ;;  %v16034_v14 = vsel %vm2526_vm6, %v2578_v5, %v2580_v24  ;;  %v16042_v20 = vsel %vm2526_vm6, %v2580_v24, %v2582_v9  ;;  %v16050_v5 = vsel %vm2526_vm6, %v2582_v9, %v2584_v29  ;;  %v16058_v24 = vsel %vm2526_vm6, %v2584_v29, %v2586_v13 }
 0x355   : > { %v16066_v9 = vsel %vm2526_vm6, %v2586_v13, %v2588_v33  ;;  %v16074_v29 = vsel %vm2526_vm6, %v2588_v33, %v2590_v16  ;;  %v16082_v13 = vsel %vm2526_vm6, %v2590_v16, %v2592_v38  ;;  %v16090_v33 = vsel %vm2526_vm6, %v2592_v38, %v2594_v19 }
 0x356   : > { %v2596_v44 = vrot.slane %v15789_v48, 1  ;;  %v2600_v48 = vrot.slane %v15803_v53, 1  ;;  %v2604_v53 = vrot.slane %v15513_v4, 1 }
 0x357   : > { %11153 = vmatmul.mubr.msk.f32.gmra.mrb[6].mxu0 %vm522_vm2, %v15850_v46 }
 0x358   : > { %11155 = vmatprep.mubr.msk.f32.mxu0 %vm14301_vm1, %v14300_v1  ;;  %v16098_v16 = vsel %vm2526_vm6, %v2594_v19, %v2596_v44  ;;  %v16106_v38 = vsel %vm2526_vm6, %v2596_v44, %v2598_v22  ;;  %v16114_v19 = vsel %vm2526_vm6, %v2598_v22, %v2600_v48  ;;  %v16122_v44 = vsel %vm2526_vm6, %v2600_v48, %v2602_v25  ;;  %v16301_v48 = vld [vmem:[%s14465_s12 + $0x160] sm:$0xff] }
 0x359   : > { %v16130_v22 = vsel %vm2526_vm6, %v2602_v25, %v2604_v53  ;;  %v16141_v4 = vsel %vm2526_vm6, %v2604_v53, %v16133_v28  ;;  %v3008_v25 = vrot.slane %v16301_v48, 1  ;;  %v16309_v53 = vld [vmem:[%s14465_s12 + $0x168] sm:$0xff] }
 0x35b   : > { %11156 = vmatmul.mubr.msk.f32.gmra.mrb[8].mxu0 %vm522_vm2, %v15858_v49 }
 0x35c   : > { %11158 = vmatprep.mubr.msk.f32.mxu0 %vm14301_vm1, %v14300_v1 }
 0x35f   : > { %11159 = vmatmul.mubr.msk.f32.gmra.mrb[10].mxu0 %vm522_vm2, %v15866_v52 }
 0x360   : > { %11161 = vmatprep.mubr.msk.f32.mxu0 %vm14301_vm1, %v14300_v1 }
 0x363   : > { %11162 = vmatmul.mubr.msk.f32.gmra.mrb[12].mxu0 %vm522_vm2, %v15874_v47 }
 0x364   : > { %11164 = vmatprep.mubr.msk.f32.mxu0 %vm14301_vm1, %v14300_v1 }
 0x367   : > { %11165 = vmatmul.mubr.msk.f32.gmra.mrb[14].mxu0 %vm522_vm2, %v15882_v3 }
 0x368   : > { %11167 = vmatprep.mubr.msk.f32.mxu0 %vm14301_vm1, %v14300_v1 }
 0x36b   : > { %11168 = vmatmul.mubr.msk.f32.gmra.mrb[16].mxu0 %vm522_vm2, %v15890_v17 }
 0x36c   : > { %11170 = vmatprep.mubr.msk.f32.mxu0 %vm14301_vm1, %v14300_v1 }
 0x36f   : > { %11171 = vmatmul.mubr.msk.f32.gmra.mrb[18].mxu0 %vm522_vm2, %v15898_v54 }
 0x370   : > { %11173 = vmatprep.mubr.msk.f32.mxu0 %vm14301_vm1, %v14300_v1 }
 0x373   : > { %11174 = vmatmul.mubr.msk.f32.gmra.mrb[20].mxu0 %vm522_vm2, %v15906_v27 }
 0x374   : > { %11176 = vmatprep.mubr.msk.f32.mxu0 %vm14301_vm1, %v14300_v1 }
 0x377   : > { %11177 = vmatmul.mubr.msk.f32.gmra.mrb[22].mxu0 %vm522_vm2, %v15914_v31 }
 0x378   : > { %11179 = vmatprep.mubr.msk.f32.mxu0 %vm14301_vm1, %v14300_v1 }
 0x37b   : > { %11180 = vmatmul.mubr.msk.f32.gmra.mrb[24].mxu0 %vm522_vm2, %v15922_v36 }
 0x37c   : > { %11182 = vmatprep.mubr.msk.f32.mxu0 %vm14301_vm1, %v14300_v1 }
 0x37f   : > { %11183 = vmatmul.mubr.msk.f32.gmra.mrb[26].mxu0 %vm522_vm2, %v15930_v39 }
 0x380   : > { %11185 = vmatprep.mubr.msk.f32.mxu0 %vm14301_vm1, %v14300_v1 }
 0x383   : > { %11186 = vmatmul.mubr.msk.f32.gmra.mrb[28].mxu0 %vm522_vm2, %v15938_v18 }
 0x384   : > { %11188 = vmatprep.mubr.msk.f32.mxu0 %vm14301_vm1, %v14300_v1 }
 0x387   : > { %11189 = vmatmul.mubr.msk.f32.gmra.mrb[30].mxu0 %vm522_vm2, %v15946_v32 }
 0x388   : > { %11191 = vmatprep.mubr.msk.f32.mxu0 %vm14301_vm1, %v14300_v1 }
 0x38b   : > { %11192 = vmatmul.mubr.msk.f32.gmra.mrb[32].mxu0 %vm522_vm2, %v15954_v55 }
 0x38c   : > { %11194 = vmatprep.mubr.msk.f32.mxu0 %vm14301_vm1, %v14300_v1 }
 0x38f   : > { %11195 = vmatmul.mubr.msk.f32.gmra.mrb[34].mxu0 %vm522_vm2, %v15962_v21 }
 0x390   : > { %11197 = vmatprep.mubr.msk.f32.mxu0 %vm14301_vm1, %v14300_v1 }
 0x393   : > { %11198 = vmatmul.mubr.msk.f32.gmra.mrb[36].mxu0 %vm522_vm2, %v15970_v57 }
 0x394   : > { %11200 = vmatprep.mubr.msk.f32.mxu0 %vm14301_vm1, %v14300_v1 }
 0x397   : > { %11201 = vmatmul.mubr.msk.f32.gmra.mrb[38].mxu0 %vm522_vm2, %v15978_v6 }
 0x398   : > { %11203 = vmatprep.mubr.msk.f32.mxu0 %vm14301_vm1, %v14300_v1 }
 0x39b   : > { %11204 = vmatmul.mubr.msk.f32.gmra.mrb[40].mxu0 %vm522_vm2, %v15986_v26 }
 0x39c   : > { %11206 = vmatprep.mubr.msk.f32.mxu0 %vm14301_vm1, %v14300_v1 }
 0x39f   : > { %11207 = vmatmul.mubr.msk.f32.gmra.mrb[42].mxu0 %vm522_vm2, %v15994_v35 }
 0x3a0   : > { %11209 = vmatprep.mubr.msk.f32.mxu0 %vm14301_vm1, %v14300_v1 }
 0x3a3   : > { %11210 = vmatmul.mubr.msk.f32.gmra.mrb[44].mxu0 %vm522_vm2, %v16002_v62 }
 0x3a4   : > { %11212 = vmatprep.mubr.msk.f32.mxu0 %vm14301_vm1, %v14300_v1 }
 0x3a7   : > { %11213 = vmatmul.mubr.msk.f32.gmra.mrb[46].mxu0 %vm522_vm2, %v16010_v12 }
 0x3a8   : > { %11215 = vmatprep.mubr.msk.f32.mxu0 %vm14301_vm1, %v14300_v1 }
 0x3ab   : > { %11216 = vmatmul.mubr.msk.f32.gmra.mrb[48].mxu0 %vm522_vm2, %v16018_v41 }
 0x3ac   : > { %11218 = vmatprep.mubr.msk.f32.mxu0 %vm14301_vm1, %v14300_v1 }
 0x3af   : > { %11219 = vmatmul.mubr.msk.f32.gmra.mrb[50].mxu0 %vm522_vm2, %v16026_v23 }
 0x3b0   : > { %11221 = vmatprep.mubr.msk.f32.mxu0 %vm14301_vm1, %v14300_v1 }
 0x3b3   : > { %11222 = vmatmul.mubr.msk.f32.gmra.mrb[52].mxu0 %vm522_vm2, %v16034_v14 }
 0x3b4   : > { %11224 = vmatprep.mubr.msk.f32.mxu0 %vm14301_vm1, %v14300_v1 }
 0x3b7   : > { %11225 = vmatmul.mubr.msk.f32.gmra.mrb[54].mxu0 %vm522_vm2, %v16042_v20 }
 0x3b8   : > { %11227 = vmatprep.mubr.msk.f32.mxu0 %vm14301_vm1, %v14300_v1 }
 0x3bb   : > { %11228 = vmatmul.mubr.msk.f32.gmra.mrb[56].mxu0 %vm522_vm2, %v16050_v5 }
 0x3bc   : > { %11230 = vmatprep.mubr.msk.f32.mxu0 %vm14301_vm1, %v14300_v1 }
 0x3bf   : > { %11231 = vmatmul.mubr.msk.f32.gmra.mrb[58].mxu0 %vm522_vm2, %v16058_v24 }
 0x3c0   : > { %11233 = vmatprep.mubr.msk.f32.mxu0 %vm14301_vm1, %v14300_v1 }
 0x3c3   : > { %11234 = vmatmul.mubr.msk.f32.gmra.mrb[60].mxu0 %vm522_vm2, %v16066_v9 }
 0x3c4   : > { %11236 = vmatprep.mubr.msk.f32.mxu0 %vm14301_vm1, %v14300_v1 }
 0x3c7   : > { %11237 = vmatmul.mubr.msk.f32.gmra.mrb[62].mxu0 %vm522_vm2, %v16074_v29 }
 0x3c8   : > { %11239 = vmatprep.mubr.msk.f32.mxu0 %vm14301_vm1, %v14300_v1 }
 0x3cb   : > { %11240 = vmatmul.mubr.msk.f32.gmra.mrb[64].mxu0 %vm522_vm2, %v16082_v13 }
 0x3cc   : > { %11242 = vmatprep.mubr.msk.f32.mxu0 %vm14301_vm1, %v14300_v1 }
 0x3cf   : > { %11243 = vmatmul.mubr.msk.f32.gmra.mrb[66].mxu0 %vm522_vm2, %v16090_v33 }
 0x3d0   : > { %11245 = vmatprep.mubr.msk.f32.mxu0 %vm14301_vm1, %v14300_v1 }
 0x3d3   : > { %11246 = vmatmul.mubr.msk.f32.gmra.mrb[68].mxu0 %vm522_vm2, %v16098_v16 }
 0x3d4   : > { %11248 = vmatprep.mubr.msk.f32.mxu0 %vm14301_vm1, %v14300_v1 }
 0x3d7   : > { %11249 = vmatmul.mubr.msk.f32.gmra.mrb[70].mxu0 %vm522_vm2, %v16106_v38 }
 0x3d8   : > { %11251 = vmatprep.mubr.msk.f32.mxu0 %vm14301_vm1, %v14300_v1 }
 0x3db   : > { %11252 = vmatmul.mubr.msk.f32.gmra.mrb[72].mxu0 %vm522_vm2, %v16114_v19 }
 0x3dc   : > { %11254 = vmatprep.mubr.msk.f32.mxu0 %vm14301_vm1, %v14300_v1 }
 0x3df   : > { %11255 = vmatmul.mubr.msk.f32.gmra.mrb[74].mxu0 %vm522_vm2, %v16122_v44 }
 0x3e0   : > { %11257 = vmatprep.mubr.msk.f32.mxu0 %vm14301_vm1, %v14300_v1 }
 0x3e3   : > { %11258 = vmatmul.mubr.msk.f32.gmra.mrb[76].mxu0 %vm522_vm2, %v16130_v22 }
 0x3e4   : > { %11260 = vmatprep.mubr.msk.f32.mxu0 %vm14301_vm1, %v14300_v1 }
 0x3e7   : > { %11261 = vmatmul.mubr.msk.f32.gmra.mrb[78].mxu0 %vm522_vm2, %v16141_v4 }
 0x3e8   : > { %11263 = vmatprep.mubr.msk.f32.mxu0 %vm14301_vm1, %v14300_v1 }
 0x3eb   : > { %11264 = vmatmul.mubr.msk.f32.gmra.mrb[80].mxu0 %vm522_vm2, %v16133_v28 }
 0x3ec   : > { %11268 = vmatprep.mubr.msk.f32.mxu0 %vm14301_vm1, %v14300_v1 }
 0x3ef   : > { %11269 = vmatmul.mubr.msk.f32.vlgmr.msra.gmra.mrb[0].mxu0 %vm522_vm2, %v15842_v43  ;;  %v3009_v43 = vsel %vm2526_vm6, %v16133_v28, %v3008_v25 }
 0x3f0   : > { %11392 = vmatpush3.msk.msra.mxu0 %vm605_vm0, %v9282_v59  ;;  %11271 = vmatprep.mubr.msk.f32.mxu0 %vm14301_vm1, %v14300_v1 }
 0x3f1   : > { %11516 = vmatprep.subr.mxu0 %v14300_v1 }
 0x3f3   : > { %11272 = vmatmul.mubr.msk.f32.gmra.mrb[2].mxu0 %vm522_vm2, %v15850_v46  ;;  %v3010_v46 = vrot.slane %v16309_v53, 1 }
 0x3f4   : > { %11274 = vmatprep.mubr.msk.f32.mxu0 %vm14301_vm1, %v14300_v1 }
 0x3f7   : > { %11275 = vmatmul.mubr.msk.f32.gmra.mrb[4].mxu0 %vm522_vm2, %v15858_v49  ;;  %v3011_v49 = vsel %vm2526_vm6, %v3008_v25, %v3010_v46  ;;  %v19481_v25 = vld [vmem:[#allocation4_spill] sm:$0xff] }
 0x3f8   : > { %11277 = vmatprep.mubr.msk.f32.mxu0 %vm14301_vm1, %v14300_v1 }
 0x3fb   : > { %11278 = vmatmul.mubr.msk.f32.gmra.mrb[6].mxu0 %vm522_vm2, %v15866_v52  ;;  %v3335_v52 = vrot.slane %v15558_v30, 2 }
 0x3fc   : > { %11280 = vmatprep.mubr.msk.f32.mxu0 %vm14301_vm1, %v14300_v1 }
 0x3ff   : > { %11281 = vmatmul.mubr.msk.f32.gmra.mrb[8].mxu0 %vm522_vm2, %v15874_v47  ;;  %v3336_v47 = vrot.slane %v15565_v34, 2  ;;  %v3340_v34 = vrot.slane %v15579_v42, 2 }
 0x400   : > { %11283 = vmatprep.mubr.msk.f32.mxu0 %vm14301_vm1, %v14300_v1 }
 0x401   : > { %v3337_v28 = vsel %vm3334_vm7, %v3335_v52, %v3336_v47 }
 0x403   : > { %11284 = vmatmul.mubr.msk.f32.gmra.mrb[10].mxu0 %vm522_vm2, %v15882_v3  ;;  %v3338_v3 = vrot.slane %v15572_v37, 2 }
 0x404   : > { %11286 = vmatprep.mubr.msk.f32.mxu0 %vm14301_vm1, %v14300_v1 }
 0x405   : > { %v3339_v30 = vsel %vm3334_vm7, %v3336_v47, %v3338_v3  ;;  %v3341_v37 = vsel %vm3334_vm7, %v3338_v3, %v3340_v34  ;;  %v19482_v47 = vld [vmem:[#allocation5_spill] sm:$0xff] }
 0x406   : > { %v365_v3 = vld [vmem:[%s19442_s7 + $0x68] sm:$0xff] }
 0x407   : > { %11287 = vmatmul.mubr.msk.f32.gmra.mrb[12].mxu0 %vm522_vm2, %v15890_v17  ;;  %v9325_v17 = vld [vmem:[%s19436_s1 + $0x20] sm:$0xf] }
 0x408   : > { %11289 = vmatprep.mubr.msk.f32.mxu0 %vm14301_vm1, %v14300_v1 }
 0x40b   : > { %11290 = vmatmul.mubr.msk.f32.gmra.mrb[14].mxu0 %vm522_vm2, %v15898_v54  ;;  %v3342_v54 = vrot.slane %v15586_v45, 2 }
 0x40c   : > { %11292 = vmatprep.mubr.msk.f32.mxu0 %vm14301_vm1, %v14300_v1 }
 0x40f   : > { %11293 = vmatmul.mubr.msk.f32.gmra.mrb[16].mxu0 %vm522_vm2, %v15906_v27  ;;  %v3343_v27 = vsel %vm3334_vm7, %v3340_v34, %v3342_v54  ;;  %v19483_v34 = vld [vmem:[#allocation6_spill] sm:$0xff] }
 0x410   : > { %11295 = vmatprep.mubr.msk.f32.mxu0 %vm14301_vm1, %v14300_v1 }
 0x413   : > { %11296 = vmatmul.mubr.msk.f32.gmra.mrb[18].mxu0 %vm522_vm2, %v15914_v31  ;;  %v3344_v31 = vrot.slane %v15593_v50, 2 }
 0x414   : > { %11298 = vmatprep.mubr.msk.f32.mxu0 %vm14301_vm1, %v14300_v1 }
 0x415   : > { %v3345_v42 = vsel %vm3334_vm7, %v3342_v54, %v3344_v31  ;;  %v367_v54 = vld [vmem:[%s19442_s7 + $0x78] sm:$0xff] }
 0x417   : > { %11299 = vmatmul.mubr.msk.f32.gmra.mrb[20].mxu0 %vm522_vm2, %v15922_v36  ;;  %v3346_v36 = vrot.slane %v15600_v51, 2 }
 0x418   : > { %11301 = vmatprep.mubr.msk.f32.mxu0 %vm14301_vm1, %v14300_v1 }
 0x419   : > { %v3347_v45 = vsel %vm3334_vm7, %v3344_v31, %v3346_v36 }
 0x41b   : > { %11302 = vmatmul.mubr.msk.f32.gmra.mrb[22].mxu0 %vm522_vm2, %v15930_v39  ;;  %v3348_v39 = vrot.slane %v15607_v56, 2 }
 0x41c   : > { %11304 = vmatprep.mubr.msk.f32.mxu0 %vm14301_vm1, %v14300_v1 }
 0x41d   : > { %v3349_v50 = vsel %vm3334_vm7, %v3346_v36, %v3348_v39 }
 0x41f   : > { %11305 = vmatmul.mubr.msk.f32.gmra.mrb[24].mxu0 %vm522_vm2, %v15938_v18  ;;  %v3350_v18 = vrot.slane %v15614_v60, 2 }
 0x420   : > { %11307 = vmatprep.mubr.msk.f32.mxu0 %vm14301_vm1, %v14300_v1 }
 0x421   : > { %v3351_v51 = vsel %vm3334_vm7, %v3348_v39, %v3350_v18  ;;  %v374_v39 = vld [vmem:[%s19442_s7 + $0xb0] sm:$0xff] }
 0x423   : > { %11308 = vmatmul.mubr.msk.f32.gmra.mrb[26].mxu0 %vm522_vm2, %v15946_v32  ;;  %v3352_v32 = vrot.slane %v15621_v58, 2 }
 0x424   : > { %11310 = vmatprep.mubr.msk.f32.mxu0 %vm14301_vm1, %v14300_v1 }
 0x425   : > { %v3353_v56 = vsel %vm3334_vm7, %v3350_v18, %v3352_v32  ;;  %v19485_v18 = vld [vmem:[#allocation8_spill] sm:$0xff] }
 0x427   : > { %11311 = vmatmul.mubr.msk.f32.gmra.mrb[28].mxu0 %vm522_vm2, %v15954_v55  ;;  %v3354_v55 = vrot.slane %v15628_v63, 2 }
 0x428   : > { %11313 = vmatprep.mubr.msk.f32.mxu0 %vm14301_vm1, %v14300_v1 }
 0x429   : > { %v3355_v60 = vsel %vm3334_vm7, %v3352_v32, %v3354_v55  ;;  %v371_v32 = vld [vmem:[%s19442_s7 + $0x98] sm:$0xff] }
 0x42b   : > { %11314 = vmatmul.mubr.msk.f32.gmra.mrb[30].mxu0 %vm522_vm2, %v15962_v21  ;;  %v3356_v21 = vrot.slane %v15635_v61, 2  ;;  %v352_v61 = vld [vmem:[%s19442_s7] sm:$0xff] }
 0x42c   : > { %11316 = vmatprep.mubr.msk.f32.mxu0 %vm14301_vm1, %v14300_v1 }
 0x42d   : > { %v3357_v58 = vsel %vm3334_vm7, %v3354_v55, %v3356_v21 }
 0x42f   : > { %11317 = vmatmul.mubr.msk.f32.gmra.mrb[32].mxu0 %vm522_vm2, %v15970_v57  ;;  %v3358_v57 = vrot.slane %v15642_v2, 2 }
 0x430   : > { %11319 = vmatprep.mubr.msk.f32.mxu0 %vm14301_vm1, %v14300_v1 }
 0x431   : > { %v3359_v63 = vsel %vm3334_vm7, %v3356_v21, %v3358_v57 }
 0x433   : > { %11320 = vmatmul.mubr.msk.f32.gmra.mrb[34].mxu0 %vm522_vm2, %v15978_v6  ;;  %v3360_v6 = vrot.slane %v15649_v0, 2  ;;  %v353_v0 = vld [vmem:[%s19442_s7 + $0x8] sm:$0xff] }
 0x434   : > { %11322 = vmatprep.mubr.msk.f32.mxu0 %vm14301_vm1, %v14300_v1 }
 0x435   : > { %v3361_v2 = vsel %vm3334_vm7, %v3358_v57, %v3360_v6  ;;  %v378_v57 = vld [vmem:[%s19442_s7 + $0xd0] sm:$0xff] }
 0x437   : > { %11323 = vmatmul.mubr.msk.f32.gmra.mrb[36].mxu0 %vm522_vm2, %v15986_v26  ;;  %v3362_v26 = vrot.slane %v15656_v8, 2  ;;  %v356_v8 = vld [vmem:[%s19442_s7 + $0x20] sm:$0xff] }
 0x438   : > { %11325 = vmatprep.mubr.msk.f32.mxu0 %vm14301_vm1, %v14300_v1 }
 0x43b   : > { %11326 = vmatmul.mubr.msk.f32.gmra.mrb[38].mxu0 %vm522_vm2, %v15994_v35  ;;  %v14302_v35 = vmov 0  }
 0x43c   : > { %11328 = vmatprep.mubr.msk.f32.mxu0 %vm14301_vm1, %v14300_v1  ;;  %14091 = vset.pattern.permute.xlu0 %v14302_v35 }
 0x43d   : > { %4431 = vperm.xlu0 %14091, %v352_v61   ;;  %14092 = vset.pattern.permute.xlu1 %v14302_v35 }
 0x43f   : > { %11329 = vmatmul.mubr.msk.f32.gmra.mrb[40].mxu0 %vm522_vm2, %v16002_v62  ;;  %v3363_v62 = vsel %vm3334_vm7, %v3360_v6, %v3362_v26  ;;  %v19487_v6 = vld [vmem:[#allocation10_spill] sm:$0xff] }
 0x440   : > { %11331 = vmatprep.mubr.msk.f32.mxu0 %vm14301_vm1, %v14300_v1  ;;  %v3388_v61 = vrot.slane %v19487_v6, 2  ;;  %v14136_v6 = vld [vmem:[%s14465_s12 + $0x38] sm:$0xff] }
 0x441   : > { %4436 = vperm.xlu0 %14091, %v353_v0   ;;  %v19488_v0 = vld [vmem:[#allocation11_spill] sm:$0xff] }
 0x443   : > { %11332 = vmatmul.mubr.msk.f32.gmra.mrb[42].mxu0 %vm522_vm2, %v16010_v12  ;;  %v3364_v12 = vrot.slane %v15663_v7, 2  ;;  %v354_v7 = vld [vmem:[%s19442_s7 + $0x10] sm:$0xff] }
 0x444   : > { %11334 = vmatprep.mubr.msk.f32.mxu0 %vm14301_vm1, %v14300_v1  ;;  %4441 = vperm.xlu1 %14092, %v354_v7  }
 0x445   : > { %4451 = vperm.xlu0 %14091, %v356_v8   ;;  %v382_v8 = vld [vmem:[%s19442_s7 + $0xf0] sm:$0xff] }
 0x447   : > { %11335 = vmatmul.mubr.msk.f32.gmra.mrb[44].mxu0 %vm522_vm2, %v16018_v41  ;;  %v3365_v41 = vsel %vm3334_vm7, %v3362_v26, %v3364_v12  ;;  %v380_v26 = vld [vmem:[%s19442_s7 + $0xe0] sm:$0xff] }
 0x448   : > { %11337 = vmatprep.mubr.msk.f32.mxu0 %vm14301_vm1, %v14300_v1 }
 0x44b   : > { %11338 = vmatmul.mubr.msk.f32.gmra.mrb[46].mxu0 %vm522_vm2, %v16026_v23  ;;  %v3366_v23 = vrot.slane %v15670_v10, 2  ;;  %v355_v10 = vld [vmem:[%s19442_s7 + $0x18] sm:$0xff] }
 0x44c   : > { %11340 = vmatprep.mubr.msk.f32.mxu0 %vm14301_vm1, %v14300_v1  ;;  %4446 = vperm.xlu1 %14092, %v355_v10   ;;  %v19490_v10 = vld [vmem:[#allocation13_spill] sm:$0xff] }
 0x44f   : > { %11341 = vmatmul.mubr.msk.f32.gmra.mrb[48].mxu0 %vm522_vm2, %v16034_v14  ;;  %v358_v14 = vld [vmem:[%s19442_s7 + $0x30] sm:$0xff] }
 0x450   : > { %11343 = vmatprep.mubr.msk.f32.mxu0 %vm14301_vm1, %v14300_v1  ;;  %4461 = vperm.xlu0 %14091, %v358_v14   ;;  %v379_v14 = vld [vmem:[%s19442_s7 + $0xd8] sm:$0xff] }
 0x453   : > { %11344 = vmatmul.mubr.msk.f32.gmra.mrb[50].mxu0 %vm522_vm2, %v16042_v20  ;;  %v3367_v20 = vsel %vm3334_vm7, %v3364_v12, %v3366_v23  ;;  %v377_v12 = vld [vmem:[%s19442_s7 + $0xc8] sm:$0xff] }
 0x454   : > { %11346 = vmatprep.mubr.msk.f32.mxu0 %vm14301_vm1, %v14300_v1 }
 0x457   : > { %11347 = vmatmul.mubr.msk.f32.gmra.mrb[52].mxu0 %vm522_vm2, %v16050_v5  ;;  %v3368_v5 = vrot.slane %v15677_v11, 2  ;;  %v357_v11 = vld [vmem:[%s19442_s7 + $0x28] sm:$0xff] }
 0x458   : > { %11349 = vmatprep.mubr.msk.f32.mxu0 %vm14301_vm1, %v14300_v1  ;;  %4456 = vperm.xlu1 %14092, %v357_v11  }
 0x45b   : > { %11350 = vmatmul.mubr.msk.f32.gmra.mrb[54].mxu0 %vm522_vm2, %v16058_v24  ;;  %v360_v24 = vld [vmem:[%s19442_s7 + $0x40] sm:$0xff] }
 0x45c   : > { %11352 = vmatprep.mubr.msk.f32.mxu0 %vm14301_vm1, %v14300_v1  ;;  %4471 = vperm.xlu0 %14091, %v360_v24   ;;  %v3394_v24 = vrot.slane %v19490_v10, 2  ;;  %v14141_v10 = vld [vmem:[%s14465_s12 + $0x60] sm:$0xff] }
 0x45f   : > { %11353 = vmatmul.mubr.msk.f32.gmra.mrb[56].mxu0 %vm522_vm2, %v16066_v9  ;;  %v3369_v9 = vsel %vm3334_vm7, %v3366_v23, %v3368_v5  ;;  %v19489_v23 = vld [vmem:[#allocation12_spill] sm:$0xff] }
 0x460   : > { %11355 = vmatprep.mubr.msk.f32.mxu0 %vm14301_vm1, %v14300_v1  ;;  %v3392_v7 = vrot.slane %v19489_v23, 2 }
 0x462   : > { %v3395_v11 = vsel %vm3334_vm7, %v3392_v7, %v3394_v24 }
 0x463   : > { %11356 = vmatmul.mubr.msk.f32.gmra.mrb[58].mxu0 %vm522_vm2, %v16074_v29  ;;  %v3370_v29 = vrot.slane %v15684_v40, 2  ;;  %v359_v40 = vld [vmem:[%s19442_s7 + $0x38] sm:$0xff] }
 0x464   : > { %11358 = vmatprep.mubr.msk.f32.mxu0 %vm14301_vm1, %v14300_v1  ;;  %4466 = vperm.xlu1 %14092, %v359_v40   ;;  %v388_v40 = vld [vmem:[%s19442_s7 + $0x120] sm:$0xff] }
 0x467   : > { %11359 = vmatmul.mubr.msk.f32.gmra.mrb[60].mxu0 %vm522_vm2, %v16082_v13  ;;  %v362_v13 = vld [vmem:[%s19442_s7 + $0x50] sm:$0xff] }
 0x468   : > { %11361 = vmatprep.mubr.msk.f32.mxu0 %vm14301_vm1, %v14300_v1  ;;  %4481 = vperm.xlu0 %14091, %v362_v13   ;;  %v19491_v13 = vld [vmem:[#allocation14_spill] sm:$0xff] }
 0x46b   : > { %11362 = vmatmul.mubr.msk.f32.gmra.mrb[62].mxu0 %vm522_vm2, %v16090_v33  ;;  %v3371_v33 = vsel %vm3334_vm7, %v3368_v5, %v3370_v29 }
 0x46c   : > { %11364 = vmatprep.mubr.msk.f32.mxu0 %vm14301_vm1, %v14300_v1 }
 0x46f   : > { %11365 = vmatmul.mubr.msk.f32.gmra.mrb[64].mxu0 %vm522_vm2, %v16098_v16  ;;  %v3372_v16 = vrot.slane %v15691_v15, 2  ;;  %v361_v15 = vld [vmem:[%s19442_s7 + $0x48] sm:$0xff] }
 0x470   : > { %11367 = vmatprep.mubr.msk.f32.mxu0 %vm14301_vm1, %v14300_v1  ;;  %4476 = vperm.xlu1 %14092, %v361_v15   ;;  %v390_v15 = vld [vmem:[%s19442_s7 + $0x130] sm:$0xff] }
 0x473   : > { %11368 = vmatmul.mubr.msk.f32.gmra.mrb[66].mxu0 %vm522_vm2, %v16106_v38  ;;  %v364_v38 = vld [vmem:[%s19442_s7 + $0x60] sm:$0xff] }
 0x474   : > { %11370 = vmatprep.mubr.msk.f32.mxu0 %vm14301_vm1, %v14300_v1  ;;  %4491 = vperm.xlu0 %14091, %v364_v38  }
 0x477   : > { %11371 = vmatmul.mubr.msk.f32.gmra.mrb[68].mxu0 %vm522_vm2, %v16114_v19  ;;  %v3373_v19 = vsel %vm3334_vm7, %v3370_v29, %v3372_v16  ;;  %v386_v29 = vld [vmem:[%s19442_s7 + $0x110] sm:$0xff] }
 0x478   : > { %11373 = vmatprep.mubr.msk.f32.mxu0 %vm14301_vm1, %v14300_v1 }
 0x47b   : > { %11374 = vmatmul.mubr.msk.f32.gmra.mrb[70].mxu0 %vm522_vm2, %v16122_v44  ;;  %v19480_v44 = vld [vmem:[#allocation3_spill] sm:$0xff] }
 0x47c   : > { %11376 = vmatprep.mubr.msk.f32.mxu0 %vm14301_vm1, %v14300_v1 }
 0x47f   : > { %11377 = vmatmul.mubr.msk.f32.gmra.mrb[72].mxu0 %vm522_vm2, %v16130_v22  ;;  %v3374_v22 = vrot.slane %v19480_v44, 2 }
 0x480   : > { %11379 = vmatprep.mubr.msk.f32.mxu0 %vm14301_vm1, %v14300_v1 }
 0x481   : > { %v3375_v59 = vsel %vm3334_vm7, %v3372_v16, %v3374_v22  ;;  %v383_v16 = vld [vmem:[%s19442_s7 + $0xf8] sm:$0xff] }
 0x483   : > { %11380 = vmatmul.mubr.msk.f32.gmra.mrb[74].mxu0 %vm522_vm2, %v16141_v4  ;;  %v366_v4 = vld [vmem:[%s19442_s7 + $0x70] sm:$0xff] }
 0x484   : > { %11382 = vmatprep.mubr.msk.f32.mxu0 %vm14301_vm1, %v14300_v1  ;;  %4501 = vperm.xlu0 %14091, %v366_v4  }
 0x487   : > { %11383 = vmatmul.mubr.msk.f32.gmra.mrb[76].mxu0 %vm522_vm2, %v3009_v43  ;;  %v3376_v43 = vrot.slane %v19481_v25, 2 }
 0x488   : > { %11385 = vmatprep.mubr.msk.f32.mxu0 %vm14301_vm1, %v14300_v1 }
 0x489   : > { %v3377_v52 = vsel %vm3334_vm7, %v3374_v22, %v3376_v43  ;;  %v385_v22 = vld [vmem:[%s19442_s7 + $0x108] sm:$0xff] }
 0x48b   : > { %11386 = vmatmul.mubr.msk.f32.gmra.mrb[78].mxu0 %vm522_vm2, %v3011_v49  ;;  %v368_v49 = vld [vmem:[%s19442_s7 + $0x80] sm:$0xff] }
 0x48c   : > { %11388 = vmatprep.mubr.msk.f32.mxu0 %vm14301_vm1, %v14300_v1  ;;  %4511 = vperm.xlu0 %14091, %v368_v49  }
 0x48f   : > { %11389 = vmatmul.mubr.msk.f32.gmra.mrb[80].mxu0 %vm522_vm2, %v3010_v46  ;;  %v363_v46 = vld [vmem:[%s19442_s7 + $0x58] sm:$0xff] }
 0x490   : > { %11393 = vmatprep.mubr.msk.f32.mxu0 %vm14301_vm1, %v14300_v1  ;;  %4486 = vperm.xlu1 %14092, %v363_v46   ;;  %v392_v46 = vld [vmem:[%s19442_s7 + $0x140] sm:$0xf] }
 0x493   : > { %11394 = vmatmul.mubr.msk.f32.vlgmr.msra.gmra.mrb[0].mxu0 %vm522_vm2, %v3337_v28  ;;  %v3378_v28 = vrot.slane %v19482_v47, 2 }
 0x494   : > { %11517 = vmatpush3.msk.msra.mxu0 %vm605_vm0, %v9325_v17  ;;  %11396 = vmatprep.mubr.msk.f32.mxu0 %vm14301_vm1, %v14300_v1  ;;  %v370_v17 = vld [vmem:[%s19442_s7 + $0x90] sm:$0xff] }
 0x495   : > { %4496 = vperm.xlu1 %14092, %v365_v3   ;;  %4521 = vperm.xlu0 %14091, %v370_v17   ;;  %v19495_v17 = vld [vmem:[#allocation18_spill] sm:$0xff] }
 0x497   : > { %11397 = vmatmul.mubr.msk.f32.gmra.mrb[2].mxu0 %vm522_vm2, %v3339_v30  ;;  %v3379_v30 = vsel %vm3334_vm7, %v3376_v43, %v3378_v28  ;;  %v387_v43 = vld [vmem:[%s19442_s7 + $0x118] sm:$0xff] }
 0x498   : > { %11399 = vmatprep.mubr.msk.f32.mxu0 %vm14301_vm1, %v14300_v1 }
 0x499   : > { %4506 = vperm.xlu1 %14092, %v367_v54   ;;  %v19496_v54 = vld [vmem:[#allocation19_spill] sm:$0xff] }
 0x49b   : > { %11400 = vmatmul.mubr.msk.f32.gmra.mrb[4].mxu0 %vm522_vm2, %v3341_v37  ;;  %v3380_v37 = vrot.slane %v19483_v34, 2  ;;  %v391_v34 = vld [vmem:[%s19442_s7 + $0x138] sm:$0xff] }
 0x49c   : > { %11402 = vmatprep.mubr.msk.f32.mxu0 %vm14301_vm1, %v14300_v1 }
 0x49d   : > { %v3381_v31 = vsel %vm3334_vm7, %v3378_v28, %v3380_v37  ;;  %v389_v28 = vld [vmem:[%s19442_s7 + $0x128] sm:$0xff] }
 0x49f   : > { %11403 = vmatmul.mubr.msk.f32.gmra.mrb[6].mxu0 %vm522_vm2, %v3343_v27  ;;  %v372_v27 = vld [vmem:[%s19442_s7 + $0xa0] sm:$0xff] }
 0x4a0   : > { %11405 = vmatprep.mubr.msk.f32.mxu0 %vm14301_vm1, %v14300_v1  ;;  %4531 = vperm.xlu0 %14091, %v372_v27   ;;  %v3406_v27 = vrot.slane %v19496_v54, 2 }
 0x4a3   : > { %11406 = vmatmul.mubr.msk.f32.gmra.mrb[8].mxu0 %vm522_vm2, %v3345_v42  ;;  %v19484_v42 = vld [vmem:[#allocation7_spill] sm:$0xff] }
 0x4a4   : > { %11408 = vmatprep.mubr.msk.f32.mxu0 %vm14301_vm1, %v14300_v1  ;;  %v3382_v36 = vrot.slane %v19484_v42, 2  ;;  %4541 = vperm.xlu0 %14091, %v374_v39   ;;  %v16634_v42 = vld [vmem:[%s14465_s12 + $0x150] sm:$0xff]  ;;  %v16642_v39 = vld [vmem:[%s14465_s12 + $0x158] sm:$0xff] }
 0x4a7   : > { %11409 = vmatmul.mubr.msk.f32.gmra.mrb[10].mxu0 %vm522_vm2, %v3347_v45  ;;  %v369_v45 = vld [vmem:[%s19442_s7 + $0x88] sm:$0xff] }
 0x4a8   : > { %11411 = vmatprep.mubr.msk.f32.mxu0 %vm14301_vm1, %v14300_v1  ;;  %4516 = vperm.xlu1 %14092, %v369_v45  }
 0x4ab   : > { %11412 = vmatmul.mubr.msk.f32.gmra.mrb[12].mxu0 %vm522_vm2, %v3349_v50  ;;  %v3383_v50 = vsel %vm3334_vm7, %v3380_v37, %v3382_v36 }
 0x4ac   : > { %11414 = vmatprep.mubr.msk.f32.mxu0 %vm14301_vm1, %v14300_v1  ;;  %4526 = vperm.xlu1 %14092, %v371_v32  }
 0x4af   : > { %11415 = vmatmul.mubr.msk.f32.gmra.mrb[14].mxu0 %vm522_vm2, %v3351_v51  ;;  %v3384_v51 = vrot.slane %v19485_v18, 2 }
 0x4b0   : > { %11417 = vmatprep.mubr.msk.f32.mxu0 %vm14301_vm1, %v14300_v1 }
 0x4b1   : > { %v3385_v55 = vsel %vm3334_vm7, %v3382_v36, %v3384_v51  ;;  %v3408_v36 = vrot.slane %v16634_v42, 2 }
 0x4b3   : > { %11418 = vmatmul.mubr.msk.f32.gmra.mrb[16].mxu0 %vm522_vm2, %v3353_v56  ;;  %v376_v56 = vld [vmem:[%s19442_s7 + $0xc0] sm:$0xff]  ;;  %v3409_v45 = vsel %vm3334_vm7, %v3406_v27, %v3408_v36 }
 0x4b4   : > { %11420 = vmatprep.mubr.msk.f32.mxu0 %vm14301_vm1, %v14300_v1  ;;  %4551 = vperm.xlu0 %14091, %v376_v56   ;;  %v3414_v56 = vrot.slane %v16309_v53, 2 }
 0x4b7   : > { %11421 = vmatmul.mubr.msk.f32.gmra.mrb[18].mxu0 %vm522_vm2, %v3355_v60  ;;  %v19486_v60 = vld [vmem:[#allocation9_spill] sm:$0xff] }
 0x4b8   : > { %11423 = vmatprep.mubr.msk.f32.mxu0 %vm14301_vm1, %v14300_v1  ;;  %v3386_v21 = vrot.slane %v19486_v60, 2  ;;  %4561 = vperm.xlu0 %14091, %v378_v57   ;;  %v14134_v60 = vld [vmem:[%s14465_s12 + $0x28] sm:$0xff] }
 0x4ba   : > { %v3389_v35 = vsel %vm3334_vm7, %v3386_v21, %v3388_v61 }
 0x4bb   : > { %11424 = vmatmul.mubr.msk.f32.gmra.mrb[20].mxu0 %vm522_vm2, %v3357_v58  ;;  %v373_v58 = vld [vmem:[%s19442_s7 + $0xa8] sm:$0xff] }
 0x4bc   : > { %11426 = vmatprep.mubr.msk.f32.mxu0 %vm14301_vm1, %v14300_v1  ;;  %4536 = vperm.xlu1 %14092, %v373_v58   ;;  %v14135_v58 = vld [vmem:[%s14465_s12 + $0x30] sm:$0xff] }
 0x4bd   : > { %4571 = vperm.xlu0 %14091, %v380_v26   ;;  %v3816_v57 = vrot.slane %v14135_v58, 3  ;;  %v14137_v26 = vld [vmem:[%s14465_s12 + $0x40] sm:$0xff] }
 0x4bf   : > { %11427 = vmatmul.mubr.msk.f32.gmra.mrb[22].mxu0 %vm522_vm2, %v3359_v63  ;;  %v3387_v63 = vsel %vm3334_vm7, %v3384_v51, %v3386_v21  ;;  %v3412_v51 = vrot.slane %v16301_v48, 2  ;;  %v3815_v21 = vrot.slane %v14134_v60, 3  ;;  %v14154_v60 = vld [vmem:[%s14465_s12 + $0xc8] sm:$0xff] }
 0x4c0   : > { %11429 = vmatprep.mubr.msk.f32.mxu0 %vm14301_vm1, %v14300_v1 }
 0x4c1   : > { %4581 = vperm.xlu0 %14091, %v382_v8  }
 0x4c3   : > { %11430 = vmatmul.mubr.msk.f32.gmra.mrb[24].mxu0 %vm522_vm2, %v3361_v2  ;;  %v375_v2 = vld [vmem:[%s19442_s7 + $0xb8] sm:$0xff] }
 0x4c4   : > { %11432 = vmatprep.mubr.msk.f32.mxu0 %vm14301_vm1, %v14300_v1  ;;  %4546 = vperm.xlu1 %14092, %v375_v2  }
 0x4c7   : > { %11433 = vmatmul.mubr.msk.f32.gmra.mrb[26].mxu0 %vm522_vm2, %v3363_v62  ;;  %v3390_v62 = vrot.slane %v19488_v0, 2 }
 0x4c8   : > { %11435 = vmatprep.mubr.msk.f32.mxu0 %vm14301_vm1, %v14300_v1  ;;  %4556 = vperm.xlu1 %14092, %v377_v12  }
 0x4c9   : > { %v3393_v5 = vsel %vm3334_vm7, %v3390_v62, %v3392_v7 }
 0x4cb   : > { %11436 = vmatmul.mubr.msk.f32.gmra.mrb[28].mxu0 %vm522_vm2, %v3365_v41  ;;  %v3391_v41 = vsel %vm3334_vm7, %v3388_v61, %v3390_v62  ;;  %v3818_v61 = vrot.slane %v14136_v6, 3  ;;  %v14138_v62 = vld [vmem:[%s14465_s12 + $0x48] sm:$0xff] }
 0x4cc   : > { %11438 = vmatprep.mubr.msk.f32.mxu0 %vm14301_vm1, %v14300_v1  ;;  %4566 = vperm.xlu1 %14092, %v379_v14   ;;  %v3822_v12 = vrot.slane %v14138_v62, 3  ;;  %v14140_v14 = vld [vmem:[%s14465_s12 + $0x58] sm:$0xff] }
 0x4cd   : > { %v3819_v2 = vsel %vm3814_vm8, %v3816_v57, %v3818_v61 }
 0x4cf   : > { %11439 = vmatmul.mubr.msk.f32.gmra.mrb[30].mxu0 %vm522_vm2, %v3367_v20  ;;  %v384_v20 = vld [vmem:[%s19442_s7 + $0x100] sm:$0xff] }
 0x4d0   : > { %11441 = vmatprep.mubr.msk.f32.mxu0 %vm14301_vm1, %v14300_v1  ;;  %4591 = vperm.xlu0 %14091, %v384_v20   ;;  %v3826_v20 = vrot.slane %v14140_v14, 3  ;;  %v16784_v14 = vld [vmem:[#allocation2] sm:$0xff] }
 0x4d3   : > { %11442 = vmatmul.mubr.msk.f32.gmra.mrb[32].mxu0 %vm522_vm2, %v3369_v9  ;;  %v381_v9 = vld [vmem:[%s19442_s7 + $0xe8] sm:$0xff] }
 0x4d4   : > { %11444 = vmatprep.mubr.msk.f32.mxu0 %vm14301_vm1, %v14300_v1  ;;  %4576 = vperm.xlu1 %14092, %v381_v9  }
 0x4d5   : > { %4601 = vperm.xlu0 %14091, %v386_v29   ;;  %v14142_v29 = vld [vmem:[%s14465_s12 + $0x68] sm:$0xff] }
 0x4d7   : > { %11445 = vmatmul.mubr.msk.f32.gmra.mrb[34].mxu0 %vm522_vm2, %v3371_v33  ;;  %v3396_v33 = vrot.slane %v19491_v13, 2 }
 0x4d8   : > { %11447 = vmatprep.mubr.msk.f32.mxu0 %vm14301_vm1, %v14300_v1  ;;  %4586 = vperm.xlu1 %14092, %v383_v16  }
 0x4d9   : > { %v3397_v38 = vsel %vm3334_vm7, %v3394_v24, %v3396_v33  ;;  %4611 = vperm.xlu0 %14091, %v388_v40   ;;  %v3828_v24 = vrot.slane %v14141_v10, 3 }
 0x4db   : > { %11448 = vmatmul.mubr.msk.f32.gmra.mrb[36].mxu0 %vm522_vm2, %v3373_v19  ;;  %v19492_v19 = vld [vmem:[#allocation15_spill] sm:$0xff]  ;;  %v3829_v9 = vsel %vm3814_vm8, %v3826_v20, %v3828_v24 }
 0x4dc   : > { %11450 = vmatprep.mubr.msk.f32.mxu0 %vm14301_vm1, %v14300_v1  ;;  %v3398_v44 = vrot.slane %v19492_v19, 2  ;;  %4596 = vperm.xlu1 %14092, %v385_v22   ;;  %v14145_v22 = vld [vmem:[%s14465_s12 + $0x80] sm:$0xff] }
 0x4dd   : > { %4621 = vperm.xlu0 %14091, %v390_v15   ;;  %v3836_v15 = vrot.slane %v14145_v22, 3 }
 0x4de   : > { %v3399_v4 = vsel %vm3334_vm7, %v3396_v33, %v3398_v44  ;;  %v14143_v33 = vld [vmem:[%s14465_s12 + $0x70] sm:$0xff] }
 0x4df   : > { %11451 = vmatmul.mubr.msk.f32.gmra.mrb[38].mxu0 %vm522_vm2, %v3375_v59  ;;  %v19493_v59 = vld [vmem:[#allocation16_spill] sm:$0xff]  ;;  %v3832_v16 = vrot.slane %v14143_v33, 3  ;;  %v16802_v33 = vld [vmem:[#allocation2 + $0x10] sm:$0xff] }
 0x4e0   : > { %11453 = vmatprep.mubr.msk.f32.mxu0 %vm14301_vm1, %v14300_v1  ;;  %v3400_v25 = vrot.slane %v19493_v59, 2  ;;  %4606 = vperm.xlu1 %14092, %v387_v43   ;;  %v14146_v59 = vld [vmem:[%s14465_s12 + $0x88] sm:$0xff] }
 0x4e1   : > { %4631 = vperm.xlu0 %14091, %v392_v46   ;;  %v14147_v46 = vld [vmem:[%s14465_s12 + $0x90] sm:$0xff] }
 0x4e2   : > { %v3401_v49 = vsel %vm3334_vm7, %v3398_v44, %v3400_v25 }
 0x4e3   : > { %11454 = vmatmul.mubr.msk.f32.gmra.mrb[40].mxu0 %vm522_vm2, %v3377_v52  ;;  %v19494_v52 = vld [vmem:[#allocation17_spill] sm:$0xff] }
 0x4e4   : > { %11456 = vmatprep.mubr.msk.f32.mxu0 %vm14301_vm1, %v14300_v1  ;;  %v3402_v47 = vrot.slane %v19494_v52, 2  ;;  %4616 = vperm.xlu1 %14092, %v389_v28  }
 0x4e6   : > { %v3403_v3 = vsel %vm3334_vm7, %v3400_v25, %v3402_v47  ;;  %v3838_v25 = vrot.slane %v14146_v59, 3  ;;  %v4810_v59 = vld [vmem:[%s19439_s4] sm:$0xf] }
 0x4e7   : > { %11457 = vmatmul.mubr.msk.f32.gmra.mrb[42].mxu0 %vm522_vm2, %v3379_v30  ;;  %v3404_v30 = vrot.slane %v19495_v17, 2  ;;  %v14149_v17 = vld [vmem:[%s14465_s12 + $0xa0] sm:$0xff] }
 0x4e8   : > { %11459 = vmatprep.mubr.msk.f32.mxu0 %vm14301_vm1, %v14300_v1  ;;  %4626 = vperm.xlu1 %14092, %v391_v34   ;;  %v3839_v43 = vsel %vm3814_vm8, %v3836_v15, %v3838_v25 }
 0x4e9   : > { %v3405_v37 = vsel %vm3334_vm7, %v3402_v47, %v3404_v30  ;;  %v14148_v47 = vld [vmem:[%s14465_s12 + $0x98] sm:$0xff] }
 0x4ea   : > { %v3842_v28 = vrot.slane %v14148_v47, 3 }
 0x4eb   : > { %11460 = vmatmul.mubr.msk.f32.gmra.mrb[44].mxu0 %vm522_vm2, %v3381_v31  ;;  %v3407_v31 = vsel %vm3334_vm7, %v3404_v30, %v3406_v27  ;;  %v3844_v30 = vrot.slane %v14149_v17, 3 }
 0x4ec   : > { %11462 = vmatprep.mubr.msk.f32.mxu0 %vm14301_vm1, %v14300_v1 }
 0x4ed   : > { %v3845_v34 = vsel %vm3814_vm8, %v3842_v28, %v3844_v30 }
 0x4ef   : > { %11463 = vmatmul.mubr.msk.f32.gmra.mrb[46].mxu0 %vm522_vm2, %v3383_v50  ;;  %v3410_v50 = vrot.slane %v16642_v39, 2 }
 0x4f0   : > { %11465 = vmatprep.mubr.msk.f32.mxu0 %vm14301_vm1, %v14300_v1 }
 0x4f1   : > { %v3411_v18 = vsel %vm3334_vm7, %v3408_v36, %v3410_v50  ;;  %v3413_v32 = vsel %vm3334_vm7, %v3410_v50, %v3412_v51  ;;  %v14152_v50 = vld [vmem:[%s14465_s12 + $0xb8] sm:$0xff] }
 0x4f3   : > { %11466 = vmatmul.mubr.msk.f32.gmra.mrb[48].mxu0 %vm522_vm2, %v3385_v55  ;;  %v3415_v55 = vsel %vm3334_vm7, %v3412_v51, %v3414_v56 }
 0x4f4   : > { %11468 = vmatprep.mubr.msk.f32.mxu0 %vm14301_vm1, %v14300_v1 }
 0x4f7   : > { %11469 = vmatmul.mubr.msk.f32.gmra.mrb[50].mxu0 %vm522_vm2, %v3387_v63  ;;  %v3817_v63 = vsel %vm3814_vm8, %v3815_v21, %v3816_v57  ;;  %v3854_v21 = vrot.slane %v14154_v60, 3  ;;  %v14155_v57 = vld [vmem:[%s14465_s12 + $0xd0] sm:$0xff] }
 0x4f8   : > { %11471 = vmatprep.mubr.msk.f32.mxu0 %vm14301_vm1, %v14300_v1 }
 0x4fb   : > { %11472 = vmatmul.mubr.msk.f32.gmra.mrb[52].mxu0 %vm522_vm2, %v3389_v35  ;;  %v3820_v35 = vrot.slane %v14137_v26, 3 }
 0x4fc   : > { %11474 = vmatprep.mubr.msk.f32.mxu0 %vm14301_vm1, %v14300_v1 }
 0x4fd   : > { %v3821_v0 = vsel %vm3814_vm8, %v3818_v61, %v3820_v35  ;;  %v3823_v8 = vsel %vm3814_vm8, %v3820_v35, %v3822_v12  ;;  %v14156_v61 = vld [vmem:[%s14465_s12 + $0xd8] sm:$0xff]  ;;  %v14157_v35 = vld [vmem:[%s14465_s12 + $0xe0] sm:$0xff] }
 0x4ff   : > { %11475 = vmatmul.mubr.msk.f32.gmra.mrb[54].mxu0 %vm522_vm2, %v3391_v41  ;;  %v14139_v41 = vld [vmem:[%s14465_s12 + $0x50] sm:$0xff] }
 0x500   : > { %11477 = vmatprep.mubr.msk.f32.mxu0 %vm14301_vm1, %v14300_v1  ;;  %v3824_v23 = vrot.slane %v14139_v41, 3 }
 0x502   : > { %v3825_v7 = vsel %vm3814_vm8, %v3822_v12, %v3824_v23  ;;  %v14158_v12 = vld [vmem:[%s14465_s12 + $0xe8] sm:$0xff] }
 0x503   : > { %11478 = vmatmul.mubr.msk.f32.gmra.mrb[56].mxu0 %vm522_vm2, %v3393_v5  ;;  %v3827_v5 = vsel %vm3814_vm8, %v3824_v23, %v3826_v20  ;;  %v14159_v23 = vld [vmem:[%s14465_s12 + $0xf0] sm:$0xff]  ;;  %v16786_v20 = vld [vmem:[#allocation2 + $0x8] sm:$0xff] }
 0x504   : > { %11480 = vmatprep.mubr.msk.f32.mxu0 %vm14301_vm1, %v14300_v1  ;;  %v4856_v10 = vrot.slane %v16786_v20, 6 }
 0x507   : > { %11481 = vmatmul.mubr.msk.f32.gmra.mrb[58].mxu0 %vm522_vm2, %v3395_v11  ;;  %v3830_v11 = vrot.slane %v14142_v29, 3 }
 0x508   : > { %11483 = vmatprep.mubr.msk.f32.mxu0 %vm14301_vm1, %v14300_v1 }
 0x509   : > { %v3831_v13 = vsel %vm3814_vm8, %v3828_v24, %v3830_v11  ;;  %v3833_v40 = vsel %vm3814_vm8, %v3830_v11, %v3832_v16  ;;  %v9370_v11 = vld [vmem:[%s19439_s4 + $0x4] sm:$0xf] }
 0x50a   : > { %11642 = vmatpush3.msk.msra.mxu1 %vm605_vm0, %v9370_v11 }
 0x50b   : > { %11484 = vmatmul.mubr.msk.f32.gmra.mrb[60].mxu0 %vm522_vm2, %v3397_v38  ;;  %v14144_v38 = vld [vmem:[%s14465_s12 + $0x78] sm:$0xff]  ;;  %11766 = vmatprep.subr.mxu1 %v14300_v1 }
 0x50c   : > { %11486 = vmatprep.mubr.msk.f32.mxu0 %vm14301_vm1, %v14300_v1  ;;  %v3834_v19 = vrot.slane %v14144_v38, 3  ;;  %v14161_v38 = vld [vmem:[%s14465_s12 + $0x100] sm:$0xff] }
 0x50e   : > { %v3835_v44 = vsel %vm3814_vm8, %v3832_v16, %v3834_v19  ;;  %v4858_v16 = vrot.slane %v16802_v33, 6 }
 0x50f   : > { %11487 = vmatmul.mubr.msk.f32.gmra.mrb[62].mxu0 %vm522_vm2, %v3399_v4  ;;  %v3837_v4 = vsel %vm3814_vm8, %v3834_v19, %v3836_v15  ;;  %v3868_v19 = vrot.slane %v14161_v38, 3  ;;  %v14162_v15 = vld [vmem:[%s14465_s12 + $0x108] sm:$0xff] }
 0x510   : > { %11489 = vmatprep.mubr.msk.f32.mxu0 %vm14301_vm1, %v14300_v1 }
 0x513   : > { %11490 = vmatmul.mubr.msk.f32.gmra.mrb[64].mxu0 %vm522_vm2, %v3401_v49  ;;  %v3840_v49 = vrot.slane %v14147_v46, 3 }
 0x514   : > { %11492 = vmatprep.mubr.msk.f32.mxu0 %vm14301_vm1, %v14300_v1 }
 0x515   : > { %v3841_v52 = vsel %vm3814_vm8, %v3838_v25, %v3840_v49 }
 0x517   : > { %11493 = vmatmul.mubr.msk.f32.gmra.mrb[66].mxu0 %vm522_vm2, %v3403_v3  ;;  %v3843_v3 = vsel %vm3814_vm8, %v3840_v49, %v3842_v28 }
 0x518   : > { %11495 = vmatprep.mubr.msk.f32.mxu0 %vm14301_vm1, %v14300_v1 }
 0x51b   : > { %11496 = vmatmul.mubr.msk.f32.gmra.mrb[68].mxu0 %vm522_vm2, %v3405_v37  ;;  %v14150_v37 = vld [vmem:[%s14465_s12 + $0xa8] sm:$0xff] }
 0x51c   : > { %11498 = vmatprep.mubr.msk.f32.mxu0 %vm14301_vm1, %v14300_v1  ;;  %v3846_v54 = vrot.slane %v14150_v37, 3 }
 0x51e   : > { %v3847_v27 = vsel %vm3814_vm8, %v3844_v30, %v3846_v54 }
 0x51f   : > { %11499 = vmatmul.mubr.msk.f32.gmra.mrb[70].mxu0 %vm522_vm2, %v3407_v31  ;;  %v14151_v31 = vld [vmem:[%s14465_s12 + $0xb0] sm:$0xff] }
 0x520   : > { %11501 = vmatprep.mubr.msk.f32.mxu0 %vm14301_vm1, %v14300_v1  ;;  %v3848_v36 = vrot.slane %v14151_v31, 3 }
 0x523   : > { %11502 = vmatmul.mubr.msk.f32.gmra.mrb[72].mxu0 %vm522_vm2, %v3409_v45  ;;  %v3849_v45 = vsel %vm3814_vm8, %v3846_v54, %v3848_v36 }
 0x524   : > { %11504 = vmatprep.mubr.msk.f32.mxu0 %vm14301_vm1, %v14300_v1 }
 0x527   : > { %11505 = vmatmul.mubr.msk.f32.gmra.mrb[74].mxu0 %vm522_vm2, %v3411_v18  ;;  %v3850_v18 = vrot.slane %v14152_v50, 3 }
 0x528   : > { %11507 = vmatprep.mubr.msk.f32.mxu0 %vm14301_vm1, %v14300_v1 }
 0x529   : > { %v3851_v51 = vsel %vm3814_vm8, %v3848_v36, %v3850_v18 }
 0x52b   : > { %11508 = vmatmul.mubr.msk.f32.gmra.mrb[76].mxu0 %vm522_vm2, %v3413_v32  ;;  %v14153_v32 = vld [vmem:[%s14465_s12 + $0xc0] sm:$0xff] }
 0x52c   : > { %11510 = vmatprep.mubr.msk.f32.mxu0 %vm14301_vm1, %v14300_v1 }
 0x52f   : > { %11511 = vmatmul.mubr.msk.f32.gmra.mrb[78].mxu0 %vm522_vm2, %v3415_v55 }
 0x530   : > { %11513 = vmatprep.mubr.msk.f32.mxu0 %vm14301_vm1, %v14300_v1 }
 0x533   : > { %11514 = vmatmul.mubr.msk.f32.gmra.mrb[80].mxu0 %vm522_vm2, %v3414_v56  ;;  %v3852_v56 = vrot.slane %v14153_v32, 3 }
 0x534   : > { %11518 = vmatprep.mubr.msk.f32.mxu0 %vm14301_vm1, %v14300_v1 }
 0x535   : > { %v3853_v55 = vsel %vm3814_vm8, %v3850_v18, %v3852_v56  ;;  %v3855_v58 = vsel %vm3814_vm8, %v3852_v56, %v3854_v21 }
 0x537   : > { %11519 = vmatmul.mubr.msk.f32.vlgmr.msra.gmra.mrb[0].mxu0 %vm522_vm2, %v3817_v63  ;;  %v3856_v63 = vrot.slane %v14155_v57, 3 }
 0x538   : > { %11521 = vmatprep.mubr.msk.f32.mxu0 %vm14301_vm1, %v14300_v1 }
 0x539   : > { %v3857_v6 = vsel %vm3814_vm8, %v3854_v21, %v3856_v63 }
 0x53b   : > { %11522 = vmatmul.mubr.msk.f32.gmra.mrb[2].mxu0 %vm522_vm2, %v3819_v2  ;;  %v3858_v2 = vrot.slane %v14156_v61, 3  ;;  %v3892_v61 = vrot.slane %v16301_v48, 3  ;;  %v16899_v48 = vld [vmem:[%s19437_s2] ss:$0 sm:$0xff] }
 0x53c   : > { %11524 = vmatprep.mubr.msk.f32.mxu0 %vm14301_vm1, %v14300_v1 }
 0x53d   : > { %v3859_v26 = vsel %vm3814_vm8, %v3856_v63, %v3858_v2  ;;  %v3890_v63 = vrot.slane %v16642_v39, 3 }
 0x53f   : > { %11525 = vmatmul.mubr.msk.f32.gmra.mrb[4].mxu0 %vm522_vm2, %v3821_v0  ;;  %v3860_v0 = vrot.slane %v14157_v35, 3 }
 0x540   : > { %11527 = vmatprep.mubr.msk.f32.mxu0 %vm14301_vm1, %v14300_v1 }
 0x541   : > { %v3861_v62 = vsel %vm3814_vm8, %v3858_v2, %v3860_v0  ;;  %v3894_v2 = vrot.slane %v16309_v53, 3 }
 0x543   : > { %11528 = vmatmul.mubr.msk.f32.gmra.mrb[6].mxu0 %vm522_vm2, %v3823_v8  ;;  %v3862_v8 = vrot.slane %v14158_v12, 3  ;;  %v3895_v39 = vsel %vm3814_vm8, %v3892_v61, %v3894_v2  ;;  %v4432_v12 = vpop.permute.xlu0 %4431 }
 0x544   : > { %11530 = vmatprep.mubr.msk.f32.mxu0 %vm14301_vm1, %v14300_v1 }
 0x545   : > { %v3863_v41 = vsel %vm3814_vm8, %v3860_v0, %v3862_v8 }
 0x547   : > { %11531 = vmatmul.mubr.msk.f32.gmra.mrb[8].mxu0 %vm522_vm2, %v3825_v7  ;;  %v3864_v7 = vrot.slane %v14159_v23, 3 }
 0x548   : > { %11533 = vmatprep.mubr.msk.f32.mxu0 %vm14301_vm1, %v14300_v1 }
 0x549   : > { %v3865_v24 = vsel %vm3814_vm8, %v3862_v8, %v3864_v7 }
 0x54b   : > { %11534 = vmatmul.mubr.msk.f32.gmra.mrb[10].mxu0 %vm522_vm2, %v3827_v5  ;;  %v4855_v5 = vrot.slane %v16784_v14, 6 }
 0x54c   : > { %11536 = vmatprep.mubr.msk.f32.mxu0 %vm14301_vm1, %v14300_v1 }
 0x54f   : > { %11537 = vmatmul.mubr.msk.f32.gmra.mrb[12].mxu0 %vm522_vm2, %v3829_v9  ;;  %v14160_v9 = vld [vmem:[%s14465_s12 + $0xf8] sm:$0xff] }
 0x550   : > { %11539 = vmatprep.mubr.msk.f32.mxu0 %vm14301_vm1, %v14300_v1  ;;  %v3866_v29 = vrot.slane %v14160_v9, 3 }
 0x552   : > { %v3869_v22 = vsel %vm3814_vm8, %v3866_v29, %v3868_v19 }
 0x553   : > { %11540 = vmatmul.mubr.msk.f32.gmra.mrb[14].mxu0 %vm522_vm2, %v3831_v13  ;;  %v4857_v13 = vsel %vm438_vm3, %v4855_v5, %v4856_v10 }
 0x554   : > { %11542 = vmatprep.mubr.msk.f32.mxu0 %vm14301_vm1, %v14300_v1  ;;  %11644 = vmatmul.mubr.msk.f32.vlgmr.msra.gmra.mrb[0].mxu1 %vm522_vm2, %v4857_v13  ;;  %v4437_v13 = vpop.permute.xlu0 %4436 }
 0x555   : > { %11646 = vmatprep.mubr.msk.f32.mxu1 %vm14301_vm1, %v14300_v1  ;;  %11767 = vmatpush3.msk.msra.mxu1 %vm605_vm0, %v4810_v59 }
 0x556   : > { %11891 = vmatprep.subr.mxu1 %v14300_v1 }
 0x557   : > { %11543 = vmatmul.mubr.msk.f32.gmra.mrb[16].mxu0 %vm522_vm2, %v3833_v40  ;;  %v3867_v40 = vsel %vm3814_vm8, %v3864_v7, %v3866_v29 }
 0x558   : > { %11545 = vmatprep.mubr.msk.f32.mxu0 %vm14301_vm1, %v14300_v1 }
 0x55b   : > { %11546 = vmatmul.mubr.msk.f32.gmra.mrb[18].mxu0 %vm522_vm2, %v3835_v44  ;;  %v4859_v44 = vsel %vm438_vm3, %v4856_v10, %v4858_v16 }
 0x55c   : > { %11548 = vmatprep.mubr.msk.f32.mxu0 %vm14301_vm1, %v14300_v1  ;;  %11647 = vmatmul.mubr.msk.f32.gmra.mrb[2].mxu1 %vm522_vm2, %v4859_v44 }
 0x55d   : > { %11649 = vmatprep.mubr.msk.f32.mxu1 %vm14301_vm1, %v14300_v1 }
 0x55f   : > { %11549 = vmatmul.mubr.msk.f32.gmra.mrb[20].mxu0 %vm522_vm2, %v3837_v4  ;;  %v3870_v4 = vrot.slane %v14162_v15, 3 }
 0x560   : > { %11551 = vmatprep.mubr.msk.f32.mxu0 %vm14301_vm1, %v14300_v1 }
 0x561   : > { %v3871_v25 = vsel %vm3814_vm8, %v3868_v19, %v3870_v4  ;;  %v4442_v19 = vpop.permute.xlu1 %4441 }
 0x563   : > { %11552 = vmatmul.mubr.msk.f32.gmra.mrb[22].mxu0 %vm522_vm2, %v3839_v43  ;;  %v14163_v43 = vld [vmem:[%s14465_s12 + $0x110] sm:$0xff] }
 0x564   : > { %11554 = vmatprep.mubr.msk.f32.mxu0 %vm14301_vm1, %v14300_v1  ;;  %v3872_v46 = vrot.slane %v14163_v43, 3 }
 0x566   : > { %v3873_v49 = vsel %vm3814_vm8, %v3870_v4, %v3872_v46 }
 0x567   : > { %11555 = vmatmul.mubr.msk.f32.gmra.mrb[24].mxu0 %vm522_vm2, %v3841_v52  ;;  %v14164_v52 = vld [vmem:[%s14465_s12 + $0x118] sm:$0xff] }
 0x568   : > { %11557 = vmatprep.mubr.msk.f32.mxu0 %vm14301_vm1, %v14300_v1  ;;  %v3874_v47 = vrot.slane %v14164_v52, 3 }
 0x56a   : > { %v3875_v28 = vsel %vm3814_vm8, %v3872_v46, %v3874_v47 }
 0x56b   : > { %11558 = vmatmul.mubr.msk.f32.gmra.mrb[26].mxu0 %vm522_vm2, %v3843_v3  ;;  %v14165_v3 = vld [vmem:[%s14465_s12 + $0x120] sm:$0xff] }
 0x56c   : > { %11560 = vmatprep.mubr.msk.f32.mxu0 %vm14301_vm1, %v14300_v1  ;;  %v3876_v17 = vrot.slane %v14165_v3, 3  ;;  %v4447_v3 = vpop.permute.xlu1 %4446 }
 0x56e   : > { %v3877_v30 = vsel %vm3814_vm8, %v3874_v47, %v3876_v17 }
 0x56f   : > { %11561 = vmatmul.mubr.msk.f32.gmra.mrb[28].mxu0 %vm522_vm2, %v3845_v34  ;;  %v14166_v34 = vld [vmem:[%s14465_s12 + $0x128] sm:$0xff] }
 0x570   : > { %11563 = vmatprep.mubr.msk.f32.mxu0 %vm14301_vm1, %v14300_v1  ;;  %v3878_v37 = vrot.slane %v14166_v34, 3 }
 0x572   : > { %v3879_v54 = vsel %vm3814_vm8, %v3876_v17, %v3878_v37 }
 0x573   : > { %11564 = vmatmul.mubr.msk.f32.gmra.mrb[30].mxu0 %vm522_vm2, %v3847_v27  ;;  %v14167_v27 = vld [vmem:[%s14465_s12 + $0x130] sm:$0xff] }
 0x574   : > { %11566 = vmatprep.mubr.msk.f32.mxu0 %vm14301_vm1, %v14300_v1  ;;  %v3880_v31 = vrot.slane %v14167_v27, 3 }
 0x576   : > { %v3881_v36 = vsel %vm3814_vm8, %v3878_v37, %v3880_v31 }
 0x577   : > { %11567 = vmatmul.mubr.msk.f32.gmra.mrb[32].mxu0 %vm522_vm2, %v3849_v45  ;;  %v14168_v45 = vld [vmem:[%s14465_s12 + $0x138] sm:$0xff] }
 0x578   : > { %11569 = vmatprep.mubr.msk.f32.mxu0 %vm14301_vm1, %v14300_v1  ;;  %v3882_v50 = vrot.slane %v14168_v45, 3 }
 0x57a   : > { %v3883_v18 = vsel %vm3814_vm8, %v3880_v31, %v3882_v50 }
 0x57b   : > { %11570 = vmatmul.mubr.msk.f32.gmra.mrb[34].mxu0 %vm522_vm2, %v3851_v51  ;;  %v14169_v51 = vld [vmem:[%s14465_s12 + $0x140] sm:$0xff] }
 0x57c   : > { %11572 = vmatprep.mubr.msk.f32.mxu0 %vm14301_vm1, %v14300_v1  ;;  %v3884_v32 = vrot.slane %v14169_v51, 3 }
 0x57e   : > { %v3885_v56 = vsel %vm3814_vm8, %v3882_v50, %v3884_v32  ;;  %v4452_v50 = vpop.permute.xlu0 %4451 }
 0x57f   : > { %11573 = vmatmul.mubr.msk.f32.gmra.mrb[36].mxu0 %vm522_vm2, %v3853_v55  ;;  %v14170_v55 = vld [vmem:[%s14465_s12 + $0x148] sm:$0xff] }
 0x580   : > { %11575 = vmatprep.mubr.msk.f32.mxu0 %vm14301_vm1, %v14300_v1  ;;  %v3886_v60 = vrot.slane %v14170_v55, 3 }
 0x582   : > { %v3887_v21 = vsel %vm3814_vm8, %v3884_v32, %v3886_v60 }
 0x583   : > { %11576 = vmatmul.mubr.msk.f32.gmra.mrb[38].mxu0 %vm522_vm2, %v3855_v58  ;;  %v3888_v58 = vrot.slane %v16634_v42, 3  ;;  %v3893_v42 = vsel %vm3814_vm8, %v3890_v63, %v3892_v61 }
 0x584   : > { %11578 = vmatprep.mubr.msk.f32.mxu0 %vm14301_vm1, %v14300_v1 }
 0x585   : > { %v3889_v57 = vsel %vm3814_vm8, %v3886_v60, %v3888_v58 }
 0x587   : > { %11579 = vmatmul.mubr.msk.f32.gmra.mrb[40].mxu0 %vm522_vm2, %v3857_v6  ;;  %v3891_v6 = vsel %vm3814_vm8, %v3888_v58, %v3890_v63 }
 0x588   : > { %11581 = vmatprep.mubr.msk.f32.mxu0 %vm14301_vm1, %v14300_v1 }
 0x58b   : > { %11582 = vmatmul.mubr.msk.f32.gmra.mrb[42].mxu0 %vm522_vm2, %v3859_v26  ;;  %v16904_v26 = vld [vmem:[%s19438_s3] ss:$0 sm:$0xff] }
 0x58c   : > { %11584 = vmatprep.mubr.msk.f32.mxu0 %vm14301_vm1, %v14300_v1 }
 0x58f   : > { %11585 = vmatmul.mubr.msk.f32.gmra.mrb[44].mxu0 %vm522_vm2, %v3861_v62 }
 0x590   : > { %11587 = vmatprep.mubr.msk.f32.mxu0 %vm14301_vm1, %v14300_v1 }
 0x593   : > { %11588 = vmatmul.mubr.msk.f32.gmra.mrb[46].mxu0 %vm522_vm2, %v3863_v41 }
 0x594   : > { %11590 = vmatprep.mubr.msk.f32.mxu0 %vm14301_vm1, %v14300_v1 }
 0x597   : > { %11591 = vmatmul.mubr.msk.f32.gmra.mrb[48].mxu0 %vm522_vm2, %v3865_v24 }
 0x598   : > { %11593 = vmatprep.mubr.msk.f32.mxu0 %vm14301_vm1, %v14300_v1 }
 0x59b   : > { %11594 = vmatmul.mubr.msk.f32.gmra.mrb[50].mxu0 %vm522_vm2, %v3867_v40 }
 0x59c   : > { %11596 = vmatprep.mubr.msk.f32.mxu0 %vm14301_vm1, %v14300_v1 }
 0x59f   : > { %11597 = vmatmul.mubr.msk.f32.gmra.mrb[52].mxu0 %vm522_vm2, %v3869_v22 }
 0x5a0   : > { %11599 = vmatprep.mubr.msk.f32.mxu0 %vm14301_vm1, %v14300_v1 }
 0x5a3   : > { %11600 = vmatmul.mubr.msk.f32.gmra.mrb[54].mxu0 %vm522_vm2, %v3871_v25 }
 0x5a4   : > { %11602 = vmatprep.mubr.msk.f32.mxu0 %vm14301_vm1, %v14300_v1 }
 0x5a7   : > { %11603 = vmatmul.mubr.msk.f32.gmra.mrb[56].mxu0 %vm522_vm2, %v3873_v49 }
 0x5a8   : > { %11605 = vmatprep.mubr.msk.f32.mxu0 %vm14301_vm1, %v14300_v1 }
 0x5ab   : > { %11606 = vmatmul.mubr.msk.f32.gmra.mrb[58].mxu0 %vm522_vm2, %v3875_v28 }
 0x5ac   : > { %11608 = vmatprep.mubr.msk.f32.mxu0 %vm14301_vm1, %v14300_v1 }
 0x5af   : > { %11609 = vmatmul.mubr.msk.f32.gmra.mrb[60].mxu0 %vm522_vm2, %v3877_v30 }
 0x5b0   : > { %11611 = vmatprep.mubr.msk.f32.mxu0 %vm14301_vm1, %v14300_v1 }
 0x5b3   : > { %11612 = vmatmul.mubr.msk.f32.gmra.mrb[62].mxu0 %vm522_vm2, %v3879_v54 }
 0x5b4   : > { %11614 = vmatprep.mubr.msk.f32.mxu0 %vm14301_vm1, %v14300_v1 }
 0x5b7   : > { %11615 = vmatmul.mubr.msk.f32.gmra.mrb[64].mxu0 %vm522_vm2, %v3881_v36 }
 0x5b8   : > { %11617 = vmatprep.mubr.msk.f32.mxu0 %vm14301_vm1, %v14300_v1 }
 0x5bb   : > { %11618 = vmatmul.mubr.msk.f32.gmra.mrb[66].mxu0 %vm522_vm2, %v3883_v18 }
 0x5bc   : > { %11620 = vmatprep.mubr.msk.f32.mxu0 %vm14301_vm1, %v14300_v1 }
 0x5bf   : > { %11621 = vmatmul.mubr.msk.f32.gmra.mrb[68].mxu0 %vm522_vm2, %v3885_v56 }
 0x5c0   : > { %11623 = vmatprep.mubr.msk.f32.mxu0 %vm14301_vm1, %v14300_v1 }
 0x5c3   : > { %11624 = vmatmul.mubr.msk.f32.gmra.mrb[70].mxu0 %vm522_vm2, %v3887_v21 }
 0x5c4   : > { %11626 = vmatprep.mubr.msk.f32.mxu0 %vm14301_vm1, %v14300_v1 }
 0x5c7   : > { %11627 = vmatmul.mubr.msk.f32.gmra.mrb[72].mxu0 %vm522_vm2, %v3889_v57  ;;  %v4457_v57 = vpop.permute.xlu1 %4456 }
 0x5c8   : > { %11629 = vmatprep.mubr.msk.f32.mxu0 %vm14301_vm1, %v14300_v1 }
 0x5cb   : > { %11630 = vmatmul.mubr.msk.f32.gmra.mrb[74].mxu0 %vm522_vm2, %v3891_v6 }
 0x5cc   : > { %11632 = vmatprep.mubr.msk.f32.mxu0 %vm14301_vm1, %v14300_v1 }
 0x5cf   : > { %11633 = vmatmul.mubr.msk.f32.gmra.mrb[76].mxu0 %vm522_vm2, %v3893_v42 }
 0x5d0   : > { %11635 = vmatprep.mubr.msk.f32.mxu0 %vm14301_vm1, %v14300_v1 }
 0x5d3   : > { %11636 = vmatmul.mubr.msk.f32.gmra.mrb[78].mxu0 %vm522_vm2, %v3895_v39 }
 0x5d4   : > { %11638 = vmatprep.mubr.msk.f32.mxu0 %vm14301_vm1, %v14300_v1 }
 0x5d7   : > { %11639 = vmatmul.mubr.msk.f32.gmra.mrb[80].mxu0 %vm522_vm2, %v3894_v2 }
 0x60a   : > { %v4047_v53 = vpop.f32.mrb[0].mxu0 }
 0x60b   : > { %v4299_v35 = vmul.f32 %v16899_v48, %v4047_v53  ;;  %v11520_v0 = vpop.f32.mrb[1].mxu0 }
 0x60d   : > { %v4347_v62 = vadd.f32 %v16904_v26, %v4299_v35 }
 0x60e   : > { %v4052_v8 = vpop.f32.mrb[2].mxu0 }
 0x60f   : > { %v4388_v41 = vmax.f32 %v4347_v62, 0.0  ;;  %v4300_v23 = vmul.f32 %v16899_v48, %v4052_v8  ;;  %v11523_v7 = vpop.f32.mrb[3].mxu0  ;;  %v4462_v62 = vpop.permute.xlu0 %4461 }
 0x611   : > { %v4634_v5 = vmul.f32 %v4432_v12, %v4388_v41  ;;  %v4348_v10 = vadd.f32 %v16904_v26, %v4300_v23 }
 0x612   : > { %v4057_v24 = vpop.f32.mrb[4].mxu0 }
 0x613   : > { %4723 = vst.msk [vmem:[#allocation2 + $0x18] sm:$0xff] %vm522_vm2, %v4634_v5  ;;  %v4389_v9 = vmax.f32 %v4348_v10, 0.0  ;;  %v4301_v29 = vmul.f32 %v16899_v48, %v4057_v24  ;;  %v11526_v11 = vpop.f32.mrb[5].mxu0 }
 0x615   : > { %v4635_v40 = vmul.f32 %v4437_v13, %v4389_v9  ;;  %v4349_v38 = vadd.f32 %v16904_v26, %v4301_v29  ;;  %v4467_v29 = vpop.permute.xlu1 %4466 }
 0x616   : > { %v4062_v44 = vpop.f32.mrb[6].mxu0 }
 0x617   : > { %4724 = vst.msk [vmem:[#allocation2 + $0x20] sm:$0xff] %vm522_vm2, %v4635_v40  ;;  %v4390_v22 = vmax.f32 %v4349_v38, 0.0  ;;  %v4302_v15 = vmul.f32 %v16899_v48, %v4062_v44  ;;  %v11529_v4 = vpop.f32.mrb[7].mxu0 }
 0x619   : > { %v4636_v59 = vmul.f32 %v4442_v19, %v4390_v22  ;;  %v4350_v25 = vadd.f32 %v16904_v26, %v4302_v15 }
 0x61a   : > { %v4067_v43 = vpop.f32.mrb[8].mxu0  ;;  %v16916_v46 = vld [vmem:[#allocation2 + $0x18] sm:$0xff] }
 0x61b   : > { %4725 = vst.msk [vmem:[#allocation2 + $0x28] sm:$0xff] %vm522_vm2, %v4636_v59  ;;  %v4391_v49 = vmax.f32 %v4350_v25, 0.0  ;;  %v4303_v52 = vmul.f32 %v16899_v48, %v4067_v43  ;;  %v11532_v47 = vpop.f32.mrb[9].mxu0  ;;  %v4860_v28 = vrot.slane %v16916_v46, 6  ;;  %v4472_v59 = vpop.permute.xlu0 %4471 }
 0x61d   : > { %v4637_v17 = vmul.f32 %v4447_v3, %v4391_v49  ;;  %v4351_v30 = vadd.f32 %v16904_v26, %v4303_v52  ;;  %v4861_v34 = vsel %vm438_vm3, %v4858_v16, %v4860_v28  ;;  %v5293_v52 = vrot.slane %v16784_v14, 5 }
 0x61e   : > { %v4072_v37 = vpop.f32.mrb[10].mxu0  ;;  %11650 = vmatmul.mubr.msk.f32.gmra.mrb[4].mxu1 %vm522_vm2, %v4861_v34  ;;  %v16926_v54 = vld [vmem:[#allocation2 + $0x20] sm:$0xff]  ;;  %v5294_v3 = vrot.slane %v16786_v20, 5 }
 0x61f   : > { %4726 = vst.msk [vmem:[#allocation2 + $0x30] sm:$0xff] %vm522_vm2, %v4637_v17  ;;  %v4392_v27 = vmax.f32 %v4351_v30, 0.0  ;;  %v4304_v31 = vmul.f32 %v16899_v48, %v4072_v37  ;;  %v11535_v36 = vpop.f32.mrb[11].mxu0  ;;  %11652 = vmatprep.mubr.msk.f32.mxu1 %vm14301_vm1, %v14300_v1  ;;  %v4862_v45 = vrot.slane %v16926_v54, 6 }
 0x621   : > { %v4638_v18 = vmul.f32 %v4452_v50, %v4392_v27  ;;  %v4352_v16 = vadd.f32 %v16904_v26, %v4304_v31  ;;  %v4863_v51 = vsel %vm438_vm3, %v4860_v28, %v4862_v45  ;;  %v4477_v27 = vpop.permute.xlu1 %4476 }
 0x622   : > { %v4077_v32 = vpop.f32.mrb[12].mxu0  ;;  %11653 = vmatmul.mubr.msk.f32.gmra.mrb[6].mxu1 %vm522_vm2, %v4863_v51  ;;  %v16936_v56 = vld [vmem:[#allocation2 + $0x28] sm:$0xff] }
 0x623   : > { %4727 = vst.msk [vmem:[#allocation2 + $0x38] sm:$0xff] %vm522_vm2, %v4638_v18  ;;  %v4393_v55 = vmax.f32 %v4352_v16, 0.0  ;;  %v4305_v60 = vmul.f32 %v16899_v48, %v4077_v32  ;;  %v11538_v21 = vpop.f32.mrb[13].mxu0  ;;  %11655 = vmatprep.mubr.msk.f32.mxu1 %vm14301_vm1, %v14300_v1  ;;  %v4864_v58 = vrot.slane %v16936_v56, 6  ;;  %v16996_v32 = vsel %vm879_vm4, %v5293_v52, %v5294_v3 }
 0x625   : > { %v4639_v63 = vmul.f32 %v4457_v57, %v4393_v55  ;;  %v4353_v6 = vadd.f32 %v16904_v26, %v4305_v60  ;;  %v4865_v61 = vsel %vm438_vm3, %v4862_v45, %v4864_v58  ;;  %v4482_v55 = vpop.permute.xlu0 %4481  ;;  %v5296_v57 = vrot.slane %v16802_v33, 5 }
 0x626   : > { %v4082_v42 = vpop.f32.mrb[14].mxu0  ;;  %11656 = vmatmul.mubr.msk.f32.gmra.mrb[8].mxu1 %vm522_vm2, %v4865_v61  ;;  %v16946_v2 = vld [vmem:[#allocation2 + $0x30] sm:$0xff] }
 0x627   : > { %4728 = vst.msk [vmem:[#allocation2 + $0x40] sm:$0xff] %vm522_vm2, %v4639_v63  ;;  %v4394_v39 = vmax.f32 %v4353_v6, 0.0  ;;  %v4306_v53 = vmul.f32 %v16899_v48, %v4082_v42  ;;  %v11541_v35 = vpop.f32.mrb[15].mxu0  ;;  %11658 = vmatprep.mubr.msk.f32.mxu1 %vm14301_vm1, %v14300_v1  ;;  %v4866_v0 = vrot.slane %v16946_v2, 6 }
 0x628   : > { %v17012_v35 = vsel %vm879_vm4, %v5294_v3, %v5296_v57 }
 0x629   : > { %v4640_v12 = vmul.f32 %v4462_v62, %v4394_v39  ;;  %v4354_v8 = vadd.f32 %v16904_v26, %v4306_v53  ;;  %v4867_v41 = vsel %vm438_vm3, %v4864_v58, %v4866_v0 }
 0x62a   : > { %v4087_v23 = vpop.f32.mrb[16].mxu0  ;;  %11659 = vmatmul.mubr.msk.f32.gmra.mrb[10].mxu1 %vm522_vm2, %v4867_v41  ;;  %v16956_v7 = vld [vmem:[#allocation2 + $0x38] sm:$0xff] }
 0x62b   : > { %4729 = vst.msk [vmem:[#allocation2 + $0x48] sm:$0xff] %vm522_vm2, %v4640_v12  ;;  %v4395_v5 = vmax.f32 %v4354_v8, 0.0  ;;  %v4307_v10 = vmul.f32 %v16899_v48, %v4087_v23  ;;  %v11544_v24 = vpop.f32.mrb[17].mxu0  ;;  %11661 = vmatprep.mubr.msk.f32.mxu1 %vm14301_vm1, %v14300_v1  ;;  %v4868_v9 = vrot.slane %v16956_v7, 6 }
 0x62d   : > { %v4641_v11 = vmul.f32 %v4467_v29, %v4395_v5  ;;  %v4355_v13 = vadd.f32 %v16904_v26, %v4307_v10  ;;  %v4869_v40 = vsel %vm438_vm3, %v4866_v0, %v4868_v9  ;;  %v4487_v0 = vpop.permute.xlu1 %4486  ;;  %v4492_v29 = vpop.permute.xlu0 %4491 }
 0x62e   : > { %v4092_v38 = vpop.f32.mrb[18].mxu0  ;;  %11662 = vmatmul.mubr.msk.f32.gmra.mrb[12].mxu1 %vm522_vm2, %v4869_v40  ;;  %v16966_v19 = vld [vmem:[#allocation2 + $0x40] sm:$0xff] }
 0x62f   : > { %4730 = vst.msk [vmem:[#allocation2 + $0x50] sm:$0xff] %vm522_vm2, %v4641_v11  ;;  %v4396_v44 = vmax.f32 %v4355_v13, 0.0  ;;  %v4308_v22 = vmul.f32 %v16899_v48, %v4092_v38  ;;  %v11547_v15 = vpop.f32.mrb[19].mxu0  ;;  %11664 = vmatprep.mubr.msk.f32.mxu1 %vm14301_vm1, %v14300_v1  ;;  %v4870_v4 = vrot.slane %v16966_v19, 6 }
 0x631   : > { %v4642_v25 = vmul.f32 %v4472_v59, %v4396_v44  ;;  %v4356_v43 = vadd.f32 %v16904_v26, %v4308_v22  ;;  %v4871_v49 = vsel %vm438_vm3, %v4868_v9, %v4870_v4 }
 0x632   : > { %v4097_v47 = vpop.f32.mrb[20].mxu0  ;;  %11665 = vmatmul.mubr.msk.f32.gmra.mrb[14].mxu1 %vm522_vm2, %v4871_v49  ;;  %v16977_v28 = vld [vmem:[#allocation2 + $0x48] sm:$0xff] }
 0x633   : > { %4731 = vst.msk [vmem:[#allocation2 + $0x58] sm:$0xff] %vm522_vm2, %v4642_v25  ;;  %v4397_v17 = vmax.f32 %v4356_v43, 0.0  ;;  %v4309_v30 = vmul.f32 %v16899_v48, %v4097_v47  ;;  %v11550_v34 = vpop.f32.mrb[21].mxu0  ;;  %11667 = vmatprep.mubr.msk.f32.mxu1 %vm14301_vm1, %v14300_v1  ;;  %v4872_v37 = vrot.slane %v16977_v28, 6  ;;  %v4497_v25 = vpop.permute.xlu1 %4496 }
 0x635   : > { %v4643_v14 = vmul.f32 %v4477_v27, %v4397_v17  ;;  %v4357_v31 = vadd.f32 %v16904_v26, %v4309_v30  ;;  %v4873_v36 = vsel %vm438_vm3, %v4870_v4, %v4872_v37  ;;  %v4502_v27 = vpop.permute.xlu0 %4501 }
 0x636   : > { %v4102_v45 = vpop.f32.mrb[22].mxu0  ;;  %11668 = vmatmul.mubr.msk.f32.gmra.mrb[16].mxu1 %vm522_vm2, %v4873_v36  ;;  %v16988_v20 = vld [vmem:[#allocation2 + $0x50] sm:$0xff] }
 0x637   : > { %4732 = vst.msk [vmem:[#allocation2 + $0x60] sm:$0xff] %vm522_vm2, %v4643_v14  ;;  %v4398_v50 = vmax.f32 %v4357_v31, 0.0  ;;  %v4310_v18 = vmul.f32 %v16899_v48, %v4102_v45  ;;  %v11553_v16 = vpop.f32.mrb[23].mxu0  ;;  %11670 = vmatprep.mubr.msk.f32.mxu1 %vm14301_vm1, %v14300_v1  ;;  %v4874_v51 = vrot.slane %v16988_v20, 6 }
 0x639   : > { %v4644_v60 = vmul.f32 %v4482_v55, %v4398_v50  ;;  %v4358_v21 = vadd.f32 %v16904_v26, %v4310_v18  ;;  %v4875_v58 = vsel %vm438_vm3, %v4872_v37, %v4874_v51 }
 0x63a   : > { %v4107_v63 = vpop.f32.mrb[24].mxu0  ;;  %11671 = vmatmul.mubr.msk.f32.gmra.mrb[18].mxu1 %vm522_vm2, %v4875_v58  ;;  %v17002_v6 = vld [vmem:[#allocation2 + $0x58] sm:$0xff] }
 0x63b   : > { %4733 = vst.msk [vmem:[#allocation2 + $0x68] sm:$0xff] %vm522_vm2, %v4644_v60  ;;  %v4399_v61 = vmax.f32 %v4358_v21, 0.0  ;;  %v4311_v42 = vmul.f32 %v16899_v48, %v4107_v63  ;;  %v11556_v39 = vpop.f32.mrb[25].mxu0  ;;  %11673 = vmatprep.mubr.msk.f32.mxu1 %vm14301_vm1, %v14300_v1  ;;  %v4876_v53 = vrot.slane %v17002_v6, 6  ;;  %v4507_v60 = vpop.permute.xlu1 %4506 }
 0x63d   : > { %v4645_v62 = vmul.f32 %v4487_v0, %v4399_v61  ;;  %v4359_v12 = vadd.f32 %v16904_v26, %v4311_v42  ;;  %v4877_v8 = vsel %vm438_vm3, %v4874_v51, %v4876_v53 }
 0x63e   : > { %v4112_v41 = vpop.f32.mrb[26].mxu0  ;;  %11674 = vmatmul.mubr.msk.f32.gmra.mrb[20].mxu1 %vm522_vm2, %v4877_v8  ;;  %v17017_v23 = vld [vmem:[#allocation2 + $0x60] sm:$0xff] }
 0x63f   : > { %4734 = vst.msk [vmem:[#allocation2 + $0x70] sm:$0xff] %vm522_vm2, %v4645_v62  ;;  %v4400_v5 = vmax.f32 %v4359_v12, 0.0  ;;  %v4312_v10 = vmul.f32 %v16899_v48, %v4112_v41  ;;  %v11559_v24 = vpop.f32.mrb[27].mxu0  ;;  %11676 = vmatprep.mubr.msk.f32.mxu1 %vm14301_vm1, %v14300_v1  ;;  %v4878_v9 = vrot.slane %v17017_v23, 6  ;;  %v4512_v12 = vpop.permute.xlu0 %4511 }
 0x641   : > { %v4646_v11 = vmul.f32 %v4492_v29, %v4400_v5  ;;  %v4360_v13 = vadd.f32 %v16904_v26, %v4312_v10  ;;  %v4879_v40 = vsel %vm438_vm3, %v4876_v53, %v4878_v9 }
 0x642   : > { %v4117_v38 = vpop.f32.mrb[28].mxu0  ;;  %11677 = vmatmul.mubr.msk.f32.gmra.mrb[22].mxu1 %vm522_vm2, %v4879_v40  ;;  %v17027_v44 = vld [vmem:[#allocation2 + $0x68] sm:$0xff]  ;;  %v4517_v40 = vpop.permute.xlu1 %4516 }
 0x643   : > { %4735 = vst.msk [vmem:[#allocation2 + $0x78] sm:$0xff] %vm522_vm2, %v4646_v11  ;;  %v4401_v22 = vmax.f32 %v4360_v13, 0.0  ;;  %v4313_v15 = vmul.f32 %v16899_v48, %v4117_v38  ;;  %v11562_v4 = vpop.f32.mrb[29].mxu0  ;;  %11679 = vmatprep.mubr.msk.f32.mxu1 %vm14301_vm1, %v14300_v1  ;;  %v4880_v59 = vrot.slane %v17027_v44, 6 }
 0x645   : > { %v4647_v43 = vmul.f32 %v4497_v25, %v4401_v22  ;;  %v4361_v49 = vadd.f32 %v16904_v26, %v4313_v15  ;;  %v4881_v52 = vsel %vm438_vm3, %v4878_v9, %v4880_v59 }
 0x646   : > { %v4122_v47 = vpop.f32.mrb[30].mxu0  ;;  %11680 = vmatmul.mubr.msk.f32.gmra.mrb[24].mxu1 %vm522_vm2, %v4881_v52  ;;  %v17037_v3 = vld [vmem:[#allocation2 + $0x70] sm:$0xff] }
 0x647   : > { %4736 = vst.msk [vmem:[#allocation2 + $0x80] sm:$0xff] %vm522_vm2, %v4647_v43  ;;  %v4402_v17 = vmax.f32 %v4361_v49, 0.0  ;;  %v4314_v30 = vmul.f32 %v16899_v48, %v4122_v47  ;;  %v11565_v34 = vpop.f32.mrb[31].mxu0  ;;  %11682 = vmatprep.mubr.msk.f32.mxu1 %vm14301_vm1, %v14300_v1  ;;  %v4882_v37 = vrot.slane %v17037_v3, 6  ;;  %v4522_v47 = vpop.permute.xlu0 %4521 }
 0x649   : > { %v4648_v14 = vmul.f32 %v4502_v27, %v4402_v17  ;;  %v4362_v31 = vadd.f32 %v16904_v26, %v4314_v30  ;;  %v4883_v36 = vsel %vm438_vm3, %v4880_v59, %v4882_v37 }
 0x64a   : > { %v4127_v45 = vpop.f32.mrb[32].mxu0  ;;  %11683 = vmatmul.mubr.msk.f32.gmra.mrb[26].mxu1 %vm522_vm2, %v4883_v36  ;;  %v17047_v50 = vld [vmem:[#allocation2 + $0x78] sm:$0xff] }
 0x64b   : > { %4737 = vst.msk [vmem:[#allocation2 + $0x88] sm:$0xff] %vm522_vm2, %v4648_v14  ;;  %v4403_v18 = vmax.f32 %v4362_v31, 0.0  ;;  %v4315_v16 = vmul.f32 %v16899_v48, %v4127_v45  ;;  %v11568_v51 = vpop.f32.mrb[33].mxu0  ;;  %11685 = vmatprep.mubr.msk.f32.mxu1 %vm14301_vm1, %v14300_v1  ;;  %v4884_v55 = vrot.slane %v17047_v50, 6 }
 0x64d   : > { %v4649_v21 = vmul.f32 %v4507_v60, %v4403_v18  ;;  %v4363_v58 = vadd.f32 %v16904_v26, %v4315_v16  ;;  %v4885_v63 = vsel %vm438_vm3, %v4882_v37, %v4884_v55  ;;  %v4527_v18 = vpop.permute.xlu1 %4526 }
 0x64e   : > { %v4132_v61 = vpop.f32.mrb[34].mxu0  ;;  %11686 = vmatmul.mubr.msk.f32.gmra.mrb[28].mxu1 %vm522_vm2, %v4885_v63  ;;  %v17057_v42 = vld [vmem:[#allocation2 + $0x80] sm:$0xff] }
 0x64f   : > { %4738 = vst.msk [vmem:[#allocation2 + $0x90] sm:$0xff] %vm522_vm2, %v4649_v21  ;;  %v4404_v39 = vmax.f32 %v4363_v58, 0.0  ;;  %v4316_v53 = vmul.f32 %v16899_v48, %v4132_v61  ;;  %v11571_v0 = vpop.f32.mrb[35].mxu0  ;;  %11688 = vmatprep.mubr.msk.f32.mxu1 %vm14301_vm1, %v14300_v1  ;;  %v4886_v62 = vrot.slane %v17057_v42, 6 }
 0x651   : > { %v4650_v8 = vmul.f32 %v4512_v12, %v4404_v39  ;;  %v4364_v41 = vadd.f32 %v16904_v26, %v4316_v53  ;;  %v4887_v5 = vsel %vm438_vm3, %v4884_v55, %v4886_v62  ;;  %v4532_v53 = vpop.permute.xlu0 %4531 }
 0x652   : > { %v4137_v10 = vpop.f32.mrb[36].mxu0  ;;  %11689 = vmatmul.mubr.msk.f32.gmra.mrb[30].mxu1 %vm522_vm2, %v4887_v5  ;;  %v17067_v24 = vld [vmem:[#allocation2 + $0x88] sm:$0xff] }
 0x653   : > { %4739 = vst.msk [vmem:[#allocation2 + $0x98] sm:$0xff] %vm522_vm2, %v4650_v8  ;;  %v4405_v9 = vmax.f32 %v4364_v41, 0.0  ;;  %v4317_v29 = vmul.f32 %v16899_v48, %v4137_v10  ;;  %v11574_v11 = vpop.f32.mrb[37].mxu0  ;;  %11691 = vmatprep.mubr.msk.f32.mxu1 %vm14301_vm1, %v14300_v1  ;;  %v4888_v13 = vrot.slane %v17067_v24, 6 }
 0x654   : > { %v4537_v11 = vpop.permute.xlu1 %4536 }
 0x655   : > { %v4651_v38 = vmul.f32 %v4517_v40, %v4405_v9  ;;  %v4365_v22 = vadd.f32 %v16904_v26, %v4317_v29  ;;  %v4889_v15 = vsel %vm438_vm3, %v4886_v62, %v4888_v13 }
 0x656   : > { %v4142_v4 = vpop.f32.mrb[38].mxu0  ;;  %11692 = vmatmul.mubr.msk.f32.gmra.mrb[32].mxu1 %vm522_vm2, %v4889_v15  ;;  %v17077_v59 = vld [vmem:[#allocation2 + $0x90] sm:$0xff] }
 0x657   : > { %4740 = vst.msk [vmem:[#allocation2 + $0xa0] sm:$0xff] %vm522_vm2, %v4651_v38  ;;  %v4406_v25 = vmax.f32 %v4365_v22, 0.0  ;;  %v4318_v43 = vmul.f32 %v16899_v48, %v4142_v4  ;;  %v11577_v49 = vpop.f32.mrb[39].mxu0  ;;  %11694 = vmatprep.mubr.msk.f32.mxu1 %vm14301_vm1, %v14300_v1  ;;  %v4890_v52 = vrot.slane %v17077_v59, 6 }
 0x659   : > { %v4652_v17 = vmul.f32 %v4522_v47, %v4406_v25  ;;  %v4366_v30 = vadd.f32 %v16904_v26, %v4318_v43  ;;  %v4891_v34 = vsel %vm438_vm3, %v4888_v13, %v4890_v52 }
 0x65a   : > { %v4147_v37 = vpop.f32.mrb[40].mxu0  ;;  %11695 = vmatmul.mubr.msk.f32.gmra.mrb[34].mxu1 %vm522_vm2, %v4891_v34  ;;  %v17087_v27 = vld [vmem:[#allocation2 + $0x98] sm:$0xff] }
 0x65b   : > { %4741 = vst.msk [vmem:[#allocation2 + $0xa8] sm:$0xff] %vm522_vm2, %v4652_v17  ;;  %v4407_v14 = vmax.f32 %v4366_v30, 0.0  ;;  %v4319_v31 = vmul.f32 %v16899_v48, %v4147_v37  ;;  %v11580_v36 = vpop.f32.mrb[41].mxu0  ;;  %11697 = vmatprep.mubr.msk.f32.mxu1 %vm14301_vm1, %v14300_v1  ;;  %v4892_v45 = vrot.slane %v17087_v27, 6 }
 0x65d   : > { %v4653_v16 = vmul.f32 %v4527_v18, %v4407_v14  ;;  %v4367_v51 = vadd.f32 %v16904_v26, %v4319_v31  ;;  %v4893_v55 = vsel %vm438_vm3, %v4890_v52, %v4892_v45  ;;  %v4542_v52 = vpop.permute.xlu0 %4541  ;;  %v4547_v18 = vpop.permute.xlu1 %4546 }
 0x65e   : > { %v4152_v60 = vpop.f32.mrb[42].mxu0  ;;  %11698 = vmatmul.mubr.msk.f32.gmra.mrb[36].mxu1 %vm522_vm2, %v4893_v55  ;;  %v17097_v21 = vld [vmem:[#allocation2 + $0xa0] sm:$0xff] }
 0x65f   : > { %4742 = vst.msk [vmem:[#allocation2 + $0xb0] sm:$0xff] %vm522_vm2, %v4653_v16  ;;  %v4408_v58 = vmax.f32 %v4367_v51, 0.0  ;;  %v4320_v63 = vmul.f32 %v16899_v48, %v4152_v60  ;;  %v11583_v61 = vpop.f32.mrb[43].mxu0  ;;  %11700 = vmatprep.mubr.msk.f32.mxu1 %vm14301_vm1, %v14300_v1  ;;  %v4894_v39 = vrot.slane %v17097_v21, 6 }
 0x661   : > { %v4654_v0 = vmul.f32 %v4532_v53, %v4408_v58  ;;  %v4368_v62 = vadd.f32 %v16904_v26, %v4320_v63  ;;  %v4895_v12 = vsel %vm438_vm3, %v4892_v45, %v4894_v39 }
 0x662   : > { %v4157_v8 = vpop.f32.mrb[44].mxu0  ;;  %11701 = vmatmul.mubr.msk.f32.gmra.mrb[38].mxu1 %vm522_vm2, %v4895_v12  ;;  %v17107_v41 = vld [vmem:[#allocation2 + $0xa8] sm:$0xff] }
 0x663   : > { %4743 = vst.msk [vmem:[#allocation2 + $0xb8] sm:$0xff] %vm522_vm2, %v4654_v0  ;;  %v4409_v5 = vmax.f32 %v4368_v62, 0.0  ;;  %v4321_v10 = vmul.f32 %v16899_v48, %v4157_v8  ;;  %v11586_v9 = vpop.f32.mrb[45].mxu0  ;;  %11703 = vmatprep.mubr.msk.f32.mxu1 %vm14301_vm1, %v14300_v1  ;;  %v4896_v29 = vrot.slane %v17107_v41, 6  ;;  %v4552_v0 = vpop.permute.xlu0 %4551 }
 0x665   : > { %v4655_v13 = vmul.f32 %v4537_v11, %v4409_v5  ;;  %v4369_v40 = vadd.f32 %v16904_v26, %v4321_v10  ;;  %v4897_v38 = vsel %vm438_vm3, %v4894_v39, %v4896_v29 }
 0x666   : > { %v4162_v22 = vpop.f32.mrb[46].mxu0  ;;  %11704 = vmatmul.mubr.msk.f32.gmra.mrb[40].mxu1 %vm522_vm2, %v4897_v38  ;;  %v17117_v15 = vld [vmem:[#allocation2 + $0xb0] sm:$0xff] }
 0x667   : > { %4744 = vst.msk [vmem:[#allocation2 + $0xc0] sm:$0xff] %vm522_vm2, %v4655_v13  ;;  %v4410_v4 = vmax.f32 %v4369_v40, 0.0  ;;  %v4322_v25 = vmul.f32 %v16899_v48, %v4162_v22  ;;  %v11589_v43 = vpop.f32.mrb[47].mxu0  ;;  %11706 = vmatprep.mubr.msk.f32.mxu1 %vm14301_vm1, %v14300_v1  ;;  %v4898_v49 = vrot.slane %v17117_v15, 6  ;;  %v4557_v40 = vpop.permute.xlu1 %4556 }
 0x669   : > { %v4656_v47 = vmul.f32 %v4542_v52, %v4410_v4  ;;  %v4370_v17 = vadd.f32 %v16904_v26, %v4322_v25  ;;  %v4899_v30 = vsel %vm438_vm3, %v4896_v29, %v4898_v49 }
 0x66a   : > { %v4167_v34 = vpop.f32.mrb[48].mxu0  ;;  %11707 = vmatmul.mubr.msk.f32.gmra.mrb[42].mxu1 %vm522_vm2, %v4899_v30  ;;  %v17127_v37 = vld [vmem:[#allocation2 + $0xb8] sm:$0xff]  ;;  %v4562_v30 = vpop.permute.xlu0 %4561 }
 0x66b   : > { %4745 = vst.msk [vmem:[#allocation2 + $0xc8] sm:$0xff] %vm522_vm2, %v4656_v47  ;;  %v4411_v14 = vmax.f32 %v4370_v17, 0.0  ;;  %v4323_v31 = vmul.f32 %v16899_v48, %v4167_v34  ;;  %v11592_v36 = vpop.f32.mrb[49].mxu0  ;;  %11709 = vmatprep.mubr.msk.f32.mxu1 %vm14301_vm1, %v14300_v1  ;;  %v4900_v45 = vrot.slane %v17127_v37, 6 }
 0x66d   : > { %v4657_v16 = vmul.f32 %v4547_v18, %v4411_v14  ;;  %v4371_v51 = vadd.f32 %v16904_v26, %v4323_v31  ;;  %v4901_v55 = vsel %vm438_vm3, %v4898_v49, %v4900_v45 }
 0x66e   : > { %v4172_v60 = vpop.f32.mrb[50].mxu0  ;;  %11710 = vmatmul.mubr.msk.f32.gmra.mrb[44].mxu1 %vm522_vm2, %v4901_v55  ;;  %v17137_v58 = vld [vmem:[#allocation2 + $0xc0] sm:$0xff] }
 0x66f   : > { %4746 = vst.msk [vmem:[#allocation2 + $0xd0] sm:$0xff] %vm522_vm2, %v4657_v16  ;;  %v4412_v63 = vmax.f32 %v4371_v51, 0.0  ;;  %v4324_v61 = vmul.f32 %v16899_v48, %v4172_v60  ;;  %v11595_v39 = vpop.f32.mrb[51].mxu0  ;;  %11712 = vmatprep.mubr.msk.f32.mxu1 %vm14301_vm1, %v14300_v1  ;;  %v4902_v53 = vrot.slane %v17137_v58, 6  ;;  %v4567_v60 = vpop.permute.xlu1 %4566 }
 0x671   : > { %v4658_v62 = vmul.f32 %v4552_v0, %v4412_v63  ;;  %v4372_v12 = vadd.f32 %v16904_v26, %v4324_v61  ;;  %v4903_v8 = vsel %vm438_vm3, %v4900_v45, %v4902_v53 }
 0x672   : > { %v4177_v5 = vpop.f32.mrb[52].mxu0  ;;  %11713 = vmatmul.mubr.msk.f32.gmra.mrb[46].mxu1 %vm522_vm2, %v4903_v8  ;;  %v17147_v10 = vld [vmem:[#allocation2 + $0xc8] sm:$0xff] }
 0x673   : > { %4747 = vst.msk [vmem:[#allocation2 + $0xd8] sm:$0xff] %vm522_vm2, %v4658_v62  ;;  %v4413_v9 = vmax.f32 %v4372_v12, 0.0  ;;  %v4325_v29 = vmul.f32 %v16899_v48, %v4177_v5  ;;  %v11598_v11 = vpop.f32.mrb[53].mxu0  ;;  %11715 = vmatprep.mubr.msk.f32.mxu1 %vm14301_vm1, %v14300_v1  ;;  %v4904_v13 = vrot.slane %v17147_v10, 6 }
 0x675   : > { %v4659_v38 = vmul.f32 %v4557_v40, %v4413_v9  ;;  %v4373_v22 = vadd.f32 %v16904_v26, %v4325_v29  ;;  %v4905_v4 = vsel %vm438_vm3, %v4902_v53, %v4904_v13  ;;  %v4572_v9 = vpop.permute.xlu0 %4571 }
 0x676   : > { %v4182_v25 = vpop.f32.mrb[54].mxu0  ;;  %11716 = vmatmul.mubr.msk.f32.gmra.mrb[48].mxu1 %vm522_vm2, %v4905_v4  ;;  %v17157_v43 = vld [vmem:[#allocation2 + $0xd0] sm:$0xff] }
 0x677   : > { %4748 = vst.msk [vmem:[#allocation2 + $0xe0] sm:$0xff] %vm522_vm2, %v4659_v38  ;;  %v4414_v49 = vmax.f32 %v4373_v22, 0.0  ;;  %v4326_v52 = vmul.f32 %v16899_v48, %v4182_v25  ;;  %v11601_v47 = vpop.f32.mrb[55].mxu0  ;;  %11718 = vmatprep.mubr.msk.f32.mxu1 %vm14301_vm1, %v14300_v1  ;;  %v4906_v17 = vrot.slane %v17157_v43, 6 }
 0x679   : > { %v4660_v34 = vmul.f32 %v4562_v30, %v4414_v49  ;;  %v4374_v14 = vadd.f32 %v16904_v26, %v4326_v52  ;;  %v4907_v31 = vsel %vm438_vm3, %v4904_v13, %v4906_v17  ;;  %v4577_v52 = vpop.permute.xlu1 %4576 }
 0x67a   : > { %v4187_v36 = vpop.f32.mrb[56].mxu0  ;;  %11719 = vmatmul.mubr.msk.f32.gmra.mrb[50].mxu1 %vm522_vm2, %v4907_v31  ;;  %v17167_v45 = vld [vmem:[#allocation2 + $0xd8] sm:$0xff] }
 0x67b   : > { %4749 = vst.msk [vmem:[#allocation2 + $0xe8] sm:$0xff] %vm522_vm2, %v4660_v34  ;;  %v4415_v18 = vmax.f32 %v4374_v14, 0.0  ;;  %v4327_v16 = vmul.f32 %v16899_v48, %v4187_v36  ;;  %v11604_v51 = vpop.f32.mrb[57].mxu0  ;;  %11721 = vmatprep.mubr.msk.f32.mxu1 %vm14301_vm1, %v14300_v1  ;;  %v4908_v55 = vrot.slane %v17167_v45, 6 }
 0x67c   : > { %v4582_v51 = vpop.permute.xlu0 %4581 }
 0x67d   : > { %v4661_v63 = vmul.f32 %v4567_v60, %v4415_v18  ;;  %v4375_v61 = vadd.f32 %v16904_v26, %v4327_v16  ;;  %v4909_v39 = vsel %vm438_vm3, %v4906_v17, %v4908_v55 }
 0x67e   : > { %v4192_v53 = vpop.f32.mrb[58].mxu0  ;;  %11722 = vmatmul.mubr.msk.f32.gmra.mrb[52].mxu1 %vm522_vm2, %v4909_v39  ;;  %v17177_v0 = vld [vmem:[#allocation2 + $0xe0] sm:$0xff] }
 0x67f   : > { %4750 = vst.msk [vmem:[#allocation2 + $0xf0] sm:$0xff] %vm522_vm2, %v4661_v63  ;;  %v4416_v62 = vmax.f32 %v4375_v61, 0.0  ;;  %v4328_v12 = vmul.f32 %v16899_v48, %v4192_v53  ;;  %v11607_v8 = vpop.f32.mrb[59].mxu0  ;;  %11724 = vmatprep.mubr.msk.f32.mxu1 %vm14301_vm1, %v14300_v1  ;;  %v4910_v5 = vrot.slane %v17177_v0, 6 }
 0x681   : > { %v4662_v29 = vmul.f32 %v4572_v9, %v4416_v62  ;;  %v4376_v11 = vadd.f32 %v16904_v26, %v4328_v12  ;;  %v4911_v13 = vsel %vm438_vm3, %v4908_v55, %v4910_v5 }
 0x682   : > { %v4197_v40 = vpop.f32.mrb[60].mxu0  ;;  %11725 = vmatmul.mubr.msk.f32.gmra.mrb[54].mxu1 %vm522_vm2, %v4911_v13  ;;  %v17187_v38 = vld [vmem:[#allocation2 + $0xe8] sm:$0xff] }
 0x683   : > { %4751 = vst.msk [vmem:[#allocation2 + $0xf8] sm:$0xff] %vm522_vm2, %v4662_v29  ;;  %v4417_v22 = vmax.f32 %v4376_v11, 0.0  ;;  %v4329_v4 = vmul.f32 %v16899_v48, %v4197_v40  ;;  %v11610_v25 = vpop.f32.mrb[61].mxu0  ;;  %11727 = vmatprep.mubr.msk.f32.mxu1 %vm14301_vm1, %v14300_v1  ;;  %v4912_v49 = vrot.slane %v17187_v38, 6 }
 0x685   : > { %v4663_v47 = vmul.f32 %v4577_v52, %v4417_v22  ;;  %v4377_v17 = vadd.f32 %v16904_v26, %v4329_v4  ;;  %v4913_v30 = vsel %vm438_vm3, %v4910_v5, %v4912_v49  ;;  %v4587_v5 = vpop.permute.xlu1 %4586  ;;  %v4592_v52 = vpop.permute.xlu0 %4591 }
 0x686   : > { %v4202_v34 = vpop.f32.mrb[62].mxu0  ;;  %11728 = vmatmul.mubr.msk.f32.gmra.mrb[56].mxu1 %vm522_vm2, %v4913_v30  ;;  %v17197_v14 = vld [vmem:[#allocation2 + $0xf0] sm:$0xff] }
 0x687   : > { %4752 = vst.msk [vmem:[#allocation2 + $0x100] sm:$0xff] %vm522_vm2, %v4663_v47  ;;  %v4418_v31 = vmax.f32 %v4377_v17, 0.0  ;;  %v4330_v36 = vmul.f32 %v16899_v48, %v4202_v34  ;;  %v11613_v18 = vpop.f32.mrb[63].mxu0  ;;  %11730 = vmatprep.mubr.msk.f32.mxu1 %vm14301_vm1, %v14300_v1  ;;  %v4914_v16 = vrot.slane %v17197_v14, 6 }
 0x689   : > { %v4664_v55 = vmul.f32 %v4582_v51, %v4418_v31  ;;  %v4378_v60 = vadd.f32 %v16904_v26, %v4330_v36  ;;  %v4915_v63 = vsel %vm438_vm3, %v4912_v49, %v4914_v16 }
 0x68a   : > { %v4207_v61 = vpop.f32.mrb[64].mxu0  ;;  %11731 = vmatmul.mubr.msk.f32.gmra.mrb[58].mxu1 %vm522_vm2, %v4915_v63  ;;  %v17207_v39 = vld [vmem:[#allocation2 + $0xf8] sm:$0xff] }
 0x68b   : > { %4753 = vst.msk [vmem:[#allocation2 + $0x108] sm:$0xff] %vm522_vm2, %v4664_v55  ;;  %v4419_v53 = vmax.f32 %v4378_v60, 0.0  ;;  %v4331_v62 = vmul.f32 %v16899_v48, %v4207_v61  ;;  %v11616_v12 = vpop.f32.mrb[65].mxu0  ;;  %11733 = vmatprep.mubr.msk.f32.mxu1 %vm14301_vm1, %v14300_v1  ;;  %v4916_v8 = vrot.slane %v17207_v39, 6  ;;  %v4597_v55 = vpop.permute.xlu1 %4596 }
 0x68d   : > { %v4665_v9 = vmul.f32 %v4587_v5, %v4419_v53  ;;  %v4379_v29 = vadd.f32 %v16904_v26, %v4331_v62  ;;  %v4917_v11 = vsel %vm438_vm3, %v4914_v16, %v4916_v8 }
 0x68e   : > { %v4212_v13 = vpop.f32.mrb[66].mxu0  ;;  %11734 = vmatmul.mubr.msk.f32.gmra.mrb[60].mxu1 %vm522_vm2, %v4917_v11  ;;  %v17217_v40 = vld [vmem:[#allocation2 + $0x100] sm:$0xff] }
 0x68f   : > { %4754 = vst.msk [vmem:[#allocation2 + $0x110] sm:$0xff] %vm522_vm2, %v4665_v9  ;;  %v4420_v22 = vmax.f32 %v4379_v29, 0.0  ;;  %v4332_v4 = vmul.f32 %v16899_v48, %v4212_v13  ;;  %v11619_v25 = vpop.f32.mrb[67].mxu0  ;;  %11736 = vmatprep.mubr.msk.f32.mxu1 %vm14301_vm1, %v14300_v1  ;;  %v4918_v49 = vrot.slane %v17217_v40, 6  ;;  %v4602_v29 = vpop.permute.xlu0 %4601 }
 0x691   : > { %v4666_v47 = vmul.f32 %v4592_v52, %v4420_v22  ;;  %v4380_v17 = vadd.f32 %v16904_v26, %v4332_v4  ;;  %v4919_v30 = vsel %vm438_vm3, %v4916_v8, %v4918_v49 }
 0x692   : > { %v4217_v34 = vpop.f32.mrb[68].mxu0  ;;  %11737 = vmatmul.mubr.msk.f32.gmra.mrb[62].mxu1 %vm522_vm2, %v4919_v30  ;;  %v17227_v31 = vld [vmem:[#allocation2 + $0x108] sm:$0xff]  ;;  %v4607_v30 = vpop.permute.xlu1 %4606 }
 0x693   : > { %4755 = vst.msk [vmem:[#allocation2 + $0x118] sm:$0xff] %vm522_vm2, %v4666_v47  ;;  %v4421_v36 = vmax.f32 %v4380_v17, 0.0  ;;  %v4333_v18 = vmul.f32 %v16899_v48, %v4217_v34  ;;  %v11622_v16 = vpop.f32.mrb[69].mxu0  ;;  %11739 = vmatprep.mubr.msk.f32.mxu1 %vm14301_vm1, %v14300_v1  ;;  %v4920_v51 = vrot.slane %v17227_v31, 6 }
 0x695   : > { %v4667_v60 = vmul.f32 %v4597_v55, %v4421_v36  ;;  %v4381_v63 = vadd.f32 %v16904_v26, %v4333_v18  ;;  %v4921_v61 = vsel %vm438_vm3, %v4918_v49, %v4920_v51 }
 0x696   : > { %v4222_v53 = vpop.f32.mrb[70].mxu0  ;;  %11740 = vmatmul.mubr.msk.f32.gmra.mrb[64].mxu1 %vm522_vm2, %v4921_v61  ;;  %v17237_v62 = vld [vmem:[#allocation2 + $0x110] sm:$0xff] }
 0x697   : > { %4756 = vst.msk [vmem:[#allocation2 + $0x120] sm:$0xff] %vm522_vm2, %v4667_v60  ;;  %v4422_v12 = vmax.f32 %v4381_v63, 0.0  ;;  %v4334_v8 = vmul.f32 %v16899_v48, %v4222_v53  ;;  %v11625_v5 = vpop.f32.mrb[71].mxu0  ;;  %11742 = vmatprep.mubr.msk.f32.mxu1 %vm14301_vm1, %v14300_v1  ;;  %v4922_v9 = vrot.slane %v17237_v62, 6  ;;  %v4612_v53 = vpop.permute.xlu0 %4611 }
 0x699   : > { %v4668_v11 = vmul.f32 %v4602_v29, %v4422_v12  ;;  %v4382_v13 = vadd.f32 %v16904_v26, %v4334_v8  ;;  %v4923_v22 = vsel %vm438_vm3, %v4920_v51, %v4922_v9 }
 0x69a   : > { %v4227_v4 = vpop.f32.mrb[72].mxu0  ;;  %11743 = vmatmul.mubr.msk.f32.gmra.mrb[66].mxu1 %vm522_vm2, %v4923_v22  ;;  %v17247_v25 = vld [vmem:[#allocation2 + $0x118] sm:$0xff] }
 0x69b   : > { %4757 = vst.msk [vmem:[#allocation2 + $0x128] sm:$0xff] %vm522_vm2, %v4668_v11  ;;  %v4423_v49 = vmax.f32 %v4382_v13, 0.0  ;;  %v4335_v52 = vmul.f32 %v16899_v48, %v4227_v4  ;;  %v11628_v47 = vpop.f32.mrb[73].mxu0  ;;  %11745 = vmatprep.mubr.msk.f32.mxu1 %vm14301_vm1, %v14300_v1  ;;  %v4924_v17 = vrot.slane %v17247_v25, 6 }
 0x69d   : > { %v4669_v34 = vmul.f32 %v4607_v30, %v4423_v49  ;;  %v4383_v36 = vadd.f32 %v16904_v26, %v4335_v52  ;;  %v4925_v18 = vsel %vm438_vm3, %v4922_v9, %v4924_v17  ;;  %v4617_v49 = vpop.permute.xlu1 %4616 }
 0x69e   : > { %v4232_v16 = vpop.f32.mrb[74].mxu0  ;;  %11746 = vmatmul.mubr.msk.f32.gmra.mrb[68].mxu1 %vm522_vm2, %v4925_v18  ;;  %v17257_v51 = vld [vmem:[#allocation2 + $0x120] sm:$0xff] }
 0x69f   : > { %4758 = vst.msk [vmem:[#allocation2 + $0x130] sm:$0xff] %vm522_vm2, %v4669_v34  ;;  %v4424_v55 = vmax.f32 %v4383_v36, 0.0  ;;  %v4336_v60 = vmul.f32 %v16899_v48, %v4232_v16  ;;  %v11631_v63 = vpop.f32.mrb[75].mxu0  ;;  %11748 = vmatprep.mubr.msk.f32.mxu1 %vm14301_vm1, %v14300_v1  ;;  %v4926_v61 = vrot.slane %v17257_v51, 6 }
 0x6a1   : > { %v4670_v12 = vmul.f32 %v4612_v53, %v4424_v55  ;;  %v4384_v8 = vadd.f32 %v16904_v26, %v4336_v60  ;;  %v4927_v5 = vsel %vm438_vm3, %v4924_v17, %v4926_v61  ;;  %v4622_v60 = vpop.permute.xlu0 %4621 }
 0x6a2   : > { %v4237_v9 = vpop.f32.mrb[76].mxu0  ;;  %11749 = vmatmul.mubr.msk.f32.gmra.mrb[70].mxu1 %vm522_vm2, %v4927_v5  ;;  %v17267_v29 = vld [vmem:[#allocation2 + $0x128] sm:$0xff] }
 0x6a3   : > { %4759 = vst.msk [vmem:[#allocation2 + $0x138] sm:$0xff] %vm522_vm2, %v4670_v12  ;;  %v4425_v11 = vmax.f32 %v4384_v8, 0.0  ;;  %v4337_v13 = vmul.f32 %v16899_v48, %v4237_v9  ;;  %v11634_v22 = vpop.f32.mrb[77].mxu0  ;;  %11751 = vmatprep.mubr.msk.f32.mxu1 %vm14301_vm1, %v14300_v1  ;;  %v4928_v4 = vrot.slane %v17267_v29, 6 }
 0x6a4   : > { %v4627_v22 = vpop.permute.xlu1 %4626 }
 0x6a5   : > { %v4671_v52 = vmul.f32 %v4617_v49, %v4425_v11  ;;  %v4385_v47 = vadd.f32 %v16904_v26, %v4337_v13  ;;  %v4929_v17 = vsel %vm438_vm3, %v4926_v61, %v4928_v4 }
 0x6a6   : > { %v4242_v30 = vpop.f32.mrb[78].mxu0  ;;  %11752 = vmatmul.mubr.msk.f32.gmra.mrb[72].mxu1 %vm522_vm2, %v4929_v17  ;;  %v17277_v34 = vld [vmem:[#allocation2 + $0x130] sm:$0xff] }
 0x6a7   : > { %4760 = vst.msk [vmem:[#allocation2 + $0x140] sm:$0xff] %vm522_vm2, %v4671_v52  ;;  %v4426_v36 = vmax.f32 %v4385_v47, 0.0  ;;  %v4338_v18 = vmul.f32 %v16899_v48, %v4242_v30  ;;  %v11637_v16 = vpop.f32.mrb[79].mxu0  ;;  %11754 = vmatprep.mubr.msk.f32.mxu1 %vm14301_vm1, %v14300_v1  ;;  %v4930_v55 = vrot.slane %v17277_v34, 6  ;;  %v4632_v30 = vpop.permute.xlu0 %4631 }
 0x6a9   : > { %v4672_v63 = vmul.f32 %v4622_v60, %v4426_v36  ;;  %v4386_v61 = vadd.f32 %v16904_v26, %v4338_v18  ;;  %v4931_v53 = vsel %vm438_vm3, %v4928_v4, %v4930_v55  ;;  %v9455_v60 = vld [vmem:[%s19439_s4 + $0x8] sm:$0xf] }
 0x6aa   : > { %v4247_v12 = vpop.f32.mrb[80].mxu0  ;;  %11755 = vmatmul.mubr.msk.f32.gmra.mrb[74].mxu1 %vm522_vm2, %v4931_v53  ;;  %v17287_v8 = vld [vmem:[#allocation2 + $0x138] sm:$0xff] }
 0x6ab   : > { %4761 = vst.msk [vmem:[#allocation2 + $0x148] sm:$0xff] %vm522_vm2, %v4672_v63  ;;  %v4427_v5 = vmax.f32 %v4386_v61, 0.0  ;;  %v4339_v9 = vmul.f32 %v16899_v48, %v4247_v12  ;;  %v11640_v11 = vpop.f32.mrb[81].mxu0  ;;  %11757 = vmatprep.mubr.msk.f32.mxu1 %vm14301_vm1, %v14300_v1  ;;  %v4932_v13 = vrot.slane %v17287_v8, 6  ;;  %v5298_v63 = vrot.slane %v16916_v46, 5 }
 0x6ac   : > { %v5302_v46 = vrot.slane %v16936_v56, 5  ;;  %v5308_v12 = vrot.slane %v16966_v19, 5  ;;  %v14172_v11 = vld [vmem:[#allocation2 + $0x8] sm:$0xff] }
 0x6ad   : > { %v4673_v49 = vmul.f32 %v4627_v22, %v4427_v5  ;;  %v4387_v4 = vadd.f32 %v16904_v26, %v4339_v9  ;;  %v4933_v52 = vsel %vm438_vm3, %v4930_v55, %v4932_v13  ;;  %v5299_v61 = vsel %vm879_vm4, %v5296_v57, %v5298_v63 }
 0x6ae   : > { %11758 = vmatmul.mubr.msk.f32.gmra.mrb[76].mxu1 %vm522_vm2, %v4933_v52  ;;  %v17297_v47 = vld [vmem:[#allocation2 + $0x140] sm:$0xff]  ;;  %v5304_v57 = vrot.slane %v16946_v2, 5  ;;  %v5310_v5 = vrot.slane %v16977_v28, 5  ;;  %v5312_v22 = vrot.slane %v16988_v20, 5  ;;  %v17371_v52 = vld [vmem:[#allocation2 + $0x10] sm:$0xff] }
 0x6af   : > { %4762 = vst.msk [vmem:[#allocation2 + $0x150] sm:$0xff] %vm522_vm2, %v4673_v49  ;;  %v4428_v17 = vmax.f32 %v4387_v4, 0.0  ;;  %11760 = vmatprep.mubr.msk.f32.mxu1 %vm14301_vm1, %v14300_v1  ;;  %v4934_v48 = vrot.slane %v17297_v47, 6  ;;  %v5314_v4 = vrot.slane %v17002_v6, 5 }
 0x6b0   : > { %v5311_v19 = vsel %vm879_vm4, %v5308_v12, %v5310_v5  ;;  %v5313_v49 = vsel %vm879_vm4, %v5310_v5, %v5312_v22  ;;  %v5344_v5 = vrot.slane %v17157_v43, 5 }
 0x6b1   : > { %v4674_v36 = vmul.f32 %v4632_v30, %v4428_v17  ;;  %v4935_v18 = vsel %vm438_vm3, %v4932_v13, %v4934_v48  ;;  %v5734_v13 = vrot.slane %v14172_v11, 7  ;;  %v5736_v17 = vrot.slane %v17371_v52, 7 }
 0x6b2   : > { %11761 = vmatmul.mubr.msk.f32.gmra.mrb[78].mxu1 %vm522_vm2, %v4935_v18  ;;  %v17305_v26 = vld [vmem:[#allocation2 + $0x148] sm:$0xff]  ;;  %v5316_v30 = vrot.slane %v17017_v23, 5 }
 0x6b3   : > { %4763 = vst.msk [vmem:[#allocation2 + $0x158] sm:$0xf] %vm4721_vm9, %v4674_v36  ;;  %11763 = vmatprep.mubr.msk.f32.mxu1 %vm14301_vm1, %v14300_v1  ;;  %v4936_v16 = vrot.slane %v17305_v26, 6  ;;  %v17380_v20 = vsel %vm1320_vm5, %v5734_v13, %v5736_v17  ;;  %v5318_v36 = vrot.slane %v17027_v44, 5 }
 0x6b4   : > { %v5317_v6 = vsel %vm879_vm4, %v5314_v4, %v5316_v30 }
 0x6b5   : > { %v4937_v55 = vsel %vm438_vm3, %v4934_v48, %v4936_v16  ;;  %v5315_v48 = vsel %vm879_vm4, %v5312_v22, %v5314_v4  ;;  %v5319_v18 = vsel %vm879_vm4, %v5316_v30, %v5318_v36  ;;  %v5320_v16 = vrot.slane %v17037_v3, 5 }
 0x6b6   : > { %11764 = vmatmul.mubr.msk.f32.gmra.mrb[80].mxu1 %vm522_vm2, %v4937_v55  ;;  %v5322_v55 = vrot.slane %v17047_v50, 5  ;;  %v5350_v22 = vrot.slane %v17187_v38, 5  ;;  %v5352_v4 = vrot.slane %v17197_v14, 5  ;;  %v5354_v30 = vrot.slane %v17207_v39, 5 }
 0x6b7   : > { %11768 = vmatprep.mubr.msk.f32.mxu1 %vm14301_vm1, %v14300_v1  ;;  %v5321_v23 = vsel %vm879_vm4, %v5318_v36, %v5320_v16  ;;  %v5356_v36 = vrot.slane %v17217_v40, 5 }
 0x6b8   : > { %v5323_v44 = vsel %vm879_vm4, %v5320_v16, %v5322_v55  ;;  %v5358_v16 = vrot.slane %v17227_v31, 5 }
 0x6ba   : > { %11769 = vmatmul.mubr.msk.f32.vlgmr.msra.gmra.mrb[0].mxu1 %vm522_vm2, %v16996_v32  ;;  %v5300_v32 = vrot.slane %v16926_v54, 5  ;;  %v5305_v54 = vsel %vm879_vm4, %v5302_v46, %v5304_v57 }
 0x6bb   : > { %11892 = vmatpush3.msk.msra.mxu1 %vm605_vm0, %v9455_v60  ;;  %11771 = vmatprep.mubr.msk.f32.mxu1 %vm14301_vm1, %v14300_v1  ;;  %v5324_v60 = vrot.slane %v17057_v42, 5 }
 0x6bc   : > { %12016 = vmatprep.subr.mxu1 %v14300_v1  ;;  %v5301_v53 = vsel %vm879_vm4, %v5298_v63, %v5300_v32  ;;  %v5303_v33 = vsel %vm879_vm4, %v5300_v32, %v5302_v46  ;;  %v5326_v63 = vrot.slane %v17067_v24, 5  ;;  %v5330_v32 = vrot.slane %v17087_v27, 5 }
 0x6bd   : > { %v5325_v3 = vsel %vm879_vm4, %v5322_v55, %v5324_v60  ;;  %v5334_v46 = vrot.slane %v17107_v41, 5  ;;  %v5360_v55 = vrot.slane %v17237_v62, 5 }
 0x6be   : > { %11772 = vmatmul.mubr.msk.f32.gmra.mrb[2].mxu1 %vm522_vm2, %v17012_v35  ;;  %v5306_v35 = vrot.slane %v16956_v7, 5  ;;  %v14171_v7 = vld [vmem:[#allocation2] sm:$0xff]  ;;  %v5327_v50 = vsel %vm879_vm4, %v5324_v60, %v5326_v63  ;;  %v5362_v60 = vrot.slane %v17247_v25, 5 }
 0x6bf   : > { %11774 = vmatprep.mubr.msk.f32.mxu1 %vm14301_vm1, %v14300_v1  ;;  %v5733_v9 = vrot.slane %v14171_v7, 7 }
 0x6c0   : > { %v5307_v56 = vsel %vm879_vm4, %v5304_v57, %v5306_v35  ;;  %v5309_v2 = vsel %vm879_vm4, %v5306_v35, %v5308_v12  ;;  %v5338_v57 = vrot.slane %v17127_v37, 5  ;;  %v5340_v35 = vrot.slane %v17137_v58, 5 }
 0x6c1   : > { %v17367_v28 = vsel %vm1320_vm5, %v5733_v9, %v5734_v13  ;;  %v5342_v12 = vrot.slane %v17147_v10, 5  ;;  %v5346_v9 = vrot.slane %v17167_v45, 5  ;;  %v5348_v13 = vrot.slane %v17177_v0, 5 }
 0x6c2   : > { %11775 = vmatmul.mubr.msk.f32.gmra.mrb[4].mxu1 %vm522_vm2, %v5299_v61  ;;  %v5328_v61 = vrot.slane %v17077_v59, 5 }
 0x6c3   : > { %11777 = vmatprep.mubr.msk.f32.mxu1 %vm14301_vm1, %v14300_v1  ;;  %v5345_v7 = vsel %vm879_vm4, %v5342_v12, %v5344_v5  ;;  %v5347_v11 = vsel %vm879_vm4, %v5344_v5, %v5346_v9  ;;  %v17577_v5 = vld [vmem:[#allocation2 + $0x30] sm:$0xff] }
 0x6c4   : > { %v5329_v42 = vsel %vm879_vm4, %v5326_v63, %v5328_v61  ;;  %v5331_v24 = vsel %vm879_vm4, %v5328_v61, %v5330_v32  ;;  %v5364_v63 = vrot.slane %v17257_v51, 5  ;;  %v5366_v61 = vrot.slane %v17267_v29, 5 }
 0x6c6   : > { %11778 = vmatmul.mubr.msk.f32.gmra.mrb[6].mxu1 %vm522_vm2, %v5301_v53  ;;  %v5332_v53 = vrot.slane %v17097_v21, 5 }
 0x6c7   : > { %11780 = vmatprep.mubr.msk.f32.mxu1 %vm14301_vm1, %v14300_v1 }
 0x6c8   : > { %v5333_v59 = vsel %vm879_vm4, %v5330_v32, %v5332_v53  ;;  %v5335_v27 = vsel %vm879_vm4, %v5332_v53, %v5334_v46  ;;  %v5368_v32 = vrot.slane %v17277_v34, 5  ;;  %v5370_v53 = vrot.slane %v17287_v8, 5 }
 0x6ca   : > { %11781 = vmatmul.mubr.msk.f32.gmra.mrb[8].mxu1 %vm522_vm2, %v5303_v33  ;;  %v5336_v33 = vrot.slane %v17117_v15, 5 }
 0x6cb   : > { %11783 = vmatprep.mubr.msk.f32.mxu1 %vm14301_vm1, %v14300_v1 }
 0x6cc   : > { %v5337_v21 = vsel %vm879_vm4, %v5334_v46, %v5336_v33  ;;  %v5372_v46 = vrot.slane %v17297_v47, 5 }
 0x6ce   : > { %11784 = vmatmul.mubr.msk.f32.gmra.mrb[10].mxu1 %vm522_vm2, %v5305_v54  ;;  %v5339_v54 = vsel %vm879_vm4, %v5336_v33, %v5338_v57  ;;  %v5374_v33 = vrot.slane %v17305_v26, 5 }
 0x6cf   : > { %11786 = vmatprep.mubr.msk.f32.mxu1 %vm14301_vm1, %v14300_v1 }
 0x6d2   : > { %11787 = vmatmul.mubr.msk.f32.gmra.mrb[12].mxu1 %vm522_vm2, %v5307_v56  ;;  %v5341_v56 = vsel %vm879_vm4, %v5338_v57, %v5340_v35  ;;  %v9498_v57 = vld [vmem:[%s19439_s4 + $0xc] sm:$0xf] }
 0x6d3   : > { %11789 = vmatprep.mubr.msk.f32.mxu1 %vm14301_vm1, %v14300_v1 }
 0x6d6   : > { %11790 = vmatmul.mubr.msk.f32.gmra.mrb[14].mxu1 %vm522_vm2, %v5309_v2  ;;  %v5343_v2 = vsel %vm879_vm4, %v5340_v35, %v5342_v12 }
 0x6d7   : > { %11792 = vmatprep.mubr.msk.f32.mxu1 %vm14301_vm1, %v14300_v1 }
 0x6da   : > { %11793 = vmatmul.mubr.msk.f32.gmra.mrb[16].mxu1 %vm522_vm2, %v5311_v19  ;;  %v5349_v19 = vsel %vm879_vm4, %v5346_v9, %v5348_v13 }
 0x6db   : > { %11795 = vmatprep.mubr.msk.f32.mxu1 %vm14301_vm1, %v14300_v1 }
 0x6de   : > { %11796 = vmatmul.mubr.msk.f32.gmra.mrb[18].mxu1 %vm522_vm2, %v5313_v49  ;;  %v5351_v49 = vsel %vm879_vm4, %v5348_v13, %v5350_v22 }
 0x6df   : > { %11798 = vmatprep.mubr.msk.f32.mxu1 %vm14301_vm1, %v14300_v1 }
 0x6e2   : > { %11799 = vmatmul.mubr.msk.f32.gmra.mrb[20].mxu1 %vm522_vm2, %v5315_v48  ;;  %v5353_v48 = vsel %vm879_vm4, %v5350_v22, %v5352_v4  ;;  %v17597_v22 = vld [vmem:[#allocation2 + $0x40] sm:$0xff] }
 0x6e3   : > { %11801 = vmatprep.mubr.msk.f32.mxu1 %vm14301_vm1, %v14300_v1 }
 0x6e6   : > { %11802 = vmatmul.mubr.msk.f32.gmra.mrb[22].mxu1 %vm522_vm2, %v5317_v6  ;;  %v5355_v6 = vsel %vm879_vm4, %v5352_v4, %v5354_v30 }
 0x6e7   : > { %11804 = vmatprep.mubr.msk.f32.mxu1 %vm14301_vm1, %v14300_v1 }
 0x6ea   : > { %11805 = vmatmul.mubr.msk.f32.gmra.mrb[24].mxu1 %vm522_vm2, %v5319_v18  ;;  %v5357_v18 = vsel %vm879_vm4, %v5354_v30, %v5356_v36 }
 0x6eb   : > { %11807 = vmatprep.mubr.msk.f32.mxu1 %vm14301_vm1, %v14300_v1 }
 0x6ee   : > { %11808 = vmatmul.mubr.msk.f32.gmra.mrb[26].mxu1 %vm522_vm2, %v5321_v23  ;;  %v5359_v23 = vsel %vm879_vm4, %v5356_v36, %v5358_v16  ;;  %v17617_v36 = vld [vmem:[#allocation2 + $0x50] sm:$0xff] }
 0x6ef   : > { %11810 = vmatprep.mubr.msk.f32.mxu1 %vm14301_vm1, %v14300_v1 }
 0x6f2   : > { %11811 = vmatmul.mubr.msk.f32.gmra.mrb[28].mxu1 %vm522_vm2, %v5323_v44  ;;  %v5361_v44 = vsel %vm879_vm4, %v5358_v16, %v5360_v55 }
 0x6f3   : > { %11813 = vmatprep.mubr.msk.f32.mxu1 %vm14301_vm1, %v14300_v1 }
 0x6f6   : > { %11814 = vmatmul.mubr.msk.f32.gmra.mrb[30].mxu1 %vm522_vm2, %v5325_v3  ;;  %v5363_v3 = vsel %vm879_vm4, %v5360_v55, %v5362_v60 }
 0x6f7   : > { %11816 = vmatprep.mubr.msk.f32.mxu1 %vm14301_vm1, %v14300_v1 }
 0x6fa   : > { %11817 = vmatmul.mubr.msk.f32.gmra.mrb[32].mxu1 %vm522_vm2, %v5327_v50  ;;  %v5365_v50 = vsel %vm879_vm4, %v5362_v60, %v5364_v63  ;;  %v17637_v60 = vld [vmem:[#allocation2 + $0x60] sm:$0xff] }
 0x6fb   : > { %11819 = vmatprep.mubr.msk.f32.mxu1 %vm14301_vm1, %v14300_v1 }
 0x6fe   : > { %11820 = vmatmul.mubr.msk.f32.gmra.mrb[34].mxu1 %vm522_vm2, %v5329_v42  ;;  %v5367_v42 = vsel %vm879_vm4, %v5364_v63, %v5366_v61 }
 0x6ff   : > { %11822 = vmatprep.mubr.msk.f32.mxu1 %vm14301_vm1, %v14300_v1 }
 0x702   : > { %11823 = vmatmul.mubr.msk.f32.gmra.mrb[36].mxu1 %vm522_vm2, %v5331_v24  ;;  %v5369_v24 = vsel %vm879_vm4, %v5366_v61, %v5368_v32 }
 0x703   : > { %11825 = vmatprep.mubr.msk.f32.mxu1 %vm14301_vm1, %v14300_v1 }
 0x706   : > { %11826 = vmatmul.mubr.msk.f32.gmra.mrb[38].mxu1 %vm522_vm2, %v5333_v59  ;;  %v5371_v59 = vsel %vm879_vm4, %v5368_v32, %v5370_v53  ;;  %v17657_v32 = vld [vmem:[#allocation2 + $0x70] sm:$0xff] }
 0x707   : > { %11828 = vmatprep.mubr.msk.f32.mxu1 %vm14301_vm1, %v14300_v1 }
 0x70a   : > { %11829 = vmatmul.mubr.msk.f32.gmra.mrb[40].mxu1 %vm522_vm2, %v5335_v27  ;;  %v5373_v27 = vsel %vm879_vm4, %v5370_v53, %v5372_v46 }
 0x70b   : > { %11831 = vmatprep.mubr.msk.f32.mxu1 %vm14301_vm1, %v14300_v1 }
 0x70e   : > { %11832 = vmatmul.mubr.msk.f32.gmra.mrb[42].mxu1 %vm522_vm2, %v5337_v21  ;;  %v5375_v21 = vsel %vm879_vm4, %v5372_v46, %v5374_v33  ;;  %v17677_v33 = vld [vmem:[#allocation2 + $0x80] sm:$0xff] }
 0x70f   : > { %11834 = vmatprep.mubr.msk.f32.mxu1 %vm14301_vm1, %v14300_v1 }
 0x712   : > { %11835 = vmatmul.mubr.msk.f32.gmra.mrb[44].mxu1 %vm522_vm2, %v5339_v54  ;;  %v17545_v54 = vld [vmem:[#allocation2 + $0x18] sm:$0xff] }
 0x713   : > { %11837 = vmatprep.mubr.msk.f32.mxu1 %vm14301_vm1, %v14300_v1  ;;  %v5738_v35 = vrot.slane %v17545_v54, 7 }
 0x716   : > { %11838 = vmatmul.mubr.msk.f32.gmra.mrb[46].mxu1 %vm522_vm2, %v5341_v56  ;;  %v17557_v56 = vld [vmem:[#allocation2 + $0x20] sm:$0xff] }
 0x717   : > { %11840 = vmatprep.mubr.msk.f32.mxu1 %vm14301_vm1, %v14300_v1  ;;  %v5740_v12 = vrot.slane %v17557_v56, 7 }
 0x71a   : > { %11841 = vmatmul.mubr.msk.f32.gmra.mrb[48].mxu1 %vm522_vm2, %v5343_v2  ;;  %v17567_v2 = vld [vmem:[#allocation2 + $0x28] sm:$0xff] }
 0x71b   : > { %11843 = vmatprep.mubr.msk.f32.mxu1 %vm14301_vm1, %v14300_v1  ;;  %v5742_v52 = vrot.slane %v17567_v2, 7 }
 0x71e   : > { %11844 = vmatmul.mubr.msk.f32.gmra.mrb[50].mxu1 %vm522_vm2, %v5345_v7  ;;  %v5744_v7 = vrot.slane %v17577_v5, 7 }
 0x71f   : > { %11846 = vmatprep.mubr.msk.f32.mxu1 %vm14301_vm1, %v14300_v1 }
 0x720   : > { %v17585_v9 = vsel %vm1320_vm5, %v5742_v52, %v5744_v7 }
 0x722   : > { %11847 = vmatmul.mubr.msk.f32.gmra.mrb[52].mxu1 %vm522_vm2, %v5347_v11  ;;  %v17587_v11 = vld [vmem:[#allocation2 + $0x38] sm:$0xff] }
 0x723   : > { %11849 = vmatprep.mubr.msk.f32.mxu1 %vm14301_vm1, %v14300_v1  ;;  %v5746_v13 = vrot.slane %v17587_v11, 7 }
 0x726   : > { %11850 = vmatmul.mubr.msk.f32.gmra.mrb[54].mxu1 %vm522_vm2, %v5349_v19  ;;  %v17595_v19 = vsel %vm1320_vm5, %v5744_v7, %v5746_v13  ;;  %v17697_v7 = vld [vmem:[#allocation2 + $0x90] sm:$0xff] }
 0x727   : > { %11852 = vmatprep.mubr.msk.f32.mxu1 %vm14301_vm1, %v14300_v1 }
 0x72a   : > { %11853 = vmatmul.mubr.msk.f32.gmra.mrb[56].mxu1 %vm522_vm2, %v5351_v49  ;;  %v5748_v49 = vrot.slane %v17597_v22, 7 }
 0x72b   : > { %11855 = vmatprep.mubr.msk.f32.mxu1 %vm14301_vm1, %v14300_v1 }
 0x72c   : > { %v17605_v4 = vsel %vm1320_vm5, %v5746_v13, %v5748_v49  ;;  %v5768_v13 = vrot.slane %v17697_v7, 7 }
 0x72e   : > { %11856 = vmatmul.mubr.msk.f32.gmra.mrb[58].mxu1 %vm522_vm2, %v5353_v48  ;;  %v17607_v48 = vld [vmem:[#allocation2 + $0x48] sm:$0xff] }
 0x72f   : > { %11858 = vmatprep.mubr.msk.f32.mxu1 %vm14301_vm1, %v14300_v1  ;;  %v5750_v30 = vrot.slane %v17607_v48, 7 }
 0x732   : > { %11859 = vmatmul.mubr.msk.f32.gmra.mrb[60].mxu1 %vm522_vm2, %v5355_v6  ;;  %v17615_v6 = vsel %vm1320_vm5, %v5748_v49, %v5750_v30 }
 0x733   : > { %11861 = vmatprep.mubr.msk.f32.mxu1 %vm14301_vm1, %v14300_v1 }
 0x736   : > { %11862 = vmatmul.mubr.msk.f32.gmra.mrb[62].mxu1 %vm522_vm2, %v5357_v18  ;;  %v5752_v18 = vrot.slane %v17617_v36, 7 }
 0x737   : > { %11864 = vmatprep.mubr.msk.f32.mxu1 %vm14301_vm1, %v14300_v1 }
 0x738   : > { %v17625_v16 = vsel %vm1320_vm5, %v5750_v30, %v5752_v18  ;;  %v17707_v30 = vld [vmem:[#allocation2 + $0x98] sm:$0xff] }
 0x73a   : > { %11865 = vmatmul.mubr.msk.f32.gmra.mrb[64].mxu1 %vm522_vm2, %v5359_v23  ;;  %v17627_v23 = vld [vmem:[#allocation2 + $0x58] sm:$0xff] }
 0x73b   : > { %11867 = vmatprep.mubr.msk.f32.mxu1 %vm14301_vm1, %v14300_v1  ;;  %v5754_v55 = vrot.slane %v17627_v23, 7 }
 0x73e   : > { %11868 = vmatmul.mubr.msk.f32.gmra.mrb[66].mxu1 %vm522_vm2, %v5361_v44  ;;  %v17635_v44 = vsel %vm1320_vm5, %v5752_v18, %v5754_v55  ;;  %v5770_v18 = vrot.slane %v17707_v30, 7 }
 0x73f   : > { %11870 = vmatprep.mubr.msk.f32.mxu1 %vm14301_vm1, %v14300_v1 }
 0x742   : > { %11871 = vmatmul.mubr.msk.f32.gmra.mrb[68].mxu1 %vm522_vm2, %v5363_v3  ;;  %v5756_v3 = vrot.slane %v17637_v60, 7 }
 0x743   : > { %11873 = vmatprep.mubr.msk.f32.mxu1 %vm14301_vm1, %v14300_v1 }
 0x744   : > { %v17645_v63 = vsel %vm1320_vm5, %v5754_v55, %v5756_v3  ;;  %v17715_v55 = vsel %vm1320_vm5, %v5768_v13, %v5770_v18 }
 0x746   : > { %11874 = vmatmul.mubr.msk.f32.gmra.mrb[70].mxu1 %vm522_vm2, %v5365_v50  ;;  %v17647_v50 = vld [vmem:[#allocation2 + $0x68] sm:$0xff] }
 0x747   : > { %11876 = vmatprep.mubr.msk.f32.mxu1 %vm14301_vm1, %v14300_v1  ;;  %v5758_v61 = vrot.slane %v17647_v50, 7 }
 0x74a   : > { %11877 = vmatmul.mubr.msk.f32.gmra.mrb[72].mxu1 %vm522_vm2, %v5367_v42  ;;  %v17655_v42 = vsel %vm1320_vm5, %v5756_v3, %v5758_v61  ;;  %v17717_v3 = vld [vmem:[#allocation2 + $0xa0] sm:$0xff] }
 0x74b   : > { %11879 = vmatprep.mubr.msk.f32.mxu1 %vm14301_vm1, %v14300_v1 }
 0x74e   : > { %11880 = vmatmul.mubr.msk.f32.gmra.mrb[74].mxu1 %vm522_vm2, %v5369_v24  ;;  %v5760_v24 = vrot.slane %v17657_v32, 7 }
 0x74f   : > { %11882 = vmatprep.mubr.msk.f32.mxu1 %vm14301_vm1, %v14300_v1 }
 0x750   : > { %v17665_v53 = vsel %vm1320_vm5, %v5758_v61, %v5760_v24  ;;  %v5772_v61 = vrot.slane %v17717_v3, 7 }
 0x752   : > { %11883 = vmatmul.mubr.msk.f32.gmra.mrb[76].mxu1 %vm522_vm2, %v5371_v59  ;;  %v17667_v59 = vld [vmem:[#allocation2 + $0x78] sm:$0xff] }
 0x753   : > { %11885 = vmatprep.mubr.msk.f32.mxu1 %vm14301_vm1, %v14300_v1  ;;  %v5762_v46 = vrot.slane %v17667_v59, 7 }
 0x756   : > { %11886 = vmatmul.mubr.msk.f32.gmra.mrb[78].mxu1 %vm522_vm2, %v5373_v27  ;;  %v17675_v27 = vsel %vm1320_vm5, %v5760_v24, %v5762_v46  ;;  %v17725_v24 = vsel %vm1320_vm5, %v5770_v18, %v5772_v61 }
 0x757   : > { %11888 = vmatprep.mubr.msk.f32.mxu1 %vm14301_vm1, %v14300_v1 }
 0x75a   : > { %11889 = vmatmul.mubr.msk.f32.gmra.mrb[80].mxu1 %vm522_vm2, %v5375_v21  ;;  %v5764_v21 = vrot.slane %v17677_v33, 7 }
 0x75b   : > { %11893 = vmatprep.mubr.msk.f32.mxu1 %vm14301_vm1, %v14300_v1 }
 0x75e   : > { %11894 = vmatmul.mubr.msk.f32.vlgmr.msra.gmra.mrb[0].mxu1 %vm522_vm2, %v17367_v28  ;;  %v17555_v28 = vsel %vm1320_vm5, %v5736_v17, %v5738_v35  ;;  %v17575_v17 = vsel %vm1320_vm5, %v5740_v12, %v5742_v52 }
 0x75f   : > { %12017 = vmatpush3.msk.msra.mxu1 %vm605_vm0, %v9498_v57  ;;  %11896 = vmatprep.mubr.msk.f32.mxu1 %vm14301_vm1, %v14300_v1  ;;  %v17685_v57 = vsel %vm1320_vm5, %v5762_v46, %v5764_v21  ;;  %v5774_v46 = vrot.slane %v17107_v41, 7  ;;  %v5778_v41 = vrot.slane %v17127_v37, 7  ;;  %v5782_v37 = vrot.slane %v17147_v10, 7 }
 0x760   : > { %12141 = vmatprep.subr.mxu1 %v14300_v1  ;;  %v5786_v10 = vrot.slane %v17167_v45, 7  ;;  %v5790_v45 = vrot.slane %v17187_v38, 7  ;;  %v5794_v38 = vrot.slane %v17207_v39, 7  ;;  %v5798_v39 = vrot.slane %v17227_v31, 7 }
 0x761   : > { %v5802_v31 = vrot.slane %v17247_v25, 7  ;;  %v5806_v25 = vrot.slane %v17267_v29, 7  ;;  %v5810_v29 = vrot.slane %v17287_v8, 7  ;;  %v5814_v8 = vrot.slane %v17305_v26, 7 }
 0x762   : > { %11897 = vmatmul.mubr.msk.f32.gmra.mrb[2].mxu1 %vm522_vm2, %v17380_v20  ;;  %v17565_v20 = vsel %vm1320_vm5, %v5738_v35, %v5740_v12  ;;  %v17687_v35 = vld [vmem:[#allocation2 + $0x88] sm:$0xff] }
 0x763   : > { %11899 = vmatprep.mubr.msk.f32.mxu1 %vm14301_vm1, %v14300_v1  ;;  %v5766_v12 = vrot.slane %v17687_v35, 7 }
 0x765   : > { %v17695_v52 = vsel %vm1320_vm5, %v5764_v21, %v5766_v12  ;;  %v17705_v49 = vsel %vm1320_vm5, %v5766_v12, %v5768_v13  ;;  %v17733_v21 = vsel %vm1320_vm5, %v5772_v61, %v5774_v46  ;;  %v5776_v12 = vrot.slane %v17117_v15, 7 }
 0x766   : > { %11900 = vmatmul.mubr.msk.f32.gmra.mrb[4].mxu1 %vm522_vm2, %v17555_v28  ;;  %v5780_v15 = vrot.slane %v17137_v58, 7  ;;  %v5784_v58 = vrot.slane %v17157_v43, 7  ;;  %v5788_v43 = vrot.slane %v17177_v0, 7  ;;  %v5792_v0 = vrot.slane %v17197_v14, 7 }
 0x767   : > { %11902 = vmatprep.mubr.msk.f32.mxu1 %vm14301_vm1, %v14300_v1  ;;  %v17741_v13 = vsel %vm1320_vm5, %v5774_v46, %v5776_v12  ;;  %v17749_v18 = vsel %vm1320_vm5, %v5776_v12, %v5778_v41  ;;  %v5796_v14 = vrot.slane %v17217_v40, 7  ;;  %v5800_v40 = vrot.slane %v17237_v62, 7 }
 0x768   : > { %v17757_v61 = vsel %vm1320_vm5, %v5778_v41, %v5780_v15  ;;  %v17765_v46 = vsel %vm1320_vm5, %v5780_v15, %v5782_v37  ;;  %v17773_v12 = vsel %vm1320_vm5, %v5782_v37, %v5784_v58  ;;  %v17781_v41 = vsel %vm1320_vm5, %v5784_v58, %v5786_v10 }
 0x769   : > { %v17789_v15 = vsel %vm1320_vm5, %v5786_v10, %v5788_v43  ;;  %v17797_v37 = vsel %vm1320_vm5, %v5788_v43, %v5790_v45  ;;  %v17805_v58 = vsel %vm1320_vm5, %v5790_v45, %v5792_v0  ;;  %v17813_v10 = vsel %vm1320_vm5, %v5792_v0, %v5794_v38 }
 0x76a   : > { %11903 = vmatmul.mubr.msk.f32.gmra.mrb[6].mxu1 %vm522_vm2, %v17565_v20  ;;  %v17821_v43 = vsel %vm1320_vm5, %v5794_v38, %v5796_v14  ;;  %v17829_v45 = vsel %vm1320_vm5, %v5796_v14, %v5798_v39  ;;  %v17837_v0 = vsel %vm1320_vm5, %v5798_v39, %v5800_v40  ;;  %v17845_v38 = vsel %vm1320_vm5, %v5800_v40, %v5802_v31 }
 0x76b   : > { %11905 = vmatprep.mubr.msk.f32.mxu1 %vm14301_vm1, %v14300_v1  ;;  %v5804_v62 = vrot.slane %v17257_v51, 7  ;;  %v5808_v51 = vrot.slane %v17277_v34, 7  ;;  %v5812_v34 = vrot.slane %v17297_v47, 7 }
 0x76d   : > { %v17853_v14 = vsel %vm1320_vm5, %v5802_v31, %v5804_v62  ;;  %v17861_v39 = vsel %vm1320_vm5, %v5804_v62, %v5806_v25  ;;  %v17869_v40 = vsel %vm1320_vm5, %v5806_v25, %v5808_v51  ;;  %v17877_v31 = vsel %vm1320_vm5, %v5808_v51, %v5810_v29  ;;  %v9541_v25 = vld [vmem:[%s19439_s4 + $0x10] sm:$0xf] }
 0x76e   : > { %11906 = vmatmul.mubr.msk.f32.gmra.mrb[8].mxu1 %vm522_vm2, %v17575_v17  ;;  %v17885_v62 = vsel %vm1320_vm5, %v5810_v29, %v5812_v34  ;;  %v17895_v47 = vsel %vm1320_vm5, %v5812_v34, %v5814_v8 }
 0x76f   : > { %11908 = vmatprep.mubr.msk.f32.mxu1 %vm14301_vm1, %v14300_v1 }
 0x772   : > { %11909 = vmatmul.mubr.msk.f32.gmra.mrb[10].mxu1 %vm522_vm2, %v17585_v9 }
 0x773   : > { %11911 = vmatprep.mubr.msk.f32.mxu1 %vm14301_vm1, %v14300_v1 }
 0x776   : > { %11912 = vmatmul.mubr.msk.f32.gmra.mrb[12].mxu1 %vm522_vm2, %v17595_v19 }
 0x777   : > { %11914 = vmatprep.mubr.msk.f32.mxu1 %vm14301_vm1, %v14300_v1 }
 0x77a   : > { %11915 = vmatmul.mubr.msk.f32.gmra.mrb[14].mxu1 %vm522_vm2, %v17605_v4 }
 0x77b   : > { %11917 = vmatprep.mubr.msk.f32.mxu1 %vm14301_vm1, %v14300_v1 }
 0x77e   : > { %11918 = vmatmul.mubr.msk.f32.gmra.mrb[16].mxu1 %vm522_vm2, %v17615_v6 }
 0x77f   : > { %11920 = vmatprep.mubr.msk.f32.mxu1 %vm14301_vm1, %v14300_v1 }
 0x782   : > { %11921 = vmatmul.mubr.msk.f32.gmra.mrb[18].mxu1 %vm522_vm2, %v17625_v16 }
 0x783   : > { %11923 = vmatprep.mubr.msk.f32.mxu1 %vm14301_vm1, %v14300_v1 }
 0x786   : > { %11924 = vmatmul.mubr.msk.f32.gmra.mrb[20].mxu1 %vm522_vm2, %v17635_v44 }
 0x787   : > { %11926 = vmatprep.mubr.msk.f32.mxu1 %vm14301_vm1, %v14300_v1 }
 0x78a   : > { %11927 = vmatmul.mubr.msk.f32.gmra.mrb[22].mxu1 %vm522_vm2, %v17645_v63 }
 0x78b   : > { %11929 = vmatprep.mubr.msk.f32.mxu1 %vm14301_vm1, %v14300_v1 }
 0x78e   : > { %11930 = vmatmul.mubr.msk.f32.gmra.mrb[24].mxu1 %vm522_vm2, %v17655_v42 }
 0x78f   : > { %11932 = vmatprep.mubr.msk.f32.mxu1 %vm14301_vm1, %v14300_v1 }
 0x792   : > { %11933 = vmatmul.mubr.msk.f32.gmra.mrb[26].mxu1 %vm522_vm2, %v17665_v53 }
 0x793   : > { %11935 = vmatprep.mubr.msk.f32.mxu1 %vm14301_vm1, %v14300_v1 }
 0x796   : > { %11936 = vmatmul.mubr.msk.f32.gmra.mrb[28].mxu1 %vm522_vm2, %v17675_v27 }
 0x797   : > { %11938 = vmatprep.mubr.msk.f32.mxu1 %vm14301_vm1, %v14300_v1 }
 0x79a   : > { %11939 = vmatmul.mubr.msk.f32.gmra.mrb[30].mxu1 %vm522_vm2, %v17685_v57 }
 0x79b   : > { %11941 = vmatprep.mubr.msk.f32.mxu1 %vm14301_vm1, %v14300_v1 }
 0x79e   : > { %11942 = vmatmul.mubr.msk.f32.gmra.mrb[32].mxu1 %vm522_vm2, %v17695_v52 }
 0x79f   : > { %11944 = vmatprep.mubr.msk.f32.mxu1 %vm14301_vm1, %v14300_v1 }
 0x7a2   : > { %11945 = vmatmul.mubr.msk.f32.gmra.mrb[34].mxu1 %vm522_vm2, %v17705_v49 }
 0x7a3   : > { %11947 = vmatprep.mubr.msk.f32.mxu1 %vm14301_vm1, %v14300_v1 }
 0x7a6   : > { %11948 = vmatmul.mubr.msk.f32.gmra.mrb[36].mxu1 %vm522_vm2, %v17715_v55 }
 0x7a7   : > { %11950 = vmatprep.mubr.msk.f32.mxu1 %vm14301_vm1, %v14300_v1 }
 0x7aa   : > { %11951 = vmatmul.mubr.msk.f32.gmra.mrb[38].mxu1 %vm522_vm2, %v17725_v24 }
 0x7ab   : > { %11953 = vmatprep.mubr.msk.f32.mxu1 %vm14301_vm1, %v14300_v1 }
 0x7ae   : > { %11954 = vmatmul.mubr.msk.f32.gmra.mrb[40].mxu1 %vm522_vm2, %v17733_v21 }
 0x7af   : > { %11956 = vmatprep.mubr.msk.f32.mxu1 %vm14301_vm1, %v14300_v1 }
 0x7b2   : > { %11957 = vmatmul.mubr.msk.f32.gmra.mrb[42].mxu1 %vm522_vm2, %v17741_v13 }
 0x7b3   : > { %11959 = vmatprep.mubr.msk.f32.mxu1 %vm14301_vm1, %v14300_v1 }
 0x7b6   : > { %11960 = vmatmul.mubr.msk.f32.gmra.mrb[44].mxu1 %vm522_vm2, %v17749_v18 }
 0x7b7   : > { %11962 = vmatprep.mubr.msk.f32.mxu1 %vm14301_vm1, %v14300_v1 }
 0x7ba   : > { %11963 = vmatmul.mubr.msk.f32.gmra.mrb[46].mxu1 %vm522_vm2, %v17757_v61 }
 0x7bb   : > { %11965 = vmatprep.mubr.msk.f32.mxu1 %vm14301_vm1, %v14300_v1 }
 0x7be   : > { %11966 = vmatmul.mubr.msk.f32.gmra.mrb[48].mxu1 %vm522_vm2, %v17765_v46 }
 0x7bf   : > { %11968 = vmatprep.mubr.msk.f32.mxu1 %vm14301_vm1, %v14300_v1 }
 0x7c2   : > { %11969 = vmatmul.mubr.msk.f32.gmra.mrb[50].mxu1 %vm522_vm2, %v17773_v12 }
 0x7c3   : > { %11971 = vmatprep.mubr.msk.f32.mxu1 %vm14301_vm1, %v14300_v1 }
 0x7c6   : > { %11972 = vmatmul.mubr.msk.f32.gmra.mrb[52].mxu1 %vm522_vm2, %v17781_v41 }
 0x7c7   : > { %11974 = vmatprep.mubr.msk.f32.mxu1 %vm14301_vm1, %v14300_v1 }
 0x7ca   : > { %11975 = vmatmul.mubr.msk.f32.gmra.mrb[54].mxu1 %vm522_vm2, %v17789_v15 }
 0x7cb   : > { %11977 = vmatprep.mubr.msk.f32.mxu1 %vm14301_vm1, %v14300_v1 }
 0x7ce   : > { %11978 = vmatmul.mubr.msk.f32.gmra.mrb[56].mxu1 %vm522_vm2, %v17797_v37 }
 0x7cf   : > { %11980 = vmatprep.mubr.msk.f32.mxu1 %vm14301_vm1, %v14300_v1 }
 0x7d2   : > { %11981 = vmatmul.mubr.msk.f32.gmra.mrb[58].mxu1 %vm522_vm2, %v17805_v58 }
 0x7d3   : > { %11983 = vmatprep.mubr.msk.f32.mxu1 %vm14301_vm1, %v14300_v1 }
 0x7d6   : > { %11984 = vmatmul.mubr.msk.f32.gmra.mrb[60].mxu1 %vm522_vm2, %v17813_v10 }
 0x7d7   : > { %11986 = vmatprep.mubr.msk.f32.mxu1 %vm14301_vm1, %v14300_v1 }
 0x7da   : > { %11987 = vmatmul.mubr.msk.f32.gmra.mrb[62].mxu1 %vm522_vm2, %v17821_v43 }
 0x7db   : > { %11989 = vmatprep.mubr.msk.f32.mxu1 %vm14301_vm1, %v14300_v1 }
 0x7de   : > { %11990 = vmatmul.mubr.msk.f32.gmra.mrb[64].mxu1 %vm522_vm2, %v17829_v45 }
 0x7df   : > { %11992 = vmatprep.mubr.msk.f32.mxu1 %vm14301_vm1, %v14300_v1 }
 0x7e2   : > { %11993 = vmatmul.mubr.msk.f32.gmra.mrb[66].mxu1 %vm522_vm2, %v17837_v0 }
 0x7e3   : > { %11995 = vmatprep.mubr.msk.f32.mxu1 %vm14301_vm1, %v14300_v1 }
 0x7e6   : > { %11996 = vmatmul.mubr.msk.f32.gmra.mrb[68].mxu1 %vm522_vm2, %v17845_v38 }
 0x7e7   : > { %11998 = vmatprep.mubr.msk.f32.mxu1 %vm14301_vm1, %v14300_v1 }
 0x7ea   : > { %11999 = vmatmul.mubr.msk.f32.gmra.mrb[70].mxu1 %vm522_vm2, %v17853_v14 }
 0x7eb   : > { %12001 = vmatprep.mubr.msk.f32.mxu1 %vm14301_vm1, %v14300_v1 }
 0x7ee   : > { %12002 = vmatmul.mubr.msk.f32.gmra.mrb[72].mxu1 %vm522_vm2, %v17861_v39 }
 0x7ef   : > { %12004 = vmatprep.mubr.msk.f32.mxu1 %vm14301_vm1, %v14300_v1 }
 0x7f2   : > { %12005 = vmatmul.mubr.msk.f32.gmra.mrb[74].mxu1 %vm522_vm2, %v17869_v40 }
 0x7f3   : > { %12007 = vmatprep.mubr.msk.f32.mxu1 %vm14301_vm1, %v14300_v1 }
 0x7f6   : > { %12008 = vmatmul.mubr.msk.f32.gmra.mrb[76].mxu1 %vm522_vm2, %v17877_v31 }
 0x7f7   : > { %12010 = vmatprep.mubr.msk.f32.mxu1 %vm14301_vm1, %v14300_v1 }
 0x7fa   : > { %12011 = vmatmul.mubr.msk.f32.gmra.mrb[78].mxu1 %vm522_vm2, %v17885_v62 }
 0x7fb   : > { %12013 = vmatprep.mubr.msk.f32.mxu1 %vm14301_vm1, %v14300_v1 }
 0x7fe   : > { %12014 = vmatmul.mubr.msk.f32.gmra.mrb[80].mxu1 %vm522_vm2, %v17895_v47 }
 0x7ff   : > { %12018 = vmatprep.mubr.msk.f32.mxu1 %vm14301_vm1, %v14300_v1 }
 0x802   : > { %12019 = vmatmul.mubr.msk.f32.vlgmr.msra.gmra.mrb[0].mxu1 %vm522_vm2, %v17555_v28  ;;  %v18056_v28 = vld [vmem:[#allocation2 + $0x150] sm:$0xff] }
 0x803   : > { %12142 = vmatpush3.msk.msra.mxu1 %vm605_vm0, %v9541_v25  ;;  %12021 = vmatprep.mubr.msk.f32.mxu1 %vm14301_vm1, %v14300_v1 }
 0x804   : > { %12266 = vmatprep.subr.mxu1 %v14300_v1 }
 0x806   : > { %12022 = vmatmul.mubr.msk.f32.gmra.mrb[2].mxu1 %vm522_vm2, %v17565_v20  ;;  %v6216_v20 = vrot.slane %v18056_v28, 7 }
 0x807   : > { %12024 = vmatprep.mubr.msk.f32.mxu1 %vm14301_vm1, %v14300_v1 }
 0x80a   : > { %12025 = vmatmul.mubr.msk.f32.gmra.mrb[4].mxu1 %vm522_vm2, %v17575_v17  ;;  %v18063_v17 = vld [vmem:[#allocation2 + $0x158] sm:$0xff] }
 0x80b   : > { %12027 = vmatprep.mubr.msk.f32.mxu1 %vm14301_vm1, %v14300_v1 }
 0x80e   : > { %12028 = vmatmul.mubr.msk.f32.gmra.mrb[6].mxu1 %vm522_vm2, %v17585_v9  ;;  %v6217_v9 = vsel %vm1320_vm5, %v5814_v8, %v6216_v20 }
 0x80f   : > { %12030 = vmatprep.mubr.msk.f32.mxu1 %vm14301_vm1, %v14300_v1 }
 0x812   : > { %12031 = vmatmul.mubr.msk.f32.gmra.mrb[8].mxu1 %vm522_vm2, %v17595_v19  ;;  %v6218_v19 = vrot.slane %v18063_v17, 7 }
 0x813   : > { %12033 = vmatprep.mubr.msk.f32.mxu1 %vm14301_vm1, %v14300_v1 }
 0x816   : > { %12034 = vmatmul.mubr.msk.f32.gmra.mrb[10].mxu1 %vm522_vm2, %v17605_v4  ;;  %v6219_v4 = vsel %vm1320_vm5, %v6216_v20, %v6218_v19 }
 0x817   : > { %12036 = vmatprep.mubr.msk.f32.mxu1 %vm14301_vm1, %v14300_v1 }
 0x81a   : > { %12037 = vmatmul.mubr.msk.f32.gmra.mrb[12].mxu1 %vm522_vm2, %v17615_v6  ;;  %v9584_v6 = vld [vmem:[%s19439_s4 + $0x14] sm:$0xf] }
 0x81b   : > { %12039 = vmatprep.mubr.msk.f32.mxu1 %vm14301_vm1, %v14300_v1 }
 0x81e   : > { %12040 = vmatmul.mubr.msk.f32.gmra.mrb[14].mxu1 %vm522_vm2, %v17625_v16  ;;  %v18155_v16 = vld [vmem:[#allocation2 + $0xa8] sm:$0xff] }
 0x81f   : > { %12042 = vmatprep.mubr.msk.f32.mxu1 %vm14301_vm1, %v14300_v1 }
 0x822   : > { %12043 = vmatmul.mubr.msk.f32.gmra.mrb[16].mxu1 %vm522_vm2, %v17635_v44  ;;  %v18161_v44 = vld [vmem:[#allocation2 + $0xb0] sm:$0xff] }
 0x823   : > { %12045 = vmatprep.mubr.msk.f32.mxu1 %vm14301_vm1, %v14300_v1 }
 0x826   : > { %12046 = vmatmul.mubr.msk.f32.gmra.mrb[18].mxu1 %vm522_vm2, %v17645_v63  ;;  %v18167_v63 = vld [vmem:[#allocation2 + $0xb8] sm:$0xff] }
 0x827   : > { %12048 = vmatprep.mubr.msk.f32.mxu1 %vm14301_vm1, %v14300_v1 }
 0x82a   : > { %12049 = vmatmul.mubr.msk.f32.gmra.mrb[20].mxu1 %vm522_vm2, %v17655_v42  ;;  %v18173_v42 = vld [vmem:[#allocation2 + $0xc0] sm:$0xff] }
 0x82b   : > { %12051 = vmatprep.mubr.msk.f32.mxu1 %vm14301_vm1, %v14300_v1 }
 0x82e   : > { %12052 = vmatmul.mubr.msk.f32.gmra.mrb[22].mxu1 %vm522_vm2, %v17665_v53  ;;  %v18179_v53 = vld [vmem:[#allocation2 + $0xc8] sm:$0xff] }
 0x82f   : > { %12054 = vmatprep.mubr.msk.f32.mxu1 %vm14301_vm1, %v14300_v1 }
 0x832   : > { %12055 = vmatmul.mubr.msk.f32.gmra.mrb[24].mxu1 %vm522_vm2, %v17675_v27  ;;  %v18185_v27 = vld [vmem:[#allocation2 + $0xd0] sm:$0xff] }
 0x833   : > { %12057 = vmatprep.mubr.msk.f32.mxu1 %vm14301_vm1, %v14300_v1 }
 0x836   : > { %12058 = vmatmul.mubr.msk.f32.gmra.mrb[26].mxu1 %vm522_vm2, %v17685_v57  ;;  %v18191_v57 = vld [vmem:[#allocation2 + $0xd8] sm:$0xff] }
 0x837   : > { %12060 = vmatprep.mubr.msk.f32.mxu1 %vm14301_vm1, %v14300_v1 }
 0x83a   : > { %12061 = vmatmul.mubr.msk.f32.gmra.mrb[28].mxu1 %vm522_vm2, %v17695_v52  ;;  %v18197_v52 = vld [vmem:[#allocation2 + $0xe0] sm:$0xff] }
 0x83b   : > { %12063 = vmatprep.mubr.msk.f32.mxu1 %vm14301_vm1, %v14300_v1 }
 0x83e   : > { %12064 = vmatmul.mubr.msk.f32.gmra.mrb[30].mxu1 %vm522_vm2, %v17705_v49  ;;  %v18203_v49 = vld [vmem:[#allocation2 + $0xe8] sm:$0xff] }
 0x83f   : > { %12066 = vmatprep.mubr.msk.f32.mxu1 %vm14301_vm1, %v14300_v1 }
 0x842   : > { %12067 = vmatmul.mubr.msk.f32.gmra.mrb[32].mxu1 %vm522_vm2, %v17715_v55  ;;  %v18209_v55 = vld [vmem:[#allocation2 + $0xf0] sm:$0xff] }
 0x843   : > { %12069 = vmatprep.mubr.msk.f32.mxu1 %vm14301_vm1, %v14300_v1 }
 0x846   : > { %12070 = vmatmul.mubr.msk.f32.gmra.mrb[34].mxu1 %vm522_vm2, %v17725_v24  ;;  %v18215_v24 = vld [vmem:[#allocation2 + $0xf8] sm:$0xff] }
 0x847   : > { %12072 = vmatprep.mubr.msk.f32.mxu1 %vm14301_vm1, %v14300_v1 }
 0x84a   : > { %12073 = vmatmul.mubr.msk.f32.gmra.mrb[36].mxu1 %vm522_vm2, %v17733_v21  ;;  %v18221_v21 = vld [vmem:[#allocation2 + $0x100] sm:$0xff] }
 0x84b   : > { %12075 = vmatprep.mubr.msk.f32.mxu1 %vm14301_vm1, %v14300_v1 }
 0x84e   : > { %12076 = vmatmul.mubr.msk.f32.gmra.mrb[38].mxu1 %vm522_vm2, %v17741_v13  ;;  %v18227_v13 = vld [vmem:[#allocation2 + $0x108] sm:$0xff] }
 0x84f   : > { %12078 = vmatprep.mubr.msk.f32.mxu1 %vm14301_vm1, %v14300_v1 }
 0x852   : > { %12079 = vmatmul.mubr.msk.f32.gmra.mrb[40].mxu1 %vm522_vm2, %v17749_v18  ;;  %v18233_v18 = vld [vmem:[#allocation2 + $0x110] sm:$0xff] }
 0x853   : > { %12081 = vmatprep.mubr.msk.f32.mxu1 %vm14301_vm1, %v14300_v1 }
 0x856   : > { %12082 = vmatmul.mubr.msk.f32.gmra.mrb[42].mxu1 %vm522_vm2, %v17757_v61  ;;  %v18239_v61 = vld [vmem:[#allocation2 + $0x118] sm:$0xff] }
 0x857   : > { %12084 = vmatprep.mubr.msk.f32.mxu1 %vm14301_vm1, %v14300_v1 }
 0x85a   : > { %12085 = vmatmul.mubr.msk.f32.gmra.mrb[44].mxu1 %vm522_vm2, %v17765_v46  ;;  %v18245_v46 = vld [vmem:[#allocation2 + $0x120] sm:$0xff] }
 0x85b   : > { %12087 = vmatprep.mubr.msk.f32.mxu1 %vm14301_vm1, %v14300_v1 }
 0x85e   : > { %12088 = vmatmul.mubr.msk.f32.gmra.mrb[46].mxu1 %vm522_vm2, %v17773_v12  ;;  %v18251_v12 = vld [vmem:[#allocation2 + $0x128] sm:$0xff] }
 0x85f   : > { %12090 = vmatprep.mubr.msk.f32.mxu1 %vm14301_vm1, %v14300_v1 }
 0x862   : > { %12091 = vmatmul.mubr.msk.f32.gmra.mrb[48].mxu1 %vm522_vm2, %v17781_v41  ;;  %v18257_v41 = vld [vmem:[#allocation2 + $0x130] sm:$0xff] }
 0x863   : > { %12093 = vmatprep.mubr.msk.f32.mxu1 %vm14301_vm1, %v14300_v1 }
 0x866   : > { %12094 = vmatmul.mubr.msk.f32.gmra.mrb[50].mxu1 %vm522_vm2, %v17789_v15  ;;  %v18263_v15 = vld [vmem:[#allocation2 + $0x138] sm:$0xff] }
 0x867   : > { %12096 = vmatprep.mubr.msk.f32.mxu1 %vm14301_vm1, %v14300_v1 }
 0x86a   : > { %12097 = vmatmul.mubr.msk.f32.gmra.mrb[52].mxu1 %vm522_vm2, %v17797_v37  ;;  %v18269_v37 = vld [vmem:[#allocation2 + $0x140] sm:$0xff] }
 0x86b   : > { %12099 = vmatprep.mubr.msk.f32.mxu1 %vm14301_vm1, %v14300_v1 }
 0x86e   : > { %12100 = vmatmul.mubr.msk.f32.gmra.mrb[54].mxu1 %vm522_vm2, %v17805_v58  ;;  %v6939_v58 = vrot.slane %v17557_v56, 1 }
 0x86f   : > { %12102 = vmatprep.mubr.msk.f32.mxu1 %vm14301_vm1, %v14300_v1 }
 0x872   : > { %12103 = vmatmul.mubr.msk.f32.gmra.mrb[56].mxu1 %vm522_vm2, %v17813_v10  ;;  %v6938_v10 = vrot.slane %v17545_v54, 1 }
 0x873   : > { %12105 = vmatprep.mubr.msk.f32.mxu1 %vm14301_vm1, %v14300_v1 }
 0x876   : > { %12106 = vmatmul.mubr.msk.f32.gmra.mrb[58].mxu1 %vm522_vm2, %v17821_v43  ;;  %v6940_v43 = vsel %vm2526_vm6, %v6938_v10, %v6939_v58  ;;  %v6979_v10 = vrot.slane %v18173_v42, 1 }
 0x877   : > { %12108 = vmatprep.mubr.msk.f32.mxu1 %vm14301_vm1, %v14300_v1 }
 0x87a   : > { %12109 = vmatmul.mubr.msk.f32.gmra.mrb[60].mxu1 %vm522_vm2, %v17829_v45  ;;  %v6941_v45 = vrot.slane %v17567_v2, 1 }
 0x87b   : > { %12111 = vmatprep.mubr.msk.f32.mxu1 %vm14301_vm1, %v14300_v1 }
 0x87e   : > { %12112 = vmatmul.mubr.msk.f32.gmra.mrb[62].mxu1 %vm522_vm2, %v17837_v0  ;;  %v6945_v0 = vrot.slane %v17587_v11, 1 }
 0x87f   : > { %12114 = vmatprep.mubr.msk.f32.mxu1 %vm14301_vm1, %v14300_v1 }
 0x882   : > { %12115 = vmatmul.mubr.msk.f32.gmra.mrb[64].mxu1 %vm522_vm2, %v17845_v38 }
 0x883   : > { %12117 = vmatprep.mubr.msk.f32.mxu1 %vm14301_vm1, %v14300_v1 }
 0x886   : > { %12118 = vmatmul.mubr.msk.f32.gmra.mrb[66].mxu1 %vm522_vm2, %v17853_v14 }
 0x887   : > { %12120 = vmatprep.mubr.msk.f32.mxu1 %vm14301_vm1, %v14300_v1 }
 0x88a   : > { %12121 = vmatmul.mubr.msk.f32.gmra.mrb[68].mxu1 %vm522_vm2, %v17861_v39 }
 0x88b   : > { %12123 = vmatprep.mubr.msk.f32.mxu1 %vm14301_vm1, %v14300_v1 }
 0x88e   : > { %12124 = vmatmul.mubr.msk.f32.gmra.mrb[70].mxu1 %vm522_vm2, %v17869_v40 }
 0x88f   : > { %12126 = vmatprep.mubr.msk.f32.mxu1 %vm14301_vm1, %v14300_v1 }
 0x892   : > { %12127 = vmatmul.mubr.msk.f32.gmra.mrb[72].mxu1 %vm522_vm2, %v17877_v31 }
 0x893   : > { %12129 = vmatprep.mubr.msk.f32.mxu1 %vm14301_vm1, %v14300_v1 }
 0x896   : > { %12130 = vmatmul.mubr.msk.f32.gmra.mrb[74].mxu1 %vm522_vm2, %v17885_v62 }
 0x897   : > { %12132 = vmatprep.mubr.msk.f32.mxu1 %vm14301_vm1, %v14300_v1 }
 0x89a   : > { %12133 = vmatmul.mubr.msk.f32.gmra.mrb[76].mxu1 %vm522_vm2, %v17895_v47 }
 0x89b   : > { %12135 = vmatprep.mubr.msk.f32.mxu1 %vm14301_vm1, %v14300_v1 }
 0x89e   : > { %12136 = vmatmul.mubr.msk.f32.gmra.mrb[78].mxu1 %vm522_vm2, %v6217_v9 }
 0x89f   : > { %12138 = vmatprep.mubr.msk.f32.mxu1 %vm14301_vm1, %v14300_v1 }
 0x8a2   : > { %12139 = vmatmul.mubr.msk.f32.gmra.mrb[80].mxu1 %vm522_vm2, %v6219_v4 }
 0x8a3   : > { %12143 = vmatprep.mubr.msk.f32.mxu1 %vm14301_vm1, %v14300_v1 }
 0x8a6   : > { %12144 = vmatmul.mubr.msk.f32.vlgmr.msra.gmra.mrb[0].mxu1 %vm522_vm2, %v17545_v54  ;;  %v6943_v54 = vrot.slane %v17577_v5, 1 }
 0x8a7   : > { %12267 = vmatpush3.msk.msra.mxu1 %vm605_vm0, %v9584_v6  ;;  %12146 = vmatprep.mubr.msk.f32.mxu1 %vm14301_vm1, %v14300_v1  ;;  %v6977_v6 = vrot.slane %v18167_v63, 1 }
 0x8a8   : > { %12391 = vmatprep.subr.mxu1 %v14300_v1  ;;  %v18313_v38 = vsel %vm2526_vm6, %v6943_v54, %v6945_v0 }
 0x8aa   : > { %12147 = vmatmul.mubr.msk.f32.gmra.mrb[2].mxu1 %vm522_vm2, %v17557_v56  ;;  %v6942_v56 = vsel %vm2526_vm6, %v6939_v58, %v6941_v45 }
 0x8ab   : > { %12149 = vmatprep.mubr.msk.f32.mxu1 %vm14301_vm1, %v14300_v1 }
 0x8ae   : > { %12150 = vmatmul.mubr.msk.f32.gmra.mrb[4].mxu1 %vm522_vm2, %v17567_v2  ;;  %v18305_v2 = vsel %vm2526_vm6, %v6941_v45, %v6943_v54 }
 0x8af   : > { %12152 = vmatprep.mubr.msk.f32.mxu1 %vm14301_vm1, %v14300_v1 }
 0x8b2   : > { %12153 = vmatmul.mubr.msk.f32.gmra.mrb[6].mxu1 %vm522_vm2, %v17577_v5  ;;  %v6947_v5 = vrot.slane %v17597_v22, 1 }
 0x8b3   : > { %12155 = vmatprep.mubr.msk.f32.mxu1 %vm14301_vm1, %v14300_v1 }
 0x8b4   : > { %v18321_v14 = vsel %vm2526_vm6, %v6945_v0, %v6947_v5  ;;  %v6985_v0 = vrot.slane %v18191_v57, 1 }
 0x8b6   : > { %12156 = vmatmul.mubr.msk.f32.gmra.mrb[8].mxu1 %vm522_vm2, %v17587_v11  ;;  %v6949_v11 = vrot.slane %v17607_v48, 1 }
 0x8b7   : > { %12158 = vmatprep.mubr.msk.f32.mxu1 %vm14301_vm1, %v14300_v1 }
 0x8b8   : > { %v18329_v39 = vsel %vm2526_vm6, %v6947_v5, %v6949_v11 }
 0x8ba   : > { %12159 = vmatmul.mubr.msk.f32.gmra.mrb[10].mxu1 %vm522_vm2, %v17597_v22  ;;  %v6951_v22 = vrot.slane %v17617_v36, 1 }
 0x8bb   : > { %12161 = vmatprep.mubr.msk.f32.mxu1 %vm14301_vm1, %v14300_v1 }
 0x8bc   : > { %v18337_v51 = vsel %vm2526_vm6, %v6949_v11, %v6951_v22  ;;  %v6987_v11 = vrot.slane %v18197_v52, 1 }
 0x8be   : > { %12162 = vmatmul.mubr.msk.f32.gmra.mrb[12].mxu1 %vm522_vm2, %v17607_v48  ;;  %v6953_v48 = vrot.slane %v17627_v23, 1 }
 0x8bf   : > { %12164 = vmatprep.mubr.msk.f32.mxu1 %vm14301_vm1, %v14300_v1 }
 0x8c0   : > { %v18345_v40 = vsel %vm2526_vm6, %v6951_v22, %v6953_v48  ;;  %v18481_v22 = vsel %vm2526_vm6, %v6985_v0, %v6987_v11 }
 0x8c2   : > { %12165 = vmatmul.mubr.msk.f32.gmra.mrb[14].mxu1 %vm522_vm2, %v17617_v36  ;;  %v6955_v36 = vrot.slane %v17637_v60, 1 }
 0x8c3   : > { %12167 = vmatprep.mubr.msk.f32.mxu1 %vm14301_vm1, %v14300_v1 }
 0x8c4   : > { %v18353_v29 = vsel %vm2526_vm6, %v6953_v48, %v6955_v36  ;;  %v6989_v48 = vrot.slane %v18203_v49, 1 }
 0x8c6   : > { %12168 = vmatmul.mubr.msk.f32.gmra.mrb[16].mxu1 %vm522_vm2, %v17627_v23  ;;  %v6957_v23 = vrot.slane %v17647_v50, 1 }
 0x8c7   : > { %12170 = vmatprep.mubr.msk.f32.mxu1 %vm14301_vm1, %v14300_v1 }
 0x8c8   : > { %v18361_v31 = vsel %vm2526_vm6, %v6955_v36, %v6957_v23  ;;  %v18489_v36 = vsel %vm2526_vm6, %v6987_v11, %v6989_v48 }
 0x8ca   : > { %12171 = vmatmul.mubr.msk.f32.gmra.mrb[18].mxu1 %vm522_vm2, %v17637_v60  ;;  %v6959_v60 = vrot.slane %v17657_v32, 1 }
 0x8cb   : > { %12173 = vmatprep.mubr.msk.f32.mxu1 %vm14301_vm1, %v14300_v1 }
 0x8cc   : > { %v18369_v34 = vsel %vm2526_vm6, %v6957_v23, %v6959_v60  ;;  %v6991_v23 = vrot.slane %v18209_v55, 1 }
 0x8ce   : > { %12174 = vmatmul.mubr.msk.f32.gmra.mrb[20].mxu1 %vm522_vm2, %v17647_v50  ;;  %v6961_v50 = vrot.slane %v17667_v59, 1 }
 0x8cf   : > { %12176 = vmatprep.mubr.msk.f32.mxu1 %vm14301_vm1, %v14300_v1 }
 0x8d0   : > { %v18377_v62 = vsel %vm2526_vm6, %v6959_v60, %v6961_v50  ;;  %v18497_v60 = vsel %vm2526_vm6, %v6989_v48, %v6991_v23  ;;  %v7007_v48 = vrot.slane %v18257_v41, 1 }
 0x8d2   : > { %12177 = vmatmul.mubr.msk.f32.gmra.mrb[22].mxu1 %vm522_vm2, %v17657_v32  ;;  %v6963_v32 = vrot.slane %v17677_v33, 1 }
 0x8d3   : > { %12179 = vmatprep.mubr.msk.f32.mxu1 %vm14301_vm1, %v14300_v1 }
 0x8d4   : > { %v18385_v8 = vsel %vm2526_vm6, %v6961_v50, %v6963_v32  ;;  %v6993_v50 = vrot.slane %v18215_v24, 1 }
 0x8d6   : > { %12180 = vmatmul.mubr.msk.f32.gmra.mrb[24].mxu1 %vm522_vm2, %v17667_v59  ;;  %v6965_v59 = vrot.slane %v17687_v35, 1 }
 0x8d7   : > { %12182 = vmatprep.mubr.msk.f32.mxu1 %vm14301_vm1, %v14300_v1 }
 0x8d8   : > { %v18393_v47 = vsel %vm2526_vm6, %v6963_v32, %v6965_v59  ;;  %v18505_v32 = vsel %vm2526_vm6, %v6991_v23, %v6993_v50 }
 0x8da   : > { %12183 = vmatmul.mubr.msk.f32.gmra.mrb[26].mxu1 %vm522_vm2, %v17677_v33  ;;  %v6967_v33 = vrot.slane %v17697_v7, 1 }
 0x8db   : > { %12185 = vmatprep.mubr.msk.f32.mxu1 %vm14301_vm1, %v14300_v1 }
 0x8dc   : > { %v18401_v25 = vsel %vm2526_vm6, %v6965_v59, %v6967_v33  ;;  %v6995_v59 = vrot.slane %v18221_v21, 1 }
 0x8de   : > { %12186 = vmatmul.mubr.msk.f32.gmra.mrb[28].mxu1 %vm522_vm2, %v17687_v35  ;;  %v6969_v35 = vrot.slane %v17707_v30, 1 }
 0x8df   : > { %12188 = vmatprep.mubr.msk.f32.mxu1 %vm14301_vm1, %v14300_v1 }
 0x8e0   : > { %v18409_v20 = vsel %vm2526_vm6, %v6967_v33, %v6969_v35  ;;  %v18513_v33 = vsel %vm2526_vm6, %v6993_v50, %v6995_v59  ;;  %v7009_v50 = vrot.slane %v18263_v15, 1 }
 0x8e2   : > { %12189 = vmatmul.mubr.msk.f32.gmra.mrb[30].mxu1 %vm522_vm2, %v17697_v7  ;;  %v6971_v7 = vrot.slane %v17717_v3, 1 }
 0x8e3   : > { %12191 = vmatprep.mubr.msk.f32.mxu1 %vm14301_vm1, %v14300_v1 }
 0x8e4   : > { %v18417_v9 = vsel %vm2526_vm6, %v6969_v35, %v6971_v7  ;;  %v6997_v35 = vrot.slane %v18227_v13, 1 }
 0x8e6   : > { %12192 = vmatmul.mubr.msk.f32.gmra.mrb[32].mxu1 %vm522_vm2, %v17707_v30  ;;  %v6973_v30 = vrot.slane %v18155_v16, 1 }
 0x8e7   : > { %12194 = vmatprep.mubr.msk.f32.mxu1 %vm14301_vm1, %v14300_v1 }
 0x8e8   : > { %v18425_v19 = vsel %vm2526_vm6, %v6971_v7, %v6973_v30  ;;  %v18521_v7 = vsel %vm2526_vm6, %v6995_v59, %v6997_v35  ;;  %v18569_v59 = vsel %vm2526_vm6, %v7007_v48, %v7009_v50 }
 0x8ea   : > { %12195 = vmatmul.mubr.msk.f32.gmra.mrb[34].mxu1 %vm522_vm2, %v17717_v3  ;;  %v6975_v3 = vrot.slane %v18161_v44, 1 }
 0x8eb   : > { %12197 = vmatprep.mubr.msk.f32.mxu1 %vm14301_vm1, %v14300_v1 }
 0x8ec   : > { %v18433_v4 = vsel %vm2526_vm6, %v6973_v30, %v6975_v3  ;;  %v18441_v58 = vsel %vm2526_vm6, %v6975_v3, %v6977_v6  ;;  %v6999_v30 = vrot.slane %v18233_v18, 1 }
 0x8ee   : > { %12198 = vmatmul.mubr.msk.f32.gmra.mrb[36].mxu1 %vm522_vm2, %v18155_v16  ;;  %v18529_v3 = vsel %vm2526_vm6, %v6997_v35, %v6999_v30  ;;  %v7011_v35 = vrot.slane %v18269_v37, 1 }
 0x8ef   : > { %12200 = vmatprep.mubr.msk.f32.mxu1 %vm14301_vm1, %v14300_v1 }
 0x8f2   : > { %12201 = vmatmul.mubr.msk.f32.gmra.mrb[38].mxu1 %vm522_vm2, %v18161_v44 }
 0x8f3   : > { %12203 = vmatprep.mubr.msk.f32.mxu1 %vm14301_vm1, %v14300_v1 }
 0x8f6   : > { %12204 = vmatmul.mubr.msk.f32.gmra.mrb[40].mxu1 %vm522_vm2, %v18167_v63 }
 0x8f7   : > { %12206 = vmatprep.mubr.msk.f32.mxu1 %vm14301_vm1, %v14300_v1 }
 0x8fa   : > { %12207 = vmatmul.mubr.msk.f32.gmra.mrb[42].mxu1 %vm522_vm2, %v18173_v42 }
 0x8fb   : > { %12209 = vmatprep.mubr.msk.f32.mxu1 %vm14301_vm1, %v14300_v1 }
 0x8fe   : > { %12210 = vmatmul.mubr.msk.f32.gmra.mrb[44].mxu1 %vm522_vm2, %v18179_v53 }
 0x8ff   : > { %12212 = vmatprep.mubr.msk.f32.mxu1 %vm14301_vm1, %v14300_v1 }
 0x902   : > { %12213 = vmatmul.mubr.msk.f32.gmra.mrb[46].mxu1 %vm522_vm2, %v18185_v27 }
 0x903   : > { %12215 = vmatprep.mubr.msk.f32.mxu1 %vm14301_vm1, %v14300_v1 }
 0x906   : > { %12216 = vmatmul.mubr.msk.f32.gmra.mrb[48].mxu1 %vm522_vm2, %v18191_v57 }
 0x907   : > { %12218 = vmatprep.mubr.msk.f32.mxu1 %vm14301_vm1, %v14300_v1 }
 0x90a   : > { %12219 = vmatmul.mubr.msk.f32.gmra.mrb[50].mxu1 %vm522_vm2, %v18197_v52 }
 0x90b   : > { %12221 = vmatprep.mubr.msk.f32.mxu1 %vm14301_vm1, %v14300_v1 }
 0x90e   : > { %12222 = vmatmul.mubr.msk.f32.gmra.mrb[52].mxu1 %vm522_vm2, %v18203_v49 }
 0x90f   : > { %12224 = vmatprep.mubr.msk.f32.mxu1 %vm14301_vm1, %v14300_v1 }
 0x912   : > { %12225 = vmatmul.mubr.msk.f32.gmra.mrb[54].mxu1 %vm522_vm2, %v18209_v55 }
 0x913   : > { %12227 = vmatprep.mubr.msk.f32.mxu1 %vm14301_vm1, %v14300_v1 }
 0x916   : > { %12228 = vmatmul.mubr.msk.f32.gmra.mrb[56].mxu1 %vm522_vm2, %v18215_v24 }
 0x917   : > { %12230 = vmatprep.mubr.msk.f32.mxu1 %vm14301_vm1, %v14300_v1 }
 0x91a   : > { %12231 = vmatmul.mubr.msk.f32.gmra.mrb[58].mxu1 %vm522_vm2, %v18221_v21 }
 0x91b   : > { %12233 = vmatprep.mubr.msk.f32.mxu1 %vm14301_vm1, %v14300_v1 }
 0x91e   : > { %12234 = vmatmul.mubr.msk.f32.gmra.mrb[60].mxu1 %vm522_vm2, %v18227_v13 }
 0x91f   : > { %12236 = vmatprep.mubr.msk.f32.mxu1 %vm14301_vm1, %v14300_v1 }
 0x922   : > { %12237 = vmatmul.mubr.msk.f32.gmra.mrb[62].mxu1 %vm522_vm2, %v18233_v18 }
 0x923   : > { %12239 = vmatprep.mubr.msk.f32.mxu1 %vm14301_vm1, %v14300_v1 }
 0x926   : > { %12240 = vmatmul.mubr.msk.f32.gmra.mrb[64].mxu1 %vm522_vm2, %v18239_v61 }
 0x927   : > { %12242 = vmatprep.mubr.msk.f32.mxu1 %vm14301_vm1, %v14300_v1 }
 0x92a   : > { %12243 = vmatmul.mubr.msk.f32.gmra.mrb[66].mxu1 %vm522_vm2, %v18245_v46 }
 0x92b   : > { %12245 = vmatprep.mubr.msk.f32.mxu1 %vm14301_vm1, %v14300_v1 }
 0x92e   : > { %12246 = vmatmul.mubr.msk.f32.gmra.mrb[68].mxu1 %vm522_vm2, %v18251_v12 }
 0x92f   : > { %12248 = vmatprep.mubr.msk.f32.mxu1 %vm14301_vm1, %v14300_v1 }
 0x932   : > { %12249 = vmatmul.mubr.msk.f32.gmra.mrb[70].mxu1 %vm522_vm2, %v18257_v41 }
 0x933   : > { %12251 = vmatprep.mubr.msk.f32.mxu1 %vm14301_vm1, %v14300_v1 }
 0x936   : > { %12252 = vmatmul.mubr.msk.f32.gmra.mrb[72].mxu1 %vm522_vm2, %v18263_v15 }
 0x937   : > { %12254 = vmatprep.mubr.msk.f32.mxu1 %vm14301_vm1, %v14300_v1 }
 0x93a   : > { %12255 = vmatmul.mubr.msk.f32.gmra.mrb[74].mxu1 %vm522_vm2, %v18269_v37 }
 0x93b   : > { %12257 = vmatprep.mubr.msk.f32.mxu1 %vm14301_vm1, %v14300_v1 }
 0x93e   : > { %12258 = vmatmul.mubr.msk.f32.gmra.mrb[76].mxu1 %vm522_vm2, %v17305_v26  ;;  %v9627_v26 = vld [vmem:[%s19439_s4 + $0x18] sm:$0xf] }
 0x93f   : > { %12260 = vmatprep.mubr.msk.f32.mxu1 %vm14301_vm1, %v14300_v1 }
 0x942   : > { %12261 = vmatmul.mubr.msk.f32.gmra.mrb[78].mxu1 %vm522_vm2, %v18056_v28 }
 0x943   : > { %12263 = vmatprep.mubr.msk.f32.mxu1 %vm14301_vm1, %v14300_v1 }
 0x946   : > { %12264 = vmatmul.mubr.msk.f32.gmra.mrb[80].mxu1 %vm522_vm2, %v18063_v17 }
 0x947   : > { %12268 = vmatprep.mubr.msk.f32.mxu1 %vm14301_vm1, %v14300_v1 }
 0x94a   : > { %12269 = vmatmul.mubr.msk.f32.vlgmr.msra.gmra.mrb[0].mxu1 %vm522_vm2, %v6940_v43  ;;  %v6981_v43 = vrot.slane %v18179_v53, 1 }
 0x94b   : > { %12392 = vmatpush3.msk.msra.mxu1 %vm605_vm0, %v9627_v26  ;;  %12271 = vmatprep.mubr.msk.f32.mxu1 %vm14301_vm1, %v14300_v1  ;;  %v18449_v26 = vsel %vm2526_vm6, %v6977_v6, %v6979_v10  ;;  %v7001_v6 = vrot.slane %v18239_v61, 1 }
 0x94c   : > { %12516 = vmatprep.subr.mxu1 %v14300_v1  ;;  %v18457_v45 = vsel %vm2526_vm6, %v6979_v10, %v6981_v43 }
 0x94d   : > { %v18537_v10 = vsel %vm2526_vm6, %v6999_v30, %v7001_v6  ;;  %v18577_v30 = vsel %vm2526_vm6, %v7009_v50, %v7011_v35 }
 0x94e   : > { %12272 = vmatmul.mubr.msk.f32.gmra.mrb[2].mxu1 %vm522_vm2, %v6942_v56  ;;  %v6983_v56 = vrot.slane %v18185_v27, 1 }
 0x94f   : > { %12274 = vmatprep.mubr.msk.f32.mxu1 %vm14301_vm1, %v14300_v1 }
 0x950   : > { %v18465_v54 = vsel %vm2526_vm6, %v6981_v43, %v6983_v56  ;;  %v18473_v5 = vsel %vm2526_vm6, %v6983_v56, %v6985_v0  ;;  %v7003_v43 = vrot.slane %v18245_v46, 1  ;;  %v7005_v0 = vrot.slane %v18251_v12, 1 }
 0x952   : > { %12275 = vmatmul.mubr.msk.f32.gmra.mrb[4].mxu1 %vm522_vm2, %v18305_v2  ;;  %v18545_v56 = vsel %vm2526_vm6, %v7001_v6, %v7003_v43  ;;  %v18553_v11 = vsel %vm2526_vm6, %v7003_v43, %v7005_v0  ;;  %v18561_v23 = vsel %vm2526_vm6, %v7005_v0, %v7007_v48  ;;  %v18579_v6 = vld [vmem:[#allocation2 + $0x148] sm:$0xff]  ;;  %v7015_v48 = vrot.slane %v18056_v28, 1 }
 0x953   : > { %12277 = vmatprep.mubr.msk.f32.mxu1 %vm14301_vm1, %v14300_v1  ;;  %19497 = vst [vmem:[#allocation3_spill] sm:$0xff] %v18579_v6  ;;  %v7013_v43 = vrot.slane %v18579_v6, 1  ;;  %v18598_v6 = vrot.slane %v18063_v17, 1 }
 0x955   : > { %v18587_v0 = vsel %vm2526_vm6, %v7011_v35, %v7013_v43  ;;  %v18595_v50 = vsel %vm2526_vm6, %v7013_v43, %v7015_v48  ;;  %v18606_v35 = vsel %vm2526_vm6, %v7015_v48, %v18598_v6  ;;  %v9670_v43 = vld [vmem:[%s19439_s4 + $0x1c] sm:$0xf] }
 0x956   : > { %12278 = vmatmul.mubr.msk.f32.gmra.mrb[6].mxu1 %vm522_vm2, %v18313_v38 }
 0x957   : > { %12280 = vmatprep.mubr.msk.f32.mxu1 %vm14301_vm1, %v14300_v1 }
 0x95a   : > { %12281 = vmatmul.mubr.msk.f32.gmra.mrb[8].mxu1 %vm522_vm2, %v18321_v14 }
 0x95b   : > { %12283 = vmatprep.mubr.msk.f32.mxu1 %vm14301_vm1, %v14300_v1 }
 0x95e   : > { %12284 = vmatmul.mubr.msk.f32.gmra.mrb[10].mxu1 %vm522_vm2, %v18329_v39 }
 0x95f   : > { %12286 = vmatprep.mubr.msk.f32.mxu1 %vm14301_vm1, %v14300_v1 }
 0x962   : > { %12287 = vmatmul.mubr.msk.f32.gmra.mrb[12].mxu1 %vm522_vm2, %v18337_v51 }
 0x963   : > { %12289 = vmatprep.mubr.msk.f32.mxu1 %vm14301_vm1, %v14300_v1 }
 0x966   : > { %12290 = vmatmul.mubr.msk.f32.gmra.mrb[14].mxu1 %vm522_vm2, %v18345_v40 }
 0x967   : > { %12292 = vmatprep.mubr.msk.f32.mxu1 %vm14301_vm1, %v14300_v1 }
 0x96a   : > { %12293 = vmatmul.mubr.msk.f32.gmra.mrb[16].mxu1 %vm522_vm2, %v18353_v29 }
 0x96b   : > { %12295 = vmatprep.mubr.msk.f32.mxu1 %vm14301_vm1, %v14300_v1 }
 0x96e   : > { %12296 = vmatmul.mubr.msk.f32.gmra.mrb[18].mxu1 %vm522_vm2, %v18361_v31 }
 0x96f   : > { %12298 = vmatprep.mubr.msk.f32.mxu1 %vm14301_vm1, %v14300_v1 }
 0x972   : > { %12299 = vmatmul.mubr.msk.f32.gmra.mrb[20].mxu1 %vm522_vm2, %v18369_v34 }
 0x973   : > { %12301 = vmatprep.mubr.msk.f32.mxu1 %vm14301_vm1, %v14300_v1 }
 0x976   : > { %12302 = vmatmul.mubr.msk.f32.gmra.mrb[22].mxu1 %vm522_vm2, %v18377_v62 }
 0x977   : > { %12304 = vmatprep.mubr.msk.f32.mxu1 %vm14301_vm1, %v14300_v1 }
 0x97a   : > { %12305 = vmatmul.mubr.msk.f32.gmra.mrb[24].mxu1 %vm522_vm2, %v18385_v8 }
 0x97b   : > { %12307 = vmatprep.mubr.msk.f32.mxu1 %vm14301_vm1, %v14300_v1 }
 0x97e   : > { %12308 = vmatmul.mubr.msk.f32.gmra.mrb[26].mxu1 %vm522_vm2, %v18393_v47 }
 0x97f   : > { %12310 = vmatprep.mubr.msk.f32.mxu1 %vm14301_vm1, %v14300_v1 }
 0x982   : > { %12311 = vmatmul.mubr.msk.f32.gmra.mrb[28].mxu1 %vm522_vm2, %v18401_v25 }
 0x983   : > { %12313 = vmatprep.mubr.msk.f32.mxu1 %vm14301_vm1, %v14300_v1 }
 0x986   : > { %12314 = vmatmul.mubr.msk.f32.gmra.mrb[30].mxu1 %vm522_vm2, %v18409_v20 }
 0x987   : > { %12316 = vmatprep.mubr.msk.f32.mxu1 %vm14301_vm1, %v14300_v1 }
 0x98a   : > { %12317 = vmatmul.mubr.msk.f32.gmra.mrb[32].mxu1 %vm522_vm2, %v18417_v9 }
 0x98b   : > { %12319 = vmatprep.mubr.msk.f32.mxu1 %vm14301_vm1, %v14300_v1 }
 0x98e   : > { %12320 = vmatmul.mubr.msk.f32.gmra.mrb[34].mxu1 %vm522_vm2, %v18425_v19 }
 0x98f   : > { %12322 = vmatprep.mubr.msk.f32.mxu1 %vm14301_vm1, %v14300_v1 }
 0x992   : > { %12323 = vmatmul.mubr.msk.f32.gmra.mrb[36].mxu1 %vm522_vm2, %v18433_v4 }
 0x993   : > { %12325 = vmatprep.mubr.msk.f32.mxu1 %vm14301_vm1, %v14300_v1 }
 0x996   : > { %12326 = vmatmul.mubr.msk.f32.gmra.mrb[38].mxu1 %vm522_vm2, %v18441_v58 }
 0x997   : > { %12328 = vmatprep.mubr.msk.f32.mxu1 %vm14301_vm1, %v14300_v1 }
 0x99a   : > { %12329 = vmatmul.mubr.msk.f32.gmra.mrb[40].mxu1 %vm522_vm2, %v18449_v26 }
 0x99b   : > { %12331 = vmatprep.mubr.msk.f32.mxu1 %vm14301_vm1, %v14300_v1 }
 0x99e   : > { %12332 = vmatmul.mubr.msk.f32.gmra.mrb[42].mxu1 %vm522_vm2, %v18457_v45 }
 0x99f   : > { %12334 = vmatprep.mubr.msk.f32.mxu1 %vm14301_vm1, %v14300_v1 }
 0x9a2   : > { %12335 = vmatmul.mubr.msk.f32.gmra.mrb[44].mxu1 %vm522_vm2, %v18465_v54 }
 0x9a3   : > { %12337 = vmatprep.mubr.msk.f32.mxu1 %vm14301_vm1, %v14300_v1 }
 0x9a6   : > { %12338 = vmatmul.mubr.msk.f32.gmra.mrb[46].mxu1 %vm522_vm2, %v18473_v5 }
 0x9a7   : > { %12340 = vmatprep.mubr.msk.f32.mxu1 %vm14301_vm1, %v14300_v1 }
 0x9aa   : > { %12341 = vmatmul.mubr.msk.f32.gmra.mrb[48].mxu1 %vm522_vm2, %v18481_v22 }
 0x9ab   : > { %12343 = vmatprep.mubr.msk.f32.mxu1 %vm14301_vm1, %v14300_v1 }
 0x9ae   : > { %12344 = vmatmul.mubr.msk.f32.gmra.mrb[50].mxu1 %vm522_vm2, %v18489_v36 }
 0x9af   : > { %12346 = vmatprep.mubr.msk.f32.mxu1 %vm14301_vm1, %v14300_v1 }
 0x9b2   : > { %12347 = vmatmul.mubr.msk.f32.gmra.mrb[52].mxu1 %vm522_vm2, %v18497_v60 }
 0x9b3   : > { %12349 = vmatprep.mubr.msk.f32.mxu1 %vm14301_vm1, %v14300_v1 }
 0x9b6   : > { %12350 = vmatmul.mubr.msk.f32.gmra.mrb[54].mxu1 %vm522_vm2, %v18505_v32 }
 0x9b7   : > { %12352 = vmatprep.mubr.msk.f32.mxu1 %vm14301_vm1, %v14300_v1 }
 0x9ba   : > { %12353 = vmatmul.mubr.msk.f32.gmra.mrb[56].mxu1 %vm522_vm2, %v18513_v33 }
 0x9bb   : > { %12355 = vmatprep.mubr.msk.f32.mxu1 %vm14301_vm1, %v14300_v1 }
 0x9be   : > { %12356 = vmatmul.mubr.msk.f32.gmra.mrb[58].mxu1 %vm522_vm2, %v18521_v7 }
 0x9bf   : > { %12358 = vmatprep.mubr.msk.f32.mxu1 %vm14301_vm1, %v14300_v1 }
 0x9c2   : > { %12359 = vmatmul.mubr.msk.f32.gmra.mrb[60].mxu1 %vm522_vm2, %v18529_v3 }
 0x9c3   : > { %12361 = vmatprep.mubr.msk.f32.mxu1 %vm14301_vm1, %v14300_v1 }
 0x9c6   : > { %12362 = vmatmul.mubr.msk.f32.gmra.mrb[62].mxu1 %vm522_vm2, %v18537_v10 }
 0x9c7   : > { %12364 = vmatprep.mubr.msk.f32.mxu1 %vm14301_vm1, %v14300_v1 }
 0x9ca   : > { %12365 = vmatmul.mubr.msk.f32.gmra.mrb[64].mxu1 %vm522_vm2, %v18545_v56 }
 0x9cb   : > { %12367 = vmatprep.mubr.msk.f32.mxu1 %vm14301_vm1, %v14300_v1 }
 0x9ce   : > { %12368 = vmatmul.mubr.msk.f32.gmra.mrb[66].mxu1 %vm522_vm2, %v18553_v11 }
 0x9cf   : > { %12370 = vmatprep.mubr.msk.f32.mxu1 %vm14301_vm1, %v14300_v1 }
 0x9d2   : > { %12371 = vmatmul.mubr.msk.f32.gmra.mrb[68].mxu1 %vm522_vm2, %v18561_v23 }
 0x9d3   : > { %12373 = vmatprep.mubr.msk.f32.mxu1 %vm14301_vm1, %v14300_v1 }
 0x9d6   : > { %12374 = vmatmul.mubr.msk.f32.gmra.mrb[70].mxu1 %vm522_vm2, %v18569_v59 }
 0x9d7   : > { %12376 = vmatprep.mubr.msk.f32.mxu1 %vm14301_vm1, %v14300_v1 }
 0x9da   : > { %12377 = vmatmul.mubr.msk.f32.gmra.mrb[72].mxu1 %vm522_vm2, %v18577_v30 }
 0x9db   : > { %12379 = vmatprep.mubr.msk.f32.mxu1 %vm14301_vm1, %v14300_v1 }
 0x9de   : > { %12380 = vmatmul.mubr.msk.f32.gmra.mrb[74].mxu1 %vm522_vm2, %v18587_v0 }
 0x9df   : > { %12382 = vmatprep.mubr.msk.f32.mxu1 %vm14301_vm1, %v14300_v1 }
 0x9e2   : > { %12383 = vmatmul.mubr.msk.f32.gmra.mrb[76].mxu1 %vm522_vm2, %v18595_v50 }
 0x9e3   : > { %12385 = vmatprep.mubr.msk.f32.mxu1 %vm14301_vm1, %v14300_v1 }
 0x9e6   : > { %12386 = vmatmul.mubr.msk.f32.gmra.mrb[78].mxu1 %vm522_vm2, %v18606_v35 }
 0x9e7   : > { %12388 = vmatprep.mubr.msk.f32.mxu1 %vm14301_vm1, %v14300_v1 }
 0x9ea   : > { %12389 = vmatmul.mubr.msk.f32.gmra.mrb[80].mxu1 %vm522_vm2, %v18598_v6 }
 0x9eb   : > { %12393 = vmatprep.mubr.msk.f32.mxu1 %vm14301_vm1, %v14300_v1 }
 0x9ee   : > { %12394 = vmatmul.mubr.msk.f32.vlgmr.msra.gmra.mrb[0].mxu1 %vm522_vm2, %v18305_v2  ;;  %v18767_v2 = vld [vmem:[#allocation2 + $0x160] sm:$0xff] }
 0x9ef   : > { %12517 = vmatpush3.msk.msra.mxu1 %vm605_vm0, %v9670_v43  ;;  %12396 = vmatprep.mubr.msk.f32.mxu1 %vm14301_vm1, %v14300_v1 }
 0x9f0   : > { %12641 = vmatprep.subr.mxu1 %v14300_v1 }
 0x9f2   : > { %12397 = vmatmul.mubr.msk.f32.gmra.mrb[2].mxu1 %vm522_vm2, %v18313_v38  ;;  %v18771_v38 = vld [vmem:[#allocation2 + $0x168] sm:$0xff] }
 0x9f3   : > { %12399 = vmatprep.mubr.msk.f32.mxu1 %vm14301_vm1, %v14300_v1 }
 0x9f6   : > { %12400 = vmatmul.mubr.msk.f32.gmra.mrb[4].mxu1 %vm522_vm2, %v18321_v14  ;;  %v7419_v14 = vrot.slane %v18767_v2, 1 }
 0x9f7   : > { %12402 = vmatprep.mubr.msk.f32.mxu1 %vm14301_vm1, %v14300_v1 }
 0x9fa   : > { %12403 = vmatmul.mubr.msk.f32.gmra.mrb[6].mxu1 %vm522_vm2, %v18329_v39  ;;  %v7421_v39 = vrot.slane %v18771_v38, 1 }
 0x9fb   : > { %12405 = vmatprep.mubr.msk.f32.mxu1 %vm14301_vm1, %v14300_v1 }
 0x9fe   : > { %12406 = vmatmul.mubr.msk.f32.gmra.mrb[8].mxu1 %vm522_vm2, %v18337_v51  ;;  %v7420_v51 = vsel %vm2526_vm6, %v18598_v6, %v7419_v14 }
 0x9ff   : > { %12408 = vmatprep.mubr.msk.f32.mxu1 %vm14301_vm1, %v14300_v1 }
 0xa02   : > { %12409 = vmatmul.mubr.msk.f32.gmra.mrb[10].mxu1 %vm522_vm2, %v18345_v40  ;;  %v7422_v40 = vsel %vm2526_vm6, %v7419_v14, %v7421_v39 }
 0xa03   : > { %12411 = vmatprep.mubr.msk.f32.mxu1 %vm14301_vm1, %v14300_v1 }
 0xa06   : > { %12412 = vmatmul.mubr.msk.f32.gmra.mrb[12].mxu1 %vm522_vm2, %v18353_v29  ;;  %v18788_v29 = vld [vmem:[#allocation2 + $0x30] sm:$0xff] }
 0xa07   : > { %12414 = vmatprep.mubr.msk.f32.mxu1 %vm14301_vm1, %v14300_v1 }
 0xa0a   : > { %12415 = vmatmul.mubr.msk.f32.gmra.mrb[14].mxu1 %vm522_vm2, %v18361_v31  ;;  %v7746_v31 = vrot.slane %v18788_v29, 2 }
 0xa0b   : > { %12417 = vmatprep.mubr.msk.f32.mxu1 %vm14301_vm1, %v14300_v1 }
 0xa0e   : > { %12418 = vmatmul.mubr.msk.f32.gmra.mrb[16].mxu1 %vm522_vm2, %v18369_v34  ;;  %v18794_v34 = vld [vmem:[#allocation2 + $0x28] sm:$0xff] }
 0xa0f   : > { %12420 = vmatprep.mubr.msk.f32.mxu1 %vm14301_vm1, %v14300_v1 }
 0xa12   : > { %12421 = vmatmul.mubr.msk.f32.gmra.mrb[18].mxu1 %vm522_vm2, %v18377_v62  ;;  %v7745_v62 = vrot.slane %v18794_v34, 2 }
 0xa13   : > { %12423 = vmatprep.mubr.msk.f32.mxu1 %vm14301_vm1, %v14300_v1 }
 0xa16   : > { %12424 = vmatmul.mubr.msk.f32.gmra.mrb[20].mxu1 %vm522_vm2, %v18385_v8  ;;  %v9713_v8 = vld [vmem:[%s19439_s4 + $0x20] sm:$0xf] }
 0xa17   : > { %12426 = vmatprep.mubr.msk.f32.mxu1 %vm14301_vm1, %v14300_v1 }
 0xa1a   : > { %12427 = vmatmul.mubr.msk.f32.gmra.mrb[22].mxu1 %vm522_vm2, %v18393_v47  ;;  %v7747_v47 = vsel %vm3334_vm7, %v7745_v62, %v7746_v31 }
 0xa1b   : > { %12429 = vmatprep.mubr.msk.f32.mxu1 %vm14301_vm1, %v14300_v1 }
 0xa1e   : > { %12430 = vmatmul.mubr.msk.f32.gmra.mrb[24].mxu1 %vm522_vm2, %v18401_v25  ;;  %v18801_v25 = vld [vmem:[#allocation2 + $0x38] sm:$0xff] }
 0xa1f   : > { %12432 = vmatprep.mubr.msk.f32.mxu1 %vm14301_vm1, %v14300_v1 }
 0xa22   : > { %12433 = vmatmul.mubr.msk.f32.gmra.mrb[26].mxu1 %vm522_vm2, %v18409_v20  ;;  %v7748_v20 = vrot.slane %v18801_v25, 2 }
 0xa23   : > { %12435 = vmatprep.mubr.msk.f32.mxu1 %vm14301_vm1, %v14300_v1 }
 0xa26   : > { %12436 = vmatmul.mubr.msk.f32.gmra.mrb[28].mxu1 %vm522_vm2, %v18417_v9  ;;  %v7749_v9 = vsel %vm3334_vm7, %v7746_v31, %v7748_v20  ;;  %v18879_v31 = vld [vmem:[#allocation2 + $0x90] sm:$0xff] }
 0xa27   : > { %12438 = vmatprep.mubr.msk.f32.mxu1 %vm14301_vm1, %v14300_v1  ;;  %v7770_v62 = vrot.slane %v18879_v31, 2 }
 0xa2a   : > { %12439 = vmatmul.mubr.msk.f32.gmra.mrb[30].mxu1 %vm522_vm2, %v18425_v19  ;;  %v18809_v19 = vld [vmem:[#allocation2 + $0x40] sm:$0xff] }
 0xa2b   : > { %12441 = vmatprep.mubr.msk.f32.mxu1 %vm14301_vm1, %v14300_v1 }
 0xa2e   : > { %12442 = vmatmul.mubr.msk.f32.gmra.mrb[32].mxu1 %vm522_vm2, %v18433_v4  ;;  %v7750_v4 = vrot.slane %v18809_v19, 2 }
 0xa2f   : > { %12444 = vmatprep.mubr.msk.f32.mxu1 %vm14301_vm1, %v14300_v1 }
 0xa32   : > { %12445 = vmatmul.mubr.msk.f32.gmra.mrb[34].mxu1 %vm522_vm2, %v18441_v58  ;;  %v7751_v58 = vsel %vm3334_vm7, %v7748_v20, %v7750_v4 }
 0xa33   : > { %12447 = vmatprep.mubr.msk.f32.mxu1 %vm14301_vm1, %v14300_v1 }
 0xa36   : > { %12448 = vmatmul.mubr.msk.f32.gmra.mrb[36].mxu1 %vm522_vm2, %v18449_v26  ;;  %v18816_v26 = vld [vmem:[#allocation2 + $0x48] sm:$0xff] }
 0xa37   : > { %12450 = vmatprep.mubr.msk.f32.mxu1 %vm14301_vm1, %v14300_v1 }
 0xa3a   : > { %12451 = vmatmul.mubr.msk.f32.gmra.mrb[38].mxu1 %vm522_vm2, %v18457_v45  ;;  %v7752_v45 = vrot.slane %v18816_v26, 2 }
 0xa3b   : > { %12453 = vmatprep.mubr.msk.f32.mxu1 %vm14301_vm1, %v14300_v1 }
 0xa3e   : > { %12454 = vmatmul.mubr.msk.f32.gmra.mrb[40].mxu1 %vm522_vm2, %v18465_v54  ;;  %v7753_v54 = vsel %vm3334_vm7, %v7750_v4, %v7752_v45  ;;  %v18893_v4 = vld [vmem:[#allocation2 + $0xa0] sm:$0xff] }
 0xa3f   : > { %12456 = vmatprep.mubr.msk.f32.mxu1 %vm14301_vm1, %v14300_v1 }
 0xa42   : > { %12457 = vmatmul.mubr.msk.f32.gmra.mrb[42].mxu1 %vm522_vm2, %v18473_v5  ;;  %v18823_v5 = vld [vmem:[#allocation2 + $0x50] sm:$0xff] }
 0xa43   : > { %12459 = vmatprep.mubr.msk.f32.mxu1 %vm14301_vm1, %v14300_v1 }
 0xa46   : > { %12460 = vmatmul.mubr.msk.f32.gmra.mrb[44].mxu1 %vm522_vm2, %v18481_v22  ;;  %v7754_v22 = vrot.slane %v18823_v5, 2 }
 0xa47   : > { %12462 = vmatprep.mubr.msk.f32.mxu1 %vm14301_vm1, %v14300_v1 }
 0xa4a   : > { %12463 = vmatmul.mubr.msk.f32.gmra.mrb[46].mxu1 %vm522_vm2, %v18489_v36  ;;  %v7755_v36 = vsel %vm3334_vm7, %v7752_v45, %v7754_v22 }
 0xa4b   : > { %12465 = vmatprep.mubr.msk.f32.mxu1 %vm14301_vm1, %v14300_v1 }
 0xa4e   : > { %12466 = vmatmul.mubr.msk.f32.gmra.mrb[48].mxu1 %vm522_vm2, %v18497_v60  ;;  %v18830_v60 = vld [vmem:[#allocation2 + $0x58] sm:$0xff] }
 0xa4f   : > { %12468 = vmatprep.mubr.msk.f32.mxu1 %vm14301_vm1, %v14300_v1 }
 0xa52   : > { %12469 = vmatmul.mubr.msk.f32.gmra.mrb[50].mxu1 %vm522_vm2, %v18505_v32  ;;  %v7756_v32 = vrot.slane %v18830_v60, 2 }
 0xa53   : > { %12471 = vmatprep.mubr.msk.f32.mxu1 %vm14301_vm1, %v14300_v1 }
 0xa56   : > { %12472 = vmatmul.mubr.msk.f32.gmra.mrb[52].mxu1 %vm522_vm2, %v18513_v33  ;;  %v7757_v33 = vsel %vm3334_vm7, %v7754_v22, %v7756_v32 }
 0xa57   : > { %12474 = vmatprep.mubr.msk.f32.mxu1 %vm14301_vm1, %v14300_v1 }
 0xa5a   : > { %12475 = vmatmul.mubr.msk.f32.gmra.mrb[54].mxu1 %vm522_vm2, %v18521_v7  ;;  %v18837_v7 = vld [vmem:[#allocation2 + $0x60] sm:$0xff] }
 0xa5b   : > { %12477 = vmatprep.mubr.msk.f32.mxu1 %vm14301_vm1, %v14300_v1 }
 0xa5e   : > { %12478 = vmatmul.mubr.msk.f32.gmra.mrb[56].mxu1 %vm522_vm2, %v18529_v3  ;;  %v7758_v3 = vrot.slane %v18837_v7, 2 }
 0xa5f   : > { %12480 = vmatprep.mubr.msk.f32.mxu1 %vm14301_vm1, %v14300_v1 }
 0xa62   : > { %12481 = vmatmul.mubr.msk.f32.gmra.mrb[58].mxu1 %vm522_vm2, %v18537_v10  ;;  %v7759_v10 = vsel %vm3334_vm7, %v7756_v32, %v7758_v3 }
 0xa63   : > { %12483 = vmatprep.mubr.msk.f32.mxu1 %vm14301_vm1, %v14300_v1 }
 0xa66   : > { %12484 = vmatmul.mubr.msk.f32.gmra.mrb[60].mxu1 %vm522_vm2, %v18545_v56  ;;  %v18844_v56 = vld [vmem:[#allocation2 + $0x68] sm:$0xff] }
 0xa67   : > { %12486 = vmatprep.mubr.msk.f32.mxu1 %vm14301_vm1, %v14300_v1 }
 0xa6a   : > { %12487 = vmatmul.mubr.msk.f32.gmra.mrb[62].mxu1 %vm522_vm2, %v18553_v11  ;;  %v7760_v11 = vrot.slane %v18844_v56, 2 }
 0xa6b   : > { %12489 = vmatprep.mubr.msk.f32.mxu1 %vm14301_vm1, %v14300_v1 }
 0xa6e   : > { %12490 = vmatmul.mubr.msk.f32.gmra.mrb[64].mxu1 %vm522_vm2, %v18561_v23  ;;  %v7761_v23 = vsel %vm3334_vm7, %v7758_v3, %v7760_v11  ;;  %v7782_v3 = vrot.slane %v18173_v42, 2 }
 0xa6f   : > { %12492 = vmatprep.mubr.msk.f32.mxu1 %vm14301_vm1, %v14300_v1 }
 0xa72   : > { %12493 = vmatmul.mubr.msk.f32.gmra.mrb[66].mxu1 %vm522_vm2, %v18569_v59  ;;  %v18851_v59 = vld [vmem:[#allocation2 + $0x70] sm:$0xff] }
 0xa73   : > { %12495 = vmatprep.mubr.msk.f32.mxu1 %vm14301_vm1, %v14300_v1 }
 0xa76   : > { %12496 = vmatmul.mubr.msk.f32.gmra.mrb[68].mxu1 %vm522_vm2, %v18577_v30  ;;  %v7762_v30 = vrot.slane %v18851_v59, 2 }
 0xa77   : > { %12498 = vmatprep.mubr.msk.f32.mxu1 %vm14301_vm1, %v14300_v1 }
 0xa78   : > { %v7763_v6 = vsel %vm3334_vm7, %v7760_v11, %v7762_v30  ;;  %v7786_v11 = vrot.slane %v18185_v27, 2 }
 0xa7a   : > { %12499 = vmatmul.mubr.msk.f32.gmra.mrb[70].mxu1 %vm522_vm2, %v18587_v0  ;;  %v18858_v0 = vld [vmem:[#allocation2 + $0x78] sm:$0xff] }
 0xa7b   : > { %12501 = vmatprep.mubr.msk.f32.mxu1 %vm14301_vm1, %v14300_v1  ;;  %v7764_v48 = vrot.slane %v18858_v0, 2 }
 0xa7e   : > { %12502 = vmatmul.mubr.msk.f32.gmra.mrb[72].mxu1 %vm522_vm2, %v18595_v50  ;;  %v7765_v50 = vsel %vm3334_vm7, %v7762_v30, %v7764_v48  ;;  %v7790_v30 = vrot.slane %v18197_v52, 2 }
 0xa7f   : > { %12504 = vmatprep.mubr.msk.f32.mxu1 %vm14301_vm1, %v14300_v1 }
 0xa82   : > { %12505 = vmatmul.mubr.msk.f32.gmra.mrb[74].mxu1 %vm522_vm2, %v18606_v35  ;;  %v18865_v35 = vld [vmem:[#allocation2 + $0x80] sm:$0xff] }
 0xa83   : > { %12507 = vmatprep.mubr.msk.f32.mxu1 %vm14301_vm1, %v14300_v1  ;;  %v7766_v43 = vrot.slane %v18865_v35, 2 }
 0xa85   : > { %v7767_v14 = vsel %vm3334_vm7, %v7764_v48, %v7766_v43  ;;  %v7794_v48 = vrot.slane %v18209_v55, 2 }
 0xa86   : > { %12508 = vmatmul.mubr.msk.f32.gmra.mrb[76].mxu1 %vm522_vm2, %v7420_v51 }
 0xa87   : > { %12510 = vmatprep.mubr.msk.f32.mxu1 %vm14301_vm1, %v14300_v1 }
 0xa8a   : > { %12511 = vmatmul.mubr.msk.f32.gmra.mrb[78].mxu1 %vm522_vm2, %v7422_v40 }
 0xa8b   : > { %12513 = vmatprep.mubr.msk.f32.mxu1 %vm14301_vm1, %v14300_v1 }
 0xa8e   : > { %12514 = vmatmul.mubr.msk.f32.gmra.mrb[80].mxu1 %vm522_vm2, %v7421_v39  ;;  %v18872_v39 = vld [vmem:[#allocation2 + $0x88] sm:$0xff] }
 0xa8f   : > { %12518 = vmatprep.mubr.msk.f32.mxu1 %vm14301_vm1, %v14300_v1  ;;  %v7768_v51 = vrot.slane %v18872_v39, 2 }
 0xa91   : > { %v7769_v40 = vsel %vm3334_vm7, %v7766_v43, %v7768_v51  ;;  %v7798_v43 = vrot.slane %v18221_v21, 2 }
 0xa92   : > { %12519 = vmatmul.mubr.msk.f32.vlgmr.msra.gmra.mrb[0].mxu1 %vm522_vm2, %v7747_v47  ;;  %v18886_v47 = vld [vmem:[#allocation2 + $0x98] sm:$0xff] }
 0xa93   : > { %12642 = vmatpush3.msk.msra.mxu1 %vm605_vm0, %v9713_v8  ;;  %12521 = vmatprep.mubr.msk.f32.mxu1 %vm14301_vm1, %v14300_v1  ;;  %v7771_v8 = vsel %vm3334_vm7, %v7768_v51, %v7770_v62  ;;  %v7772_v20 = vrot.slane %v18886_v47, 2  ;;  %v7802_v51 = vrot.slane %v18233_v18, 2 }
 0xa96   : > { %12522 = vmatmul.mubr.msk.f32.gmra.mrb[2].mxu1 %vm522_vm2, %v7749_v9  ;;  %v7773_v9 = vsel %vm3334_vm7, %v7770_v62, %v7772_v20  ;;  %v7806_v62 = vrot.slane %v18245_v46, 2 }
 0xa97   : > { %12524 = vmatprep.mubr.msk.f32.mxu1 %vm14301_vm1, %v14300_v1 }
 0xa9a   : > { %12525 = vmatmul.mubr.msk.f32.gmra.mrb[4].mxu1 %vm522_vm2, %v7751_v58  ;;  %v7774_v58 = vrot.slane %v18893_v4, 2 }
 0xa9b   : > { %12527 = vmatprep.mubr.msk.f32.mxu1 %vm14301_vm1, %v14300_v1 }
 0xa9c   : > { %v7775_v45 = vsel %vm3334_vm7, %v7772_v20, %v7774_v58  ;;  %v7810_v20 = vrot.slane %v18257_v41, 2 }
 0xa9e   : > { %12528 = vmatmul.mubr.msk.f32.gmra.mrb[6].mxu1 %vm522_vm2, %v7753_v54  ;;  %v7776_v54 = vrot.slane %v18155_v16, 2 }
 0xa9f   : > { %12530 = vmatprep.mubr.msk.f32.mxu1 %vm14301_vm1, %v14300_v1 }
 0xaa0   : > { %v7777_v22 = vsel %vm3334_vm7, %v7774_v58, %v7776_v54  ;;  %v7814_v58 = vrot.slane %v18269_v37, 2 }
 0xaa2   : > { %12531 = vmatmul.mubr.msk.f32.gmra.mrb[8].mxu1 %vm522_vm2, %v7755_v36  ;;  %v7778_v36 = vrot.slane %v18161_v44, 2 }
 0xaa3   : > { %12533 = vmatprep.mubr.msk.f32.mxu1 %vm14301_vm1, %v14300_v1 }
 0xaa4   : > { %v7779_v32 = vsel %vm3334_vm7, %v7776_v54, %v7778_v36 }
 0xaa6   : > { %12534 = vmatmul.mubr.msk.f32.gmra.mrb[10].mxu1 %vm522_vm2, %v7757_v33  ;;  %v7780_v33 = vrot.slane %v18167_v63, 2 }
 0xaa7   : > { %12536 = vmatprep.mubr.msk.f32.mxu1 %vm14301_vm1, %v14300_v1 }
 0xaa8   : > { %v7781_v16 = vsel %vm3334_vm7, %v7778_v36, %v7780_v33  ;;  %v7783_v44 = vsel %vm3334_vm7, %v7780_v33, %v7782_v3  ;;  %v7820_v36 = vrot.slane %v18063_v17, 2  ;;  %v7822_v33 = vrot.slane %v18767_v2, 2 }
 0xaaa   : > { %12537 = vmatmul.mubr.msk.f32.gmra.mrb[12].mxu1 %vm522_vm2, %v7759_v10  ;;  %v7784_v10 = vrot.slane %v18179_v53, 2 }
 0xaab   : > { %12539 = vmatprep.mubr.msk.f32.mxu1 %vm14301_vm1, %v14300_v1 }
 0xaac   : > { %v7785_v63 = vsel %vm3334_vm7, %v7782_v3, %v7784_v10  ;;  %v7787_v42 = vsel %vm3334_vm7, %v7784_v10, %v7786_v11  ;;  %v8225_v3 = vrot.slane %v18788_v29, 3  ;;  %v8229_v29 = vrot.slane %v18809_v19, 3 }
 0xaae   : > { %12540 = vmatmul.mubr.msk.f32.gmra.mrb[14].mxu1 %vm522_vm2, %v7761_v23  ;;  %v7788_v23 = vrot.slane %v18191_v57, 2 }
 0xaaf   : > { %12542 = vmatprep.mubr.msk.f32.mxu1 %vm14301_vm1, %v14300_v1 }
 0xab0   : > { %v7789_v53 = vsel %vm3334_vm7, %v7786_v11, %v7788_v23  ;;  %v7791_v27 = vsel %vm3334_vm7, %v7788_v23, %v7790_v30  ;;  %v8233_v23 = vrot.slane %v18823_v5, 3 }
 0xab2   : > { %12543 = vmatmul.mubr.msk.f32.gmra.mrb[16].mxu1 %vm522_vm2, %v7763_v6  ;;  %v7792_v6 = vrot.slane %v18203_v49, 2 }
 0xab3   : > { %12545 = vmatprep.mubr.msk.f32.mxu1 %vm14301_vm1, %v14300_v1 }
 0xab4   : > { %v7793_v57 = vsel %vm3334_vm7, %v7790_v30, %v7792_v6  ;;  %v7795_v52 = vsel %vm3334_vm7, %v7792_v6, %v7794_v48  ;;  %v8237_v30 = vrot.slane %v18837_v7, 3  ;;  %v8241_v6 = vrot.slane %v18851_v59, 3 }
 0xab6   : > { %12546 = vmatmul.mubr.msk.f32.gmra.mrb[18].mxu1 %vm522_vm2, %v7765_v50  ;;  %v7796_v50 = vrot.slane %v18215_v24, 2 }
 0xab7   : > { %12548 = vmatprep.mubr.msk.f32.mxu1 %vm14301_vm1, %v14300_v1 }
 0xab8   : > { %v7797_v49 = vsel %vm3334_vm7, %v7794_v48, %v7796_v50  ;;  %v7799_v55 = vsel %vm3334_vm7, %v7796_v50, %v7798_v43  ;;  %v8245_v48 = vrot.slane %v18865_v35, 3  ;;  %v8249_v50 = vrot.slane %v18879_v31, 3 }
 0xaba   : > { %12549 = vmatmul.mubr.msk.f32.gmra.mrb[20].mxu1 %vm522_vm2, %v7767_v14  ;;  %v7800_v14 = vrot.slane %v18227_v13, 2 }
 0xabb   : > { %12551 = vmatprep.mubr.msk.f32.mxu1 %vm14301_vm1, %v14300_v1 }
 0xabc   : > { %v7801_v24 = vsel %vm3334_vm7, %v7798_v43, %v7800_v14  ;;  %v7803_v21 = vsel %vm3334_vm7, %v7800_v14, %v7802_v51  ;;  %v8253_v43 = vrot.slane %v18893_v4, 3 }
 0xabe   : > { %12552 = vmatmul.mubr.msk.f32.gmra.mrb[22].mxu1 %vm522_vm2, %v7769_v40  ;;  %v7804_v40 = vrot.slane %v18239_v61, 2 }
 0xabf   : > { %12554 = vmatprep.mubr.msk.f32.mxu1 %vm14301_vm1, %v14300_v1 }
 0xac0   : > { %v7805_v13 = vsel %vm3334_vm7, %v7802_v51, %v7804_v40  ;;  %v7807_v18 = vsel %vm3334_vm7, %v7804_v40, %v7806_v62 }
 0xac2   : > { %12555 = vmatmul.mubr.msk.f32.gmra.mrb[24].mxu1 %vm522_vm2, %v7771_v8  ;;  %v7808_v8 = vrot.slane %v18251_v12, 2 }
 0xac3   : > { %12557 = vmatprep.mubr.msk.f32.mxu1 %vm14301_vm1, %v14300_v1 }
 0xac4   : > { %v7809_v61 = vsel %vm3334_vm7, %v7806_v62, %v7808_v8  ;;  %v7811_v46 = vsel %vm3334_vm7, %v7808_v8, %v7810_v20  ;;  %v14232_v62 = vld [vmem:[#allocation2 + $0xc0] sm:$0xff] }
 0xac6   : > { %12558 = vmatmul.mubr.msk.f32.gmra.mrb[26].mxu1 %vm522_vm2, %v7773_v9  ;;  %v7812_v9 = vrot.slane %v18263_v15, 2 }
 0xac7   : > { %12560 = vmatprep.mubr.msk.f32.mxu1 %vm14301_vm1, %v14300_v1 }
 0xac8   : > { %v7813_v12 = vsel %vm3334_vm7, %v7810_v20, %v7812_v9  ;;  %v7815_v41 = vsel %vm3334_vm7, %v7812_v9, %v7814_v58  ;;  %v14234_v9 = vld [vmem:[#allocation2 + $0xd0] sm:$0xff] }
 0xaca   : > { %12561 = vmatmul.mubr.msk.f32.gmra.mrb[28].mxu1 %vm522_vm2, %v7775_v45  ;;  %v19498_v45 = vld [vmem:[#allocation3_spill] sm:$0xff] }
 0xacb   : > { %12563 = vmatprep.mubr.msk.f32.mxu1 %vm14301_vm1, %v14300_v1  ;;  %v7816_v54 = vrot.slane %v19498_v45, 2 }
 0xacd   : > { %v7817_v15 = vsel %vm3334_vm7, %v7814_v58, %v7816_v54 }
 0xace   : > { %12564 = vmatmul.mubr.msk.f32.gmra.mrb[30].mxu1 %vm522_vm2, %v7777_v22  ;;  %v7818_v22 = vrot.slane %v18056_v28, 2  ;;  %v7824_v28 = vrot.slane %v18771_v38, 2 }
 0xacf   : > { %12566 = vmatprep.mubr.msk.f32.mxu1 %vm14301_vm1, %v14300_v1 }
 0xad0   : > { %v7819_v37 = vsel %vm3334_vm7, %v7816_v54, %v7818_v22  ;;  %v7825_v17 = vsel %vm3334_vm7, %v7822_v33, %v7824_v28 }
 0xad2   : > { %12567 = vmatmul.mubr.msk.f32.gmra.mrb[32].mxu1 %vm522_vm2, %v7779_v32  ;;  %v7821_v32 = vsel %vm3334_vm7, %v7818_v22, %v7820_v36  ;;  %v14236_v22 = vld [vmem:[#allocation2 + $0xe0] sm:$0xff] }
 0xad3   : > { %12569 = vmatprep.mubr.msk.f32.mxu1 %vm14301_vm1, %v14300_v1 }
 0xad6   : > { %12570 = vmatmul.mubr.msk.f32.gmra.mrb[34].mxu1 %vm522_vm2, %v7781_v16  ;;  %v7823_v16 = vsel %vm3334_vm7, %v7820_v36, %v7822_v33 }
 0xad7   : > { %12572 = vmatprep.mubr.msk.f32.mxu1 %vm14301_vm1, %v14300_v1 }
 0xada   : > { %12573 = vmatmul.mubr.msk.f32.gmra.mrb[36].mxu1 %vm522_vm2, %v7783_v44  ;;  %v8224_v44 = vrot.slane %v18794_v34, 3 }
 0xadb   : > { %12575 = vmatprep.mubr.msk.f32.mxu1 %vm14301_vm1, %v14300_v1 }
 0xadc   : > { %v8226_v10 = vsel %vm3814_vm8, %v8224_v44, %v8225_v3  ;;  %v14239_v44 = vld [vmem:[#allocation2 + $0xf8] sm:$0xff] }
 0xade   : > { %12576 = vmatmul.mubr.msk.f32.gmra.mrb[38].mxu1 %vm522_vm2, %v7785_v63  ;;  %v8227_v63 = vrot.slane %v18801_v25, 3 }
 0xadf   : > { %12578 = vmatprep.mubr.msk.f32.mxu1 %vm14301_vm1, %v14300_v1 }
 0xae0   : > { %v8228_v11 = vsel %vm3814_vm8, %v8225_v3, %v8227_v63  ;;  %v8230_v34 = vsel %vm3814_vm8, %v8227_v63, %v8229_v29 }
 0xae2   : > { %12579 = vmatmul.mubr.msk.f32.gmra.mrb[40].mxu1 %vm522_vm2, %v7787_v42  ;;  %v8231_v42 = vrot.slane %v18816_v26, 3 }
 0xae3   : > { %12581 = vmatprep.mubr.msk.f32.mxu1 %vm14301_vm1, %v14300_v1 }
 0xae4   : > { %v8232_v25 = vsel %vm3814_vm8, %v8229_v29, %v8231_v42  ;;  %v8234_v19 = vsel %vm3814_vm8, %v8231_v42, %v8233_v23  ;;  %v14241_v42 = vld [vmem:[#allocation2 + $0x108] sm:$0xff] }
 0xae6   : > { %12582 = vmatmul.mubr.msk.f32.gmra.mrb[42].mxu1 %vm522_vm2, %v7789_v53  ;;  %v8235_v53 = vrot.slane %v18830_v60, 3 }
 0xae7   : > { %12584 = vmatprep.mubr.msk.f32.mxu1 %vm14301_vm1, %v14300_v1 }
 0xae8   : > { %v8236_v26 = vsel %vm3814_vm8, %v8233_v23, %v8235_v53  ;;  %v8238_v5 = vsel %vm3814_vm8, %v8235_v53, %v8237_v30 }
 0xaea   : > { %12585 = vmatmul.mubr.msk.f32.gmra.mrb[44].mxu1 %vm522_vm2, %v7791_v27  ;;  %v8239_v27 = vrot.slane %v18844_v56, 3 }
 0xaeb   : > { %12587 = vmatprep.mubr.msk.f32.mxu1 %vm14301_vm1, %v14300_v1 }
 0xaec   : > { %v8240_v60 = vsel %vm3814_vm8, %v8237_v30, %v8239_v27  ;;  %v8242_v7 = vsel %vm3814_vm8, %v8239_v27, %v8241_v6  ;;  %v14243_v30 = vld [vmem:[#allocation2 + $0x118] sm:$0xff] }
 0xaee   : > { %12588 = vmatmul.mubr.msk.f32.gmra.mrb[46].mxu1 %vm522_vm2, %v7793_v57  ;;  %v8243_v57 = vrot.slane %v18858_v0, 3 }
 0xaef   : > { %12590 = vmatprep.mubr.msk.f32.mxu1 %vm14301_vm1, %v14300_v1 }
 0xaf0   : > { %v8244_v56 = vsel %vm3814_vm8, %v8241_v6, %v8243_v57  ;;  %v8246_v59 = vsel %vm3814_vm8, %v8243_v57, %v8245_v48  ;;  %v14245_v57 = vld [vmem:[#allocation2 + $0x128] sm:$0xff] }
 0xaf2   : > { %12591 = vmatmul.mubr.msk.f32.gmra.mrb[48].mxu1 %vm522_vm2, %v7795_v52  ;;  %v8247_v52 = vrot.slane %v18872_v39, 3 }
 0xaf3   : > { %12593 = vmatprep.mubr.msk.f32.mxu1 %vm14301_vm1, %v14300_v1 }
 0xaf4   : > { %v8248_v0 = vsel %vm3814_vm8, %v8245_v48, %v8247_v52  ;;  %v8250_v35 = vsel %vm3814_vm8, %v8247_v52, %v8249_v50 }
 0xaf6   : > { %12594 = vmatmul.mubr.msk.f32.gmra.mrb[50].mxu1 %vm522_vm2, %v7797_v49  ;;  %v8251_v49 = vrot.slane %v18886_v47, 3 }
 0xaf7   : > { %12596 = vmatprep.mubr.msk.f32.mxu1 %vm14301_vm1, %v14300_v1 }
 0xaf8   : > { %v8252_v39 = vsel %vm3814_vm8, %v8249_v50, %v8251_v49  ;;  %v8254_v31 = vsel %vm3814_vm8, %v8251_v49, %v8253_v43  ;;  %v14247_v50 = vld [vmem:[#allocation2 + $0x138] sm:$0xff] }
 0xafa   : > { %12597 = vmatmul.mubr.msk.f32.gmra.mrb[52].mxu1 %vm522_vm2, %v7799_v55  ;;  %v14229_v55 = vld [vmem:[#allocation2 + $0xa8] sm:$0xff] }
 0xafb   : > { %12599 = vmatprep.mubr.msk.f32.mxu1 %vm14301_vm1, %v14300_v1  ;;  %v8255_v14 = vrot.slane %v14229_v55, 3  ;;  %v8295_v55 = vrot.slane %v19498_v45, 3 }
 0xafd   : > { %v8256_v47 = vsel %vm3814_vm8, %v8253_v43, %v8255_v14 }
 0xafe   : > { %12600 = vmatmul.mubr.msk.f32.gmra.mrb[54].mxu1 %vm522_vm2, %v7801_v24  ;;  %v14230_v24 = vld [vmem:[#allocation2 + $0xb0] sm:$0xff] }
 0xaff   : > { %12602 = vmatprep.mubr.msk.f32.mxu1 %vm14301_vm1, %v14300_v1  ;;  %v8257_v51 = vrot.slane %v14230_v24, 3 }
 0xb01   : > { %v8258_v4 = vsel %vm3814_vm8, %v8255_v14, %v8257_v51 }
 0xb02   : > { %12603 = vmatmul.mubr.msk.f32.gmra.mrb[56].mxu1 %vm522_vm2, %v7803_v21  ;;  %v14231_v21 = vld [vmem:[#allocation2 + $0xb8] sm:$0xff] }
 0xb03   : > { %12605 = vmatprep.mubr.msk.f32.mxu1 %vm14301_vm1, %v14300_v1  ;;  %v8259_v40 = vrot.slane %v14231_v21, 3 }
 0xb06   : > { %12606 = vmatmul.mubr.msk.f32.gmra.mrb[58].mxu1 %vm522_vm2, %v7805_v13  ;;  %v8260_v13 = vsel %vm3814_vm8, %v8257_v51, %v8259_v40 }
 0xb07   : > { %12608 = vmatprep.mubr.msk.f32.mxu1 %vm14301_vm1, %v14300_v1 }
 0xb0a   : > { %12609 = vmatmul.mubr.msk.f32.gmra.mrb[60].mxu1 %vm522_vm2, %v7807_v18  ;;  %v8261_v18 = vrot.slane %v14232_v62, 3 }
 0xb0b   : > { %12611 = vmatprep.mubr.msk.f32.mxu1 %vm14301_vm1, %v14300_v1 }
 0xb0c   : > { %v8262_v8 = vsel %vm3814_vm8, %v8259_v40, %v8261_v18  ;;  %v8301_v40 = vrot.slane %v18767_v2, 3  ;;  %v19214_v2 = vld [vmem:[%s19440_s5] ss:$0 sm:$0xff] }
 0xb0e   : > { %12612 = vmatmul.mubr.msk.f32.gmra.mrb[62].mxu1 %vm522_vm2, %v7809_v61  ;;  %v14233_v61 = vld [vmem:[#allocation2 + $0xc8] sm:$0xff] }
 0xb0f   : > { %12614 = vmatprep.mubr.msk.f32.mxu1 %vm14301_vm1, %v14300_v1  ;;  %v8263_v20 = vrot.slane %v14233_v61, 3 }
 0xb12   : > { %12615 = vmatmul.mubr.msk.f32.gmra.mrb[64].mxu1 %vm522_vm2, %v7811_v46  ;;  %v8264_v46 = vsel %vm3814_vm8, %v8261_v18, %v8263_v20 }
 0xb13   : > { %12617 = vmatprep.mubr.msk.f32.mxu1 %vm14301_vm1, %v14300_v1 }
 0xb16   : > { %12618 = vmatmul.mubr.msk.f32.gmra.mrb[66].mxu1 %vm522_vm2, %v7813_v12  ;;  %v8265_v12 = vrot.slane %v14234_v9, 3  ;;  %v14251_v9 = vld [vmem:[%s14465_s12 + $0x18] sm:$0xff] }
 0xb17   : > { %12620 = vmatprep.mubr.msk.f32.mxu1 %vm14301_vm1, %v14300_v1 }
 0xb18   : > { %v8266_v58 = vsel %vm3814_vm8, %v8263_v20, %v8265_v12 }
 0xb1a   : > { %12621 = vmatmul.mubr.msk.f32.gmra.mrb[68].mxu1 %vm522_vm2, %v7815_v41  ;;  %v14235_v41 = vld [vmem:[#allocation2 + $0xd8] sm:$0xff] }
 0xb1b   : > { %12623 = vmatprep.mubr.msk.f32.mxu1 %vm14301_vm1, %v14300_v1  ;;  %v8267_v54 = vrot.slane %v14235_v41, 3 }
 0xb1e   : > { %12624 = vmatmul.mubr.msk.f32.gmra.mrb[70].mxu1 %vm522_vm2, %v7817_v15  ;;  %v8268_v15 = vsel %vm3814_vm8, %v8265_v12, %v8267_v54 }
 0xb1f   : > { %12626 = vmatprep.mubr.msk.f32.mxu1 %vm14301_vm1, %v14300_v1 }
 0xb22   : > { %12627 = vmatmul.mubr.msk.f32.gmra.mrb[72].mxu1 %vm522_vm2, %v7819_v37  ;;  %v8269_v37 = vrot.slane %v14236_v22, 3 }
 0xb23   : > { %12629 = vmatprep.mubr.msk.f32.mxu1 %vm14301_vm1, %v14300_v1 }
 0xb24   : > { %v8270_v36 = vsel %vm3814_vm8, %v8267_v54, %v8269_v37 }
 0xb26   : > { %12630 = vmatmul.mubr.msk.f32.gmra.mrb[74].mxu1 %vm522_vm2, %v7821_v32  ;;  %v14237_v32 = vld [vmem:[#allocation2 + $0xe8] sm:$0xff] }
 0xb27   : > { %12632 = vmatprep.mubr.msk.f32.mxu1 %vm14301_vm1, %v14300_v1  ;;  %v8271_v33 = vrot.slane %v14237_v32, 3 }
 0xb2a   : > { %12633 = vmatmul.mubr.msk.f32.gmra.mrb[76].mxu1 %vm522_vm2, %v7823_v16  ;;  %v14238_v16 = vld [vmem:[#allocation2 + $0xf0] sm:$0xff] }
 0xb2b   : > { %12635 = vmatprep.mubr.msk.f32.mxu1 %vm14301_vm1, %v14300_v1 }
 0xb2e   : > { %12636 = vmatmul.mubr.msk.f32.gmra.mrb[78].mxu1 %vm522_vm2, %v7825_v17  ;;  %v8273_v17 = vrot.slane %v14238_v16, 3 }
 0xb2f   : > { %12638 = vmatprep.mubr.msk.f32.mxu1 %vm14301_vm1, %v14300_v1 }
 0xb30   : > { %v8274_v3 = vsel %vm3814_vm8, %v8271_v33, %v8273_v17 }
 0xb32   : > { %12639 = vmatmul.mubr.msk.f32.gmra.mrb[80].mxu1 %vm522_vm2, %v7824_v28  ;;  %v8272_v28 = vsel %vm3814_vm8, %v8269_v37, %v8271_v33  ;;  %v14252_v37 = vld [vmem:[%s14465_s12 + $0x20] sm:$0xff] }
 0xb33   : > { %12643 = vmatprep.mubr.msk.f32.mxu1 %vm14301_vm1, %v14300_v1 }
 0xb36   : > { %12644 = vmatmul.mubr.msk.f32.vlgmr.msra.gmra.mrb[0].mxu1 %vm522_vm2, %v8226_v10  ;;  %v8275_v10 = vrot.slane %v14239_v44, 3 }
 0xb37   : > { %12646 = vmatprep.mubr.msk.f32.mxu1 %vm14301_vm1, %v14300_v1 }
 0xb38   : > { %v8276_v63 = vsel %vm3814_vm8, %v8273_v17, %v8275_v10 }
 0xb3a   : > { %12647 = vmatmul.mubr.msk.f32.gmra.mrb[2].mxu1 %vm522_vm2, %v8228_v11  ;;  %v14240_v11 = vld [vmem:[#allocation2 + $0x100] sm:$0xff] }
 0xb3b   : > { %12649 = vmatprep.mubr.msk.f32.mxu1 %vm14301_vm1, %v14300_v1  ;;  %v8277_v29 = vrot.slane %v14240_v11, 3 }
 0xb3e   : > { %12650 = vmatmul.mubr.msk.f32.gmra.mrb[4].mxu1 %vm522_vm2, %v8230_v34  ;;  %v8278_v34 = vsel %vm3814_vm8, %v8275_v10, %v8277_v29 }
 0xb3f   : > { %12652 = vmatprep.mubr.msk.f32.mxu1 %vm14301_vm1, %v14300_v1 }
 0xb42   : > { %12653 = vmatmul.mubr.msk.f32.gmra.mrb[6].mxu1 %vm522_vm2, %v8232_v25  ;;  %v8279_v25 = vrot.slane %v14241_v42, 3  ;;  %v14254_v42 = vld [vmem:[%s14465_s12 + $0x30] sm:$0xff] }
 0xb43   : > { %12655 = vmatprep.mubr.msk.f32.mxu1 %vm14301_vm1, %v14300_v1 }
 0xb44   : > { %v8280_v23 = vsel %vm3814_vm8, %v8277_v29, %v8279_v25 }
 0xb46   : > { %12656 = vmatmul.mubr.msk.f32.gmra.mrb[8].mxu1 %vm522_vm2, %v8234_v19  ;;  %v14242_v19 = vld [vmem:[#allocation2 + $0x110] sm:$0xff] }
 0xb47   : > { %12658 = vmatprep.mubr.msk.f32.mxu1 %vm14301_vm1, %v14300_v1  ;;  %v8281_v53 = vrot.slane %v14242_v19, 3 }
 0xb4a   : > { %12659 = vmatmul.mubr.msk.f32.gmra.mrb[10].mxu1 %vm522_vm2, %v8236_v26  ;;  %v8282_v26 = vsel %vm3814_vm8, %v8279_v25, %v8281_v53 }
 0xb4b   : > { %12661 = vmatprep.mubr.msk.f32.mxu1 %vm14301_vm1, %v14300_v1 }
 0xb4e   : > { %12662 = vmatmul.mubr.msk.f32.gmra.mrb[12].mxu1 %vm522_vm2, %v8238_v5  ;;  %v8283_v5 = vrot.slane %v14243_v30, 3 }
 0xb4f   : > { %12664 = vmatprep.mubr.msk.f32.mxu1 %vm14301_vm1, %v14300_v1 }
 0xb50   : > { %v8284_v27 = vsel %vm3814_vm8, %v8281_v53, %v8283_v5 }
 0xb52   : > { %12665 = vmatmul.mubr.msk.f32.gmra.mrb[14].mxu1 %vm522_vm2, %v8240_v60  ;;  %v14244_v60 = vld [vmem:[#allocation2 + $0x120] sm:$0xff] }
 0xb53   : > { %12667 = vmatprep.mubr.msk.f32.mxu1 %vm14301_vm1, %v14300_v1  ;;  %v8285_v6 = vrot.slane %v14244_v60, 3 }
 0xb56   : > { %12668 = vmatmul.mubr.msk.f32.gmra.mrb[16].mxu1 %vm522_vm2, %v8242_v7  ;;  %v8286_v7 = vsel %vm3814_vm8, %v8283_v5, %v8285_v6  ;;  %v14255_v5 = vld [vmem:[%s14465_s12 + $0x38] sm:$0xff] }
 0xb57   : > { %12670 = vmatprep.mubr.msk.f32.mxu1 %vm14301_vm1, %v14300_v1 }
 0xb5a   : > { %12671 = vmatmul.mubr.msk.f32.gmra.mrb[18].mxu1 %vm522_vm2, %v8244_v56  ;;  %v8287_v56 = vrot.slane %v14245_v57, 3 }
 0xb5b   : > { %12673 = vmatprep.mubr.msk.f32.mxu1 %vm14301_vm1, %v14300_v1 }
 0xb5c   : > { %v8288_v48 = vsel %vm3814_vm8, %v8285_v6, %v8287_v56 }
 0xb5e   : > { %12674 = vmatmul.mubr.msk.f32.gmra.mrb[20].mxu1 %vm522_vm2, %v8246_v59  ;;  %v14246_v59 = vld [vmem:[#allocation2 + $0x130] sm:$0xff] }
 0xb5f   : > { %12676 = vmatprep.mubr.msk.f32.mxu1 %vm14301_vm1, %v14300_v1  ;;  %v8289_v52 = vrot.slane %v14246_v59, 3 }
 0xb62   : > { %12677 = vmatmul.mubr.msk.f32.gmra.mrb[22].mxu1 %vm522_vm2, %v8248_v0  ;;  %v8290_v0 = vsel %vm3814_vm8, %v8287_v56, %v8289_v52 }
 0xb63   : > { %12679 = vmatprep.mubr.msk.f32.mxu1 %vm14301_vm1, %v14300_v1 }
 0xb66   : > { %12680 = vmatmul.mubr.msk.f32.gmra.mrb[24].mxu1 %vm522_vm2, %v8250_v35  ;;  %v8291_v35 = vrot.slane %v14247_v50, 3 }
 0xb67   : > { %12682 = vmatprep.mubr.msk.f32.mxu1 %vm14301_vm1, %v14300_v1 }
 0xb68   : > { %v8292_v49 = vsel %vm3814_vm8, %v8289_v52, %v8291_v35 }
 0xb6a   : > { %12683 = vmatmul.mubr.msk.f32.gmra.mrb[26].mxu1 %vm522_vm2, %v8252_v39  ;;  %v14248_v39 = vld [vmem:[#allocation2 + $0x140] sm:$0xff] }
 0xb6b   : > { %12685 = vmatprep.mubr.msk.f32.mxu1 %vm14301_vm1, %v14300_v1  ;;  %v8293_v43 = vrot.slane %v14248_v39, 3  ;;  %v14257_v39 = vld [vmem:[%s14465_s12 + $0x48] sm:$0xff] }
 0xb6d   : > { %v8296_v14 = vsel %vm3814_vm8, %v8293_v43, %v8295_v55 }
 0xb6e   : > { %12686 = vmatmul.mubr.msk.f32.gmra.mrb[28].mxu1 %vm522_vm2, %v8254_v31  ;;  %v8294_v31 = vsel %vm3814_vm8, %v8291_v35, %v8293_v43 }
 0xb6f   : > { %12688 = vmatprep.mubr.msk.f32.mxu1 %vm14301_vm1, %v14300_v1 }
 0xb72   : > { %12689 = vmatmul.mubr.msk.f32.gmra.mrb[30].mxu1 %vm522_vm2, %v8256_v47  ;;  %v14249_v47 = vld [vmem:[#allocation2 + $0x150] sm:$0xff] }
 0xb73   : > { %12691 = vmatprep.mubr.msk.f32.mxu1 %vm14301_vm1, %v14300_v1  ;;  %v8297_v24 = vrot.slane %v14249_v47, 3 }
 0xb75   : > { %v8298_v51 = vsel %vm3814_vm8, %v8295_v55, %v8297_v24 }
 0xb76   : > { %12692 = vmatmul.mubr.msk.f32.gmra.mrb[32].mxu1 %vm522_vm2, %v8258_v4  ;;  %v14250_v4 = vld [vmem:[#allocation2 + $0x158] sm:$0xff] }
 0xb77   : > { %12694 = vmatprep.mubr.msk.f32.mxu1 %vm14301_vm1, %v14300_v1  ;;  %v8299_v21 = vrot.slane %v14250_v4, 3 }
 0xb79   : > { %v8300_v45 = vsel %vm3814_vm8, %v8297_v24, %v8299_v21  ;;  %v8302_v62 = vsel %vm3814_vm8, %v8299_v21, %v8301_v40 }
 0xb7a   : > { %12695 = vmatmul.mubr.msk.f32.gmra.mrb[34].mxu1 %vm522_vm2, %v8260_v13  ;;  %v8303_v13 = vrot.slane %v18771_v38, 3 }
 0xb7b   : > { %12697 = vmatprep.mubr.msk.f32.mxu1 %vm14301_vm1, %v14300_v1 }
 0xb7c   : > { %v8304_v18 = vsel %vm3814_vm8, %v8301_v40, %v8303_v13 }
 0xb7e   : > { %12698 = vmatmul.mubr.msk.f32.gmra.mrb[36].mxu1 %vm522_vm2, %v8262_v8  ;;  %v19219_v8 = vld [vmem:[%s19441_s6] ss:$0 sm:$0xff] }
 0xb7f   : > { %12700 = vmatprep.mubr.msk.f32.mxu1 %vm14301_vm1, %v14300_v1 }
 0xb82   : > { %12701 = vmatmul.mubr.msk.f32.gmra.mrb[38].mxu1 %vm522_vm2, %v8264_v46 }
 0xb83   : > { %12703 = vmatprep.mubr.msk.f32.mxu1 %vm14301_vm1, %v14300_v1 }
 0xb86   : > { %12704 = vmatmul.mubr.msk.f32.gmra.mrb[40].mxu1 %vm522_vm2, %v8266_v58 }
 0xb87   : > { %12706 = vmatprep.mubr.msk.f32.mxu1 %vm14301_vm1, %v14300_v1 }
 0xb8a   : > { %12707 = vmatmul.mubr.msk.f32.gmra.mrb[42].mxu1 %vm522_vm2, %v8268_v15 }
 0xb8b   : > { %12709 = vmatprep.mubr.msk.f32.mxu1 %vm14301_vm1, %v14300_v1 }
 0xb8e   : > { %12710 = vmatmul.mubr.msk.f32.gmra.mrb[44].mxu1 %vm522_vm2, %v8270_v36 }
 0xb8f   : > { %12712 = vmatprep.mubr.msk.f32.mxu1 %vm14301_vm1, %v14300_v1 }
 0xb92   : > { %12713 = vmatmul.mubr.msk.f32.gmra.mrb[46].mxu1 %vm522_vm2, %v8272_v28 }
 0xb93   : > { %12715 = vmatprep.mubr.msk.f32.mxu1 %vm14301_vm1, %v14300_v1 }
 0xb96   : > { %12716 = vmatmul.mubr.msk.f32.gmra.mrb[48].mxu1 %vm522_vm2, %v8274_v3  ;;  %v14253_v3 = vld [vmem:[%s14465_s12 + $0x28] sm:$0xff] }
 0xb97   : > { %12718 = vmatprep.mubr.msk.f32.mxu1 %vm14301_vm1, %v14300_v1 }
 0xb9a   : > { %12719 = vmatmul.mubr.msk.f32.gmra.mrb[50].mxu1 %vm522_vm2, %v8276_v63 }
 0xb9b   : > { %12721 = vmatprep.mubr.msk.f32.mxu1 %vm14301_vm1, %v14300_v1 }
 0xb9e   : > { %12722 = vmatmul.mubr.msk.f32.gmra.mrb[52].mxu1 %vm522_vm2, %v8278_v34 }
 0xb9f   : > { %12724 = vmatprep.mubr.msk.f32.mxu1 %vm14301_vm1, %v14300_v1 }
 0xba2   : > { %12725 = vmatmul.mubr.msk.f32.gmra.mrb[54].mxu1 %vm522_vm2, %v8280_v23 }
 0xba3   : > { %12727 = vmatprep.mubr.msk.f32.mxu1 %vm14301_vm1, %v14300_v1 }
 0xba6   : > { %12728 = vmatmul.mubr.msk.f32.gmra.mrb[56].mxu1 %vm522_vm2, %v8282_v26 }
 0xba7   : > { %12730 = vmatprep.mubr.msk.f32.mxu1 %vm14301_vm1, %v14300_v1 }
 0xbaa   : > { %12731 = vmatmul.mubr.msk.f32.gmra.mrb[58].mxu1 %vm522_vm2, %v8284_v27 }
 0xbab   : > { %12733 = vmatprep.mubr.msk.f32.mxu1 %vm14301_vm1, %v14300_v1 }
 0xbae   : > { %12734 = vmatmul.mubr.msk.f32.gmra.mrb[60].mxu1 %vm522_vm2, %v8286_v7 }
 0xbaf   : > { %12736 = vmatprep.mubr.msk.f32.mxu1 %vm14301_vm1, %v14300_v1 }
 0xbb2   : > { %12737 = vmatmul.mubr.msk.f32.gmra.mrb[62].mxu1 %vm522_vm2, %v8288_v48  ;;  %v14256_v48 = vld [vmem:[%s14465_s12 + $0x40] sm:$0xff] }
 0xbb3   : > { %12739 = vmatprep.mubr.msk.f32.mxu1 %vm14301_vm1, %v14300_v1 }
 0xbb6   : > { %12740 = vmatmul.mubr.msk.f32.gmra.mrb[64].mxu1 %vm522_vm2, %v8290_v0 }
 0xbb7   : > { %12742 = vmatprep.mubr.msk.f32.mxu1 %vm14301_vm1, %v14300_v1 }
 0xbba   : > { %12743 = vmatmul.mubr.msk.f32.gmra.mrb[66].mxu1 %vm522_vm2, %v8292_v49 }
 0xbbb   : > { %12745 = vmatprep.mubr.msk.f32.mxu1 %vm14301_vm1, %v14300_v1 }
 0xbbe   : > { %12746 = vmatmul.mubr.msk.f32.gmra.mrb[68].mxu1 %vm522_vm2, %v8294_v31 }
 0xbbf   : > { %12748 = vmatprep.mubr.msk.f32.mxu1 %vm14301_vm1, %v14300_v1 }
 0xbc2   : > { %12749 = vmatmul.mubr.msk.f32.gmra.mrb[70].mxu1 %vm522_vm2, %v8296_v14 }
 0xbc3   : > { %12751 = vmatprep.mubr.msk.f32.mxu1 %vm14301_vm1, %v14300_v1 }
 0xbc6   : > { %12752 = vmatmul.mubr.msk.f32.gmra.mrb[72].mxu1 %vm522_vm2, %v8298_v51  ;;  %v14258_v51 = vld [vmem:[%s14465_s12 + $0x50] sm:$0xff] }
 0xbc7   : > { %12754 = vmatprep.mubr.msk.f32.mxu1 %vm14301_vm1, %v14300_v1 }
 0xbca   : > { %12755 = vmatmul.mubr.msk.f32.gmra.mrb[74].mxu1 %vm522_vm2, %v8300_v45 }
 0xbcb   : > { %12757 = vmatprep.mubr.msk.f32.mxu1 %vm14301_vm1, %v14300_v1 }
 0xbce   : > { %12758 = vmatmul.mubr.msk.f32.gmra.mrb[76].mxu1 %vm522_vm2, %v8302_v62 }
 0xbcf   : > { %12760 = vmatprep.mubr.msk.f32.mxu1 %vm14301_vm1, %v14300_v1 }
 0xbd2   : > { %12761 = vmatmul.mubr.msk.f32.gmra.mrb[78].mxu1 %vm522_vm2, %v8304_v18  ;;  %v14259_v18 = vld [vmem:[%s14465_s12 + $0x58] sm:$0xff] }
 0xbd3   : > { %12763 = vmatprep.mubr.msk.f32.mxu1 %vm14301_vm1, %v14300_v1 }
 0xbd6   : > { %12764 = vmatmul.mubr.msk.f32.gmra.mrb[80].mxu1 %vm522_vm2, %v8303_v13 }
 0xc09   : > { %v8456_v38 = vpop.f32.mrb[0].mxu1 }
 0xc0a   : > { %v8708_v61 = vmul.f32 %v19214_v2, %v8456_v38  ;;  %v12645_v20 = vpop.f32.mrb[1].mxu1 }
 0xc0c   : > { %v8756_v1 = vadd.f32 %v19219_v8, %v8708_v61 }
 0xc0d   : > { %v8461_v46 = vpop.f32.mrb[2].mxu1 }
 0xc0e   : > { %v8797_v12 = vadd.f32 %v14251_v9, %v8756_v1  ;;  %v8709_v58 = vmul.f32 %v19214_v2, %v8461_v46  ;;  %v12648_v41 = vpop.f32.mrb[3].mxu1 }
 0xc10   : > { %v8838_v54 = vmax.f32 %v8797_v12, 0.0  ;;  %v8757_v15 = vadd.f32 %v19219_v8, %v8709_v58  ;;  %v14260_v12 = vld [vmem:[%s14465_s12 + $0x60] sm:$0xff] }
 0xc11   : > { %v8466_v22 = vpop.f32.mrb[4].mxu1 }
 0xc12   : > { %8879 = vst.msk [vmem:[%s19229_s26] sm:$0xff] %vm522_vm2, %v8838_v54  ;;  %v8798_v36 = vadd.f32 %v14252_v37, %v8757_v15  ;;  %v8710_v32 = vmul.f32 %v19214_v2, %v8466_v22  ;;  %v12651_v33 = vpop.f32.mrb[5].mxu1 }
 0xc14   : > { %v8839_v28 = vmax.f32 %v8798_v36, 0.0  ;;  %v8758_v16 = vadd.f32 %v19219_v8, %v8710_v32  ;;  %v14261_v36 = vld [vmem:[%s14465_s12 + $0x68] sm:$0xff] }
 0xc15   : > { %v8471_v17 = vpop.f32.mrb[6].mxu1 }
 0xc16   : > { %8880 = vst.msk [vmem:[%s19229_s26 + $0x8] sm:$0xff] %vm522_vm2, %v8839_v28  ;;  %v8799_v44 = vadd.f32 %v14253_v3, %v8758_v16  ;;  %v8711_v10 = vmul.f32 %v19214_v2, %v8471_v17  ;;  %v12654_v63 = vpop.f32.mrb[7].mxu1 }
 0xc18   : > { %v8840_v11 = vmax.f32 %v8799_v44, 0.0  ;;  %v8759_v29 = vadd.f32 %v19219_v8, %v8711_v10  ;;  %v14262_v44 = vld [vmem:[%s14465_s12 + $0x70] sm:$0xff] }
 0xc19   : > { %v8476_v34 = vpop.f32.mrb[8].mxu1 }
 0xc1a   : > { %8881 = vst.msk [vmem:[%s19229_s26 + $0x10] sm:$0xff] %vm522_vm2, %v8840_v11  ;;  %v8800_v25 = vadd.f32 %v14254_v42, %v8759_v29  ;;  %v8712_v23 = vmul.f32 %v19214_v2, %v8476_v34  ;;  %v12657_v19 = vpop.f32.mrb[9].mxu1 }
 0xc1c   : > { %v8841_v53 = vmax.f32 %v8800_v25, 0.0  ;;  %v8760_v26 = vadd.f32 %v19219_v8, %v8712_v23  ;;  %v14263_v25 = vld [vmem:[%s14465_s12 + $0x78] sm:$0xff] }
 0xc1d   : > { %v8481_v30 = vpop.f32.mrb[10].mxu1 }
 0xc1e   : > { %8882 = vst.msk [vmem:[%s19229_s26 + $0x18] sm:$0xff] %vm522_vm2, %v8841_v53  ;;  %v8801_v27 = vadd.f32 %v14255_v5, %v8760_v26  ;;  %v8713_v60 = vmul.f32 %v19214_v2, %v8481_v30  ;;  %v12660_v6 = vpop.f32.mrb[11].mxu1 }
 0xc20   : > { %v8842_v7 = vmax.f32 %v8801_v27, 0.0  ;;  %v8761_v57 = vadd.f32 %v19219_v8, %v8713_v60  ;;  %v14264_v27 = vld [vmem:[%s14465_s12 + $0x80] sm:$0xff] }
 0xc21   : > { %v8486_v56 = vpop.f32.mrb[12].mxu1 }
 0xc22   : > { %8883 = vst.msk [vmem:[%s19229_s26 + $0x20] sm:$0xff] %vm522_vm2, %v8842_v7  ;;  %v8802_v59 = vadd.f32 %v14256_v48, %v8761_v57  ;;  %v8714_v52 = vmul.f32 %v19214_v2, %v8486_v56  ;;  %v12663_v0 = vpop.f32.mrb[13].mxu1 }
 0xc24   : > { %v8843_v50 = vmax.f32 %v8802_v59, 0.0  ;;  %v8762_v35 = vadd.f32 %v19219_v8, %v8714_v52  ;;  %v14265_v59 = vld [vmem:[%s14465_s12 + $0x88] sm:$0xff] }
 0xc25   : > { %v8491_v49 = vpop.f32.mrb[14].mxu1 }
 0xc26   : > { %8884 = vst.msk [vmem:[%s19229_s26 + $0x28] sm:$0xff] %vm522_vm2, %v8843_v50  ;;  %v8803_v43 = vadd.f32 %v14257_v39, %v8762_v35  ;;  %v8715_v31 = vmul.f32 %v19214_v2, %v8491_v49  ;;  %v12666_v55 = vpop.f32.mrb[15].mxu1 }
 0xc28   : > { %v8844_v14 = vmax.f32 %v8803_v43, 0.0  ;;  %v8763_v47 = vadd.f32 %v19219_v8, %v8715_v31  ;;  %v14266_v43 = vld [vmem:[%s14465_s12 + $0x90] sm:$0xff] }
 0xc29   : > { %v8496_v24 = vpop.f32.mrb[16].mxu1 }
 0xc2a   : > { %8885 = vst.msk [vmem:[%s19229_s26 + $0x30] sm:$0xff] %vm522_vm2, %v8844_v14  ;;  %v8804_v4 = vadd.f32 %v14258_v51, %v8763_v47  ;;  %v8716_v21 = vmul.f32 %v19214_v2, %v8496_v24  ;;  %v12669_v45 = vpop.f32.mrb[17].mxu1 }
 0xc2c   : > { %v8845_v40 = vmax.f32 %v8804_v4, 0.0  ;;  %v8764_v13 = vadd.f32 %v19219_v8, %v8716_v21  ;;  %v14267_v4 = vld [vmem:[%s14465_s12 + $0x98] sm:$0xff] }
 0xc2d   : > { %v8501_v62 = vpop.f32.mrb[18].mxu1 }
 0xc2e   : > { %8886 = vst.msk [vmem:[%s19229_s26 + $0x38] sm:$0xff] %vm522_vm2, %v8845_v40  ;;  %v8805_v38 = vadd.f32 %v14259_v18, %v8764_v13  ;;  %v8717_v61 = vmul.f32 %v19214_v2, %v8501_v62  ;;  %v12672_v20 = vpop.f32.mrb[19].mxu1 }
 0xc30   : > { %v8846_v1 = vmax.f32 %v8805_v38, 0.0  ;;  %v8765_v46 = vadd.f32 %v19219_v8, %v8717_v61  ;;  %v14268_v38 = vld [vmem:[%s14465_s12 + $0xa0] sm:$0xff] }
 0xc31   : > { %v8506_v9 = vpop.f32.mrb[20].mxu1 }
 0xc32   : > { %8887 = vst.msk [vmem:[%s19229_s26 + $0x40] sm:$0xff] %vm522_vm2, %v8846_v1  ;;  %v8806_v58 = vadd.f32 %v14260_v12, %v8765_v46  ;;  %v8718_v41 = vmul.f32 %v19214_v2, %v8506_v9  ;;  %v12675_v54 = vpop.f32.mrb[21].mxu1 }
 0xc34   : > { %v8847_v15 = vmax.f32 %v8806_v58, 0.0  ;;  %v8766_v22 = vadd.f32 %v19219_v8, %v8718_v41  ;;  %v14269_v58 = vld [vmem:[%s14465_s12 + $0xa8] sm:$0xff] }
 0xc35   : > { %v8511_v37 = vpop.f32.mrb[22].mxu1 }
 0xc36   : > { %8888 = vst.msk [vmem:[%s19229_s26 + $0x48] sm:$0xff] %vm522_vm2, %v8847_v15  ;;  %v8807_v32 = vadd.f32 %v14261_v36, %v8766_v22  ;;  %v8719_v33 = vmul.f32 %v19214_v2, %v8511_v37  ;;  %v12678_v28 = vpop.f32.mrb[23].mxu1 }
 0xc38   : > { %v8848_v16 = vmax.f32 %v8807_v32, 0.0  ;;  %v8767_v17 = vadd.f32 %v19219_v8, %v8719_v33  ;;  %v14270_v32 = vld [vmem:[%s14465_s12 + $0xb0] sm:$0xff] }
 0xc39   : > { %v8516_v3 = vpop.f32.mrb[24].mxu1 }
 0xc3a   : > { %8889 = vst.msk [vmem:[%s19229_s26 + $0x50] sm:$0xff] %vm522_vm2, %v8848_v16  ;;  %v8808_v10 = vadd.f32 %v14262_v44, %v8767_v17  ;;  %v8720_v63 = vmul.f32 %v19214_v2, %v8516_v3  ;;  %v12681_v11 = vpop.f32.mrb[25].mxu1 }
 0xc3c   : > { %v8849_v29 = vmax.f32 %v8808_v10, 0.0  ;;  %v8768_v34 = vadd.f32 %v19219_v8, %v8720_v63  ;;  %v14271_v10 = vld [vmem:[%s14465_s12 + $0xb8] sm:$0xff] }
 0xc3d   : > { %v8521_v42 = vpop.f32.mrb[26].mxu1 }
 0xc3e   : > { %8890 = vst.msk [vmem:[%s19229_s26 + $0x58] sm:$0xff] %vm522_vm2, %v8849_v29  ;;  %v8809_v23 = vadd.f32 %v14263_v25, %v8768_v34  ;;  %v8721_v19 = vmul.f32 %v19214_v2, %v8521_v42  ;;  %v12684_v53 = vpop.f32.mrb[27].mxu1 }
 0xc40   : > { %v8850_v26 = vmax.f32 %v8809_v23, 0.0  ;;  %v8769_v30 = vadd.f32 %v19219_v8, %v8721_v19  ;;  %v14272_v23 = vld [vmem:[%s14465_s12 + $0xc0] sm:$0xff] }
 0xc41   : > { %v8526_v5 = vpop.f32.mrb[28].mxu1 }
 0xc42   : > { %8891 = vst.msk [vmem:[%s19229_s26 + $0x60] sm:$0xff] %vm522_vm2, %v8850_v26  ;;  %v8810_v60 = vadd.f32 %v14264_v27, %v8769_v30  ;;  %v8722_v6 = vmul.f32 %v19214_v2, %v8526_v5  ;;  %v12687_v7 = vpop.f32.mrb[29].mxu1 }
 0xc44   : > { %v8851_v57 = vmax.f32 %v8810_v60, 0.0  ;;  %v8770_v56 = vadd.f32 %v19219_v8, %v8722_v6  ;;  %v14273_v60 = vld [vmem:[%s14465_s12 + $0xc8] sm:$0xff] }
 0xc45   : > { %v8531_v48 = vpop.f32.mrb[30].mxu1 }
 0xc46   : > { %8892 = vst.msk [vmem:[%s19229_s26 + $0x68] sm:$0xff] %vm522_vm2, %v8851_v57  ;;  %v8811_v52 = vadd.f32 %v14265_v59, %v8770_v56  ;;  %v8723_v0 = vmul.f32 %v19214_v2, %v8531_v48  ;;  %v12690_v50 = vpop.f32.mrb[31].mxu1 }
 0xc48   : > { %v8852_v35 = vmax.f32 %v8811_v52, 0.0  ;;  %v8771_v49 = vadd.f32 %v19219_v8, %v8723_v0  ;;  %v14274_v52 = vld [vmem:[%s14465_s12 + $0xd0] sm:$0xff] }
 0xc49   : > { %v8536_v39 = vpop.f32.mrb[32].mxu1 }
 0xc4a   : > { %8893 = vst.msk [vmem:[%s19229_s26 + $0x70] sm:$0xff] %vm522_vm2, %v8852_v35  ;;  %v8812_v31 = vadd.f32 %v14266_v43, %v8771_v49  ;;  %v8724_v55 = vmul.f32 %v19214_v2, %v8536_v39  ;;  %v12693_v14 = vpop.f32.mrb[33].mxu1 }
 0xc4c   : > { %v8853_v47 = vmax.f32 %v8812_v31, 0.0  ;;  %v8772_v24 = vadd.f32 %v19219_v8, %v8724_v55  ;;  %v14275_v31 = vld [vmem:[%s14465_s12 + $0xd8] sm:$0xff] }
 0xc4d   : > { %v8541_v51 = vpop.f32.mrb[34].mxu1 }
 0xc4e   : > { %8894 = vst.msk [vmem:[%s19229_s26 + $0x78] sm:$0xff] %vm522_vm2, %v8853_v47  ;;  %v8813_v21 = vadd.f32 %v14267_v4, %v8772_v24  ;;  %v8725_v45 = vmul.f32 %v19214_v2, %v8541_v51  ;;  %v12696_v40 = vpop.f32.mrb[35].mxu1 }
 0xc50   : > { %v8854_v13 = vmax.f32 %v8813_v21, 0.0  ;;  %v8773_v62 = vadd.f32 %v19219_v8, %v8725_v45  ;;  %v14276_v21 = vld [vmem:[%s14465_s12 + $0xe0] sm:$0xff] }
 0xc51   : > { %v8546_v18 = vpop.f32.mrb[36].mxu1 }
 0xc52   : > { %8895 = vst.msk [vmem:[%s19229_s26 + $0x80] sm:$0xff] %vm522_vm2, %v8854_v13  ;;  %v8814_v61 = vadd.f32 %v14268_v38, %v8773_v62  ;;  %v8726_v20 = vmul.f32 %v19214_v2, %v8546_v18  ;;  %v12699_v1 = vpop.f32.mrb[37].mxu1 }
 0xc54   : > { %v8855_v46 = vmax.f32 %v8814_v61, 0.0  ;;  %v8774_v9 = vadd.f32 %v19219_v8, %v8726_v20  ;;  %v14277_v61 = vld [vmem:[%s14465_s12 + $0xe8] sm:$0xff] }
 0xc55   : > { %v8551_v12 = vpop.f32.mrb[38].mxu1 }
 0xc56   : > { %8896 = vst.msk [vmem:[%s19229_s26 + $0x88] sm:$0xff] %vm522_vm2, %v8855_v46  ;;  %v8815_v41 = vadd.f32 %v14269_v58, %v8774_v9  ;;  %v8727_v54 = vmul.f32 %v19214_v2, %v8551_v12  ;;  %v12702_v15 = vpop.f32.mrb[39].mxu1 }
 0xc58   : > { %v8856_v22 = vmax.f32 %v8815_v41, 0.0  ;;  %v8775_v37 = vadd.f32 %v19219_v8, %v8727_v54  ;;  %v14278_v41 = vld [vmem:[%s14465_s12 + $0xf0] sm:$0xff] }
 0xc59   : > { %v8556_v36 = vpop.f32.mrb[40].mxu1 }
 0xc5a   : > { %8897 = vst.msk [vmem:[%s19229_s26 + $0x90] sm:$0xff] %vm522_vm2, %v8856_v22  ;;  %v8816_v33 = vadd.f32 %v14270_v32, %v8775_v37  ;;  %v8728_v28 = vmul.f32 %v19214_v2, %v8556_v36  ;;  %v12705_v16 = vpop.f32.mrb[41].mxu1 }
 0xc5c   : > { %v8857_v17 = vmax.f32 %v8816_v33, 0.0  ;;  %v8776_v3 = vadd.f32 %v19219_v8, %v8728_v28  ;;  %v14279_v33 = vld [vmem:[%s14465_s12 + $0xf8] sm:$0xff] }
 0xc5d   : > { %v8561_v44 = vpop.f32.mrb[42].mxu1 }
 0xc5e   : > { %8898 = vst.msk [vmem:[%s19229_s26 + $0x98] sm:$0xff] %vm522_vm2, %v8857_v17  ;;  %v8817_v63 = vadd.f32 %v14271_v10, %v8776_v3  ;;  %v8729_v11 = vmul.f32 %v19214_v2, %v8561_v44  ;;  %v12708_v29 = vpop.f32.mrb[43].mxu1 }
 0xc60   : > { %v8858_v34 = vmax.f32 %v8817_v63, 0.0  ;;  %v8777_v42 = vadd.f32 %v19219_v8, %v8729_v11  ;;  %v14280_v63 = vld [vmem:[%s14465_s12 + $0x100] sm:$0xff] }
 0xc61   : > { %v8566_v25 = vpop.f32.mrb[44].mxu1 }
 0xc62   : > { %8899 = vst.msk [vmem:[%s19229_s26 + $0xa0] sm:$0xff] %vm522_vm2, %v8858_v34  ;;  %v8818_v19 = vadd.f32 %v14272_v23, %v8777_v42  ;;  %v8730_v53 = vmul.f32 %v19214_v2, %v8566_v25  ;;  %v12711_v26 = vpop.f32.mrb[45].mxu1 }
 0xc64   : > { %v8859_v30 = vmax.f32 %v8818_v19, 0.0  ;;  %v8778_v5 = vadd.f32 %v19219_v8, %v8730_v53  ;;  %v14281_v19 = vld [vmem:[%s14465_s12 + $0x108] sm:$0xff] }
 0xc65   : > { %v8571_v27 = vpop.f32.mrb[46].mxu1 }
 0xc66   : > { %8900 = vst.msk [vmem:[%s19229_s26 + $0xa8] sm:$0xff] %vm522_vm2, %v8859_v30  ;;  %v8819_v6 = vadd.f32 %v14273_v60, %v8778_v5  ;;  %v8731_v7 = vmul.f32 %v19214_v2, %v8571_v27  ;;  %v12714_v57 = vpop.f32.mrb[47].mxu1 }
 0xc68   : > { %v8860_v56 = vmax.f32 %v8819_v6, 0.0  ;;  %v8779_v48 = vadd.f32 %v19219_v8, %v8731_v7  ;;  %v14282_v6 = vld [vmem:[%s14465_s12 + $0x110] sm:$0xff] }
 0xc69   : > { %v8576_v59 = vpop.f32.mrb[48].mxu1 }
 0xc6a   : > { %8901 = vst.msk [vmem:[%s19229_s26 + $0xb0] sm:$0xff] %vm522_vm2, %v8860_v56  ;;  %v8820_v0 = vadd.f32 %v14274_v52, %v8779_v48  ;;  %v8732_v50 = vmul.f32 %v19214_v2, %v8576_v59  ;;  %v12717_v35 = vpop.f32.mrb[49].mxu1 }
 0xc6c   : > { %v8861_v49 = vmax.f32 %v8820_v0, 0.0  ;;  %v8780_v39 = vadd.f32 %v19219_v8, %v8732_v50  ;;  %v14283_v0 = vld [vmem:[%s14465_s12 + $0x118] sm:$0xff] }
 0xc6d   : > { %v8581_v43 = vpop.f32.mrb[50].mxu1 }
 0xc6e   : > { %8902 = vst.msk [vmem:[%s19229_s26 + $0xb8] sm:$0xff] %vm522_vm2, %v8861_v49  ;;  %v8821_v55 = vadd.f32 %v14275_v31, %v8780_v39  ;;  %v8733_v14 = vmul.f32 %v19214_v2, %v8581_v43  ;;  %v12720_v47 = vpop.f32.mrb[51].mxu1 }
 0xc70   : > { %v8862_v24 = vmax.f32 %v8821_v55, 0.0  ;;  %v8781_v51 = vadd.f32 %v19219_v8, %v8733_v14  ;;  %v14284_v55 = vld [vmem:[%s14465_s12 + $0x120] sm:$0xff] }
 0xc71   : > { %v8586_v4 = vpop.f32.mrb[52].mxu1 }
 0xc72   : > { %8903 = vst.msk [vmem:[%s19229_s26 + $0xc0] sm:$0xff] %vm522_vm2, %v8862_v24  ;;  %v8822_v45 = vadd.f32 %v14276_v21, %v8781_v51  ;;  %v8734_v40 = vmul.f32 %v19214_v2, %v8586_v4  ;;  %v12723_v13 = vpop.f32.mrb[53].mxu1 }
 0xc74   : > { %v8863_v62 = vmax.f32 %v8822_v45, 0.0  ;;  %v8782_v18 = vadd.f32 %v19219_v8, %v8734_v40  ;;  %v14285_v45 = vld [vmem:[%s14465_s12 + $0x128] sm:$0xff] }
 0xc75   : > { %v8591_v38 = vpop.f32.mrb[54].mxu1 }
 0xc76   : > { %8904 = vst.msk [vmem:[%s19229_s26 + $0xc8] sm:$0xff] %vm522_vm2, %v8863_v62  ;;  %v8823_v20 = vadd.f32 %v14277_v61, %v8782_v18  ;;  %v8735_v1 = vmul.f32 %v19214_v2, %v8591_v38  ;;  %v12726_v46 = vpop.f32.mrb[55].mxu1 }
 0xc78   : > { %v8864_v9 = vmax.f32 %v8823_v20, 0.0  ;;  %v8783_v12 = vadd.f32 %v19219_v8, %v8735_v1  ;;  %v14286_v20 = vld [vmem:[%s14465_s12 + $0x130] sm:$0xff] }
 0xc79   : > { %v8596_v58 = vpop.f32.mrb[56].mxu1 }
 0xc7a   : > { %8905 = vst.msk [vmem:[%s19229_s26 + $0xd0] sm:$0xff] %vm522_vm2, %v8864_v9  ;;  %v8824_v54 = vadd.f32 %v14278_v41, %v8783_v12  ;;  %v8736_v15 = vmul.f32 %v19214_v2, %v8596_v58  ;;  %v12729_v22 = vpop.f32.mrb[57].mxu1 }
 0xc7c   : > { %v8865_v37 = vmax.f32 %v8824_v54, 0.0  ;;  %v8784_v36 = vadd.f32 %v19219_v8, %v8736_v15  ;;  %v14287_v54 = vld [vmem:[%s14465_s12 + $0x138] sm:$0xff] }
 0xc7d   : > { %v8601_v32 = vpop.f32.mrb[58].mxu1 }
 0xc7e   : > { %8906 = vst.msk [vmem:[%s19229_s26 + $0xd8] sm:$0xff] %vm522_vm2, %v8865_v37  ;;  %v8825_v28 = vadd.f32 %v14279_v33, %v8784_v36  ;;  %v8737_v16 = vmul.f32 %v19214_v2, %v8601_v32  ;;  %v12732_v17 = vpop.f32.mrb[59].mxu1 }
 0xc80   : > { %v8866_v3 = vmax.f32 %v8825_v28, 0.0  ;;  %v8785_v44 = vadd.f32 %v19219_v8, %v8737_v16  ;;  %v14288_v28 = vld [vmem:[%s14465_s12 + $0x140] sm:$0xff] }
 0xc81   : > { %v8606_v10 = vpop.f32.mrb[60].mxu1 }
 0xc82   : > { %8907 = vst.msk [vmem:[%s19229_s26 + $0xe0] sm:$0xff] %vm522_vm2, %v8866_v3  ;;  %v8826_v11 = vadd.f32 %v14280_v63, %v8785_v44  ;;  %v8738_v29 = vmul.f32 %v19214_v2, %v8606_v10  ;;  %v12735_v34 = vpop.f32.mrb[61].mxu1 }
 0xc84   : > { %v8867_v42 = vmax.f32 %v8826_v11, 0.0  ;;  %v8786_v25 = vadd.f32 %v19219_v8, %v8738_v29  ;;  %v14289_v11 = vld [vmem:[%s14465_s12 + $0x148] sm:$0xff] }
 0xc85   : > { %v8611_v23 = vpop.f32.mrb[62].mxu1 }
 0xc86   : > { %8908 = vst.msk [vmem:[%s19229_s26 + $0xe8] sm:$0xff] %vm522_vm2, %v8867_v42  ;;  %v8827_v53 = vadd.f32 %v14281_v19, %v8786_v25  ;;  %v8739_v26 = vmul.f32 %v19214_v2, %v8611_v23  ;;  %v12738_v30 = vpop.f32.mrb[63].mxu1 }
 0xc88   : > { %v8868_v5 = vmax.f32 %v8827_v53, 0.0  ;;  %v8787_v27 = vadd.f32 %v19219_v8, %v8739_v26  ;;  %v14290_v53 = vld [vmem:[%s14465_s12 + $0x150] sm:$0xff] }
 0xc89   : > { %v8616_v60 = vpop.f32.mrb[64].mxu1 }
 0xc8a   : > { %8909 = vst.msk [vmem:[%s19229_s26 + $0xf0] sm:$0xff] %vm522_vm2, %v8868_v5  ;;  %v8828_v7 = vadd.f32 %v14282_v6, %v8787_v27  ;;  %v8740_v57 = vmul.f32 %v19214_v2, %v8616_v60  ;;  %v12741_v56 = vpop.f32.mrb[65].mxu1  ;;  %v14291_v6 = vld [vmem:[%s14465_s12 + $0x158] sm:$0xff] }
 0xc8c   : > { %v8869_v48 = vmax.f32 %v8828_v7, 0.0  ;;  %v8788_v59 = vadd.f32 %v19219_v8, %v8740_v57 }
 0xc8d   : > { %v8621_v52 = vpop.f32.mrb[66].mxu1 }
 0xc8e   : > { %8910 = vst.msk [vmem:[%s19229_s26 + $0xf8] sm:$0xff] %vm522_vm2, %v8869_v48  ;;  %v8829_v50 = vadd.f32 %v14283_v0, %v8788_v59  ;;  %v8741_v35 = vmul.f32 %v19214_v2, %v8621_v52  ;;  %v12744_v49 = vpop.f32.mrb[67].mxu1 }
 0xc90   : > { %v8870_v39 = vmax.f32 %v8829_v50, 0.0  ;;  %v8789_v43 = vadd.f32 %v19219_v8, %v8741_v35 }
 0xc91   : > { %v8626_v31 = vpop.f32.mrb[68].mxu1 }
 0xc92   : > { %8911 = vst.msk [vmem:[%s19229_s26 + $0x100] sm:$0xff] %vm522_vm2, %v8870_v39  ;;  %v8830_v14 = vadd.f32 %v14284_v55, %v8789_v43  ;;  %v8742_v47 = vmul.f32 %v19214_v2, %v8626_v31  ;;  %v12747_v24 = vpop.f32.mrb[69].mxu1 }
 0xc94   : > { %v8871_v51 = vmax.f32 %v8830_v14, 0.0  ;;  %v8790_v4 = vadd.f32 %v19219_v8, %v8742_v47 }
 0xc95   : > { %v8631_v21 = vpop.f32.mrb[70].mxu1 }
 0xc96   : > { %8912 = vst.msk [vmem:[%s19229_s26 + $0x108] sm:$0xff] %vm522_vm2, %v8871_v51  ;;  %v8831_v40 = vadd.f32 %v14285_v45, %v8790_v4  ;;  %v8743_v13 = vmul.f32 %v19214_v2, %v8631_v21  ;;  %v12750_v62 = vpop.f32.mrb[71].mxu1 }
 0xc98   : > { %v8872_v18 = vmax.f32 %v8831_v40, 0.0  ;;  %v8791_v38 = vadd.f32 %v19219_v8, %v8743_v13 }
 0xc99   : > { %v8636_v61 = vpop.f32.mrb[72].mxu1 }
 0xc9a   : > { %8913 = vst.msk [vmem:[%s19229_s26 + $0x110] sm:$0xff] %vm522_vm2, %v8872_v18  ;;  %v8832_v1 = vadd.f32 %v14286_v20, %v8791_v38  ;;  %v8744_v46 = vmul.f32 %v19214_v2, %v8636_v61  ;;  %v12753_v9 = vpop.f32.mrb[73].mxu1 }
 0xc9c   : > { %v8873_v12 = vmax.f32 %v8832_v1, 0.0  ;;  %v8792_v58 = vadd.f32 %v19219_v8, %v8744_v46 }
 0xc9d   : > { %v8641_v41 = vpop.f32.mrb[74].mxu1 }
 0xc9e   : > { %8914 = vst.msk [vmem:[%s19229_s26 + $0x118] sm:$0xff] %vm522_vm2, %v8873_v12  ;;  %v8833_v15 = vadd.f32 %v14287_v54, %v8792_v58  ;;  %v8745_v22 = vmul.f32 %v19214_v2, %v8641_v41  ;;  %v12756_v37 = vpop.f32.mrb[75].mxu1 }
 0xca0   : > { %v8874_v36 = vmax.f32 %v8833_v15, 0.0  ;;  %v8793_v32 = vadd.f32 %v19219_v8, %v8745_v22 }
 0xca1   : > { %v8646_v33 = vpop.f32.mrb[76].mxu1 }
 0xca2   : > { %8915 = vst.msk [vmem:[%s19229_s26 + $0x120] sm:$0xff] %vm522_vm2, %v8874_v36  ;;  %v8834_v16 = vadd.f32 %v14288_v28, %v8793_v32  ;;  %v8746_v17 = vmul.f32 %v19214_v2, %v8646_v33  ;;  %v12759_v3 = vpop.f32.mrb[77].mxu1 }
 0xca4   : > { %v8875_v44 = vmax.f32 %v8834_v16, 0.0  ;;  %v8794_v10 = vadd.f32 %v19219_v8, %v8746_v17 }
 0xca5   : > { %v8651_v63 = vpop.f32.mrb[78].mxu1 }
 0xca6   : > { %8916 = vst.msk [vmem:[%s19229_s26 + $0x128] sm:$0xff] %vm522_vm2, %v8875_v44  ;;  %v8835_v29 = vadd.f32 %v14289_v11, %v8794_v10  ;;  %v8747_v34 = vmul.f32 %v19214_v2, %v8651_v63  ;;  %v12762_v42 = vpop.f32.mrb[79].mxu1 }
 0xca8   : > { %v8876_v25 = vmax.f32 %v8835_v29, 0.0  ;;  %v8795_v23 = vadd.f32 %v19219_v8, %v8747_v34 }
 0xca9   : > { %v8656_v19 = vpop.f32.mrb[80].mxu1 }
 0xcaa   : > { %8917 = vst.msk [vmem:[%s19229_s26 + $0x130] sm:$0xff] %vm522_vm2, %v8876_v25  ;;  %v8836_v26 = vadd.f32 %v14290_v53, %v8795_v23  ;;  %v8748_v30 = vmul.f32 %v19214_v2, %v8656_v19  ;;  %v12765_v5 = vpop.f32.mrb[81].mxu1 }
 0xcac   : > { %v8877_v27 = vmax.f32 %v8836_v26, 0.0  ;;  %v8796_v60 = vadd.f32 %v19219_v8, %v8748_v30 }
 0xcae   : > { %8918 = vst.msk [vmem:[%s19229_s26 + $0x138] sm:$0xff] %vm522_vm2, %v8877_v27  ;;  %v8837_v7 = vadd.f32 %v14291_v6, %v8796_v60 }
 0xcb0   : > { %v8878_v57 = vmax.f32 %v8837_v7, 0.0 }
 0xcb2   : > { %8919 = vst.msk [vmem:[%s19229_s26 + $0x140] sm:$0xf] %vm4721_vm9, %v8878_v57 }
 0xcb3 PF: > { %s18_s27 = sadd.s32 1, %s14298_s27  }
 0xcb4   : > { %p15_p4 = scmp.ge.s32.totalorder %s18_s27, 4  }
 0xcb6   :  { %17 = sbr.rel (!%p15_p4) target bundleno = 1 (0x1), region = 98 }

</bundles_post_ra>
